<compile_context>
chip_gen: v7x
topology: tpu7x:2x2x1
jax: 0.10.0
libtpu: 0.0.40
codegen_flags: <defaults>
</compile_context>

<pallas_src>
import functools
import math

import jax
import jax.numpy as jnp
import numpy as np
from jax.experimental import pallas as pl
from jax.experimental.pallas import tpu as pltpu

EPS = 1e-5          # BatchNorm2d eps
MAX_TM = 1024       # M-tile rows (multiple of 8 and 128); sweepable 512..2048
_MOSAIC = dict(vmem_limit_bytes=48 * 1024 * 1024)   # <= v7x 64 MiB/TC, plenty on v5e/v6e


def _pick_tm(M):
    """Full-M single block when it fits (always layout-legal), else a 1024-row tile."""
    return M if M <= MAX_TM else MAX_TM


# ----------------------------- Pallas kernels ------------------------------

def _matmul_bias_kernel(x_ref, w_ref, b_ref, o_ref, *, relu):
    """out = opt_relu(x @ w + bias) in one shot (full-K block, no accumulator)."""
    y = jnp.dot(x_ref[...], w_ref[...], preferred_element_type=jnp.float32) + b_ref[...]
    if relu:
        y = jnp.maximum(y, 0.0)
    o_ref[...] = y.astype(o_ref.dtype)


def fused_matmul(x, w, bias, *, relu, out_dtype):
    """x:(M,K) bf16, w:(K,N) bf16, bias:(N,) f32 -> (M,N) out_dtype."""
    M, K = x.shape
    Kw, N = w.shape
    assert K == Kw
    tm = _pick_tm(M)
    kern = functools.partial(_matmul_bias_kernel, relu=relu)
    return pl.pallas_call(
        kern,
        out_shape=jax.ShapeDtypeStruct((M, N), out_dtype),
        grid=(pl.cdiv(M, tm),),
        in_specs=[
            pl.BlockSpec((tm, K), lambda i: (i, 0)),
            pl.BlockSpec((K, N), lambda i: (0, 0)),      # constant -> weights DMA'd once
            pl.BlockSpec((1, N), lambda i: (0, 0)),
        ],
        out_specs=pl.BlockSpec((tm, N), lambda i: (i, 0)),
        compiler_params=pltpu.CompilerParams(
            dimension_semantics=("parallel",), **_MOSAIC),
    )(x, w, bias.reshape(1, N).astype(jnp.float32))


def _conv3_max_kernel(xa_ref, xb_ref, wa_ref, wb_ref, b_ref, o_ref, max_ref):
    """conv3 = relu(xa@wa + xb@wb + bias) (split-K over the high/low halves),
    fused with the running max over the L input tensors (innermost grid axis)."""
    l = pl.program_id(1)
    y = jnp.dot(xa_ref[...], wa_ref[...], preferred_element_type=jnp.float32)
    y = y + jnp.dot(xb_ref[...], wb_ref[...], preferred_element_type=jnp.float32)
    y = jnp.maximum(y + b_ref[...], 0.0)                 # folded BN bias + ReLU

    @pl.when(l == 0)
    def _():
        max_ref[...] = y

    @pl.when(l > 0)
    def _():
        max_ref[...] = jnp.maximum(max_ref[...], y)      # cross-tensor max (f32)

    @pl.when(l == pl.num_programs(1) - 1)
    def _():
        o_ref[...] = max_ref[...].astype(o_ref.dtype)


def conv3_max(xa, xb, wa, wb, bias, *, out_dtype):
    """xa/xb:(L, M, 576) bf16 patches (high/low halves); returns max_L relu(conv3)."""
    L, M, Ka = xa.shape
    Kb = xb.shape[2]
    N = wa.shape[1]
    tm = _pick_tm(M)
    return pl.pallas_call(
        _conv3_max_kernel,
        out_shape=jax.ShapeDtypeStruct((M, N), out_dtype),
        grid=(pl.cdiv(M, tm), L),                        # L (max-reduction) innermost
        in_specs=[
            pl.BlockSpec((None, tm, Ka), lambda m, l: (l, m, 0)),   # L dim squeezed
            pl.BlockSpec((None, tm, Kb), lambda m, l: (l, m, 0)),
            pl.BlockSpec((Ka, N), lambda m, l: (0, 0)),
            pl.BlockSpec((Kb, N), lambda m, l: (0, 0)),
            pl.BlockSpec((1, N), lambda m, l: (0, 0)),
        ],
        out_specs=pl.BlockSpec((tm, N), lambda m, l: (m, 0)),
        scratch_shapes=[pltpu.VMEM((tm, N), jnp.float32)],
        compiler_params=pltpu.CompilerParams(
            dimension_semantics=("parallel", "arbitrary"), **_MOSAIC),
    )(xa, xb, wa, wb, bias.reshape(1, N).astype(jnp.float32))


def _conv45_kernel(x_ref, w4_ref, b4_ref, w5t_ref, b5_ref, o_ref):
    """conv4 (bias+ReLU) -> dropout(identity at eval) -> conv5 (1x1, f32, bias).
    conv5 result is stored transposed (C5, tm) so the HBM store is lane-dense."""
    h = jnp.dot(x_ref[...], w4_ref[...], preferred_element_type=jnp.float32) + b4_ref[...]
    h = jnp.maximum(h, 0.0)
    # (3, 32) contracted against (tm, 32) on the last dims -> (3, tm), f32 throughout.
    y = jax.lax.dot_general(w5t_ref[...], h,
                            dimension_numbers=(((1,), (1,)), ((), ())),
                            preferred_element_type=jnp.float32)
    o_ref[...] = y + b5_ref[...]


def conv45_fused(x, w4, b4, w5, b5):
    """x:(M,576) bf16 conv4 patches -> (3, M) f32 (transposed; caller transposes back)."""
    M, K = x.shape
    C4 = w4.shape[1]
    C5 = w5.shape[1]
    tm = _pick_tm(M)
    return pl.pallas_call(
        _conv45_kernel,
        out_shape=jax.ShapeDtypeStruct((C5, M), jnp.float32),
        grid=(pl.cdiv(M, tm),),
        in_specs=[
            pl.BlockSpec((tm, K), lambda i: (i, 0)),
            pl.BlockSpec((K, C4), lambda i: (0, 0)),
            pl.BlockSpec((1, C4), lambda i: (0, 0)),
            pl.BlockSpec((C5, C4), lambda i: (0, 0)),
            pl.BlockSpec((C5, 1), lambda i: (0, 0)),
        ],
        out_specs=pl.BlockSpec((C5, tm), lambda i: (0, i)),
        compiler_params=pltpu.CompilerParams(
            dimension_semantics=("parallel",), **_MOSAIC),
    )(x, w4, b4.reshape(1, C4).astype(jnp.float32),
      jnp.transpose(w5).astype(jnp.float32), b5.reshape(C5, 1).astype(jnp.float32))


# ------------------------------- glue (JAX) --------------------------------

def im2col_batched(x, k, stride):
    """x:(B, Hp, Wp, C) -> patches (B, Ho*Wo, k*k*C), tap order (kh, kw, cin)."""
    B, Hp, Wp, C = x.shape
    Ho = (Hp - k) // stride + 1
    Wo = (Wp - k) // stride + 1
    taps = []
    for di in range(k):
        for dj in range(k):
            taps.append(jax.lax.slice(
                x,
                (0, di, dj, 0),
                (B, di + (Ho - 1) * stride + 1, dj + (Wo - 1) * stride + 1, C),
                (1, stride, stride, 1)))
    patches = jnp.stack(taps, axis=3)                    # (B, Ho, Wo, k*k, C)
    return patches.reshape(B, Ho * Wo, k * k * C), Ho, Wo


def _bilinear_params(out_size, in_size):
    """Static 2-tap gather indices/weights for bilinear upsample, align_corners=True."""
    if in_size == 1:
        idx0 = np.zeros((out_size,), np.int32)
        return jnp.asarray(idx0), jnp.asarray(idx0), jnp.zeros((out_size,), jnp.float32)
    i = np.arange(out_size, dtype=np.float64)
    src = i * (in_size - 1) / (out_size - 1) if out_size > 1 else np.zeros_like(i)
    idx0 = np.clip(np.floor(src).astype(np.int64), 0, in_size - 2)
    frac = (src - idx0).astype(np.float32)
    return (jnp.asarray(idx0.astype(np.int32)),
            jnp.asarray((idx0 + 1).astype(np.int32)),
            jnp.asarray(frac))


def bilinear_upsample(x, hi0, hi1, hf, wi0, wi1, wf):
    """(B,Hin,Win,C) bf16 -> (B,Hout,Wout,C) bf16: separable 2-tap lerp, bf16 buffers."""
    xh = (x[:, hi0].astype(jnp.float32) * (1.0 - hf)[None, :, None, None]
          + x[:, hi1].astype(jnp.float32) * hf[None, :, None, None]).astype(x.dtype)
    xw = (xh[:, :, wi0].astype(jnp.float32) * (1.0 - wf)[None, None, :, None]
          + xh[:, :, wi1].astype(jnp.float32) * wf[None, None, :, None])
    return xw.astype(x.dtype)


# ------------------------------- parameters --------------------------------

def init_params(key):
    keys = jax.random.split(key, 7)

    def conv_w(k, out_c, in_c, ksz):
        # matches m.weight.data.normal_(0, sqrt(2 / (k*k*out_c))); OIHW -> (k*k*in, out)
        n = ksz * ksz * out_c
        std = math.sqrt(2.0 / n)
        w = jax.random.normal(k, (out_c, in_c, ksz, ksz), jnp.float32) * std
        return jnp.transpose(w, (2, 3, 1, 0)).reshape(ksz * ksz * in_c, out_c)

    def bn_fold(c):
        # eval-mode BatchNorm with default stats: gamma=1, beta=0, mean=0, var=1
        gamma = jnp.ones((c,), jnp.float32)
        beta = jnp.zeros((c,), jnp.float32)
        mean = jnp.zeros((c,), jnp.float32)
        var = jnp.ones((c,), jnp.float32)
        scale = gamma / jnp.sqrt(var + EPS)
        bias = beta - mean * scale
        return scale, bias

    p = {}
    p['w1'] = conv_w(keys[0], 64, 3, 7).astype(jnp.bfloat16)        # resnet conv1, stride 1
    s2, b2 = bn_fold(64)                                            # BN folded into conv2
    p['w2'] = (conv_w(keys[1], 64, 64, 3) * s2[None, :]).astype(jnp.bfloat16)
    p['b2'] = b2
    p['w1_1'] = conv_w(keys[2], 64, 3, 7).astype(jnp.bfloat16)      # resnet_low conv1, stride 3
    s3, b3 = bn_fold(64)
    w3 = (conv_w(keys[3], 64, 128, 3) * s3[None, :]).reshape(9, 128, 64)
    p['w3a'] = w3[:, :64, :].reshape(576, 64).astype(jnp.bfloat16)  # fed by high path
    p['w3b'] = w3[:, 64:, :].reshape(576, 64).astype(jnp.bfloat16)  # fed by low path
    p['b3'] = b3
    s4, b4 = bn_fold(32)
    p['w4'] = (conv_w(keys[4], 32, 64, 3) * s4[None, :]).astype(jnp.bfloat16)
    p['b4'] = b4
    p['w5'] = conv_w(keys[5], 3, 32, 1)                             # 1x1, (32, 3), f32
    bound = 1.0 / math.sqrt(32.0)                                   # default Conv2d bias init
    p['b5'] = jax.random.uniform(keys[6], (3,), jnp.float32, -bound, bound)
    p['b0_64'] = jnp.zeros((64,), jnp.float32)                      # no-bias conv1 / conv1_1
    return p


# --------------------------------- forward ---------------------------------

@jax.jit
def lffcnn_forward(params, xs):
    """xs: (L, N, 3, H, W) — L input tensors of NCHW images; H, W multiples of 3."""
    L, N, C, H, W = xs.shape
    B = L * N
    imgs = jnp.transpose(xs, (0, 1, 3, 4, 2)).reshape(B, H, W, C).astype(jnp.bfloat16)

    # ---- high path: replicate pad 3 -> 7x7 stride-1 conv (no bias) -> ConvBlock(64,64)
    xp = jnp.pad(imgs, ((0, 0), (3, 3), (3, 3), (0, 0)), mode='edge')
    p, Ho, Wo = im2col_batched(xp, 7, 1)                             # (B, H*W, 147)
    h = fused_matmul(p.reshape(B * Ho * Wo, -1), params['w1'], params['b0_64'],
                     relu=False, out_dtype=jnp.bfloat16).reshape(B, Ho, Wo, 64)
    hp = jnp.pad(h, ((0, 0), (1, 1), (1, 1), (0, 0)), mode='edge')
    p, Ho, Wo = im2col_batched(hp, 3, 1)                             # (B, H*W, 576)
    h = fused_matmul(p.reshape(B * Ho * Wo, -1), params['w2'], params['b2'],
                     relu=True, out_dtype=jnp.bfloat16).reshape(B, Ho, Wo, 64)

    # ---- low path (bf16): replicate pad 2 -> 7x7 stride-3 conv -> bilinear x3
    xlp = jnp.pad(imgs, ((0, 0), (2, 2), (2, 2), (0, 0)), mode='edge')
    p, Hl, Wl = im2col_batched(xlp, 7, 3)                            # (B, Hl*Wl, 147)
    lo = fused_matmul(p.reshape(B * Hl * Wl, -1), params['w1_1'], params['b0_64'],
                      relu=False, out_dtype=jnp.bfloat16).reshape(B, Hl, Wl, 64)
    hi0, hi1, hf = _bilinear_params(3 * Hl, Hl)
    wi0, wi1, wf = _bilinear_params(3 * Wl, Wl)
    lo = bilinear_upsample(lo, hi0, hi1, hf, wi0, wi1, wf)           # (B, H, W, 64) bf16

    # ---- conv3 (ConvBlock 128->64) + cross-tensor max, split-K (no 128-ch concat)
    hpad = jnp.pad(h, ((0, 0), (1, 1), (1, 1), (0, 0)), mode='edge')
    lpad = jnp.pad(lo, ((0, 0), (1, 1), (1, 1), (0, 0)), mode='edge')
    pa, Ho, Wo = im2col_batched(hpad, 3, 1)                          # (B, H*W, 576)
    pb, _, _ = im2col_batched(lpad, 3, 1)                            # (B, H*W, 576)
    pa = pa.reshape(L, N * Ho * Wo, -1)
    pb = pb.reshape(L, N * Ho * Wo, -1)
    fused = conv3_max(pa, pb, params['w3a'], params['w3b'], params['b3'],
                      out_dtype=jnp.bfloat16).reshape(N, Ho, Wo, 64)

    # ---- conv4 (ConvBlock 64->32) -> dropout(identity) -> conv5 (1x1, f32 + bias), fused
    fp = jnp.pad(fused, ((0, 0), (1, 1), (1, 1), (0, 0)), mode='edge')
    p, Ho, Wo = im2col_batched(fp, 3, 1)                             # (N, H*W, 576)
    out_t = conv45_fused(p.reshape(N * Ho * Wo, -1), params['w4'], params['b4'],
                         params['w5'], params['b5'])                 # (3, N*H*W) f32
    return out_t.reshape(3, N, Ho, Wo).transpose(1, 0, 2, 3)         # (N, 3, H, W)


# ----------------------------------- main -----------------------------------

if __name__ == "__main__":
    key = jax.random.PRNGKey(0)
    kp, k1, k2 = jax.random.split(key, 3)
    params = init_params(kp)

    # H, W must be multiples of 3 so the x3-upsampled low path matches the high path.
    N, C, H, W = 2, 3, 12, 12
    x0 = jax.random.normal(k1, (N, C, H, W), jnp.float32)
    x1 = jax.random.normal(k2, (N, C, H, W), jnp.float32)
    xs = jnp.stack([x0, x1], axis=0)                                 # (L=2, N, 3, H, W)

    out = lffcnn_forward(params, xs)
    out = jax.block_until_ready(out)
    assert out.shape == (N, 3, H, W) and out.dtype == jnp.float32
    assert bool(jnp.all(jnp.isfinite(out)))
    print("KERNEL_OK")
</pallas_src>

<mosaic_0001>
module attributes {stable_mosaic.version = 11 : i64} {
  func.func @_matmul_bias_kernel(%arg0: i32, %arg1: memref<576x147xbf16, #tpu.memory_space<vmem>>, %arg2: memref<147x64xbf16, #tpu.memory_space<vmem>>, %arg3: memref<1x64xf32, #tpu.memory_space<vmem>>, %arg4: memref<576x64xbf16, #tpu.memory_space<vmem>>) attributes {dimension_semantics = [#tpu.dimension_semantics<parallel>], iteration_bounds = array<i64: 1>, scalar_prefetch = 0 : i64, scratch_operands = 0 : i64, tpu.core_type = #tpu.core_type<tc>, window_params = [{transform_indices = @transform_0, window_bounds = array<i64: 576, 147>}, {pipeline_mode = #tpu.pipeline_mode<synchronous>, transform_indices = @transform_1, window_bounds = array<i64: 147, 64>}, {pipeline_mode = #tpu.pipeline_mode<synchronous>, transform_indices = @transform_2, window_bounds = array<i64: 1, 64>}, {transform_indices = @transform_3, window_bounds = array<i64: 576, 64>}]} {
    %c0 = arith.constant 0 : index
    %c0_0 = arith.constant 0 : index
    %0 = vector.load %arg1[%c0, %c0_0] : memref<576x147xbf16, #tpu.memory_space<vmem>>, vector<576x147xbf16>
    %c0_1 = arith.constant 0 : index
    %c0_2 = arith.constant 0 : index
    %1 = vector.load %arg2[%c0_1, %c0_2] : memref<147x64xbf16, #tpu.memory_space<vmem>>, vector<147x64xbf16>
    %cst = arith.constant dense<0.000000e+00> : vector<576x64xf32>
    %2 = tpu.matmul %0, %1, %cst {dimension_numbers = #tpu.dot_dimension_numbers<[1], [0], [0], [1], [0, 0, 1, 1], [], []>} : vector<576x147xbf16>, vector<147x64xbf16>, vector<576x64xf32> -> vector<576x64xf32>
    %c0_3 = arith.constant 0 : index
    %c0_4 = arith.constant 0 : index
    %3 = vector.load %arg3[%c0_3, %c0_4] : memref<1x64xf32, #tpu.memory_space<vmem>>, vector<1x64xf32>
    %4 = vector.broadcast %3 : vector<1x64xf32> to vector<576x64xf32>
    %5 = arith.addf %2, %4 : vector<576x64xf32>
    %6 = arith.truncf %5 : vector<576x64xf32> to vector<576x64xbf16>
    %c0_5 = arith.constant 0 : index
    %c0_6 = arith.constant 0 : index
    %7 = vector.load %arg4[%c0_5, %c0_6] : memref<576x64xbf16, #tpu.memory_space<vmem>>, vector<576x64xbf16>
    tpu.vector_store %arg4[%c0_5, %c0_6], %6 {strides = array<i32>} : memref<576x64xbf16, #tpu.memory_space<vmem>>, vector<576x64xbf16>,
    return
  }
  func.func @transform_0(%arg0: i32) -> (i32, i32) {
    %c0_i32 = arith.constant 0 : i32
    %c0_i32_0 = arith.constant 0 : i32
    return %arg0, %c0_i32 : i32, i32
  }
  func.func @transform_1(%arg0: i32) -> (i32, i32) {
    %c0_i32 = arith.constant 0 : i32
    %c0_i32_0 = arith.constant 0 : i32
    %c0_i32_1 = arith.constant 0 : i32
    return %c0_i32, %c0_i32_0 : i32, i32
  }
  func.func @transform_2(%arg0: i32) -> (i32, i32) {
    %c0_i32 = arith.constant 0 : i32
    %c0_i32_0 = arith.constant 0 : i32
    %c0_i32_1 = arith.constant 0 : i32
    return %c0_i32, %c0_i32_0 : i32, i32
  }
  func.func @transform_3(%arg0: i32) -> (i32, i32) {
    %c0_i32 = arith.constant 0 : i32
    %c0_i32_0 = arith.constant 0 : i32
    return %arg0, %c0_i32 : i32, i32
  }
}

module attributes {stable_mosaic.version = 11 : i64} {
  func.func @_matmul_bias_kernel(%arg0: i32, %arg1: memref<576x576xbf16, #tpu.memory_space<vmem>>, %arg2: memref<576x64xbf16, #tpu.memory_space<vmem>>, %arg3: memref<1x64xf32, #tpu.memory_space<vmem>>, %arg4: memref<576x64xbf16, #tpu.memory_space<vmem>>) attributes {dimension_semantics = [#tpu.dimension_semantics<parallel>], iteration_bounds = array<i64: 1>, scalar_prefetch = 0 : i64, scratch_operands = 0 : i64, tpu.core_type = #tpu.core_type<tc>, window_params = [{transform_indices = @transform_0, window_bounds = array<i64: 576, 576>}, {pipeline_mode = #tpu.pipeline_mode<synchronous>, transform_indices = @transform_1, window_bounds = array<i64: 576, 64>}, {pipeline_mode = #tpu.pipeline_mode<synchronous>, transform_indices = @transform_2, window_bounds = array<i64: 1, 64>}, {transform_indices = @transform_3, window_bounds = array<i64: 576, 64>}]} {
    %c0 = arith.constant 0 : index
    %c0_0 = arith.constant 0 : index
    %0 = vector.load %arg1[%c0, %c0_0] : memref<576x576xbf16, #tpu.memory_space<vmem>>, vector<576x576xbf16>
    %c0_1 = arith.constant 0 : index
    %c0_2 = arith.constant 0 : index
    %1 = vector.load %arg2[%c0_1, %c0_2] : memref<576x64xbf16, #tpu.memory_space<vmem>>, vector<576x64xbf16>
    %cst = arith.constant dense<0.000000e+00> : vector<576x64xf32>
    %2 = tpu.matmul %0, %1, %cst {dimension_numbers = #tpu.dot_dimension_numbers<[1], [0], [0], [1], [0, 0, 1, 1], [], []>} : vector<576x576xbf16>, vector<576x64xbf16>, vector<576x64xf32> -> vector<576x64xf32>
    %c0_3 = arith.constant 0 : index
    %c0_4 = arith.constant 0 : index
    %3 = vector.load %arg3[%c0_3, %c0_4] : memref<1x64xf32, #tpu.memory_space<vmem>>, vector<1x64xf32>
    %4 = vector.broadcast %3 : vector<1x64xf32> to vector<576x64xf32>
    %5 = arith.addf %2, %4 : vector<576x64xf32>
    %cst_5 = arith.constant 0.000000e+00 : f32
    %6 = vector.broadcast %cst_5 : f32 to vector<576x64xf32>
    %7 = arith.maximumf %5, %6 : vector<576x64xf32>
    %8 = arith.truncf %7 : vector<576x64xf32> to vector<576x64xbf16>
    %c0_6 = arith.constant 0 : index
    %c0_7 = arith.constant 0 : index
    %9 = vector.load %arg4[%c0_6, %c0_7] : memref<576x64xbf16, #tpu.memory_space<vmem>>, vector<576x64xbf16>
    tpu.vector_store %arg4[%c0_6, %c0_7], %8 {strides = array<i32>} : memref<576x64xbf16, #tpu.memory_space<vmem>>, vector<576x64xbf16>,
    return
  }
  func.func @transform_0(%arg0: i32) -> (i32, i32) {
    %c0_i32 = arith.constant 0 : i32
    %c0_i32_0 = arith.constant 0 : i32
    return %arg0, %c0_i32 : i32, i32
  }
  func.func @transform_1(%arg0: i32) -> (i32, i32) {
    %c0_i32 = arith.constant 0 : i32
    %c0_i32_0 = arith.constant 0 : i32
    %c0_i32_1 = arith.constant 0 : i32
    return %c0_i32, %c0_i32_0 : i32, i32
  }
  func.func @transform_2(%arg0: i32) -> (i32, i32) {
    %c0_i32 = arith.constant 0 : i32
    %c0_i32_0 = arith.constant 0 : i32
    %c0_i32_1 = arith.constant 0 : i32
    return %c0_i32, %c0_i32_0 : i32, i32
  }
  func.func @transform_3(%arg0: i32) -> (i32, i32) {
    %c0_i32 = arith.constant 0 : i32
    %c0_i32_0 = arith.constant 0 : i32
    return %arg0, %c0_i32 : i32, i32
  }
}

module attributes {stable_mosaic.version = 11 : i64} {
  func.func @_matmul_bias_kernel(%arg0: i32, %arg1: memref<64x147xbf16, #tpu.memory_space<vmem>>, %arg2: memref<147x64xbf16, #tpu.memory_space<vmem>>, %arg3: memref<1x64xf32, #tpu.memory_space<vmem>>, %arg4: memref<64x64xbf16, #tpu.memory_space<vmem>>) attributes {dimension_semantics = [#tpu.dimension_semantics<parallel>], iteration_bounds = array<i64: 1>, scalar_prefetch = 0 : i64, scratch_operands = 0 : i64, tpu.core_type = #tpu.core_type<tc>, window_params = [{transform_indices = @transform_0, window_bounds = array<i64: 64, 147>}, {pipeline_mode = #tpu.pipeline_mode<synchronous>, transform_indices = @transform_1, window_bounds = array<i64: 147, 64>}, {pipeline_mode = #tpu.pipeline_mode<synchronous>, transform_indices = @transform_2, window_bounds = array<i64: 1, 64>}, {transform_indices = @transform_3, window_bounds = array<i64: 64, 64>}]} {
    %c0 = arith.constant 0 : index
    %c0_0 = arith.constant 0 : index
    %0 = vector.load %arg1[%c0, %c0_0] : memref<64x147xbf16, #tpu.memory_space<vmem>>, vector<64x147xbf16>
    %c0_1 = arith.constant 0 : index
    %c0_2 = arith.constant 0 : index
    %1 = vector.load %arg2[%c0_1, %c0_2] : memref<147x64xbf16, #tpu.memory_space<vmem>>, vector<147x64xbf16>
    %cst = arith.constant dense<0.000000e+00> : vector<64x64xf32>
    %2 = tpu.matmul %0, %1, %cst {dimension_numbers = #tpu.dot_dimension_numbers<[1], [0], [0], [1], [0, 0, 1, 1], [], []>} : vector<64x147xbf16>, vector<147x64xbf16>, vector<64x64xf32> -> vector<64x64xf32>
    %c0_3 = arith.constant 0 : index
    %c0_4 = arith.constant 0 : index
    %3 = vector.load %arg3[%c0_3, %c0_4] : memref<1x64xf32, #tpu.memory_space<vmem>>, vector<1x64xf32>
    %4 = vector.broadcast %3 : vector<1x64xf32> to vector<64x64xf32>
    %5 = arith.addf %2, %4 : vector<64x64xf32>
    %6 = arith.truncf %5 : vector<64x64xf32> to vector<64x64xbf16>
    %c0_5 = arith.constant 0 : index
    %c0_6 = arith.constant 0 : index
    %7 = vector.load %arg4[%c0_5, %c0_6] : memref<64x64xbf16, #tpu.memory_space<vmem>>, vector<64x64xbf16>
    tpu.vector_store %arg4[%c0_5, %c0_6], %6 {strides = array<i32>} : memref<64x64xbf16, #tpu.memory_space<vmem>>, vector<64x64xbf16>,
    return
  }
  func.func @transform_0(%arg0: i32) -> (i32, i32) {
    %c0_i32 = arith.constant 0 : i32
    %c0_i32_0 = arith.constant 0 : i32
    return %arg0, %c0_i32 : i32, i32
  }
  func.func @transform_1(%arg0: i32) -> (i32, i32) {
    %c0_i32 = arith.constant 0 : i32
    %c0_i32_0 = arith.constant 0 : i32
    %c0_i32_1 = arith.constant 0 : i32
    return %c0_i32, %c0_i32_0 : i32, i32
  }
  func.func @transform_2(%arg0: i32) -> (i32, i32) {
    %c0_i32 = arith.constant 0 : i32
    %c0_i32_0 = arith.constant 0 : i32
    %c0_i32_1 = arith.constant 0 : i32
    return %c0_i32, %c0_i32_0 : i32, i32
  }
  func.func @transform_3(%arg0: i32) -> (i32, i32) {
    %c0_i32 = arith.constant 0 : i32
    %c0_i32_0 = arith.constant 0 : i32
    return %arg0, %c0_i32 : i32, i32
  }
}

module attributes {stable_mosaic.version = 11 : i64} {
  func.func @_conv3_max_kernel(%arg0: i32, %arg1: i32, %arg2: memref<1x288x576xbf16, #tpu.memory_space<vmem>>, %arg3: memref<1x288x576xbf16, #tpu.memory_space<vmem>>, %arg4: memref<576x64xbf16, #tpu.memory_space<vmem>>, %arg5: memref<576x64xbf16, #tpu.memory_space<vmem>>, %arg6: memref<1x64xf32, #tpu.memory_space<vmem>>, %arg7: memref<288x64xbf16, #tpu.memory_space<vmem>>, %arg8: memref<288x64xf32, #tpu.memory_space<vmem>>) attributes {dimension_semantics = [#tpu.dimension_semantics<parallel>, #tpu.dimension_semantics<arbitrary>], iteration_bounds = array<i64: 1, 2>, scalar_prefetch = 0 : i64, scratch_operands = 1 : i64, tpu.core_type = #tpu.core_type<tc>, window_params = [{transform_indices = @transform_0, window_bounds = array<i64: 1, 288, 576>}, {transform_indices = @transform_1, window_bounds = array<i64: 1, 288, 576>}, {pipeline_mode = #tpu.pipeline_mode<synchronous>, transform_indices = @transform_2, window_bounds = array<i64: 576, 64>}, {pipeline_mode = #tpu.pipeline_mode<synchronous>, transform_indices = @transform_3, window_bounds = array<i64: 576, 64>}, {pipeline_mode = #tpu.pipeline_mode<synchronous>, transform_indices = @transform_4, window_bounds = array<i64: 1, 64>}, {transform_indices = @transform_5, window_bounds = array<i64: 288, 64>}]} {
    %c0 = arith.constant 0 : index
    %c0_0 = arith.constant 0 : index
    %c0_1 = arith.constant 0 : index
    %0 = vector.load %arg2[%c0, %c0_0, %c0_1] : memref<1x288x576xbf16, #tpu.memory_space<vmem>>, vector<1x288x576xbf16>
    %1 = vector.shape_cast %0 : vector<1x288x576xbf16> to vector<288x576xbf16>
    %c0_2 = arith.constant 0 : index
    %c0_3 = arith.constant 0 : index
    %2 = vector.load %arg4[%c0_2, %c0_3] : memref<576x64xbf16, #tpu.memory_space<vmem>>, vector<576x64xbf16>
    %cst = arith.constant dense<0.000000e+00> : vector<288x64xf32>
    %3 = tpu.matmul %1, %2, %cst {dimension_numbers = #tpu.dot_dimension_numbers<[1], [0], [0], [1], [0, 0, 1, 1], [], []>} : vector<288x576xbf16>, vector<576x64xbf16>, vector<288x64xf32> -> vector<288x64xf32>
    %c0_4 = arith.constant 0 : index
    %c0_5 = arith.constant 0 : index
    %c0_6 = arith.constant 0 : index
    %4 = vector.load %arg3[%c0_4, %c0_5, %c0_6] : memref<1x288x576xbf16, #tpu.memory_space<vmem>>, vector<1x288x576xbf16>
    %5 = vector.shape_cast %4 : vector<1x288x576xbf16> to vector<288x576xbf16>
    %c0_7 = arith.constant 0 : index
    %c0_8 = arith.constant 0 : index
    %6 = vector.load %arg5[%c0_7, %c0_8] : memref<576x64xbf16, #tpu.memory_space<vmem>>, vector<576x64xbf16>
    %cst_9 = arith.constant dense<0.000000e+00> : vector<288x64xf32>
    %7 = tpu.matmul %5, %6, %cst_9 {dimension_numbers = #tpu.dot_dimension_numbers<[1], [0], [0], [1], [0, 0, 1, 1], [], []>} : vector<288x576xbf16>, vector<576x64xbf16>, vector<288x64xf32> -> vector<288x64xf32>
    %8 = arith.addf %3, %7 : vector<288x64xf32>
    %c0_10 = arith.constant 0 : index
    %c0_11 = arith.constant 0 : index
    %9 = vector.load %arg6[%c0_10, %c0_11] : memref<1x64xf32, #tpu.memory_space<vmem>>, vector<1x64xf32>
    %10 = vector.broadcast %9 : vector<1x64xf32> to vector<288x64xf32>
    %11 = arith.addf %8, %10 : vector<288x64xf32>
    %cst_12 = arith.constant 0.000000e+00 : f32
    %12 = vector.broadcast %cst_12 : f32 to vector<288x64xf32>
    %13 = arith.maximumf %11, %12 : vector<288x64xf32>
    %c0_i32 = arith.constant 0 : i32
    %14 = arith.cmpi eq, %arg1, %c0_i32 : i32
    %15 = arith.extui %14 : i1 to i32
    %c0_i32_13 = arith.constant 0 : i32
    %16 = arith.cmpi ne, %15, %c0_i32_13 : i32
    scf.if %16 {
      %c0_17 = arith.constant 0 : index
      %c0_18 = arith.constant 0 : index
      %23 = vector.load %arg8[%c0_17, %c0_18] : memref<288x64xf32, #tpu.memory_space<vmem>>, vector<288x64xf32>
      tpu.vector_store %arg8[%c0_17, %c0_18], %13 {strides = array<i32>} : memref<288x64xf32, #tpu.memory_space<vmem>>, vector<288x64xf32>,
    } else {
    }
    %c0_i32_14 = arith.constant 0 : i32
    %17 = arith.cmpi sgt, %arg1, %c0_i32_14 : i32
    %18 = arith.extui %17 : i1 to i32
    %c0_i32_15 = arith.constant 0 : i32
    %19 = arith.cmpi ne, %18, %c0_i32_15 : i32
    scf.if %19 {
      %c0_17 = arith.constant 0 : index
      %c0_18 = arith.constant 0 : index
      %23 = vector.load %arg8[%c0_17, %c0_18] : memref<288x64xf32, #tpu.memory_space<vmem>>, vector<288x64xf32>
      %24 = arith.maximumf %23, %13 : vector<288x64xf32>
      %c0_19 = arith.constant 0 : index
      %c0_20 = arith.constant 0 : index
      %25 = vector.load %arg8[%c0_19, %c0_20] : memref<288x64xf32, #tpu.memory_space<vmem>>, vector<288x64xf32>
      tpu.vector_store %arg8[%c0_19, %c0_20], %24 {strides = array<i32>} : memref<288x64xf32, #tpu.memory_space<vmem>>, vector<288x64xf32>,
    } else {
    }
    %c1_i32 = arith.constant 1 : i32
    %20 = arith.cmpi eq, %arg1, %c1_i32 : i32
    %21 = arith.extui %20 : i1 to i32
    %c0_i32_16 = arith.constant 0 : i32
    %22 = arith.cmpi ne, %21, %c0_i32_16 : i32
    scf.if %22 {
      %c0_17 = arith.constant 0 : index
      %c0_18 = arith.constant 0 : index
      %23 = vector.load %arg8[%c0_17, %c0_18] : memref<288x64xf32, #tpu.memory_space<vmem>>, vector<288x64xf32>
      %24 = arith.truncf %23 : vector<288x64xf32> to vector<288x64xbf16>
      %c0_19 = arith.constant 0 : index
      %c0_20 = arith.constant 0 : index
      %25 = vector.load %arg7[%c0_19, %c0_20] : memref<288x64xbf16, #tpu.memory_space<vmem>>, vector<288x64xbf16>
      tpu.vector_store %arg7[%c0_19, %c0_20], %24 {strides = array<i32>} : memref<288x64xbf16, #tpu.memory_space<vmem>>, vector<288x64xbf16>,
    } else {
    }
    return
  }
  func.func @transform_0(%arg0: i32, %arg1: i32) -> (i32, i32, i32) {
    %c0_i32 = arith.constant 0 : i32
    %c0_i32_0 = arith.constant 0 : i32
    return %arg1, %arg0, %c0_i32 : i32, i32, i32
  }
  func.func @transform_1(%arg0: i32, %arg1: i32) -> (i32, i32, i32) {
    %c0_i32 = arith.constant 0 : i32
    %c0_i32_0 = arith.constant 0 : i32
    return %arg1, %arg0, %c0_i32 : i32, i32, i32
  }
  func.func @transform_2(%arg0: i32, %arg1: i32) -> (i32, i32) {
    %c0_i32 = arith.constant 0 : i32
    %c0_i32_0 = arith.constant 0 : i32
    %c0_i32_1 = arith.constant 0 : i32
    return %c0_i32, %c0_i32_0 : i32, i32
  }
  func.func @transform_3(%arg0: i32, %arg1: i32) -> (i32, i32) {
    %c0_i32 = arith.constant 0 : i32
    %c0_i32_0 = arith.constant 0 : i32
    %c0_i32_1 = arith.constant 0 : i32
    return %c0_i32, %c0_i32_0 : i32, i32
  }
  func.func @transform_4(%arg0: i32, %arg1: i32) -> (i32, i32) {
    %c0_i32 = arith.constant 0 : i32
    %c0_i32_0 = arith.constant 0 : i32
    %c0_i32_1 = arith.constant 0 : i32
    return %c0_i32, %c0_i32_0 : i32, i32
  }
  func.func @transform_5(%arg0: i32, %arg1: i32) -> (i32, i32) {
    %c0_i32 = arith.constant 0 : i32
    %c0_i32_0 = arith.constant 0 : i32
    return %arg0, %c0_i32 : i32, i32
  }
}

module attributes {stable_mosaic.version = 11 : i64} {
  func.func @_conv45_kernel(%arg0: i32, %arg1: memref<288x576xbf16, #tpu.memory_space<vmem>>, %arg2: memref<576x32xbf16, #tpu.memory_space<vmem>>, %arg3: memref<1x32xf32, #tpu.memory_space<vmem>>, %arg4: memref<3x32xf32, #tpu.memory_space<vmem>>, %arg5: memref<3x1xf32, #tpu.memory_space<vmem>>, %arg6: memref<3x288xf32, #tpu.memory_space<vmem>>) attributes {dimension_semantics = [#tpu.dimension_semantics<parallel>], iteration_bounds = array<i64: 1>, scalar_prefetch = 0 : i64, scratch_operands = 0 : i64, tpu.core_type = #tpu.core_type<tc>, window_params = [{transform_indices = @transform_0, window_bounds = array<i64: 288, 576>}, {pipeline_mode = #tpu.pipeline_mode<synchronous>, transform_indices = @transform_1, window_bounds = array<i64: 576, 32>}, {pipeline_mode = #tpu.pipeline_mode<synchronous>, transform_indices = @transform_2, window_bounds = array<i64: 1, 32>}, {pipeline_mode = #tpu.pipeline_mode<synchronous>, transform_indices = @transform_3, window_bounds = array<i64: 3, 32>}, {pipeline_mode = #tpu.pipeline_mode<synchronous>, transform_indices = @transform_4, window_bounds = array<i64: 3, 1>}, {transform_indices = @transform_5, window_bounds = array<i64: 3, 288>}]} {
    %c0 = arith.constant 0 : index
    %c0_0 = arith.constant 0 : index
    %0 = vector.load %arg1[%c0, %c0_0] : memref<288x576xbf16, #tpu.memory_space<vmem>>, vector<288x576xbf16>
    %c0_1 = arith.constant 0 : index
    %c0_2 = arith.constant 0 : index
    %1 = vector.load %arg2[%c0_1, %c0_2] : memref<576x32xbf16, #tpu.memory_space<vmem>>, vector<576x32xbf16>
    %cst = arith.constant dense<0.000000e+00> : vector<288x32xf32>
    %2 = tpu.matmul %0, %1, %cst {dimension_numbers = #tpu.dot_dimension_numbers<[1], [0], [0], [1], [0, 0, 1, 1], [], []>} : vector<288x576xbf16>, vector<576x32xbf16>, vector<288x32xf32> -> vector<288x32xf32>
    %c0_3 = arith.constant 0 : index
    %c0_4 = arith.constant 0 : index
    %3 = vector.load %arg3[%c0_3, %c0_4] : memref<1x32xf32, #tpu.memory_space<vmem>>, vector<1x32xf32>
    %4 = vector.broadcast %3 : vector<1x32xf32> to vector<288x32xf32>
    %5 = arith.addf %2, %4 : vector<288x32xf32>
    %cst_5 = arith.constant 0.000000e+00 : f32
    %6 = vector.broadcast %cst_5 : f32 to vector<288x32xf32>
    %7 = arith.maximumf %5, %6 : vector<288x32xf32>
    %c0_6 = arith.constant 0 : index
    %c0_7 = arith.constant 0 : index
    %8 = vector.load %arg4[%c0_6, %c0_7] : memref<3x32xf32, #tpu.memory_space<vmem>>, vector<3x32xf32>
    %cst_8 = arith.constant dense<0.000000e+00> : vector<3x288xf32>
    %9 = tpu.matmul %8, %7, %cst_8 {dimension_numbers = #tpu.dot_dimension_numbers<[1], [1], [0], [0], [0, 0, 1, 0], [], []>} : vector<3x32xf32>, vector<288x32xf32>, vector<3x288xf32> -> vector<3x288xf32>
    %c0_9 = arith.constant 0 : index
    %c0_10 = arith.constant 0 : index
    %10 = vector.load %arg5[%c0_9, %c0_10] : memref<3x1xf32, #tpu.memory_space<vmem>>, vector<3x1xf32>
    %11 = vector.broadcast %10 : vector<3x1xf32> to vector<3x288xf32>
    %12 = arith.addf %9, %11 : vector<3x288xf32>
    %c0_11 = arith.constant 0 : index
    %c0_12 = arith.constant 0 : index
    %13 = vector.load %arg6[%c0_11, %c0_12] : memref<3x288xf32, #tpu.memory_space<vmem>>, vector<3x288xf32>
    tpu.vector_store %arg6[%c0_11, %c0_12], %12 {strides = array<i32>} : memref<3x288xf32, #tpu.memory_space<vmem>>, vector<3x288xf32>,
    return
  }
  func.func @transform_0(%arg0: i32) -> (i32, i32) {
    %c0_i32 = arith.constant 0 : i32
    %c0_i32_0 = arith.constant 0 : i32
    return %arg0, %c0_i32 : i32, i32
  }
  func.func @transform_1(%arg0: i32) -> (i32, i32) {
    %c0_i32 = arith.constant 0 : i32
    %c0_i32_0 = arith.constant 0 : i32
    %c0_i32_1 = arith.constant 0 : i32
    return %c0_i32, %c0_i32_0 : i32, i32
  }
  func.func @transform_2(%arg0: i32) -> (i32, i32) {
    %c0_i32 = arith.constant 0 : i32
    %c0_i32_0 = arith.constant 0 : i32
    %c0_i32_1 = arith.constant 0 : i32
    return %c0_i32, %c0_i32_0 : i32, i32
  }
  func.func @transform_3(%arg0: i32) -> (i32, i32) {
    %c0_i32 = arith.constant 0 : i32
    %c0_i32_0 = arith.constant 0 : i32
    %c0_i32_1 = arith.constant 0 : i32
    return %c0_i32, %c0_i32_0 : i32, i32
  }
  func.func @transform_4(%arg0: i32) -> (i32, i32) {
    %c0_i32 = arith.constant 0 : i32
    %c0_i32_0 = arith.constant 0 : i32
    %c0_i32_1 = arith.constant 0 : i32
    return %c0_i32, %c0_i32_0 : i32, i32
  }
  func.func @transform_5(%arg0: i32) -> (i32, i32) {
    %c0_i32 = arith.constant 0 : i32
    %c0_i32_0 = arith.constant 0 : i32
    return %c0_i32, %arg0 : i32, i32
  }
}

</mosaic_0001>

<bundles_post_ra>
// kernel: lffcnn_forward.5
= control target key start
LH: loop header
LB: loop body
LE: loop exit
PB: predicated region body
PF: predicated region fallthrough
CT: control target
= control target key end

     0   :  { %v1699_v0 = vmov 0   ;;  %vm494_vm0 = vcmask 154624   ;;  %vm603_vm1 = vcmask 1040384   ;;  %vm604_vm2 = vcmask 1041408   ;;  %s2368_s1 = inlined_call_operand.vmem [shape: bf16[147,64], index: 1, kind: input, shape index: {}]   ;;  %s2369_s0 = inlined_call_operand.vmem [shape: bf16[576,147], index: 0, kind: input, shape index: {}]   ;;  %s2370_s2 = inlined_call_operand.vmem [shape: f32[1,64], index: 2, kind: input, shape index: {}]   ;;  %s2371_s3 = inlined_call_operand.vmem [shape: bf16[576,64], index: 3, kind: output, shape index: {}]  }
   0x1   :  { %610 = vmatprep.subr.bf16.mxu0 %v1699_v0  ;;  %1559 = vmatprep.subr.bf16.mxu1 %v1699_v0  ;;  %v1581_v1 = vld [vmem:[%s2368_s1] sm:$0xff]   ;;  %v1582_v2 = vld [vmem:[%s2368_s1 + $0x8] sm:$0xff]   ;;  %v1583_v3 = vld [vmem:[%s2368_s1 + $0x10] sm:$0xff]   ;;  %v1700_v11 = vmov 65535   ;;  %vm1219_vm3 = vcmask 519168  }
   0x2   :  { %611 = vmatpush1.bf16.msra.mxu0 %v1581_v1  ;;  %1569 = vmatpush1.bf16.msra.mxu1 %v1581_v1  ;;  %v1584_v4 = vld [vmem:[%s2368_s1 + $0x18] sm:$0xff]   ;;  %v1593_v5 = vld [vmem:[%s2369_s0 + $0x4] ss:$8 sps:$4 sm:$0xff]   ;;  %v1587_v9 = vld [vmem:[%s2368_s1 + $0x30] sm:$0xff]   ;;  %v605_v12 = vsel %vm603_vm1, 4294967295, %v1700_v11 }
   0x3   :  { %612 = vmatprep.subr.bf16.mxu0 %v1699_v0  ;;  %1560 = vmatprep.subr.bf16.mxu1 %v1699_v0  ;;  %v1596_v6 = vld [vmem:[%s2369_s0 + $0x124] ss:$8 sps:$4 sm:$0xff]   ;;  %v1588_v10 = vld [vmem:[%s2368_s1 + $0x38] sm:$0xff]   ;;  %v1590_v14 = vld [vmem:[%s2368_s1 + $0x48] ss:$0 sps:$4 sm:$0x33]  }
   0x4   :  { %1379 = vmatprep.mubr.msk.bf16.mxu0 %vm494_vm0, %v1593_v5  ;;  %v1585_v7 = vld [vmem:[%s2368_s1 + $0x20] sm:$0xff]   ;;  %1397 = vmatprep.mubr.msk.bf16.mxu1 %vm494_vm0, %v1596_v6  ;;  %v1586_v8 = vld [vmem:[%s2368_s1 + $0x28] sm:$0xff]   ;;  %v606_v15 = vsel %vm604_vm2, %v605_v12, 0  ;;  %v1597_v19 = vld [vmem:[%s2369_s0 + $0x14] ss:$8 sps:$4 sm:$0xff]  }
   0x5   :  { %v1589_v13 = vld [vmem:[%s2368_s1 + $0x40] sm:$0xff]   ;;  %v608_v16 = vand.u32 %v1590_v14, %v606_v15  ;;  %v1599_v20 = vld [vmem:[%s2369_s0 + $0x134] ss:$8 sps:$4 sm:$0xff]   ;;  %v1601_v21 = vld [vmem:[%s2369_s0 + $0x10] ss:$8 sps:$4 sm:$0xff]  }
   0x6   :  { %613 = vmatpush1.bf16.msra.mxu0 %v1582_v2  ;;  %1570 = vmatpush1.bf16.msra.mxu1 %v1582_v2  ;;  %v1591_v17 = vld [vmem:[%s2369_s0] ss:$8 sps:$4 sm:$0xff]   ;;  %v1602_v22 = vld [vmem:[%s2369_s0 + $0x130] ss:$8 sps:$4 sm:$0xff]   ;;  %v1603_v23 = vld [vmem:[%s2369_s0 + $0x24] ss:$8 sps:$4 sm:$0xff]  }
   0x7   :  { %614 = vmatprep.subr.bf16.mxu0 %v1699_v0  ;;  %1561 = vmatprep.subr.bf16.mxu1 %v1699_v0  ;;  %v1594_v18 = vld [vmem:[%s2369_s0 + $0x120] ss:$8 sps:$4 sm:$0xff]   ;;  %v1605_v24 = vld [vmem:[%s2369_s0 + $0x144] ss:$8 sps:$4 sm:$0xff]   ;;  %v1609_v27 = vld [vmem:[%s2369_s0 + $0x34] ss:$8 sps:$4 sm:$0xff]  }
   0x8   :  { %v1607_v25 = vld [vmem:[%s2369_s0 + $0x20] ss:$8 sps:$4 sm:$0xff]   ;;  %v1611_v28 = vld [vmem:[%s2369_s0 + $0x154] ss:$8 sps:$4 sm:$0xff]   ;;  %v1613_v29 = vld [vmem:[%s2369_s0 + $0x30] ss:$8 sps:$4 sm:$0xff]  }
   0x9   :  { %v1608_v26 = vld [vmem:[%s2369_s0 + $0x140] ss:$8 sps:$4 sm:$0xff]   ;;  %v1614_v30 = vld [vmem:[%s2369_s0 + $0x150] ss:$8 sps:$4 sm:$0xff]   ;;  %v1615_v31 = vld [vmem:[%s2369_s0 + $0x44] ss:$8 sps:$4 sm:$0xff]  }
   0xa   :  { %615 = vmatpush1.bf16.msra.mxu0 %v1583_v3  ;;  %1571 = vmatpush1.bf16.msra.mxu1 %v1583_v3  ;;  %v1617_v32 = vld [vmem:[%s2369_s0 + $0x164] ss:$8 sps:$4 sm:$0xff]   ;;  %v1619_v33 = vld [vmem:[%s2369_s0 + $0x40] ss:$8 sps:$4 sm:$0xff]   ;;  %v1621_v35 = vld [vmem:[%s2369_s0 + $0x54] ss:$8 sps:$4 sm:$0xff]  }
   0xb   :  { %616 = vmatprep.subr.bf16.mxu0 %v1699_v0  ;;  %1562 = vmatprep.subr.bf16.mxu1 %v1699_v0  ;;  %v1620_v34 = vld [vmem:[%s2369_s0 + $0x160] ss:$8 sps:$4 sm:$0xff]   ;;  %v1623_v36 = vld [vmem:[%s2369_s0 + $0x174] ss:$8 sps:$4 sm:$0xff]   ;;  %v1625_v37 = vld [vmem:[%s2369_s0 + $0x50] ss:$8 sps:$4 sm:$0xff]  }
   0xc   :  { %v1626_v38 = vld [vmem:[%s2369_s0 + $0x170] ss:$8 sps:$4 sm:$0xff]   ;;  %v1627_v39 = vld [vmem:[%s2369_s0 + $0x64] ss:$8 sps:$4 sm:$0xff]   ;;  %v1631_v41 = vld [vmem:[%s2369_s0 + $0x60] ss:$8 sps:$4 sm:$0xff]  }
   0xd   :  { %v1629_v40 = vld [vmem:[%s2369_s0 + $0x184] ss:$8 sps:$4 sm:$0xff]   ;;  %v1632_v42 = vld [vmem:[%s2369_s0 + $0x180] ss:$8 sps:$4 sm:$0xff]   ;;  %v1633_v43 = vld [vmem:[%s2369_s0 + $0x74] ss:$8 sps:$4 sm:$0xff]  }
   0xe   :  { %617 = vmatpush1.bf16.msra.mxu0 %v1584_v4  ;;  %1572 = vmatpush1.bf16.msra.mxu1 %v1584_v4  ;;  %v1635_v44 = vld [vmem:[%s2369_s0 + $0x194] ss:$8 sps:$4 sm:$0xff]   ;;  %v1637_v45 = vld [vmem:[%s2369_s0 + $0x70] ss:$8 sps:$4 sm:$0xff]   ;;  %v1639_v47 = vld [vmem:[%s2369_s0 + $0x84] ss:$8 sps:$4 sm:$0xff]  }
   0xf   :  { %618 = vmatprep.subr.bf16.mxu0 %v1699_v0  ;;  %1563 = vmatprep.subr.bf16.mxu1 %v1699_v0  ;;  %v1638_v46 = vld [vmem:[%s2369_s0 + $0x190] ss:$8 sps:$4 sm:$0xff]   ;;  %v1641_v48 = vld [vmem:[%s2369_s0 + $0x1a4] ss:$8 sps:$4 sm:$0xff]   ;;  %v1643_v49 = vld [vmem:[%s2369_s0 + $0x80] ss:$8 sps:$4 sm:$0xff]  }
  0x10   :  { %v1644_v50 = vld [vmem:[%s2369_s0 + $0x1a0] ss:$8 sps:$4 sm:$0xff]   ;;  %v1645_v51 = vld [vmem:[%s2369_s0 + $0x94] ss:$8 sps:$4 sm:$0xff]   ;;  %v1649_v53 = vld [vmem:[%s2369_s0 + $0x90] ss:$8 sps:$4 sm:$0xff]  }
  0x11   :  { %v1647_v52 = vld [vmem:[%s2369_s0 + $0x1b4] ss:$8 sps:$4 sm:$0xff]   ;;  %v1650_v54 = vld [vmem:[%s2369_s0 + $0x1b0] ss:$8 sps:$4 sm:$0xff]   ;;  %v1651_v55 = vld [vmem:[%s2369_s0 + $0xa4] ss:$8 sps:$4 sm:$0xff]  }
  0x12   :  { %619 = vmatpush1.bf16.msra.mxu0 %v1585_v7  ;;  %1573 = vmatpush1.bf16.msra.mxu1 %v1585_v7  ;;  %v1653_v56 = vld [vmem:[%s2369_s0 + $0x1c4] ss:$8 sps:$4 sm:$0xff]   ;;  %v1655_v57 = vld [vmem:[%s2369_s0 + $0xa0] ss:$8 sps:$4 sm:$0xff]   ;;  %v1657_v59 = vld [vmem:[%s2369_s0 + $0xb4] ss:$8 sps:$4 sm:$0xff]  }
  0x13   :  { %620 = vmatprep.subr.bf16.mxu0 %v1699_v0  ;;  %1564 = vmatprep.subr.bf16.mxu1 %v1699_v0  ;;  %v1656_v58 = vld [vmem:[%s2369_s0 + $0x1c0] ss:$8 sps:$4 sm:$0xff]   ;;  %v1659_v60 = vld [vmem:[%s2369_s0 + $0x1d4] ss:$8 sps:$4 sm:$0xff]   ;;  %v1661_v61 = vld [vmem:[%s2369_s0 + $0xb0] ss:$8 sps:$4 sm:$0xff]  }
  0x14   :  { %v1662_v62 = vld [vmem:[%s2369_s0 + $0x1d0] ss:$8 sps:$4 sm:$0xff]   ;;  %v1663_v63 = vld [vmem:[%s2369_s0 + $0xc4] ss:$8 sps:$4 sm:$0xff]   ;;  %v1667_v1 = vld [vmem:[%s2369_s0 + $0xc0] ss:$8 sps:$4 sm:$0xff]  }
  0x15   :  { %v1668_v2 = vld [vmem:[%s2369_s0 + $0x1e0] ss:$8 sps:$4 sm:$0xff]   ;;  %v1669_v3 = vld [vmem:[%s2369_s0 + $0xd4] ss:$8 sps:$4 sm:$0xff]   ;;  %v1673_v5 = vld [vmem:[%s2369_s0 + $0xd0] ss:$8 sps:$4 sm:$0xff]  }
  0x16   :  { %621 = vmatpush1.bf16.msra.mxu0 %v1586_v8  ;;  %1574 = vmatpush1.bf16.msra.mxu1 %v1586_v8  ;;  %v1671_v4 = vld [vmem:[%s2369_s0 + $0x1f4] ss:$8 sps:$4 sm:$0xff]   ;;  %v1674_v6 = vld [vmem:[%s2369_s0 + $0x1f0] ss:$8 sps:$4 sm:$0xff]   ;;  %v1675_v7 = vld [vmem:[%s2369_s0 + $0xe4] ss:$8 sps:$4 sm:$0xff]  }
  0x17   :  { %622 = vmatprep.subr.bf16.mxu0 %v1699_v0  ;;  %1565 = vmatprep.subr.bf16.mxu1 %v1699_v0  ;;  %v1677_v8 = vld [vmem:[%s2369_s0 + $0x204] ss:$8 sps:$4 sm:$0xff]   ;;  %v1681_v11 = vld [vmem:[%s2369_s0 + $0xf4] ss:$8 sps:$4 sm:$0xff]   ;;  %v1686_v14 = vld [vmem:[%s2369_s0 + $0x210] ss:$8 sps:$4 sm:$0xff]  }
  0x18   :  { %v1683_v12 = vld [vmem:[%s2369_s0 + $0x214] ss:$8 sps:$4 sm:$0xff]   ;;  %v1687_v15 = vld [vmem:[%s2369_s0 + $0x104] ss:$8 sps:$4 sm:$0xff]  }
  0x1a   :  { %623 = vmatpush1.bf16.msra.mxu0 %v1587_v9  ;;  %1575 = vmatpush1.bf16.msra.mxu1 %v1587_v9  ;;  %v1679_v9 = vld [vmem:[%s2369_s0 + $0xe0] ss:$8 sps:$4 sm:$0xff]  }
  0x1b   :  { %624 = vmatprep.subr.bf16.mxu0 %v1699_v0  ;;  %1566 = vmatprep.subr.bf16.mxu1 %v1699_v0 }
  0x1e   :  { %625 = vmatpush1.bf16.msra.mxu0 %v1588_v10  ;;  %1576 = vmatpush1.bf16.msra.mxu1 %v1588_v10  ;;  %v1680_v10 = vld [vmem:[%s2369_s0 + $0x200] ss:$8 sps:$4 sm:$0xff]  }
  0x1f   :  { %626 = vmatprep.subr.bf16.mxu0 %v1699_v0  ;;  %1567 = vmatprep.subr.bf16.mxu1 %v1699_v0 }
  0x22   :  { %627 = vmatpush1.bf16.msra.mxu0 %v1589_v13  ;;  %1577 = vmatpush1.bf16.msra.mxu1 %v1589_v13  ;;  %v1685_v13 = vld [vmem:[%s2369_s0 + $0xf0] ss:$8 sps:$4 sm:$0xff]  }
  0x23   :  { %628 = vmatprep.subr.bf16.mxu0 %v1699_v0  ;;  %1568 = vmatprep.subr.bf16.mxu1 %v1699_v0  ;;  %v1665_v0 = vld [vmem:[%s2369_s0 + $0x1e4] ss:$8 sps:$4 sm:$0xff]  }
  0x26   :  { %629 = vmatpush1.bf16.msra.mxu0 %v608_v16  ;;  %1578 = vmatpush1.bf16.msra.mxu1 %v608_v16  ;;  %v1689_v16 = vld [vmem:[%s2369_s0 + $0x224] ss:$8 sps:$4 sm:$0xff]  }
  0x29   :  { %643 = vmatmul.mubr.bf16.vlgmr.msra.gmra.mrb[0].mxu0 %v1591_v17  ;;  %787 = vmatmul.mubr.bf16.vlgmr.msra.gmra.mrb[0].mxu1 %v1594_v18  ;;  %v1691_v17 = vld [vmem:[%s2369_s0 + $0x100] ss:$8 sps:$4 sm:$0xff]  }
  0x2a   :  { %1380 = vmatprep.mubr.msk.bf16.mxu0 %vm494_vm0, %v1597_v19  ;;  %1398 = vmatprep.mubr.msk.bf16.mxu1 %vm494_vm0, %v1599_v20  ;;  %v1692_v18 = vld [vmem:[%s2369_s0 + $0x220] ss:$8 sps:$4 sm:$0xff]   ;;  %v1693_v19 = vld [vmem:[%s2369_s0 + $0x114] ss:$8 sps:$4 sm:$0xff]  }
  0x2b   :  { %v1695_v20 = vld [vmem:[%s2369_s0 + $0x234] ss:$8 sps:$4 sm:$0xff]  }
  0x31   :  { %651 = vmatmul.mubr.bf16.gmra.mrb[4].mxu0 %v1601_v21  ;;  %795 = vmatmul.mubr.bf16.gmra.mrb[4].mxu1 %v1602_v22  ;;  %v1697_v21 = vld [vmem:[%s2369_s0 + $0x110] ss:$8 sps:$4 sm:$0xff]  }
  0x32   :  { %1381 = vmatprep.mubr.msk.bf16.mxu0 %vm494_vm0, %v1603_v23  ;;  %1399 = vmatprep.mubr.msk.bf16.mxu1 %vm494_vm0, %v1605_v24  ;;  %v1698_v22 = vld [vmem:[%s2369_s0 + $0x230] ss:$8 sps:$4 sm:$0xff]   ;;  %v2006_v23 = vld [vmem:[%s2370_s2] ss:$0 sm:$0xff] }
  0x39   :  { %659 = vmatmul.mubr.bf16.gmra.mrb[8].mxu0 %v1607_v25  ;;  %803 = vmatmul.mubr.bf16.gmra.mrb[8].mxu1 %v1608_v26 }
  0x3a   :  { %1382 = vmatprep.mubr.msk.bf16.mxu0 %vm494_vm0, %v1609_v27  ;;  %1400 = vmatprep.mubr.msk.bf16.mxu1 %vm494_vm0, %v1611_v28 }
  0x41   :  { %667 = vmatmul.mubr.bf16.gmra.mrb[12].mxu0 %v1613_v29  ;;  %811 = vmatmul.mubr.bf16.gmra.mrb[12].mxu1 %v1614_v30 }
  0x42   :  { %1383 = vmatprep.mubr.msk.bf16.mxu0 %vm494_vm0, %v1615_v31  ;;  %1401 = vmatprep.mubr.msk.bf16.mxu1 %vm494_vm0, %v1617_v32 }
  0x49   :  { %675 = vmatmul.mubr.bf16.gmra.mrb[16].mxu0 %v1619_v33  ;;  %819 = vmatmul.mubr.bf16.gmra.mrb[16].mxu1 %v1620_v34 }
  0x4a   :  { %1384 = vmatprep.mubr.msk.bf16.mxu0 %vm494_vm0, %v1621_v35  ;;  %1402 = vmatprep.mubr.msk.bf16.mxu1 %vm494_vm0, %v1623_v36 }
  0x51   :  { %683 = vmatmul.mubr.bf16.gmra.mrb[20].mxu0 %v1625_v37  ;;  %827 = vmatmul.mubr.bf16.gmra.mrb[20].mxu1 %v1626_v38 }
  0x52   :  { %1385 = vmatprep.mubr.msk.bf16.mxu0 %vm494_vm0, %v1627_v39  ;;  %1403 = vmatprep.mubr.msk.bf16.mxu1 %vm494_vm0, %v1629_v40 }
  0x59   :  { %691 = vmatmul.mubr.bf16.gmra.mrb[24].mxu0 %v1631_v41  ;;  %835 = vmatmul.mubr.bf16.gmra.mrb[24].mxu1 %v1632_v42 }
  0x5a   :  { %1386 = vmatprep.mubr.msk.bf16.mxu0 %vm494_vm0, %v1633_v43  ;;  %1404 = vmatprep.mubr.msk.bf16.mxu1 %vm494_vm0, %v1635_v44 }
  0x61   :  { %699 = vmatmul.mubr.bf16.gmra.mrb[28].mxu0 %v1637_v45  ;;  %843 = vmatmul.mubr.bf16.gmra.mrb[28].mxu1 %v1638_v46 }
  0x62   :  { %1387 = vmatprep.mubr.msk.bf16.mxu0 %vm494_vm0, %v1639_v47  ;;  %1405 = vmatprep.mubr.msk.bf16.mxu1 %vm494_vm0, %v1641_v48 }
  0x69   :  { %707 = vmatmul.mubr.bf16.gmra.mrb[32].mxu0 %v1643_v49  ;;  %851 = vmatmul.mubr.bf16.gmra.mrb[32].mxu1 %v1644_v50 }
  0x6a   :  { %1388 = vmatprep.mubr.msk.bf16.mxu0 %vm494_vm0, %v1645_v51  ;;  %1406 = vmatprep.mubr.msk.bf16.mxu1 %vm494_vm0, %v1647_v52 }
  0x71   :  { %715 = vmatmul.mubr.bf16.gmra.mrb[36].mxu0 %v1649_v53  ;;  %859 = vmatmul.mubr.bf16.gmra.mrb[36].mxu1 %v1650_v54 }
  0x72   :  { %1389 = vmatprep.mubr.msk.bf16.mxu0 %vm494_vm0, %v1651_v55  ;;  %1407 = vmatprep.mubr.msk.bf16.mxu1 %vm494_vm0, %v1653_v56 }
  0x79   :  { %723 = vmatmul.mubr.bf16.gmra.mrb[40].mxu0 %v1655_v57  ;;  %867 = vmatmul.mubr.bf16.gmra.mrb[40].mxu1 %v1656_v58 }
  0x7a   :  { %1390 = vmatprep.mubr.msk.bf16.mxu0 %vm494_vm0, %v1657_v59  ;;  %1408 = vmatprep.mubr.msk.bf16.mxu1 %vm494_vm0, %v1659_v60 }
  0x81   :  { %731 = vmatmul.mubr.bf16.gmra.mrb[44].mxu0 %v1661_v61  ;;  %875 = vmatmul.mubr.bf16.gmra.mrb[44].mxu1 %v1662_v62 }
  0x82   :  { %1391 = vmatprep.mubr.msk.bf16.mxu0 %vm494_vm0, %v1663_v63  ;;  %1409 = vmatprep.mubr.msk.bf16.mxu1 %vm494_vm0, %v1665_v0 }
  0x89   :  { %739 = vmatmul.mubr.bf16.gmra.mrb[48].mxu0 %v1667_v1  ;;  %883 = vmatmul.mubr.bf16.gmra.mrb[48].mxu1 %v1668_v2 }
  0x8a   :  { %1392 = vmatprep.mubr.msk.bf16.mxu0 %vm494_vm0, %v1669_v3  ;;  %1410 = vmatprep.mubr.msk.bf16.mxu1 %vm494_vm0, %v1671_v4 }
  0x91   :  { %747 = vmatmul.mubr.bf16.gmra.mrb[52].mxu0 %v1673_v5  ;;  %891 = vmatmul.mubr.bf16.gmra.mrb[52].mxu1 %v1674_v6 }
  0x92   :  { %1393 = vmatprep.mubr.msk.bf16.mxu0 %vm494_vm0, %v1675_v7  ;;  %1411 = vmatprep.mubr.msk.bf16.mxu1 %vm494_vm0, %v1677_v8 }
  0x99   :  { %755 = vmatmul.mubr.bf16.gmra.mrb[56].mxu0 %v1679_v9  ;;  %899 = vmatmul.mubr.bf16.gmra.mrb[56].mxu1 %v1680_v10 }
  0x9a   :  { %1394 = vmatprep.mubr.msk.bf16.mxu0 %vm494_vm0, %v1681_v11  ;;  %1412 = vmatprep.mubr.msk.bf16.mxu1 %vm494_vm0, %v1683_v12 }
  0xa1   :  { %763 = vmatmul.mubr.bf16.gmra.mrb[60].mxu0 %v1685_v13  ;;  %907 = vmatmul.mubr.bf16.gmra.mrb[60].mxu1 %v1686_v14 }
  0xa2   :  { %1395 = vmatprep.mubr.msk.bf16.mxu0 %vm494_vm0, %v1687_v15  ;;  %1413 = vmatprep.mubr.msk.bf16.mxu1 %vm494_vm0, %v1689_v16 }
  0xa9   :  { %771 = vmatmul.mubr.bf16.gmra.mrb[64].mxu0 %v1691_v17  ;;  %915 = vmatmul.mubr.bf16.gmra.mrb[64].mxu1 %v1692_v18 }
  0xaa   :  { %1396 = vmatprep.mubr.msk.bf16.mxu0 %vm494_vm0, %v1693_v19  ;;  %1414 = vmatprep.mubr.msk.bf16.mxu1 %vm494_vm0, %v1695_v20 }
  0xb1   :  { %779 = vmatmul.mubr.bf16.gmra.mrb[68].mxu0 %v1697_v21  ;;  %923 = vmatmul.mubr.bf16.gmra.mrb[68].mxu1 %v1698_v22 }
  0xfc   :  { %v644_v24 = vpop.f32.mrb[0].mxu0  ;;  %v788_v25 = vpop.f32.mrb[0].mxu1 }
  0xfd   :  { %v645_v26 = vadd.f32 %v2006_v23, %v644_v24  ;;  %v789_v27 = vadd.f32 %v2006_v23, %v788_v25  ;;  %v646_v28 = vpop.f32.mrb[1].mxu0  ;;  %v790_v29 = vpop.f32.mrb[1].mxu1 }
  0xfe   :  { %v647_v30 = vpop.f32.mrb[2].mxu0  ;;  %v791_v31 = vpop.f32.mrb[2].mxu1 }
  0xff   :  { %v1487_v32 = vpack.c.bf16 %v645_v26, %v645_v26  ;;  %v1523_v33 = vpack.c.bf16 %v789_v27, %v789_v27  ;;  %v648_v34 = vadd.f32 %v2006_v23, %v647_v30  ;;  %v792_v35 = vadd.f32 %v2006_v23, %v791_v31  ;;  %v649_v36 = vpop.f32.mrb[3].mxu0  ;;  %v793_v37 = vpop.f32.mrb[3].mxu1 }
 0x101   :  { %1220 = vst.msk [vmem:[%s2371_s3] sm:$0xf] %vm1219_vm3, %v1487_v32  ;;  %1256 = vst.msk [vmem:[%s2371_s3 + $0x90] sm:$0xf] %vm1219_vm3, %v1523_v33  ;;  %v1488_v38 = vpack.c.bf16 %v648_v34, %v648_v34  ;;  %v1524_v39 = vpack.c.bf16 %v792_v35, %v792_v35 }
 0x103   :  { %1221 = vst.msk [vmem:[%s2371_s3 + $0x4] sm:$0xf] %vm1219_vm3, %v1488_v38  ;;  %1257 = vst.msk [vmem:[%s2371_s3 + $0x94] sm:$0xf] %vm1219_vm3, %v1524_v39 }
 0x104   :  { %v652_v40 = vpop.f32.mrb[4].mxu0  ;;  %v796_v41 = vpop.f32.mrb[4].mxu1 }
 0x105   :  { %v653_v42 = vadd.f32 %v2006_v23, %v652_v40  ;;  %v797_v43 = vadd.f32 %v2006_v23, %v796_v41  ;;  %v654_v44 = vpop.f32.mrb[5].mxu0  ;;  %v798_v45 = vpop.f32.mrb[5].mxu1 }
 0x106   :  { %v655_v46 = vpop.f32.mrb[6].mxu0  ;;  %v799_v47 = vpop.f32.mrb[6].mxu1 }
 0x107   :  { %v1489_v48 = vpack.c.bf16 %v653_v42, %v653_v42  ;;  %v1525_v49 = vpack.c.bf16 %v797_v43, %v797_v43  ;;  %v656_v50 = vadd.f32 %v2006_v23, %v655_v46  ;;  %v800_v51 = vadd.f32 %v2006_v23, %v799_v47  ;;  %v657_v52 = vpop.f32.mrb[7].mxu0  ;;  %v801_v53 = vpop.f32.mrb[7].mxu1 }
 0x109   :  { %1222 = vst.msk [vmem:[%s2371_s3 + $0x8] sm:$0xf] %vm1219_vm3, %v1489_v48  ;;  %1258 = vst.msk [vmem:[%s2371_s3 + $0x98] sm:$0xf] %vm1219_vm3, %v1525_v49  ;;  %v1490_v54 = vpack.c.bf16 %v656_v50, %v656_v50  ;;  %v1526_v55 = vpack.c.bf16 %v800_v51, %v800_v51 }
 0x10b   :  { %1223 = vst.msk [vmem:[%s2371_s3 + $0xc] sm:$0xf] %vm1219_vm3, %v1490_v54  ;;  %1259 = vst.msk [vmem:[%s2371_s3 + $0x9c] sm:$0xf] %vm1219_vm3, %v1526_v55 }
 0x10c   :  { %v660_v56 = vpop.f32.mrb[8].mxu0  ;;  %v804_v57 = vpop.f32.mrb[8].mxu1 }
 0x10d   :  { %v661_v58 = vadd.f32 %v2006_v23, %v660_v56  ;;  %v805_v59 = vadd.f32 %v2006_v23, %v804_v57  ;;  %v662_v60 = vpop.f32.mrb[9].mxu0  ;;  %v806_v61 = vpop.f32.mrb[9].mxu1 }
 0x10e   :  { %v663_v62 = vpop.f32.mrb[10].mxu0  ;;  %v807_v63 = vpop.f32.mrb[10].mxu1 }
 0x10f   :  { %v1491_v0 = vpack.c.bf16 %v661_v58, %v661_v58  ;;  %v1527_v1 = vpack.c.bf16 %v805_v59, %v805_v59  ;;  %v664_v2 = vadd.f32 %v2006_v23, %v663_v62  ;;  %v808_v3 = vadd.f32 %v2006_v23, %v807_v63  ;;  %v665_v4 = vpop.f32.mrb[11].mxu0  ;;  %v809_v5 = vpop.f32.mrb[11].mxu1 }
 0x111   :  { %1224 = vst.msk [vmem:[%s2371_s3 + $0x10] sm:$0xf] %vm1219_vm3, %v1491_v0  ;;  %1260 = vst.msk [vmem:[%s2371_s3 + $0xa0] sm:$0xf] %vm1219_vm3, %v1527_v1  ;;  %v1492_v6 = vpack.c.bf16 %v664_v2, %v664_v2  ;;  %v1528_v7 = vpack.c.bf16 %v808_v3, %v808_v3 }
 0x113   :  { %1225 = vst.msk [vmem:[%s2371_s3 + $0x14] sm:$0xf] %vm1219_vm3, %v1492_v6  ;;  %1261 = vst.msk [vmem:[%s2371_s3 + $0xa4] sm:$0xf] %vm1219_vm3, %v1528_v7 }
 0x114   :  { %v668_v8 = vpop.f32.mrb[12].mxu0  ;;  %v812_v9 = vpop.f32.mrb[12].mxu1 }
 0x115   :  { %v669_v10 = vadd.f32 %v2006_v23, %v668_v8  ;;  %v813_v11 = vadd.f32 %v2006_v23, %v812_v9  ;;  %v670_v12 = vpop.f32.mrb[13].mxu0  ;;  %v814_v13 = vpop.f32.mrb[13].mxu1 }
 0x116   :  { %v671_v14 = vpop.f32.mrb[14].mxu0  ;;  %v815_v15 = vpop.f32.mrb[14].mxu1 }
 0x117   :  { %v1493_v16 = vpack.c.bf16 %v669_v10, %v669_v10  ;;  %v1529_v17 = vpack.c.bf16 %v813_v11, %v813_v11  ;;  %v672_v18 = vadd.f32 %v2006_v23, %v671_v14  ;;  %v816_v19 = vadd.f32 %v2006_v23, %v815_v15  ;;  %v673_v20 = vpop.f32.mrb[15].mxu0  ;;  %v817_v21 = vpop.f32.mrb[15].mxu1 }
 0x119   :  { %1226 = vst.msk [vmem:[%s2371_s3 + $0x18] sm:$0xf] %vm1219_vm3, %v1493_v16  ;;  %1262 = vst.msk [vmem:[%s2371_s3 + $0xa8] sm:$0xf] %vm1219_vm3, %v1529_v17  ;;  %v1494_v22 = vpack.c.bf16 %v672_v18, %v672_v18  ;;  %v1530_v24 = vpack.c.bf16 %v816_v19, %v816_v19 }
 0x11b   :  { %1227 = vst.msk [vmem:[%s2371_s3 + $0x1c] sm:$0xf] %vm1219_vm3, %v1494_v22  ;;  %1263 = vst.msk [vmem:[%s2371_s3 + $0xac] sm:$0xf] %vm1219_vm3, %v1530_v24 }
 0x11c   :  { %v676_v25 = vpop.f32.mrb[16].mxu0  ;;  %v820_v26 = vpop.f32.mrb[16].mxu1 }
 0x11d   :  { %v677_v27 = vadd.f32 %v2006_v23, %v676_v25  ;;  %v821_v28 = vadd.f32 %v2006_v23, %v820_v26  ;;  %v678_v29 = vpop.f32.mrb[17].mxu0  ;;  %v822_v30 = vpop.f32.mrb[17].mxu1 }
 0x11e   :  { %v679_v31 = vpop.f32.mrb[18].mxu0  ;;  %v823_v32 = vpop.f32.mrb[18].mxu1 }
 0x11f   :  { %v1495_v33 = vpack.c.bf16 %v677_v27, %v677_v27  ;;  %v1531_v34 = vpack.c.bf16 %v821_v28, %v821_v28  ;;  %v680_v35 = vadd.f32 %v2006_v23, %v679_v31  ;;  %v824_v36 = vadd.f32 %v2006_v23, %v823_v32  ;;  %v681_v37 = vpop.f32.mrb[19].mxu0  ;;  %v825_v38 = vpop.f32.mrb[19].mxu1 }
 0x121   :  { %1228 = vst.msk [vmem:[%s2371_s3 + $0x20] sm:$0xf] %vm1219_vm3, %v1495_v33  ;;  %1264 = vst.msk [vmem:[%s2371_s3 + $0xb0] sm:$0xf] %vm1219_vm3, %v1531_v34  ;;  %v1496_v39 = vpack.c.bf16 %v680_v35, %v680_v35  ;;  %v1532_v40 = vpack.c.bf16 %v824_v36, %v824_v36 }
 0x123   :  { %1229 = vst.msk [vmem:[%s2371_s3 + $0x24] sm:$0xf] %vm1219_vm3, %v1496_v39  ;;  %1265 = vst.msk [vmem:[%s2371_s3 + $0xb4] sm:$0xf] %vm1219_vm3, %v1532_v40 }
 0x124   :  { %v684_v41 = vpop.f32.mrb[20].mxu0  ;;  %v828_v42 = vpop.f32.mrb[20].mxu1 }
 0x125   :  { %v685_v43 = vadd.f32 %v2006_v23, %v684_v41  ;;  %v829_v44 = vadd.f32 %v2006_v23, %v828_v42  ;;  %v686_v45 = vpop.f32.mrb[21].mxu0  ;;  %v830_v46 = vpop.f32.mrb[21].mxu1 }
 0x126   :  { %v687_v47 = vpop.f32.mrb[22].mxu0  ;;  %v831_v48 = vpop.f32.mrb[22].mxu1 }
 0x127   :  { %v1497_v49 = vpack.c.bf16 %v685_v43, %v685_v43  ;;  %v1533_v50 = vpack.c.bf16 %v829_v44, %v829_v44  ;;  %v688_v51 = vadd.f32 %v2006_v23, %v687_v47  ;;  %v832_v52 = vadd.f32 %v2006_v23, %v831_v48  ;;  %v689_v53 = vpop.f32.mrb[23].mxu0  ;;  %v833_v54 = vpop.f32.mrb[23].mxu1 }
 0x129   :  { %1230 = vst.msk [vmem:[%s2371_s3 + $0x28] sm:$0xf] %vm1219_vm3, %v1497_v49  ;;  %1266 = vst.msk [vmem:[%s2371_s3 + $0xb8] sm:$0xf] %vm1219_vm3, %v1533_v50  ;;  %v1498_v55 = vpack.c.bf16 %v688_v51, %v688_v51  ;;  %v1534_v56 = vpack.c.bf16 %v832_v52, %v832_v52 }
 0x12b   :  { %1231 = vst.msk [vmem:[%s2371_s3 + $0x2c] sm:$0xf] %vm1219_vm3, %v1498_v55  ;;  %1267 = vst.msk [vmem:[%s2371_s3 + $0xbc] sm:$0xf] %vm1219_vm3, %v1534_v56 }
 0x12c   :  { %v692_v57 = vpop.f32.mrb[24].mxu0  ;;  %v836_v58 = vpop.f32.mrb[24].mxu1 }
 0x12d   :  { %v693_v59 = vadd.f32 %v2006_v23, %v692_v57  ;;  %v837_v60 = vadd.f32 %v2006_v23, %v836_v58  ;;  %v694_v61 = vpop.f32.mrb[25].mxu0  ;;  %v838_v62 = vpop.f32.mrb[25].mxu1 }
 0x12e   :  { %v695_v63 = vpop.f32.mrb[26].mxu0  ;;  %v839_v0 = vpop.f32.mrb[26].mxu1 }
 0x12f   :  { %v1499_v1 = vpack.c.bf16 %v693_v59, %v693_v59  ;;  %v1535_v2 = vpack.c.bf16 %v837_v60, %v837_v60  ;;  %v696_v3 = vadd.f32 %v2006_v23, %v695_v63  ;;  %v840_v4 = vadd.f32 %v2006_v23, %v839_v0  ;;  %v697_v5 = vpop.f32.mrb[27].mxu0  ;;  %v841_v6 = vpop.f32.mrb[27].mxu1 }
 0x131   :  { %1232 = vst.msk [vmem:[%s2371_s3 + $0x30] sm:$0xf] %vm1219_vm3, %v1499_v1  ;;  %1268 = vst.msk [vmem:[%s2371_s3 + $0xc0] sm:$0xf] %vm1219_vm3, %v1535_v2  ;;  %v1500_v7 = vpack.c.bf16 %v696_v3, %v696_v3  ;;  %v1536_v8 = vpack.c.bf16 %v840_v4, %v840_v4 }
 0x133   :  { %1233 = vst.msk [vmem:[%s2371_s3 + $0x34] sm:$0xf] %vm1219_vm3, %v1500_v7  ;;  %1269 = vst.msk [vmem:[%s2371_s3 + $0xc4] sm:$0xf] %vm1219_vm3, %v1536_v8 }
 0x134   :  { %v700_v9 = vpop.f32.mrb[28].mxu0  ;;  %v844_v10 = vpop.f32.mrb[28].mxu1 }
 0x135   :  { %v701_v11 = vadd.f32 %v2006_v23, %v700_v9  ;;  %v845_v12 = vadd.f32 %v2006_v23, %v844_v10  ;;  %v702_v13 = vpop.f32.mrb[29].mxu0  ;;  %v846_v14 = vpop.f32.mrb[29].mxu1 }
 0x136   :  { %v703_v15 = vpop.f32.mrb[30].mxu0  ;;  %v847_v16 = vpop.f32.mrb[30].mxu1 }
 0x137   :  { %v1501_v17 = vpack.c.bf16 %v701_v11, %v701_v11  ;;  %v1537_v18 = vpack.c.bf16 %v845_v12, %v845_v12  ;;  %v704_v19 = vadd.f32 %v2006_v23, %v703_v15  ;;  %v848_v20 = vadd.f32 %v2006_v23, %v847_v16  ;;  %v705_v21 = vpop.f32.mrb[31].mxu0  ;;  %v849_v22 = vpop.f32.mrb[31].mxu1 }
 0x139   :  { %1234 = vst.msk [vmem:[%s2371_s3 + $0x38] sm:$0xf] %vm1219_vm3, %v1501_v17  ;;  %1270 = vst.msk [vmem:[%s2371_s3 + $0xc8] sm:$0xf] %vm1219_vm3, %v1537_v18  ;;  %v1502_v24 = vpack.c.bf16 %v704_v19, %v704_v19  ;;  %v1538_v25 = vpack.c.bf16 %v848_v20, %v848_v20 }
 0x13b   :  { %1235 = vst.msk [vmem:[%s2371_s3 + $0x3c] sm:$0xf] %vm1219_vm3, %v1502_v24  ;;  %1271 = vst.msk [vmem:[%s2371_s3 + $0xcc] sm:$0xf] %vm1219_vm3, %v1538_v25 }
 0x13c   :  { %v708_v26 = vpop.f32.mrb[32].mxu0  ;;  %v852_v27 = vpop.f32.mrb[32].mxu1 }
 0x13d   :  { %v709_v28 = vadd.f32 %v2006_v23, %v708_v26  ;;  %v853_v29 = vadd.f32 %v2006_v23, %v852_v27  ;;  %v710_v30 = vpop.f32.mrb[33].mxu0  ;;  %v854_v31 = vpop.f32.mrb[33].mxu1 }
 0x13e   :  { %v711_v32 = vpop.f32.mrb[34].mxu0  ;;  %v855_v33 = vpop.f32.mrb[34].mxu1 }
 0x13f   :  { %v1503_v34 = vpack.c.bf16 %v709_v28, %v709_v28  ;;  %v1539_v35 = vpack.c.bf16 %v853_v29, %v853_v29  ;;  %v712_v36 = vadd.f32 %v2006_v23, %v711_v32  ;;  %v856_v37 = vadd.f32 %v2006_v23, %v855_v33  ;;  %v713_v38 = vpop.f32.mrb[35].mxu0  ;;  %v857_v39 = vpop.f32.mrb[35].mxu1 }
 0x141   :  { %1236 = vst.msk [vmem:[%s2371_s3 + $0x40] sm:$0xf] %vm1219_vm3, %v1503_v34  ;;  %1272 = vst.msk [vmem:[%s2371_s3 + $0xd0] sm:$0xf] %vm1219_vm3, %v1539_v35  ;;  %v1504_v40 = vpack.c.bf16 %v712_v36, %v712_v36  ;;  %v1540_v41 = vpack.c.bf16 %v856_v37, %v856_v37 }
 0x143   :  { %1237 = vst.msk [vmem:[%s2371_s3 + $0x44] sm:$0xf] %vm1219_vm3, %v1504_v40  ;;  %1273 = vst.msk [vmem:[%s2371_s3 + $0xd4] sm:$0xf] %vm1219_vm3, %v1540_v41 }
 0x144   :  { %v716_v42 = vpop.f32.mrb[36].mxu0  ;;  %v860_v43 = vpop.f32.mrb[36].mxu1 }
 0x145   :  { %v717_v44 = vadd.f32 %v2006_v23, %v716_v42  ;;  %v861_v45 = vadd.f32 %v2006_v23, %v860_v43  ;;  %v718_v46 = vpop.f32.mrb[37].mxu0  ;;  %v862_v47 = vpop.f32.mrb[37].mxu1 }
 0x146   :  { %v719_v48 = vpop.f32.mrb[38].mxu0  ;;  %v863_v49 = vpop.f32.mrb[38].mxu1 }
 0x147   :  { %v1505_v50 = vpack.c.bf16 %v717_v44, %v717_v44  ;;  %v1541_v51 = vpack.c.bf16 %v861_v45, %v861_v45  ;;  %v720_v52 = vadd.f32 %v2006_v23, %v719_v48  ;;  %v864_v53 = vadd.f32 %v2006_v23, %v863_v49  ;;  %v721_v54 = vpop.f32.mrb[39].mxu0  ;;  %v865_v55 = vpop.f32.mrb[39].mxu1 }
 0x149   :  { %1238 = vst.msk [vmem:[%s2371_s3 + $0x48] sm:$0xf] %vm1219_vm3, %v1505_v50  ;;  %1274 = vst.msk [vmem:[%s2371_s3 + $0xd8] sm:$0xf] %vm1219_vm3, %v1541_v51  ;;  %v1506_v56 = vpack.c.bf16 %v720_v52, %v720_v52  ;;  %v1542_v57 = vpack.c.bf16 %v864_v53, %v864_v53 }
 0x14b   :  { %1239 = vst.msk [vmem:[%s2371_s3 + $0x4c] sm:$0xf] %vm1219_vm3, %v1506_v56  ;;  %1275 = vst.msk [vmem:[%s2371_s3 + $0xdc] sm:$0xf] %vm1219_vm3, %v1542_v57 }
 0x14c   :  { %v724_v58 = vpop.f32.mrb[40].mxu0  ;;  %v868_v59 = vpop.f32.mrb[40].mxu1 }
 0x14d   :  { %v725_v60 = vadd.f32 %v2006_v23, %v724_v58  ;;  %v869_v61 = vadd.f32 %v2006_v23, %v868_v59  ;;  %v726_v62 = vpop.f32.mrb[41].mxu0  ;;  %v870_v63 = vpop.f32.mrb[41].mxu1 }
 0x14e   :  { %v727_v0 = vpop.f32.mrb[42].mxu0  ;;  %v871_v1 = vpop.f32.mrb[42].mxu1 }
 0x14f   :  { %v1507_v2 = vpack.c.bf16 %v725_v60, %v725_v60  ;;  %v1543_v3 = vpack.c.bf16 %v869_v61, %v869_v61  ;;  %v728_v4 = vadd.f32 %v2006_v23, %v727_v0  ;;  %v872_v5 = vadd.f32 %v2006_v23, %v871_v1  ;;  %v729_v6 = vpop.f32.mrb[43].mxu0  ;;  %v873_v7 = vpop.f32.mrb[43].mxu1 }
 0x151   :  { %1240 = vst.msk [vmem:[%s2371_s3 + $0x50] sm:$0xf] %vm1219_vm3, %v1507_v2  ;;  %1276 = vst.msk [vmem:[%s2371_s3 + $0xe0] sm:$0xf] %vm1219_vm3, %v1543_v3  ;;  %v1508_v8 = vpack.c.bf16 %v728_v4, %v728_v4  ;;  %v1544_v9 = vpack.c.bf16 %v872_v5, %v872_v5 }
 0x153   :  { %1241 = vst.msk [vmem:[%s2371_s3 + $0x54] sm:$0xf] %vm1219_vm3, %v1508_v8  ;;  %1277 = vst.msk [vmem:[%s2371_s3 + $0xe4] sm:$0xf] %vm1219_vm3, %v1544_v9 }
 0x154   :  { %v732_v10 = vpop.f32.mrb[44].mxu0  ;;  %v876_v11 = vpop.f32.mrb[44].mxu1 }
 0x155   :  { %v733_v12 = vadd.f32 %v2006_v23, %v732_v10  ;;  %v877_v13 = vadd.f32 %v2006_v23, %v876_v11  ;;  %v734_v14 = vpop.f32.mrb[45].mxu0  ;;  %v878_v15 = vpop.f32.mrb[45].mxu1 }
 0x156   :  { %v735_v16 = vpop.f32.mrb[46].mxu0  ;;  %v879_v17 = vpop.f32.mrb[46].mxu1 }
 0x157   :  { %v1509_v18 = vpack.c.bf16 %v733_v12, %v733_v12  ;;  %v1545_v19 = vpack.c.bf16 %v877_v13, %v877_v13  ;;  %v736_v20 = vadd.f32 %v2006_v23, %v735_v16  ;;  %v880_v21 = vadd.f32 %v2006_v23, %v879_v17  ;;  %v737_v22 = vpop.f32.mrb[47].mxu0  ;;  %v881_v24 = vpop.f32.mrb[47].mxu1 }
 0x159   :  { %1242 = vst.msk [vmem:[%s2371_s3 + $0x58] sm:$0xf] %vm1219_vm3, %v1509_v18  ;;  %1278 = vst.msk [vmem:[%s2371_s3 + $0xe8] sm:$0xf] %vm1219_vm3, %v1545_v19  ;;  %v1510_v25 = vpack.c.bf16 %v736_v20, %v736_v20  ;;  %v1546_v26 = vpack.c.bf16 %v880_v21, %v880_v21 }
 0x15b   :  { %1243 = vst.msk [vmem:[%s2371_s3 + $0x5c] sm:$0xf] %vm1219_vm3, %v1510_v25  ;;  %1279 = vst.msk [vmem:[%s2371_s3 + $0xec] sm:$0xf] %vm1219_vm3, %v1546_v26 }
 0x15c   :  { %v740_v27 = vpop.f32.mrb[48].mxu0  ;;  %v884_v28 = vpop.f32.mrb[48].mxu1 }
 0x15d   :  { %v741_v29 = vadd.f32 %v2006_v23, %v740_v27  ;;  %v885_v30 = vadd.f32 %v2006_v23, %v884_v28  ;;  %v742_v31 = vpop.f32.mrb[49].mxu0  ;;  %v886_v32 = vpop.f32.mrb[49].mxu1 }
 0x15e   :  { %v743_v33 = vpop.f32.mrb[50].mxu0  ;;  %v887_v34 = vpop.f32.mrb[50].mxu1 }
 0x15f   :  { %v1511_v35 = vpack.c.bf16 %v741_v29, %v741_v29  ;;  %v1547_v36 = vpack.c.bf16 %v885_v30, %v885_v30  ;;  %v744_v37 = vadd.f32 %v2006_v23, %v743_v33  ;;  %v888_v38 = vadd.f32 %v2006_v23, %v887_v34  ;;  %v745_v39 = vpop.f32.mrb[51].mxu0  ;;  %v889_v40 = vpop.f32.mrb[51].mxu1 }
 0x161   :  { %1244 = vst.msk [vmem:[%s2371_s3 + $0x60] sm:$0xf] %vm1219_vm3, %v1511_v35  ;;  %1280 = vst.msk [vmem:[%s2371_s3 + $0xf0] sm:$0xf] %vm1219_vm3, %v1547_v36  ;;  %v1512_v41 = vpack.c.bf16 %v744_v37, %v744_v37  ;;  %v1548_v42 = vpack.c.bf16 %v888_v38, %v888_v38 }
 0x163   :  { %1245 = vst.msk [vmem:[%s2371_s3 + $0x64] sm:$0xf] %vm1219_vm3, %v1512_v41  ;;  %1281 = vst.msk [vmem:[%s2371_s3 + $0xf4] sm:$0xf] %vm1219_vm3, %v1548_v42 }
 0x164   :  { %v748_v43 = vpop.f32.mrb[52].mxu0  ;;  %v892_v44 = vpop.f32.mrb[52].mxu1 }
 0x165   :  { %v749_v45 = vadd.f32 %v2006_v23, %v748_v43  ;;  %v893_v46 = vadd.f32 %v2006_v23, %v892_v44  ;;  %v750_v47 = vpop.f32.mrb[53].mxu0  ;;  %v894_v48 = vpop.f32.mrb[53].mxu1 }
 0x166   :  { %v751_v49 = vpop.f32.mrb[54].mxu0  ;;  %v895_v50 = vpop.f32.mrb[54].mxu1 }
 0x167   :  { %v1513_v51 = vpack.c.bf16 %v749_v45, %v749_v45  ;;  %v1549_v52 = vpack.c.bf16 %v893_v46, %v893_v46  ;;  %v752_v53 = vadd.f32 %v2006_v23, %v751_v49  ;;  %v896_v54 = vadd.f32 %v2006_v23, %v895_v50  ;;  %v753_v55 = vpop.f32.mrb[55].mxu0  ;;  %v897_v56 = vpop.f32.mrb[55].mxu1 }
 0x169   :  { %1246 = vst.msk [vmem:[%s2371_s3 + $0x68] sm:$0xf] %vm1219_vm3, %v1513_v51  ;;  %1282 = vst.msk [vmem:[%s2371_s3 + $0xf8] sm:$0xf] %vm1219_vm3, %v1549_v52  ;;  %v1514_v57 = vpack.c.bf16 %v752_v53, %v752_v53  ;;  %v1550_v58 = vpack.c.bf16 %v896_v54, %v896_v54 }
 0x16b   :  { %1247 = vst.msk [vmem:[%s2371_s3 + $0x6c] sm:$0xf] %vm1219_vm3, %v1514_v57  ;;  %1283 = vst.msk [vmem:[%s2371_s3 + $0xfc] sm:$0xf] %vm1219_vm3, %v1550_v58 }
 0x16c   :  { %v756_v59 = vpop.f32.mrb[56].mxu0  ;;  %v900_v60 = vpop.f32.mrb[56].mxu1 }
 0x16d   :  { %v757_v61 = vadd.f32 %v2006_v23, %v756_v59  ;;  %v901_v62 = vadd.f32 %v2006_v23, %v900_v60  ;;  %v758_v63 = vpop.f32.mrb[57].mxu0  ;;  %v902_v0 = vpop.f32.mrb[57].mxu1 }
 0x16e   :  { %v759_v1 = vpop.f32.mrb[58].mxu0  ;;  %v903_v2 = vpop.f32.mrb[58].mxu1 }
 0x16f   :  { %v1515_v3 = vpack.c.bf16 %v757_v61, %v757_v61  ;;  %v1551_v4 = vpack.c.bf16 %v901_v62, %v901_v62  ;;  %v760_v5 = vadd.f32 %v2006_v23, %v759_v1  ;;  %v904_v6 = vadd.f32 %v2006_v23, %v903_v2  ;;  %v761_v7 = vpop.f32.mrb[59].mxu0  ;;  %v905_v8 = vpop.f32.mrb[59].mxu1 }
 0x171   :  { %1248 = vst.msk [vmem:[%s2371_s3 + $0x70] sm:$0xf] %vm1219_vm3, %v1515_v3  ;;  %1284 = vst.msk [vmem:[%s2371_s3 + $0x100] sm:$0xf] %vm1219_vm3, %v1551_v4  ;;  %v1516_v9 = vpack.c.bf16 %v760_v5, %v760_v5  ;;  %v1552_v10 = vpack.c.bf16 %v904_v6, %v904_v6 }
 0x173   :  { %1249 = vst.msk [vmem:[%s2371_s3 + $0x74] sm:$0xf] %vm1219_vm3, %v1516_v9  ;;  %1285 = vst.msk [vmem:[%s2371_s3 + $0x104] sm:$0xf] %vm1219_vm3, %v1552_v10 }
 0x174   :  { %v764_v11 = vpop.f32.mrb[60].mxu0  ;;  %v908_v12 = vpop.f32.mrb[60].mxu1 }
 0x175   :  { %v765_v13 = vadd.f32 %v2006_v23, %v764_v11  ;;  %v909_v14 = vadd.f32 %v2006_v23, %v908_v12  ;;  %v766_v15 = vpop.f32.mrb[61].mxu0  ;;  %v910_v16 = vpop.f32.mrb[61].mxu1 }
 0x176   :  { %v767_v17 = vpop.f32.mrb[62].mxu0  ;;  %v911_v18 = vpop.f32.mrb[62].mxu1 }
 0x177   :  { %v1517_v19 = vpack.c.bf16 %v765_v13, %v765_v13  ;;  %v1553_v20 = vpack.c.bf16 %v909_v14, %v909_v14  ;;  %v768_v21 = vadd.f32 %v2006_v23, %v767_v17  ;;  %v912_v22 = vadd.f32 %v2006_v23, %v911_v18  ;;  %v769_v24 = vpop.f32.mrb[63].mxu0  ;;  %v913_v25 = vpop.f32.mrb[63].mxu1 }
 0x179   :  { %1250 = vst.msk [vmem:[%s2371_s3 + $0x78] sm:$0xf] %vm1219_vm3, %v1517_v19  ;;  %1286 = vst.msk [vmem:[%s2371_s3 + $0x108] sm:$0xf] %vm1219_vm3, %v1553_v20  ;;  %v1518_v26 = vpack.c.bf16 %v768_v21, %v768_v21  ;;  %v1554_v27 = vpack.c.bf16 %v912_v22, %v912_v22 }
 0x17b   :  { %1251 = vst.msk [vmem:[%s2371_s3 + $0x7c] sm:$0xf] %vm1219_vm3, %v1518_v26  ;;  %1287 = vst.msk [vmem:[%s2371_s3 + $0x10c] sm:$0xf] %vm1219_vm3, %v1554_v27 }
 0x17c   :  { %v772_v28 = vpop.f32.mrb[64].mxu0  ;;  %v916_v29 = vpop.f32.mrb[64].mxu1 }
 0x17d   :  { %v773_v30 = vadd.f32 %v2006_v23, %v772_v28  ;;  %v917_v31 = vadd.f32 %v2006_v23, %v916_v29  ;;  %v774_v32 = vpop.f32.mrb[65].mxu0  ;;  %v918_v33 = vpop.f32.mrb[65].mxu1 }
 0x17e   :  { %v775_v34 = vpop.f32.mrb[66].mxu0  ;;  %v919_v35 = vpop.f32.mrb[66].mxu1 }
 0x17f   :  { %v1519_v36 = vpack.c.bf16 %v773_v30, %v773_v30  ;;  %v1555_v37 = vpack.c.bf16 %v917_v31, %v917_v31  ;;  %v776_v38 = vadd.f32 %v2006_v23, %v775_v34  ;;  %v920_v39 = vadd.f32 %v2006_v23, %v919_v35  ;;  %v777_v40 = vpop.f32.mrb[67].mxu0  ;;  %v921_v41 = vpop.f32.mrb[67].mxu1 }
 0x181   :  { %1252 = vst.msk [vmem:[%s2371_s3 + $0x80] sm:$0xf] %vm1219_vm3, %v1519_v36  ;;  %1288 = vst.msk [vmem:[%s2371_s3 + $0x110] sm:$0xf] %vm1219_vm3, %v1555_v37  ;;  %v1520_v42 = vpack.c.bf16 %v776_v38, %v776_v38  ;;  %v1556_v43 = vpack.c.bf16 %v920_v39, %v920_v39 }
 0x183   :  { %1253 = vst.msk [vmem:[%s2371_s3 + $0x84] sm:$0xf] %vm1219_vm3, %v1520_v42  ;;  %1289 = vst.msk [vmem:[%s2371_s3 + $0x114] sm:$0xf] %vm1219_vm3, %v1556_v43 }
 0x184   :  { %v780_v44 = vpop.f32.mrb[68].mxu0  ;;  %v924_v45 = vpop.f32.mrb[68].mxu1 }
 0x185   :  { %v781_v46 = vadd.f32 %v2006_v23, %v780_v44  ;;  %v925_v47 = vadd.f32 %v2006_v23, %v924_v45  ;;  %v782_v48 = vpop.f32.mrb[69].mxu0  ;;  %v926_v49 = vpop.f32.mrb[69].mxu1 }
 0x186   :  { %v783_v50 = vpop.f32.mrb[70].mxu0  ;;  %v927_v51 = vpop.f32.mrb[70].mxu1 }
 0x187   :  { %v1521_v52 = vpack.c.bf16 %v781_v46, %v781_v46  ;;  %v1557_v53 = vpack.c.bf16 %v925_v47, %v925_v47  ;;  %v784_v54 = vadd.f32 %v2006_v23, %v783_v50  ;;  %v928_v55 = vadd.f32 %v2006_v23, %v927_v51  ;;  %v785_v56 = vpop.f32.mrb[71].mxu0  ;;  %v929_v57 = vpop.f32.mrb[71].mxu1 }
 0x189   :  { %1254 = vst.msk [vmem:[%s2371_s3 + $0x88] sm:$0xf] %vm1219_vm3, %v1521_v52  ;;  %1290 = vst.msk [vmem:[%s2371_s3 + $0x118] sm:$0xf] %vm1219_vm3, %v1557_v53  ;;  %v1522_v58 = vpack.c.bf16 %v784_v54, %v784_v54  ;;  %v1558_v59 = vpack.c.bf16 %v928_v55, %v928_v55 }
 0x18b   :  { %1255 = vst.msk [vmem:[%s2371_s3 + $0x8c] sm:$0xf] %vm1219_vm3, %v1522_v58  ;;  %1291 = vst.msk [vmem:[%s2371_s3 + $0x11c] sm:$0xf] %vm1219_vm3, %v1558_v59 }

// kernel: lffcnn_forward.6
= control target key start
LH: loop header
LB: loop body
LE: loop exit
PB: predicated region body
PF: predicated region fallthrough
CT: control target
= control target key end

     0   :  { %v3936_v0 = vmov 0   ;;  %vm1426_vm0 = vcmask 523264   ;;  %vm2858_vm1 = vcmask 519168   ;;  %s5407_s1 = inlined_call_operand.vmem [shape: bf16[576,64], index: 1, kind: input, shape index: {}]   ;;  %s5408_s0 = inlined_call_operand.vmem [shape: bf16[576,576], index: 0, kind: input, shape index: {}]   ;;  %s5409_s2 = inlined_call_operand.vmem [shape: f32[1,64], index: 2, kind: input, shape index: {}]   ;;  %s5410_s3 = inlined_call_operand.vmem [shape: bf16[576,64], index: 3, kind: output, shape index: {}]  }
   0x1   :  { %1535 = vmatprep.subr.bf16.mxu0 %v3936_v0  ;;  %3452 = vmatprep.subr.bf16.mxu1 %v3936_v0  ;;  %v3647_v1 = vld [vmem:[%s5407_s1] sm:$0xff]   ;;  %v3648_v2 = vld [vmem:[%s5407_s1 + $0x8] sm:$0xff]   ;;  %v3649_v3 = vld [vmem:[%s5407_s1 + $0x10] sm:$0xff]  }
   0x2   :  { %1536 = vmatpush1.bf16.msra.mxu0 %v3647_v1  ;;  %3468 = vmatpush1.bf16.msra.mxu1 %v3647_v1  ;;  %v3650_v4 = vld [vmem:[%s5407_s1 + $0x18] sm:$0xff]   ;;  %v3651_v5 = vld [vmem:[%s5407_s1 + $0x20] sm:$0xff]   ;;  %v3652_v7 = vld [vmem:[%s5407_s1 + $0x28] sm:$0xff]  }
   0x3   :  { %1537 = vmatprep.subr.bf16.mxu0 %v3936_v0  ;;  %3453 = vmatprep.subr.bf16.mxu1 %v3936_v0  ;;  %v3665_v6 = vld [vmem:[%s5408_s0 + $0x4] ss:$20 sps:$4 sm:$0xff]   ;;  %v3668_v8 = vld [vmem:[%s5408_s0 + $0x16c] ss:$20 sps:$4 sm:$0xff]   ;;  %v3653_v9 = vld [vmem:[%s5407_s1 + $0x30] sm:$0xff]  }
   0x4   :  { %1567 = vmatprep.mubr.bf16.mxu0 %v3665_v6  ;;  %1639 = vmatprep.mubr.bf16.mxu1 %v3668_v8  ;;  %v3654_v10 = vld [vmem:[%s5407_s1 + $0x38] sm:$0xff]   ;;  %v3655_v11 = vld [vmem:[%s5407_s1 + $0x40] sm:$0xff]   ;;  %v3656_v12 = vld [vmem:[%s5407_s1 + $0x48] sm:$0xff]  }
   0x5   :  { %v3657_v13 = vld [vmem:[%s5407_s1 + $0x50] sm:$0xff]   ;;  %v3658_v14 = vld [vmem:[%s5407_s1 + $0x58] sm:$0xff]   ;;  %v3659_v15 = vld [vmem:[%s5407_s1 + $0x60] sm:$0xff]  }
   0x6   :  { %1538 = vmatpush1.bf16.msra.mxu0 %v3648_v2  ;;  %3469 = vmatpush1.bf16.msra.mxu1 %v3648_v2  ;;  %v3660_v16 = vld [vmem:[%s5407_s1 + $0x68] sm:$0xff]   ;;  %v3661_v17 = vld [vmem:[%s5407_s1 + $0x70] sm:$0xff]   ;;  %v3662_v18 = vld [vmem:[%s5407_s1 + $0x78] sm:$0xff]  }
   0x7   :  { %1539 = vmatprep.subr.bf16.mxu0 %v3936_v0  ;;  %3454 = vmatprep.subr.bf16.mxu1 %v3936_v0  ;;  %v3670_v19 = vld [vmem:[%s5407_s1 + $0x100] sm:$0xff]   ;;  %v3666_v21 = vld [vmem:[%s5408_s0 + $0x168] ss:$20 sps:$4 sm:$0xff]   ;;  %v3678_v29 = vld [vmem:[%s5407_s1 + $0x90] sm:$0xff]  }
   0x8   :  { %v3663_v20 = vld [vmem:[%s5408_s0] ss:$20 sps:$4 sm:$0xff]   ;;  %v3723_v25 = vld [vmem:[%s5407_s1 + $0x108] sm:$0xff]   ;;  %v3677_v28 = vld [vmem:[%s5408_s0 + $0x190] ss:$20 sps:$4 sm:$0xff]  }
   0x9   :  { %v3669_v22 = vld [vmem:[%s5407_s1 + $0x80] sm:$0xff]   ;;  %v3674_v24 = vld [vmem:[%s5408_s0 + $0x194] ss:$20 sps:$4 sm:$0xff]   ;;  %v3681_v31 = vld [vmem:[%s5408_s0 + $0x1bc] ss:$20 sps:$4 sm:$0xff]  }
   0xa   :  { %1540 = vmatpush1.bf16.msra.mxu0 %v3649_v3  ;;  %3470 = vmatpush1.bf16.msra.mxu1 %v3649_v3  ;;  %v3672_v23 = vld [vmem:[%s5408_s0 + $0x2c] ss:$20 sps:$4 sm:$0xff]   ;;  %v3676_v27 = vld [vmem:[%s5408_s0 + $0x28] ss:$20 sps:$4 sm:$0xff]   ;;  %v3765_v32 = vld [vmem:[%s5407_s1 + $0x110] sm:$0xff]  }
   0xb   :  { %1541 = vmatprep.subr.bf16.mxu0 %v3936_v0  ;;  %3455 = vmatprep.subr.bf16.mxu1 %v3936_v0  ;;  %v3671_v26 = vld [vmem:[%s5407_s1 + $0x88] sm:$0xff]   ;;  %v3683_v33 = vld [vmem:[%s5407_s1 + $0x98] sm:$0xff]   ;;  %v3684_v34 = vld [vmem:[%s5408_s0 + $0x50] ss:$20 sps:$4 sm:$0xff]  }
   0xc   :  { %v3679_v30 = vld [vmem:[%s5408_s0 + $0x54] ss:$20 sps:$4 sm:$0xff]   ;;  %v3685_v35 = vld [vmem:[%s5408_s0 + $0x1b8] ss:$20 sps:$4 sm:$0xff]   ;;  %v3686_v36 = vld [vmem:[%s5407_s1 + $0xa0] sm:$0xff]  }
   0xd   :  { %v3687_v37 = vld [vmem:[%s5408_s0 + $0x7c] ss:$20 sps:$4 sm:$0xff]   ;;  %v3689_v38 = vld [vmem:[%s5408_s0 + $0x1e4] ss:$20 sps:$4 sm:$0xff]   ;;  %v3693_v39 = vld [vmem:[%s5407_s1 + $0xa8] sm:$0xff]  }
   0xe   :  { %1542 = vmatpush1.bf16.msra.mxu0 %v3650_v4  ;;  %3471 = vmatpush1.bf16.msra.mxu1 %v3650_v4  ;;  %v3691_v40 = vld [vmem:[%s5408_s0 + $0x78] ss:$20 sps:$4 sm:$0xff]   ;;  %v3692_v41 = vld [vmem:[%s5408_s0 + $0x1e0] ss:$20 sps:$4 sm:$0xff]   ;;  %v3700_v47 = vld [vmem:[%s5408_s0 + $0x208] ss:$20 sps:$4 sm:$0xff]  }
   0xf   :  { %1543 = vmatprep.subr.bf16.mxu0 %v3936_v0  ;;  %3456 = vmatprep.subr.bf16.mxu1 %v3936_v0  ;;  %v3694_v42 = vld [vmem:[%s5407_s1 + $0xb0] sm:$0xff]   ;;  %v3695_v43 = vld [vmem:[%s5408_s0 + $0xa4] ss:$20 sps:$4 sm:$0xff]   ;;  %v3697_v44 = vld [vmem:[%s5408_s0 + $0x20c] ss:$20 sps:$4 sm:$0xff]  }
  0x10   :  { %v3701_v45 = vld [vmem:[%s5407_s1 + $0xb8] sm:$0xff]   ;;  %v3699_v46 = vld [vmem:[%s5408_s0 + $0xa0] ss:$20 sps:$4 sm:$0xff]   ;;  %v3709_v52 = vld [vmem:[%s5407_s1 + $0xc8] sm:$0xff]  }
  0x11   :  { %v3702_v48 = vld [vmem:[%s5407_s1 + $0xc0] sm:$0xff]   ;;  %v3705_v50 = vld [vmem:[%s5408_s0 + $0x234] ss:$20 sps:$4 sm:$0xff]   ;;  %v3808_v51 = vld [vmem:[%s5407_s1 + $0x118] sm:$0xff]  }
  0x12   :  { %1544 = vmatpush1.bf16.msra.mxu0 %v3651_v5  ;;  %3472 = vmatpush1.bf16.msra.mxu1 %v3651_v5  ;;  %v3703_v49 = vld [vmem:[%s5408_s0 + $0xcc] ss:$20 sps:$4 sm:$0xff]   ;;  %v3707_v53 = vld [vmem:[%s5408_s0 + $0xc8] ss:$20 sps:$4 sm:$0xff]   ;;  %v3708_v54 = vld [vmem:[%s5408_s0 + $0x230] ss:$20 sps:$4 sm:$0xff]  }
  0x13   :  { %1545 = vmatprep.subr.bf16.mxu0 %v3936_v0  ;;  %3457 = vmatprep.subr.bf16.mxu1 %v3936_v0  ;;  %v3710_v55 = vld [vmem:[%s5407_s1 + $0xd0] sm:$0xff]   ;;  %v3717_v58 = vld [vmem:[%s5407_s1 + $0xd8] sm:$0xff]   ;;  %v3722_v63 = vld [vmem:[%s5407_s1 + $0xe0] sm:$0xff]  }
  0x14   :  { %v3711_v56 = vld [vmem:[%s5408_s0 + $0xf4] ss:$20 sps:$4 sm:$0xff]   ;;  %v3713_v57 = vld [vmem:[%s5408_s0 + $0x25c] ss:$20 sps:$4 sm:$0xff]   ;;  %v3716_v60 = vld [vmem:[%s5408_s0 + $0x258] ss:$20 sps:$4 sm:$0xff]  }
  0x15   :  { %v3715_v59 = vld [vmem:[%s5408_s0 + $0xf0] ss:$20 sps:$4 sm:$0xff]   ;;  %v3726_v1 = vld [vmem:[%s5407_s1 + $0xe8] sm:$0xff]   ;;  %v3725_v3 = vld [vmem:[%s5408_s0 + $0x280] ss:$20 sps:$4 sm:$0xff]  }
  0x16   :  { %1546 = vmatpush1.bf16.msra.mxu0 %v3652_v7  ;;  %3473 = vmatpush1.bf16.msra.mxu1 %v3652_v7  ;;  %v3718_v61 = vld [vmem:[%s5408_s0 + $0x11c] ss:$20 sps:$4 sm:$0xff]   ;;  %v3720_v62 = vld [vmem:[%s5408_s0 + $0x284] ss:$20 sps:$4 sm:$0xff]   ;;  %v3729_v5 = vld [vmem:[%s5408_s0 + $0x2ac] ss:$20 sps:$4 sm:$0xff]  }
  0x17   :  { %1547 = vmatprep.subr.bf16.mxu0 %v3936_v0  ;;  %3458 = vmatprep.subr.bf16.mxu1 %v3936_v0  ;;  %v3724_v2 = vld [vmem:[%s5408_s0 + $0x118] ss:$20 sps:$4 sm:$0xff]   ;;  %v3733_v6 = vld [vmem:[%s5407_s1 + $0xf0] sm:$0xff]  }
  0x18   :  { %v3727_v4 = vld [vmem:[%s5408_s0 + $0x144] ss:$20 sps:$4 sm:$0xff]   ;;  %v3731_v8 = vld [vmem:[%s5408_s0 + $0x140] ss:$20 sps:$4 sm:$0xff]  }
  0x19   :  { %v3734_v7 = vld [vmem:[%s5407_s1 + $0xf8] sm:$0xff]  }
  0x1a   :  { %1548 = vmatpush1.bf16.msra.mxu0 %v3653_v9  ;;  %3474 = vmatpush1.bf16.msra.mxu1 %v3653_v9  ;;  %v3732_v9 = vld [vmem:[%s5408_s0 + $0x2a8] ss:$20 sps:$4 sm:$0xff]  }
  0x1b   :  { %1549 = vmatprep.subr.bf16.mxu0 %v3936_v0  ;;  %3459 = vmatprep.subr.bf16.mxu1 %v3936_v0 }
  0x1e   :  { %1550 = vmatpush1.bf16.msra.mxu0 %v3654_v10  ;;  %3475 = vmatpush1.bf16.msra.mxu1 %v3654_v10  ;;  %v3735_v10 = vld [vmem:[%s5408_s0 + $0x2d4] ss:$20 sps:$4 sm:$0xff]  }
  0x1f   :  { %1551 = vmatprep.subr.bf16.mxu0 %v3936_v0  ;;  %3460 = vmatprep.subr.bf16.mxu1 %v3936_v0 }
  0x22   :  { %1552 = vmatpush1.bf16.msra.mxu0 %v3655_v11  ;;  %3476 = vmatpush1.bf16.msra.mxu1 %v3655_v11  ;;  %v3739_v11 = vld [vmem:[%s5408_s0 + $0xc] ss:$20 sps:$4 sm:$0xff]  }
  0x23   :  { %1553 = vmatprep.subr.bf16.mxu0 %v3936_v0  ;;  %3461 = vmatprep.subr.bf16.mxu1 %v3936_v0 }
  0x26   :  { %1554 = vmatpush1.bf16.msra.mxu0 %v3656_v12  ;;  %3477 = vmatpush1.bf16.msra.mxu1 %v3656_v12  ;;  %v3737_v12 = vld [vmem:[%s5408_s0 + $0x8] ss:$20 sps:$4 sm:$0xff]  }
  0x27   :  { %1555 = vmatprep.subr.bf16.mxu0 %v3936_v0  ;;  %3462 = vmatprep.subr.bf16.mxu1 %v3936_v0 }
  0x2a   :  { %1556 = vmatpush1.bf16.msra.mxu0 %v3657_v13  ;;  %3478 = vmatpush1.bf16.msra.mxu1 %v3657_v13  ;;  %v3741_v13 = vld [vmem:[%s5408_s0 + $0x2fc] ss:$20 sps:$4 sm:$0xff]  }
  0x2b   :  { %1557 = vmatprep.subr.bf16.mxu0 %v3936_v0  ;;  %3463 = vmatprep.subr.bf16.mxu1 %v3936_v0 }
  0x2e   :  { %1558 = vmatpush1.bf16.msra.mxu0 %v3658_v14  ;;  %3479 = vmatpush1.bf16.msra.mxu1 %v3658_v14  ;;  %v3743_v14 = vld [vmem:[%s5408_s0 + $0x34] ss:$20 sps:$4 sm:$0xff]  }
  0x2f   :  { %1559 = vmatprep.subr.bf16.mxu0 %v3936_v0  ;;  %3464 = vmatprep.subr.bf16.mxu1 %v3936_v0 }
  0x32   :  { %1560 = vmatpush1.bf16.msra.mxu0 %v3659_v15  ;;  %3480 = vmatpush1.bf16.msra.mxu1 %v3659_v15  ;;  %v3745_v15 = vld [vmem:[%s5408_s0 + $0x2f8] ss:$20 sps:$4 sm:$0xff]  }
  0x33   :  { %1561 = vmatprep.subr.bf16.mxu0 %v3936_v0  ;;  %3465 = vmatprep.subr.bf16.mxu1 %v3936_v0 }
  0x36   :  { %1562 = vmatpush1.bf16.msra.mxu0 %v3660_v16  ;;  %3481 = vmatpush1.bf16.msra.mxu1 %v3660_v16  ;;  %v3746_v16 = vld [vmem:[%s5408_s0 + $0x30] ss:$20 sps:$4 sm:$0xff]  }
  0x37   :  { %1563 = vmatprep.subr.bf16.mxu0 %v3936_v0  ;;  %3466 = vmatprep.subr.bf16.mxu1 %v3936_v0 }
  0x3a   :  { %1564 = vmatpush1.bf16.msra.mxu0 %v3661_v17  ;;  %3482 = vmatpush1.bf16.msra.mxu1 %v3661_v17  ;;  %v3747_v17 = vld [vmem:[%s5408_s0 + $0x324] ss:$20 sps:$4 sm:$0xff]  }
  0x3b   :  { %1565 = vmatprep.subr.bf16.mxu0 %v3936_v0  ;;  %3467 = vmatprep.subr.bf16.mxu1 %v3936_v0 }
  0x3e   :  { %1566 = vmatpush1.bf16.msra.mxu0 %v3662_v18  ;;  %3483 = vmatpush1.bf16.msra.mxu1 %v3662_v18  ;;  %v3749_v18 = vld [vmem:[%s5408_s0 + $0x5c] ss:$20 sps:$4 sm:$0xff]  }
  0x3f   :  { %1856 = vmatprep.subr.bf16.mxu0 %v3936_v0  ;;  %3372 = vmatprep.subr.bf16.mxu1 %v3670_v19 }
  0x41   :  { %1568 = vmatmul.mubr.bf16.vlgmr.msra.gmra.mrb[0].mxu0 %v3663_v20  ;;  %1640 = vmatmul.mubr.bf16.vlgmr.msra.gmra.mrb[0].mxu1 %v3666_v21  ;;  %v3752_v20 = vld [vmem:[%s5408_s0 + $0x58] ss:$20 sps:$4 sm:$0xff]  }
  0x42   :  { %1857 = vmatpush1.bf16.msra.mxu0 %v3669_v22  ;;  %3373 = vmatpush3.bf16.msra.mxu1 %v3670_v19  ;;  %v3751_v19 = vld [vmem:[%s5408_s0 + $0x320] ss:$20 sps:$4 sm:$0xff]   ;;  %v3755_v22 = vld [vmem:[%s5408_s0 + $0x84] ss:$20 sps:$4 sm:$0xff]  }
  0x43   :  { %1858 = vmatprep.subr.bf16.mxu0 %v3936_v0  ;;  %1575 = vmatprep.mubr.bf16.mxu0 %v3672_v23  ;;  %v3753_v21 = vld [vmem:[%s5408_s0 + $0x34c] ss:$20 sps:$4 sm:$0xff]   ;;  %v3757_v23 = vld [vmem:[%s5408_s0 + $0x348] ss:$20 sps:$4 sm:$0xff]  }
  0x44   :  { %1647 = vmatprep.mubr.bf16.mxu1 %v3674_v24  ;;  %3374 = vmatprep.subr.bf16.mxu1 %v3723_v25  ;;  %v3758_v24 = vld [vmem:[%s5408_s0 + $0x80] ss:$20 sps:$4 sm:$0xff]  }
  0x46   :  { %1859 = vmatpush1.bf16.msra.mxu0 %v3671_v26  ;;  %3375 = vmatpush3.bf16.msra.mxu1 %v3723_v25  ;;  %v3759_v25 = vld [vmem:[%s5408_s0 + $0x374] ss:$20 sps:$4 sm:$0xff]   ;;  %v3761_v26 = vld [vmem:[%s5408_s0 + $0xac] ss:$20 sps:$4 sm:$0xff]  }
  0x47   :  { %1860 = vmatprep.subr.bf16.mxu0 %v3936_v0  ;;  %3376 = vmatprep.subr.bf16.mxu1 %v3765_v32 }
  0x49   :  { %1576 = vmatmul.mubr.bf16.gmra.mrb[4].mxu0 %v3676_v27  ;;  %1648 = vmatmul.mubr.bf16.gmra.mrb[4].mxu1 %v3677_v28  ;;  %v3763_v27 = vld [vmem:[%s5408_s0 + $0x370] ss:$20 sps:$4 sm:$0xff]   ;;  %v3764_v28 = vld [vmem:[%s5408_s0 + $0xa8] ss:$20 sps:$4 sm:$0xff]  }
  0x4a   :  { %1861 = vmatpush1.bf16.msra.mxu0 %v3678_v29  ;;  %1583 = vmatprep.mubr.bf16.mxu0 %v3679_v30  ;;  %v3766_v29 = vld [vmem:[%s5408_s0 + $0x39c] ss:$20 sps:$4 sm:$0xff]   ;;  %v3768_v30 = vld [vmem:[%s5408_s0 + $0xd4] ss:$20 sps:$4 sm:$0xff]  }
  0x4b   :  { %1862 = vmatprep.subr.bf16.mxu0 %v3936_v0  ;;  %1655 = vmatprep.mubr.bf16.mxu1 %v3681_v31  ;;  %v3770_v31 = vld [vmem:[%s5408_s0 + $0x398] ss:$20 sps:$4 sm:$0xff]  }
  0x4c   :  { %3377 = vmatpush3.bf16.msra.mxu1 %v3765_v32  ;;  %v3771_v32 = vld [vmem:[%s5408_s0 + $0xd0] ss:$20 sps:$4 sm:$0xff]  }
  0x4d   :  { %3378 = vmatprep.subr.bf16.mxu1 %v3808_v51 }
  0x4e   :  { %1863 = vmatpush1.bf16.msra.mxu0 %v3683_v33  ;;  %v3772_v33 = vld [vmem:[%s5408_s0 + $0x3c4] ss:$20 sps:$4 sm:$0xff]  }
  0x4f   :  { %1864 = vmatprep.subr.bf16.mxu0 %v3936_v0 }
  0x50   :  { %3379 = vmatpush3.bf16.msra.mxu1 %v3808_v51  ;;  %v3800_v51 = vld [vmem:[%s5408_s0 + $0x460] ss:$20 sps:$4 sm:$0xff]  }
  0x51   :  { %1584 = vmatmul.mubr.bf16.gmra.mrb[8].mxu0 %v3684_v34  ;;  %1656 = vmatmul.mubr.bf16.gmra.mrb[8].mxu1 %v3685_v35  ;;  %v3774_v34 = vld [vmem:[%s5408_s0 + $0xfc] ss:$20 sps:$4 sm:$0xff]   ;;  %v3776_v35 = vld [vmem:[%s5408_s0 + $0x3c0] ss:$20 sps:$4 sm:$0xff]  }
  0x52   :  { %1865 = vmatpush1.bf16.msra.mxu0 %v3686_v36  ;;  %1591 = vmatprep.mubr.bf16.mxu0 %v3687_v37  ;;  %v3777_v36 = vld [vmem:[%s5408_s0 + $0xf8] ss:$20 sps:$4 sm:$0xff]  }
  0x53   :  { %1663 = vmatprep.mubr.bf16.mxu1 %v3689_v38  ;;  %1866 = vmatprep.subr.bf16.mxu0 %v3936_v0  ;;  %v3778_v37 = vld [vmem:[%s5408_s0 + $0x3ec] ss:$20 sps:$4 sm:$0xff]   ;;  %v3780_v38 = vld [vmem:[%s5408_s0 + $0x124] ss:$20 sps:$4 sm:$0xff]  }
  0x56   :  { %1867 = vmatpush1.bf16.msra.mxu0 %v3693_v39  ;;  %v3782_v39 = vld [vmem:[%s5408_s0 + $0x3e8] ss:$20 sps:$4 sm:$0xff]  }
  0x57   :  { %1868 = vmatprep.subr.bf16.mxu0 %v3936_v0 }
  0x59   :  { %1592 = vmatmul.mubr.bf16.gmra.mrb[12].mxu0 %v3691_v40  ;;  %1664 = vmatmul.mubr.bf16.gmra.mrb[12].mxu1 %v3692_v41  ;;  %v3783_v40 = vld [vmem:[%s5408_s0 + $0x120] ss:$20 sps:$4 sm:$0xff]  }
  0x5a   :  { %1869 = vmatpush1.bf16.msra.mxu0 %v3694_v42  ;;  %1599 = vmatprep.mubr.bf16.mxu0 %v3695_v43  ;;  %v3784_v41 = vld [vmem:[%s5408_s0 + $0x414] ss:$20 sps:$4 sm:$0xff]   ;;  %v3786_v42 = vld [vmem:[%s5408_s0 + $0x14c] ss:$20 sps:$4 sm:$0xff]   ;;  %v3788_v43 = vld [vmem:[%s5408_s0 + $0x410] ss:$20 sps:$4 sm:$0xff]  }
  0x5b   :  { %1671 = vmatprep.mubr.bf16.mxu1 %v3697_v44  ;;  %1870 = vmatprep.subr.bf16.mxu0 %v3936_v0  ;;  %v3789_v44 = vld [vmem:[%s5408_s0 + $0x148] ss:$20 sps:$4 sm:$0xff]  }
  0x5e   :  { %1871 = vmatpush1.bf16.msra.mxu0 %v3701_v45  ;;  %v3790_v45 = vld [vmem:[%s5408_s0 + $0x43c] ss:$20 sps:$4 sm:$0xff]  }
  0x5f   :  { %1872 = vmatprep.subr.bf16.mxu0 %v3936_v0 }
  0x61   :  { %1600 = vmatmul.mubr.bf16.gmra.mrb[16].mxu0 %v3699_v46  ;;  %1672 = vmatmul.mubr.bf16.gmra.mrb[16].mxu1 %v3700_v47  ;;  %v3792_v46 = vld [vmem:[%s5408_s0 + $0x174] ss:$20 sps:$4 sm:$0xff]   ;;  %v3794_v47 = vld [vmem:[%s5408_s0 + $0x438] ss:$20 sps:$4 sm:$0xff]  }
  0x62   :  { %1873 = vmatpush1.bf16.msra.mxu0 %v3702_v48  ;;  %1607 = vmatprep.mubr.bf16.mxu0 %v3703_v49  ;;  %v3795_v48 = vld [vmem:[%s5408_s0 + $0x170] ss:$20 sps:$4 sm:$0xff]  }
  0x63   :  { %1679 = vmatprep.mubr.bf16.mxu1 %v3705_v50  ;;  %1874 = vmatprep.subr.bf16.mxu0 %v3936_v0  ;;  %v3796_v49 = vld [vmem:[%s5408_s0 + $0x464] ss:$20 sps:$4 sm:$0xff]   ;;  %v3798_v50 = vld [vmem:[%s5408_s0 + $0x19c] ss:$20 sps:$4 sm:$0xff]  }
  0x66   :  { %1875 = vmatpush1.bf16.msra.mxu0 %v3709_v52  ;;  %v3801_v52 = vld [vmem:[%s5408_s0 + $0x198] ss:$20 sps:$4 sm:$0xff]  }
  0x67   :  { %1876 = vmatprep.subr.bf16.mxu0 %v3936_v0 }
  0x69   :  { %1608 = vmatmul.mubr.bf16.gmra.mrb[20].mxu0 %v3707_v53  ;;  %1680 = vmatmul.mubr.bf16.gmra.mrb[20].mxu1 %v3708_v54  ;;  %v3802_v53 = vld [vmem:[%s5408_s0 + $0x48c] ss:$20 sps:$4 sm:$0xff]   ;;  %v3804_v54 = vld [vmem:[%s5408_s0 + $0x1c4] ss:$20 sps:$4 sm:$0xff]  }
  0x6a   :  { %1877 = vmatpush1.bf16.msra.mxu0 %v3710_v55  ;;  %1615 = vmatprep.mubr.bf16.mxu0 %v3711_v56  ;;  %v3806_v55 = vld [vmem:[%s5408_s0 + $0x488] ss:$20 sps:$4 sm:$0xff]   ;;  %v3807_v56 = vld [vmem:[%s5408_s0 + $0x1c0] ss:$20 sps:$4 sm:$0xff]  }
  0x6b   :  { %1687 = vmatprep.mubr.bf16.mxu1 %v3713_v57  ;;  %1878 = vmatprep.subr.bf16.mxu0 %v3936_v0  ;;  %v3809_v57 = vld [vmem:[%s5408_s0 + $0x4b4] ss:$20 sps:$4 sm:$0xff]  }
  0x6e   :  { %1879 = vmatpush1.bf16.msra.mxu0 %v3717_v58  ;;  %v3811_v58 = vld [vmem:[%s5408_s0 + $0x1ec] ss:$20 sps:$4 sm:$0xff]  }
  0x6f   :  { %1880 = vmatprep.subr.bf16.mxu0 %v3936_v0 }
  0x71   :  { %1616 = vmatmul.mubr.bf16.gmra.mrb[24].mxu0 %v3715_v59  ;;  %1688 = vmatmul.mubr.bf16.gmra.mrb[24].mxu1 %v3716_v60  ;;  %v3813_v59 = vld [vmem:[%s5408_s0 + $0x4b0] ss:$20 sps:$4 sm:$0xff]   ;;  %v3814_v60 = vld [vmem:[%s5408_s0 + $0x1e8] ss:$20 sps:$4 sm:$0xff]  }
  0x72   :  { %1623 = vmatprep.mubr.bf16.mxu0 %v3718_v61  ;;  %1695 = vmatprep.mubr.bf16.mxu1 %v3720_v62  ;;  %v3815_v61 = vld [vmem:[%s5408_s0 + $0x4dc] ss:$20 sps:$4 sm:$0xff]   ;;  %v3817_v62 = vld [vmem:[%s5408_s0 + $0x214] ss:$20 sps:$4 sm:$0xff]  }
  0x73   :  { %1881 = vmatpush1.bf16.msra.mxu0 %v3722_v63  ;;  %v3819_v63 = vld [vmem:[%s5408_s0 + $0x4d8] ss:$20 sps:$4 sm:$0xff]  }
  0x74   :  { %1882 = vmatprep.subr.bf16.mxu0 %v3936_v0 }
  0x77   :  { %1883 = vmatpush1.bf16.msra.mxu0 %v3726_v1  ;;  %v3820_v1 = vld [vmem:[%s5408_s0 + $0x210] ss:$20 sps:$4 sm:$0xff]  }
  0x78   :  { %1884 = vmatprep.subr.bf16.mxu0 %v3936_v0 }
  0x79   :  { %1624 = vmatmul.mubr.bf16.gmra.mrb[28].mxu0 %v3724_v2  ;;  %1696 = vmatmul.mubr.bf16.gmra.mrb[28].mxu1 %v3725_v3  ;;  %v3821_v2 = vld [vmem:[%s5408_s0 + $0x504] ss:$20 sps:$4 sm:$0xff]   ;;  %v3823_v3 = vld [vmem:[%s5408_s0 + $0x23c] ss:$20 sps:$4 sm:$0xff]  }
  0x7a   :  { %1631 = vmatprep.mubr.bf16.mxu0 %v3727_v4  ;;  %1703 = vmatprep.mubr.bf16.mxu1 %v3729_v5  ;;  %v3825_v4 = vld [vmem:[%s5408_s0 + $0x500] ss:$20 sps:$4 sm:$0xff]   ;;  %v3826_v5 = vld [vmem:[%s5408_s0 + $0x238] ss:$20 sps:$4 sm:$0xff]  }
  0x7b   :  { %1885 = vmatpush1.bf16.msra.mxu0 %v3733_v6  ;;  %v3827_v6 = vld [vmem:[%s5408_s0 + $0x52c] ss:$20 sps:$4 sm:$0xff]  }
  0x7c   :  { %1886 = vmatprep.subr.bf16.mxu0 %v3936_v0  ;;  %v3740_v0 = vld [vmem:[%s5408_s0 + $0x2d0] ss:$20 sps:$4 sm:$0xff]  }
  0x7f   :  { %1887 = vmatpush1.bf16.msra.mxu0 %v3734_v7  ;;  %v3829_v7 = vld [vmem:[%s5408_s0 + $0x264] ss:$20 sps:$4 sm:$0xff]  }
  0x81   :  { %1632 = vmatmul.mubr.bf16.gmra.mrb[32].mxu0 %v3731_v8  ;;  %1704 = vmatmul.mubr.bf16.gmra.mrb[32].mxu1 %v3732_v9  ;;  %v3831_v8 = vld [vmem:[%s5408_s0 + $0x528] ss:$20 sps:$4 sm:$0xff]   ;;  %v3832_v9 = vld [vmem:[%s5408_s0 + $0x260] ss:$20 sps:$4 sm:$0xff]  }
  0x82   :  { %1711 = vmatprep.mubr.bf16.mxu1 %v3735_v10  ;;  %1888 = vmatprep.mubr.bf16.mxu0 %v3739_v11  ;;  %v3833_v10 = vld [vmem:[%s5408_s0 + $0x554] ss:$20 sps:$4 sm:$0xff]   ;;  %v3835_v11 = vld [vmem:[%s5408_s0 + $0x28c] ss:$20 sps:$4 sm:$0xff]  }
  0x89   :  { %1712 = vmatmul.mubr.bf16.gmra.mrb[36].mxu1 %v3740_v0  ;;  %1889 = vmatmul.mubr.bf16.vlgmr.msra.gmra.mrb[0].mxu0 %v3737_v12  ;;  %v3837_v12 = vld [vmem:[%s5408_s0 + $0x550] ss:$20 sps:$4 sm:$0xff]   ;;  %v3838_v0 = vld [vmem:[%s5408_s0 + $0x288] ss:$20 sps:$4 sm:$0xff]  }
  0x8a   :  { %1719 = vmatprep.mubr.bf16.mxu1 %v3741_v13  ;;  %1896 = vmatprep.mubr.bf16.mxu0 %v3743_v14  ;;  %v3839_v13 = vld [vmem:[%s5408_s0 + $0x57c] ss:$20 sps:$4 sm:$0xff]   ;;  %v3841_v14 = vld [vmem:[%s5408_s0 + $0x2b4] ss:$20 sps:$4 sm:$0xff]  }
  0x91   :  { %1720 = vmatmul.mubr.bf16.gmra.mrb[40].mxu1 %v3745_v15  ;;  %1897 = vmatmul.mubr.bf16.gmra.mrb[4].mxu0 %v3746_v16  ;;  %v3843_v15 = vld [vmem:[%s5408_s0 + $0x578] ss:$20 sps:$4 sm:$0xff]   ;;  %v3844_v16 = vld [vmem:[%s5408_s0 + $0x2b0] ss:$20 sps:$4 sm:$0xff]  }
  0x92   :  { %1727 = vmatprep.mubr.bf16.mxu1 %v3747_v17  ;;  %1904 = vmatprep.mubr.bf16.mxu0 %v3749_v18  ;;  %v3845_v17 = vld [vmem:[%s5408_s0 + $0x2dc] ss:$20 sps:$4 sm:$0xff]  }
  0x93   :  { %v3847_v18 = vld [vmem:[%s5408_s0 + $0x10] ss:$20 sps:$4 sm:$0xff]  }
  0x99   :  { %1728 = vmatmul.mubr.bf16.gmra.mrb[44].mxu1 %v3751_v19  ;;  %1905 = vmatmul.mubr.bf16.gmra.mrb[8].mxu0 %v3752_v20 }
  0x9a   :  { %1735 = vmatprep.mubr.bf16.mxu1 %v3753_v21  ;;  %1912 = vmatprep.mubr.bf16.mxu0 %v3755_v22  ;;  %v3848_v21 = vld [vmem:[%s5408_s0 + $0x2d8] ss:$20 sps:$4 sm:$0xff]  }
  0x9b   :  { %v3849_v22 = vld [vmem:[%s5408_s0 + $0x38] ss:$20 sps:$4 sm:$0xff]  }
  0xa1   :  { %1736 = vmatmul.mubr.bf16.gmra.mrb[48].mxu1 %v3757_v23  ;;  %1913 = vmatmul.mubr.bf16.gmra.mrb[12].mxu0 %v3758_v24  ;;  %v3850_v24 = vld [vmem:[%s5408_s0 + $0x304] ss:$20 sps:$4 sm:$0xff]  }
  0xa2   :  { %1743 = vmatprep.mubr.bf16.mxu1 %v3759_v25  ;;  %1920 = vmatprep.mubr.bf16.mxu0 %v3761_v26  ;;  %v3852_v25 = vld [vmem:[%s5408_s0 + $0x60] ss:$20 sps:$4 sm:$0xff]  }
  0xa9   :  { %1744 = vmatmul.mubr.bf16.gmra.mrb[52].mxu1 %v3763_v27  ;;  %1921 = vmatmul.mubr.bf16.gmra.mrb[16].mxu0 %v3764_v28 }
  0xaa   :  { %1751 = vmatprep.mubr.bf16.mxu1 %v3766_v29  ;;  %1928 = vmatprep.mubr.bf16.mxu0 %v3768_v30  ;;  %v3853_v29 = vld [vmem:[%s5408_s0 + $0x300] ss:$20 sps:$4 sm:$0xff]   ;;  %v3854_v30 = vld [vmem:[%s5408_s0 + $0x88] ss:$20 sps:$4 sm:$0xff]  }
  0xb1   :  { %1752 = vmatmul.mubr.bf16.gmra.mrb[56].mxu1 %v3770_v31  ;;  %1929 = vmatmul.mubr.bf16.gmra.mrb[20].mxu0 %v3771_v32  ;;  %v3855_v32 = vld [vmem:[%s5408_s0 + $0x32c] ss:$20 sps:$4 sm:$0xff]  }
  0xb2   :  { %1759 = vmatprep.mubr.bf16.mxu1 %v3772_v33  ;;  %1936 = vmatprep.mubr.bf16.mxu0 %v3774_v34  ;;  %v3857_v33 = vld [vmem:[%s5408_s0 + $0xb0] ss:$20 sps:$4 sm:$0xff]  }
  0xb9   :  { %1760 = vmatmul.mubr.bf16.gmra.mrb[60].mxu1 %v3776_v35  ;;  %1937 = vmatmul.mubr.bf16.gmra.mrb[24].mxu0 %v3777_v36 }
  0xba   :  { %1767 = vmatprep.mubr.bf16.mxu1 %v3778_v37  ;;  %1944 = vmatprep.mubr.bf16.mxu0 %v3780_v38  ;;  %v3858_v37 = vld [vmem:[%s5408_s0 + $0x328] ss:$20 sps:$4 sm:$0xff]   ;;  %v3859_v38 = vld [vmem:[%s5408_s0 + $0xd8] ss:$20 sps:$4 sm:$0xff]  }
  0xc1   :  { %1768 = vmatmul.mubr.bf16.gmra.mrb[64].mxu1 %v3782_v39  ;;  %1945 = vmatmul.mubr.bf16.gmra.mrb[28].mxu0 %v3783_v40  ;;  %v3860_v40 = vld [vmem:[%s5408_s0 + $0x354] ss:$20 sps:$4 sm:$0xff]  }
  0xc2   :  { %1775 = vmatprep.mubr.bf16.mxu1 %v3784_v41  ;;  %1952 = vmatprep.mubr.bf16.mxu0 %v3786_v42  ;;  %v3862_v41 = vld [vmem:[%s5408_s0 + $0x100] ss:$20 sps:$4 sm:$0xff]  }
  0xc9   :  { %1776 = vmatmul.mubr.bf16.gmra.mrb[68].mxu1 %v3788_v43  ;;  %1953 = vmatmul.mubr.bf16.gmra.mrb[32].mxu0 %v3789_v44 }
  0xca   :  { %1783 = vmatprep.mubr.bf16.mxu1 %v3790_v45  ;;  %1960 = vmatprep.mubr.bf16.mxu0 %v3792_v46  ;;  %v3863_v45 = vld [vmem:[%s5408_s0 + $0x350] ss:$20 sps:$4 sm:$0xff]   ;;  %v3864_v46 = vld [vmem:[%s5408_s0 + $0x128] ss:$20 sps:$4 sm:$0xff]  }
  0xd1   :  { %1784 = vmatmul.mubr.bf16.gmra.mrb[72].mxu1 %v3794_v47  ;;  %1961 = vmatmul.mubr.bf16.gmra.mrb[36].mxu0 %v3795_v48  ;;  %v3865_v48 = vld [vmem:[%s5408_s0 + $0x37c] ss:$20 sps:$4 sm:$0xff]  }
  0xd2   :  { %1791 = vmatprep.mubr.bf16.mxu1 %v3796_v49  ;;  %1968 = vmatprep.mubr.bf16.mxu0 %v3798_v50  ;;  %v3867_v49 = vld [vmem:[%s5408_s0 + $0x150] ss:$20 sps:$4 sm:$0xff]  }
  0xd9   :  { %1792 = vmatmul.mubr.bf16.gmra.mrb[76].mxu1 %v3800_v51  ;;  %1969 = vmatmul.mubr.bf16.gmra.mrb[40].mxu0 %v3801_v52 }
  0xda   :  { %1799 = vmatprep.mubr.bf16.mxu1 %v3802_v53  ;;  %1976 = vmatprep.mubr.bf16.mxu0 %v3804_v54  ;;  %v3868_v53 = vld [vmem:[%s5408_s0 + $0x378] ss:$20 sps:$4 sm:$0xff]  }
  0xdb   :  { %v3869_v54 = vld [vmem:[%s5408_s0 + $0x178] ss:$20 sps:$4 sm:$0xff]  }
  0xe1   :  { %1800 = vmatmul.mubr.bf16.gmra.mrb[80].mxu1 %v3806_v55  ;;  %1977 = vmatmul.mubr.bf16.gmra.mrb[44].mxu0 %v3807_v56  ;;  %v3870_v56 = vld [vmem:[%s5408_s0 + $0x3a4] ss:$20 sps:$4 sm:$0xff]  }
  0xe2   :  { %1807 = vmatprep.mubr.bf16.mxu1 %v3809_v57  ;;  %1984 = vmatprep.mubr.bf16.mxu0 %v3811_v58  ;;  %v3872_v57 = vld [vmem:[%s5408_s0 + $0x1a0] ss:$20 sps:$4 sm:$0xff]  }
  0xe9   :  { %1808 = vmatmul.mubr.bf16.gmra.mrb[84].mxu1 %v3813_v59  ;;  %1985 = vmatmul.mubr.bf16.gmra.mrb[48].mxu0 %v3814_v60 }
  0xea   :  { %1815 = vmatprep.mubr.bf16.mxu1 %v3815_v61  ;;  %1992 = vmatprep.mubr.bf16.mxu0 %v3817_v62  ;;  %v3873_v61 = vld [vmem:[%s5408_s0 + $0x3a0] ss:$20 sps:$4 sm:$0xff]   ;;  %v3874_v62 = vld [vmem:[%s5408_s0 + $0x1c8] ss:$20 sps:$4 sm:$0xff]  }
  0xf1   :  { %1816 = vmatmul.mubr.bf16.gmra.mrb[88].mxu1 %v3819_v63  ;;  %1993 = vmatmul.mubr.bf16.gmra.mrb[52].mxu0 %v3820_v1  ;;  %v3875_v1 = vld [vmem:[%s5408_s0 + $0x3cc] ss:$20 sps:$4 sm:$0xff]  }
  0xf2   :  { %1823 = vmatprep.mubr.bf16.mxu1 %v3821_v2  ;;  %2000 = vmatprep.mubr.bf16.mxu0 %v3823_v3  ;;  %v3877_v2 = vld [vmem:[%s5408_s0 + $0x1f0] ss:$20 sps:$4 sm:$0xff]  }
  0xf9   :  { %1824 = vmatmul.mubr.bf16.gmra.mrb[92].mxu1 %v3825_v4  ;;  %2001 = vmatmul.mubr.bf16.gmra.mrb[56].mxu0 %v3826_v5 }
  0xfa   :  { %1831 = vmatprep.mubr.bf16.mxu1 %v3827_v6  ;;  %2008 = vmatprep.mubr.bf16.mxu0 %v3829_v7  ;;  %v3878_v6 = vld [vmem:[%s5408_s0 + $0x3c8] ss:$20 sps:$4 sm:$0xff]   ;;  %v3879_v7 = vld [vmem:[%s5408_s0 + $0x218] ss:$20 sps:$4 sm:$0xff]  }
 0x101   :  { %1832 = vmatmul.mubr.bf16.gmra.mrb[96].mxu1 %v3831_v8  ;;  %2009 = vmatmul.mubr.bf16.gmra.mrb[60].mxu0 %v3832_v9  ;;  %v3880_v9 = vld [vmem:[%s5408_s0 + $0x3f4] ss:$20 sps:$4 sm:$0xff]  }
 0x102   :  { %1839 = vmatprep.mubr.bf16.mxu1 %v3833_v10  ;;  %2016 = vmatprep.mubr.bf16.mxu0 %v3835_v11  ;;  %v3882_v10 = vld [vmem:[%s5408_s0 + $0x240] ss:$20 sps:$4 sm:$0xff]  }
 0x109   :  { %1840 = vmatmul.mubr.bf16.gmra.mrb[100].mxu1 %v3837_v12  ;;  %2017 = vmatmul.mubr.bf16.gmra.mrb[64].mxu0 %v3838_v0 }
 0x10a   :  { %1847 = vmatprep.mubr.bf16.mxu1 %v3839_v13  ;;  %2024 = vmatprep.mubr.bf16.mxu0 %v3841_v14  ;;  %v3883_v13 = vld [vmem:[%s5408_s0 + $0x3f0] ss:$20 sps:$4 sm:$0xff]   ;;  %v3884_v14 = vld [vmem:[%s5408_s0 + $0x268] ss:$20 sps:$4 sm:$0xff]  }
 0x111   :  { %1848 = vmatmul.mubr.bf16.gmra.mrb[104].mxu1 %v3843_v15  ;;  %2025 = vmatmul.mubr.bf16.gmra.mrb[68].mxu0 %v3844_v16  ;;  %v3885_v16 = vld [vmem:[%s5408_s0 + $0x41c] ss:$20 sps:$4 sm:$0xff]  }
 0x112   :  { %2032 = vmatprep.mubr.bf16.mxu0 %v3845_v17  ;;  %3380 = vmatprep.mubr.msk.bf16.mxu1 %vm1426_vm0, %v3847_v18  ;;  %v3887_v17 = vld [vmem:[%s5408_s0 + $0x290] ss:$20 sps:$4 sm:$0xff]  }
 0x114   :  { %v4444_v19 = vpop.f32.mrb[0].mxu1 }
 0x115   :  { %v1643_v20 = vpop.f32.mrb[1].mxu1 }
 0x116   :  { %v4452_v23 = vpop.f32.mrb[2].mxu1 }
 0x117   :  { %v1646_v26 = vpop.f32.mrb[3].mxu1 }
 0x118   :  { %v3890_v26 = vld [vmem:[%s5408_s0 + $0x444] ss:$20 sps:$4 sm:$0xff]  }
 0x119   :  { %2033 = vmatmul.mubr.bf16.gmra.mrb[72].mxu0 %v3848_v21  ;;  %3381 = vmatmul.mubr.msk.bf16.vlgmr.msra.gmra.mrb[108].mxu1 %vm1426_vm0, %v3849_v22  ;;  %v3888_v22 = vld [vmem:[%s5408_s0 + $0x418] ss:$20 sps:$4 sm:$0xff]  }
 0x11a   :  { %2040 = vmatprep.mubr.bf16.mxu0 %v3850_v24  ;;  %3384 = vmatprep.mubr.msk.bf16.mxu1 %vm1426_vm0, %v3852_v25  ;;  %v3889_v24 = vld [vmem:[%s5408_s0 + $0x2b8] ss:$20 sps:$4 sm:$0xff]  }
 0x11c   :  { %v4462_v27 = vpop.f32.mrb[4].mxu1 }
 0x11d   :  { %v1651_v28 = vpop.f32.mrb[5].mxu1 }
 0x11e   :  { %v4470_v31 = vpop.f32.mrb[6].mxu1  ;;  %v3892_v28 = vld [vmem:[%s5408_s0 + $0x2e0] ss:$20 sps:$4 sm:$0xff]  }
 0x11f   :  { %v1654_v34 = vpop.f32.mrb[7].mxu1 }
 0x121   :  { %2041 = vmatmul.mubr.bf16.gmra.mrb[76].mxu0 %v3853_v29  ;;  %3385 = vmatmul.mubr.msk.bf16.gmra.mrb[112].mxu1 %vm1426_vm0, %v3854_v30 }
 0x122   :  { %2048 = vmatprep.mubr.bf16.mxu0 %v3855_v32  ;;  %3388 = vmatprep.mubr.msk.bf16.mxu1 %vm1426_vm0, %v3857_v33 }
 0x124   :  { %v4480_v35 = vpop.f32.mrb[8].mxu1 }
 0x125   :  { %v1659_v36 = vpop.f32.mrb[9].mxu1 }
 0x126   :  { %v4488_v39 = vpop.f32.mrb[10].mxu1  ;;  %v3893_v36 = vld [vmem:[%s5408_s0 + $0x440] ss:$20 sps:$4 sm:$0xff]  }
 0x127   :  { %v1662_v42 = vpop.f32.mrb[11].mxu1 }
 0x128   :  { %v3897_v42 = vld [vmem:[%s5408_s0 + $0x330] ss:$20 sps:$4 sm:$0xff]  }
 0x129   :  { %2049 = vmatmul.mubr.bf16.gmra.mrb[80].mxu0 %v3858_v37  ;;  %3389 = vmatmul.mubr.msk.bf16.gmra.mrb[116].mxu1 %vm1426_vm0, %v3859_v38  ;;  %v3894_v37 = vld [vmem:[%s5408_s0 + $0x308] ss:$20 sps:$4 sm:$0xff]  }
 0x12a   :  { %2056 = vmatprep.mubr.bf16.mxu0 %v3860_v40  ;;  %3392 = vmatprep.mubr.msk.bf16.mxu1 %vm1426_vm0, %v3862_v41  ;;  %v3895_v41 = vld [vmem:[%s5408_s0 + $0x46c] ss:$20 sps:$4 sm:$0xff]  }
 0x12c   :  { %v4498_v43 = vpop.f32.mrb[12].mxu1 }
 0x12d   :  { %v1667_v44 = vpop.f32.mrb[13].mxu1 }
 0x12e   :  { %v4506_v47 = vpop.f32.mrb[14].mxu1 }
 0x12f   :  { %v1670_v50 = vpop.f32.mrb[15].mxu1 }
 0x131   :  { %2057 = vmatmul.mubr.bf16.gmra.mrb[84].mxu0 %v3863_v45  ;;  %3393 = vmatmul.mubr.msk.bf16.gmra.mrb[120].mxu1 %vm1426_vm0, %v3864_v46 }
 0x132   :  { %2064 = vmatprep.mubr.bf16.mxu0 %v3865_v48  ;;  %3396 = vmatprep.mubr.msk.bf16.mxu1 %vm1426_vm0, %v3867_v49 }
 0x134   :  { %v4516_v51 = vpop.f32.mrb[16].mxu1 }
 0x135   :  { %v1675_v52 = vpop.f32.mrb[17].mxu1 }
 0x136   :  { %v4524_v55 = vpop.f32.mrb[18].mxu1  ;;  %v3898_v52 = vld [vmem:[%s5408_s0 + $0x468] ss:$20 sps:$4 sm:$0xff]  }
 0x137   :  { %v1678_v58 = vpop.f32.mrb[19].mxu1 }
 0x138   :  { %v3902_v58 = vld [vmem:[%s5408_s0 + $0x380] ss:$20 sps:$4 sm:$0xff]  }
 0x139   :  { %2065 = vmatmul.mubr.bf16.gmra.mrb[88].mxu0 %v3868_v53  ;;  %3397 = vmatmul.mubr.msk.bf16.gmra.mrb[124].mxu1 %vm1426_vm0, %v3869_v54  ;;  %v3899_v53 = vld [vmem:[%s5408_s0 + $0x358] ss:$20 sps:$4 sm:$0xff]  }
 0x13a   :  { %2072 = vmatprep.mubr.bf16.mxu0 %v3870_v56  ;;  %3400 = vmatprep.mubr.msk.bf16.mxu1 %vm1426_vm0, %v3872_v57  ;;  %v3900_v57 = vld [vmem:[%s5408_s0 + $0x494] ss:$20 sps:$4 sm:$0xff]  }
 0x13c   :  { %v4534_v59 = vpop.f32.mrb[20].mxu1 }
 0x13d   :  { %v1683_v60 = vpop.f32.mrb[21].mxu1 }
 0x13e   :  { %v4542_v63 = vpop.f32.mrb[22].mxu1 }
 0x13f   :  { %v1686_v3 = vpop.f32.mrb[23].mxu1 }
 0x141   :  { %2073 = vmatmul.mubr.bf16.gmra.mrb[92].mxu0 %v3873_v61  ;;  %3401 = vmatmul.mubr.msk.bf16.gmra.mrb[128].mxu1 %vm1426_vm0, %v3874_v62 }
 0x142   :  { %2080 = vmatprep.mubr.bf16.mxu0 %v3875_v1  ;;  %3404 = vmatprep.mubr.msk.bf16.mxu1 %vm1426_vm0, %v3877_v2 }
 0x144   :  { %v4552_v4 = vpop.f32.mrb[24].mxu1 }
 0x145   :  { %v1691_v5 = vpop.f32.mrb[25].mxu1 }
 0x146   :  { %v4560_v8 = vpop.f32.mrb[26].mxu1  ;;  %v3903_v5 = vld [vmem:[%s5408_s0 + $0x490] ss:$20 sps:$4 sm:$0xff]  }
 0x147   :  { %v1694_v11 = vpop.f32.mrb[27].mxu1 }
 0x148   :  { %v3907_v11 = vld [vmem:[%s5408_s0 + $0x3d0] ss:$20 sps:$4 sm:$0xff]  }
 0x149   :  { %2081 = vmatmul.mubr.bf16.gmra.mrb[96].mxu0 %v3878_v6  ;;  %3405 = vmatmul.mubr.msk.bf16.gmra.mrb[132].mxu1 %vm1426_vm0, %v3879_v7  ;;  %v3904_v6 = vld [vmem:[%s5408_s0 + $0x3a8] ss:$20 sps:$4 sm:$0xff]  }
 0x14a   :  { %2088 = vmatprep.mubr.bf16.mxu0 %v3880_v9  ;;  %3408 = vmatprep.mubr.msk.bf16.mxu1 %vm1426_vm0, %v3882_v10  ;;  %v3905_v10 = vld [vmem:[%s5408_s0 + $0x4bc] ss:$20 sps:$4 sm:$0xff]  }
 0x14c   :  { %v4570_v12 = vpop.f32.mrb[28].mxu1 }
 0x14d   :  { %v1699_v0 = vpop.f32.mrb[29].mxu1 }
 0x14e   :  { %v4578_v15 = vpop.f32.mrb[30].mxu1 }
 0x14f   :  { %v1702_v18 = vpop.f32.mrb[31].mxu1 }
 0x151   :  { %2089 = vmatmul.mubr.bf16.gmra.mrb[100].mxu0 %v3883_v13  ;;  %3409 = vmatmul.mubr.msk.bf16.gmra.mrb[136].mxu1 %vm1426_vm0, %v3884_v14 }
 0x152   :  { %2096 = vmatprep.mubr.bf16.mxu0 %v3885_v16  ;;  %3412 = vmatprep.mubr.msk.bf16.mxu1 %vm1426_vm0, %v3887_v17 }
 0x154   :  { %v4588_v20 = vpop.f32.mrb[32].mxu1 }
 0x155   :  { %v1707_v21 = vpop.f32.mrb[33].mxu1 }
 0x156   :  { %v4596_v25 = vpop.f32.mrb[34].mxu1  ;;  %v3908_v21 = vld [vmem:[%s5408_s0 + $0x4b8] ss:$20 sps:$4 sm:$0xff]  }
 0x157   :  { %v1710_v29 = vpop.f32.mrb[35].mxu1 }
 0x158   :  { %v3912_v29 = vld [vmem:[%s5408_s0 + $0x420] ss:$20 sps:$4 sm:$0xff]  }
 0x159   :  { %2097 = vmatmul.mubr.bf16.gmra.mrb[104].mxu0 %v3888_v22  ;;  %3413 = vmatmul.mubr.msk.bf16.gmra.mrb[140].mxu1 %vm1426_vm0, %v3889_v24  ;;  %v3909_v22 = vld [vmem:[%s5408_s0 + $0x3f8] ss:$20 sps:$4 sm:$0xff]  }
 0x15a   :  { %2104 = vmatprep.mubr.bf16.mxu0 %v3890_v26  ;;  %3416 = vmatprep.mubr.msk.bf16.mxu1 %vm1426_vm0, %v3892_v28  ;;  %v3910_v28 = vld [vmem:[%s5408_s0 + $0x4e4] ss:$20 sps:$4 sm:$0xff]  }
 0x15c   :  { %v4606_v30 = vpop.f32.mrb[36].mxu1  ;;  %v4608_v32 = vpop.f32.mrb[0].mxu0 }
 0x15d   :  { %v1715_v33 = vpop.f32.mrb[37].mxu1  ;;  %v1892_v34 = vpop.f32.mrb[1].mxu0 }
 0x15e   :  { %v4616_v38 = vpop.f32.mrb[38].mxu1  ;;  %v4618_v40 = vpop.f32.mrb[2].mxu0 }
 0x15f   :  { %v1718_v44 = vpop.f32.mrb[39].mxu1  ;;  %v1895_v45 = vpop.f32.mrb[3].mxu0 }
 0x160   :  { %v3913_v44 = vld [vmem:[%s5408_s0 + $0x4e0] ss:$20 sps:$4 sm:$0xff]   ;;  %v3914_v45 = vld [vmem:[%s5408_s0 + $0x448] ss:$20 sps:$4 sm:$0xff]  }
 0x161   :  { %2105 = vmatmul.mubr.bf16.gmra.mrb[108].mxu0 %v3893_v36  ;;  %3417 = vmatmul.mubr.msk.bf16.gmra.mrb[144].mxu1 %vm1426_vm0, %v3894_v37 }
 0x162   :  { %2112 = vmatprep.mubr.bf16.mxu0 %v3895_v41  ;;  %3420 = vmatprep.mubr.msk.bf16.mxu1 %vm1426_vm0, %v3897_v42 }
 0x164   :  { %v4628_v46 = vpop.f32.mrb[40].mxu1  ;;  %v4630_v48 = vpop.f32.mrb[4].mxu0 }
 0x165   :  { %v1723_v49 = vpop.f32.mrb[41].mxu1  ;;  %v1900_v50 = vpop.f32.mrb[5].mxu0 }
 0x166   :  { %v4638_v54 = vpop.f32.mrb[42].mxu1  ;;  %v4640_v56 = vpop.f32.mrb[6].mxu0 }
 0x167   :  { %v1726_v60 = vpop.f32.mrb[43].mxu1  ;;  %v1903_v61 = vpop.f32.mrb[7].mxu0 }
 0x169   :  { %2113 = vmatmul.mubr.bf16.gmra.mrb[112].mxu0 %v3898_v52  ;;  %3421 = vmatmul.mubr.msk.bf16.gmra.mrb[148].mxu1 %vm1426_vm0, %v3899_v53  ;;  %v3915_v52 = vld [vmem:[%s5408_s0 + $0x50c] ss:$20 sps:$4 sm:$0xff]   ;;  %v3917_v53 = vld [vmem:[%s5408_s0 + $0x470] ss:$20 sps:$4 sm:$0xff]  }
 0x16a   :  { %2120 = vmatprep.mubr.bf16.mxu0 %v3900_v57  ;;  %3424 = vmatprep.mubr.msk.bf16.mxu1 %vm1426_vm0, %v3902_v58 }
 0x16c   :  { %v4650_v62 = vpop.f32.mrb[44].mxu1  ;;  %v4652_v1 = vpop.f32.mrb[8].mxu0 }
 0x16d   :  { %v1731_v2 = vpop.f32.mrb[45].mxu1  ;;  %v1908_v3 = vpop.f32.mrb[9].mxu0 }
 0x16e   :  { %v4660_v7 = vpop.f32.mrb[46].mxu1  ;;  %v4662_v9 = vpop.f32.mrb[10].mxu0 }
 0x16f   :  { %v1734_v0 = vpop.f32.mrb[47].mxu1  ;;  %v1911_v13 = vpop.f32.mrb[11].mxu0 }
 0x170   :  { %v3920_v0 = vld [vmem:[%s5408_s0 + $0x534] ss:$20 sps:$4 sm:$0xff]  }
 0x171   :  { %2121 = vmatmul.mubr.bf16.gmra.mrb[116].mxu0 %v3903_v5  ;;  %3425 = vmatmul.mubr.msk.bf16.gmra.mrb[152].mxu1 %vm1426_vm0, %v3904_v6  ;;  %v3918_v5 = vld [vmem:[%s5408_s0 + $0x508] ss:$20 sps:$4 sm:$0xff]   ;;  %v3919_v6 = vld [vmem:[%s5408_s0 + $0x498] ss:$20 sps:$4 sm:$0xff]   ;;  %v3922_v13 = vld [vmem:[%s5408_s0 + $0x4c0] ss:$20 sps:$4 sm:$0xff]  }
 0x172   :  { %2128 = vmatprep.mubr.bf16.mxu0 %v3905_v10  ;;  %3428 = vmatprep.mubr.msk.bf16.mxu1 %vm1426_vm0, %v3907_v11 }
 0x174   :  { %v4672_v14 = vpop.f32.mrb[48].mxu1  ;;  %v4674_v16 = vpop.f32.mrb[12].mxu0 }
 0x175   :  { %v1739_v17 = vpop.f32.mrb[49].mxu1  ;;  %v1916_v18 = vpop.f32.mrb[13].mxu0 }
 0x176   :  { %v4682_v24 = vpop.f32.mrb[50].mxu1  ;;  %v4684_v26 = vpop.f32.mrb[14].mxu0 }
 0x177   :  { %v1742_v33 = vpop.f32.mrb[51].mxu1  ;;  %v1919_v34 = vpop.f32.mrb[15].mxu0 }
 0x178   :  { %v3923_v33 = vld [vmem:[%s5408_s0 + $0x530] ss:$20 sps:$4 sm:$0xff]   ;;  %v3924_v34 = vld [vmem:[%s5408_s0 + $0x4e8] ss:$20 sps:$4 sm:$0xff]  }
 0x179   :  { %2129 = vmatmul.mubr.bf16.gmra.mrb[120].mxu0 %v3908_v21  ;;  %3429 = vmatmul.mubr.msk.bf16.gmra.mrb[156].mxu1 %vm1426_vm0, %v3909_v22 }
 0x17a   :  { %2136 = vmatprep.mubr.bf16.mxu0 %v3910_v28  ;;  %3432 = vmatprep.mubr.msk.bf16.mxu1 %vm1426_vm0, %v3912_v29 }
 0x17c   :  { %v4694_v36 = vpop.f32.mrb[52].mxu1  ;;  %v4696_v37 = vpop.f32.mrb[16].mxu0 }
 0x17d   :  { %v1747_v41 = vpop.f32.mrb[53].mxu1  ;;  %v1924_v42 = vpop.f32.mrb[17].mxu0 }
 0x17e   :  { %v4704_v49 = vpop.f32.mrb[54].mxu1  ;;  %v4706_v50 = vpop.f32.mrb[18].mxu0 }
 0x17f   :  { %v1750_v57 = vpop.f32.mrb[55].mxu1  ;;  %v1927_v58 = vpop.f32.mrb[19].mxu0 }
 0x181   :  { %2137 = vmatmul.mubr.bf16.gmra.mrb[124].mxu0 %v3913_v44  ;;  %3433 = vmatmul.mubr.msk.bf16.gmra.mrb[160].mxu1 %vm1426_vm0, %v3914_v45  ;;  %v3925_v44 = vld [vmem:[%s5408_s0 + $0x55c] ss:$20 sps:$4 sm:$0xff]  }
 0x182   :  { %2144 = vmatprep.mubr.bf16.mxu0 %v3915_v52  ;;  %3436 = vmatprep.mubr.msk.bf16.mxu1 %vm1426_vm0, %v3917_v53  ;;  %v3927_v45 = vld [vmem:[%s5408_s0 + $0x510] ss:$20 sps:$4 sm:$0xff]  }
 0x184   :  { %v4716_v60 = vpop.f32.mrb[56].mxu1  ;;  %v4718_v61 = vpop.f32.mrb[20].mxu0 }
 0x185   :  { %v1755_v2 = vpop.f32.mrb[57].mxu1  ;;  %v1932_v3 = vpop.f32.mrb[21].mxu0 }
 0x186   :  { %v4726_v10 = vpop.f32.mrb[58].mxu1  ;;  %v4728_v11 = vpop.f32.mrb[22].mxu0 }
 0x187   :  { %v1758_v17 = vpop.f32.mrb[59].mxu1  ;;  %v1935_v18 = vpop.f32.mrb[23].mxu0 }
 0x188   :  { %v3930_v17 = vld [vmem:[%s5408_s0 + $0x584] ss:$20 sps:$4 sm:$0xff]   ;;  %v3932_v18 = vld [vmem:[%s5408_s0 + $0x560] ss:$20 sps:$4 sm:$0xff]  }
 0x189   :  { %2145 = vmatmul.mubr.bf16.gmra.mrb[128].mxu0 %v3918_v5  ;;  %3437 = vmatmul.mubr.msk.bf16.gmra.mrb[164].mxu1 %vm1426_vm0, %v3919_v6  ;;  %v3928_v5 = vld [vmem:[%s5408_s0 + $0x558] ss:$20 sps:$4 sm:$0xff]  }
 0x18a   :  { %2152 = vmatprep.mubr.bf16.mxu0 %v3920_v0  ;;  %3440 = vmatprep.mubr.msk.bf16.mxu1 %vm1426_vm0, %v3922_v13  ;;  %v3929_v6 = vld [vmem:[%s5408_s0 + $0x538] ss:$20 sps:$4 sm:$0xff]  }
 0x18c   :  { %v4738_v21 = vpop.f32.mrb[60].mxu1  ;;  %v4740_v22 = vpop.f32.mrb[24].mxu0 }
 0x18d   :  { %v1763_v28 = vpop.f32.mrb[61].mxu1  ;;  %v1940_v29 = vpop.f32.mrb[25].mxu0 }
 0x18e   :  { %v4748_v41 = vpop.f32.mrb[62].mxu1  ;;  %v4750_v42 = vpop.f32.mrb[26].mxu0 }
 0x18f   :  { %v1766_v52 = vpop.f32.mrb[63].mxu1  ;;  %v1943_v53 = vpop.f32.mrb[27].mxu0 }
 0x190   :  { %v3933_v52 = vld [vmem:[%s5408_s0 + $0x580] ss:$20 sps:$4 sm:$0xff]   ;;  %v3934_v53 = vld [vmem:[%s5408_s0 + $0x588] ss:$20 sps:$4 sm:$0xff]  }
 0x191   :  { %2153 = vmatmul.mubr.bf16.gmra.mrb[132].mxu0 %v3923_v33  ;;  %3441 = vmatmul.mubr.msk.bf16.gmra.mrb[168].mxu1 %vm1426_vm0, %v3924_v34 }
 0x192   :  { %2160 = vmatprep.mubr.bf16.mxu0 %v3925_v44  ;;  %3444 = vmatprep.mubr.msk.bf16.mxu1 %vm1426_vm0, %v3927_v45 }
 0x194   :  { %v4760_v57 = vpop.f32.mrb[64].mxu1  ;;  %v4762_v58 = vpop.f32.mrb[28].mxu0 }
 0x195   :  { %5411 = vst [vmem:[#allocation2_spill] sm:$0xff] %v4760_v57  ;;  %v1771_v2 = vpop.f32.mrb[65].mxu1  ;;  %v1948_v3 = vpop.f32.mrb[29].mxu0 }
 0x196   :  { %v4770_v0 = vpop.f32.mrb[66].mxu1  ;;  %v4772_v13 = vpop.f32.mrb[30].mxu0 }
 0x197   :  { %5412 = vst [vmem:[#allocation3_spill] sm:$0xff] %v4770_v0  ;;  %v1774_v28 = vpop.f32.mrb[67].mxu1  ;;  %v1951_v29 = vpop.f32.mrb[31].mxu0 }
 0x199   :  { %2161 = vmatmul.mubr.bf16.gmra.mrb[136].mxu0 %v3928_v5  ;;  %3445 = vmatmul.mubr.msk.bf16.gmra.mrb[172].mxu1 %vm1426_vm0, %v3929_v6 }
 0x19a   :  { %2168 = vmatprep.mubr.bf16.mxu0 %v3930_v17  ;;  %3448 = vmatprep.mubr.msk.bf16.mxu1 %vm1426_vm0, %v3932_v18  ;;  %v4799_v17 = vld [vmem:[%s5409_s2] ss:$0 sm:$0xff] }
 0x19b   :  { %v1642_v18 = vadd.f32 %v4799_v17, %v4444_v19  ;;  %v1650_v19 = vadd.f32 %v4799_v17, %v4462_v27  ;;  %v1658_v27 = vadd.f32 %v4799_v17, %v4480_v35  ;;  %v1666_v35 = vadd.f32 %v4799_v17, %v4498_v43 }
 0x19c   :  { %v4782_v33 = vpop.f32.mrb[68].mxu1  ;;  %v4784_v34 = vpop.f32.mrb[32].mxu0  ;;  %v1674_v43 = vadd.f32 %v4799_v17, %v4516_v51  ;;  %v1682_v51 = vadd.f32 %v4799_v17, %v4534_v59  ;;  %v1690_v59 = vadd.f32 %v4799_v17, %v4552_v4  ;;  %v1698_v4 = vadd.f32 %v4799_v17, %v4570_v12 }
 0x19d   :  { %5413 = vst [vmem:[#allocation4_spill] sm:$0xff] %v4782_v33  ;;  %v1779_v44 = vpop.f32.mrb[69].mxu1  ;;  %v1956_v45 = vpop.f32.mrb[33].mxu0  ;;  %v1706_v12 = vadd.f32 %v4799_v17, %v4588_v20  ;;  %v1714_v20 = vadd.f32 %v4799_v17, %v4606_v30  ;;  %v3485_v30 = vadd.f32 %v4799_v17, %v4618_v40  ;;  %v3490_v40 = vadd.f32 %v4799_v17, %v4674_v16 }
 0x19e   :  { %v4792_v2 = vpop.f32.mrb[70].mxu1  ;;  %v4794_v3 = vpop.f32.mrb[34].mxu0  ;;  %v1645_v44 = vadd.f32 %v4799_v17, %v4452_v23  ;;  %v1653_v23 = vadd.f32 %v4799_v17, %v4470_v31  ;;  %v1661_v31 = vadd.f32 %v4799_v17, %v4488_v39  ;;  %v1669_v39 = vadd.f32 %v4799_v17, %v4506_v47 }
 0x19f   :  { %5414 = vst [vmem:[#allocation5_spill] sm:$0xff] %v4792_v2  ;;  %v1782_v5 = vpop.f32.mrb[71].mxu1  ;;  %v1959_v6 = vpop.f32.mrb[35].mxu0  ;;  %v1677_v47 = vadd.f32 %v4799_v17, %v4524_v55  ;;  %v1685_v55 = vadd.f32 %v4799_v17, %v4542_v63  ;;  %v1693_v63 = vadd.f32 %v4799_v17, %v4560_v8  ;;  %v1701_v8 = vadd.f32 %v4799_v17, %v4578_v15 }
 0x1a0   :  { %v1709_v15 = vadd.f32 %v4799_v17, %v4596_v25  ;;  %v3484_v25 = vadd.f32 %v4799_v17, %v4608_v32  ;;  %v1725_v16 = vadd.f32 %v4799_v17, %v4638_v54 }
 0x1a1   :  { %2169 = vmatmul.mubr.bf16.gmra.mrb[140].mxu0 %v3933_v52  ;;  %3449 = vmatmul.mubr.msk.bf16.gmra.mrb[176].mxu1 %vm1426_vm0, %v3934_v53 }
 0x1a4   :  { %v4804_v28 = vpop.f32.mrb[72].mxu1  ;;  %v1962_v29 = vpop.f32.mrb[36].mxu0 }
 0x1a5   :  { %5415 = vst [vmem:[#allocation6_spill] sm:$0xff] %v4804_v28  ;;  %v4808_v45 = vadd.f32 %v1962_v29, %v1642_v18  ;;  %v1787_v5 = vpop.f32.mrb[73].mxu1  ;;  %v1964_v6 = vpop.f32.mrb[37].mxu0 }
 0x1a6   :  { %v4810_v2 = vpop.f32.mrb[74].mxu1  ;;  %v1965_v33 = vpop.f32.mrb[38].mxu0 }
 0x1a7   :  { %5416 = vst [vmem:[#allocation7_spill] sm:$0xff] %v4810_v2  ;;  %v4812_v0 = vadd.f32 %v1965_v33, %v1645_v44  ;;  %v1790_v52 = vpop.f32.mrb[75].mxu1  ;;  %v1967_v53 = vpop.f32.mrb[39].mxu0 }
 0x1ac   :  { %v4816_v57 = vpop.f32.mrb[76].mxu1  ;;  %v1970_v28 = vpop.f32.mrb[40].mxu0 }
 0x1ad   :  { %5417 = vst [vmem:[#allocation8_spill] sm:$0xff] %v4816_v57  ;;  %v4820_v18 = vadd.f32 %v1970_v28, %v1650_v19  ;;  %v1795_v29 = vpop.f32.mrb[77].mxu1  ;;  %v1972_v5 = vpop.f32.mrb[41].mxu0 }
 0x1ae   :  { %v4822_v6 = vpop.f32.mrb[78].mxu1  ;;  %v1973_v2 = vpop.f32.mrb[42].mxu0 }
 0x1af   :  { %5418 = vst [vmem:[#allocation9_spill] sm:$0xff] %v4822_v6  ;;  %v4824_v33 = vadd.f32 %v1973_v2, %v1653_v23  ;;  %v1798_v44 = vpop.f32.mrb[79].mxu1  ;;  %v1975_v52 = vpop.f32.mrb[43].mxu0 }
 0x1b4   :  { %v4828_v53 = vpop.f32.mrb[80].mxu1  ;;  %v1978_v57 = vpop.f32.mrb[44].mxu0 }
 0x1b5   :  { %5419 = vst [vmem:[#allocation10_spill] sm:$0xff] %v4828_v53  ;;  %v4832_v28 = vadd.f32 %v1978_v57, %v1658_v27  ;;  %v1803_v19 = vpop.f32.mrb[81].mxu1  ;;  %v1980_v29 = vpop.f32.mrb[45].mxu0 }
 0x1b6   :  { %v4834_v5 = vpop.f32.mrb[82].mxu1  ;;  %v1981_v6 = vpop.f32.mrb[46].mxu0 }
 0x1b7   :  { %5420 = vst [vmem:[#allocation11_spill] sm:$0xff] %v4834_v5  ;;  %v4836_v2 = vadd.f32 %v1981_v6, %v1661_v31  ;;  %v1806_v23 = vpop.f32.mrb[83].mxu1  ;;  %v1983_v44 = vpop.f32.mrb[47].mxu0 }
 0x1bc   :  { %v4840_v52 = vpop.f32.mrb[84].mxu1  ;;  %v1986_v53 = vpop.f32.mrb[48].mxu0 }
 0x1bd   :  { %5421 = vst [vmem:[#allocation12_spill] sm:$0xff] %v4840_v52  ;;  %v4844_v57 = vadd.f32 %v1986_v53, %v1666_v35  ;;  %v1811_v27 = vpop.f32.mrb[85].mxu1  ;;  %v1988_v19 = vpop.f32.mrb[49].mxu0 }
 0x1be   :  { %v4846_v29 = vpop.f32.mrb[86].mxu1  ;;  %v1989_v5 = vpop.f32.mrb[50].mxu0 }
 0x1bf   :  { %5422 = vst [vmem:[#allocation13_spill] sm:$0xff] %v4846_v29  ;;  %v4848_v6 = vadd.f32 %v1989_v5, %v1669_v39  ;;  %v1814_v31 = vpop.f32.mrb[87].mxu1  ;;  %v1991_v23 = vpop.f32.mrb[51].mxu0 }
 0x1c4   :  { %v4852_v44 = vpop.f32.mrb[88].mxu1  ;;  %v1994_v52 = vpop.f32.mrb[52].mxu0 }
 0x1c5   :  { %5423 = vst [vmem:[#allocation14_spill] sm:$0xff] %v4852_v44  ;;  %v4856_v53 = vadd.f32 %v1994_v52, %v1674_v43  ;;  %v1819_v35 = vpop.f32.mrb[89].mxu1  ;;  %v1996_v27 = vpop.f32.mrb[53].mxu0 }
 0x1c6   :  { %v4858_v19 = vpop.f32.mrb[90].mxu1  ;;  %v1997_v29 = vpop.f32.mrb[54].mxu0 }
 0x1c7   :  { %5424 = vst [vmem:[#allocation15_spill] sm:$0xff] %v4858_v19  ;;  %v4860_v5 = vadd.f32 %v1997_v29, %v1677_v47  ;;  %v1822_v39 = vpop.f32.mrb[91].mxu1  ;;  %v1999_v31 = vpop.f32.mrb[55].mxu0 }
 0x1cc   :  { %v4864_v23 = vpop.f32.mrb[92].mxu1  ;;  %v2002_v44 = vpop.f32.mrb[56].mxu0 }
 0x1cd   :  { %5425 = vst [vmem:[#allocation16_spill] sm:$0xff] %v4864_v23  ;;  %v4868_v52 = vadd.f32 %v2002_v44, %v1682_v51  ;;  %v1827_v43 = vpop.f32.mrb[93].mxu1  ;;  %v2004_v35 = vpop.f32.mrb[57].mxu0 }
 0x1ce   :  { %v4870_v27 = vpop.f32.mrb[94].mxu1  ;;  %v2005_v19 = vpop.f32.mrb[58].mxu0 }
 0x1cf   :  { %5426 = vst [vmem:[#allocation17_spill] sm:$0xff] %v4870_v27  ;;  %v4872_v29 = vadd.f32 %v2005_v19, %v1685_v55  ;;  %v1830_v47 = vpop.f32.mrb[95].mxu1  ;;  %v2007_v39 = vpop.f32.mrb[59].mxu0 }
 0x1d4   :  { %v4876_v31 = vpop.f32.mrb[96].mxu1  ;;  %v2010_v23 = vpop.f32.mrb[60].mxu0 }
 0x1d5   :  { %5427 = vst [vmem:[#allocation18_spill] sm:$0xff] %v4876_v31  ;;  %v4880_v44 = vadd.f32 %v2010_v23, %v1690_v59  ;;  %v1835_v51 = vpop.f32.mrb[97].mxu1  ;;  %v2012_v43 = vpop.f32.mrb[61].mxu0 }
 0x1d6   :  { %v4882_v35 = vpop.f32.mrb[98].mxu1  ;;  %v2013_v27 = vpop.f32.mrb[62].mxu0 }
 0x1d7   :  { %5428 = vst [vmem:[#allocation19_spill] sm:$0xff] %v4882_v35  ;;  %v4884_v19 = vadd.f32 %v2013_v27, %v1693_v63  ;;  %v1838_v55 = vpop.f32.mrb[99].mxu1  ;;  %v2015_v47 = vpop.f32.mrb[63].mxu0 }
 0x1dc   :  { %v4888_v39 = vpop.f32.mrb[100].mxu1  ;;  %v2018_v31 = vpop.f32.mrb[64].mxu0 }
 0x1dd   :  { %5429 = vst [vmem:[#allocation20_spill] sm:$0xff] %v4888_v39  ;;  %v4892_v23 = vadd.f32 %v2018_v31, %v1698_v4  ;;  %v1843_v59 = vpop.f32.mrb[101].mxu1  ;;  %v2020_v51 = vpop.f32.mrb[65].mxu0 }
 0x1de   :  { %v4894_v43 = vpop.f32.mrb[102].mxu1  ;;  %v2021_v35 = vpop.f32.mrb[66].mxu0 }
 0x1df   :  { %5430 = vst [vmem:[#allocation21_spill] sm:$0xff] %v4892_v23  ;;  %5431 = vst [vmem:[#allocation22_spill] sm:$0xff] %v4894_v43  ;;  %v4896_v27 = vadd.f32 %v2021_v35, %v1701_v8  ;;  %v1846_v63 = vpop.f32.mrb[103].mxu1  ;;  %v2023_v55 = vpop.f32.mrb[67].mxu0 }
 0x1e0   :  { %v3486_v55 = vadd.f32 %v4799_v17, %v4630_v48 }
 0x1e1   :  { %5432 = vst [vmem:[#allocation23_spill] sm:$0xff] %v4896_v27 }
 0x1e4   :  { %v4900_v47 = vpop.f32.mrb[104].mxu1  ;;  %v2026_v39 = vpop.f32.mrb[68].mxu0 }
 0x1e5   :  { %5433 = vst [vmem:[#allocation24_spill] sm:$0xff] %v4900_v47  ;;  %v4904_v31 = vadd.f32 %v2026_v39, %v1706_v12  ;;  %v1851_v4 = vpop.f32.mrb[105].mxu1  ;;  %v2028_v59 = vpop.f32.mrb[69].mxu0 }
 0x1e6   :  { %v4906_v51 = vpop.f32.mrb[106].mxu1  ;;  %v2029_v43 = vpop.f32.mrb[70].mxu0  ;;  %v1717_v4 = vadd.f32 %v4799_v17, %v4616_v38 }
 0x1e7   :  { %5434 = vst [vmem:[#allocation25_spill] sm:$0xff] %v4904_v31  ;;  %5435 = vst [vmem:[#allocation26_spill] sm:$0xff] %v4906_v51  ;;  %v4908_v35 = vadd.f32 %v2029_v43, %v1709_v15  ;;  %v1854_v8 = vpop.f32.mrb[107].mxu1  ;;  %v2031_v63 = vpop.f32.mrb[71].mxu0  ;;  %v3487_v43 = vadd.f32 %v4799_v17, %v4640_v56 }
 0x1e9   :  { %5436 = vst [vmem:[#allocation27_spill] sm:$0xff] %v4908_v35 }
 0x1ec   :  { %v2034_v39 = vpop.f32.mrb[72].mxu0  ;;  %v3382_v12 = vpop.f32.mrb[108].mxu1 }
 0x1ed   :  { %v4920_v15 = vadd.f32 %v2034_v39, %v1714_v20  ;;  %v2220_v59 = vadd.f32 %v3486_v55, %v3382_v12  ;;  %v2036_v8 = vpop.f32.mrb[73].mxu0  ;;  %v2211_v63 = vpop.f32.mrb[109].mxu1 }
 0x1ee   :  { %v2212_v48 = vadd.f32 %v3484_v25, %v2211_v63  ;;  %v2037_v51 = vpop.f32.mrb[74].mxu0  ;;  %v3383_v47 = vpop.f32.mrb[110].mxu1  ;;  %v1722_v8 = vadd.f32 %v4799_v17, %v4628_v46 }
 0x1ef   :  { %v2500_v32 = vmax.f32 %v2220_v59, 0.0  ;;  %v4924_v27 = vadd.f32 %v2037_v51, %v1717_v4  ;;  %v2223_v35 = vadd.f32 %v3487_v43, %v3383_v47  ;;  %v2039_v23 = vpop.f32.mrb[75].mxu0  ;;  %v2214_v38 = vpop.f32.mrb[111].mxu1  ;;  %v3488_v47 = vadd.f32 %v4799_v17, %v4652_v1 }
 0x1f0   :  { %v2498_v31 = vmax.f32 %v2212_v48, 0.0  ;;  %v2215_v56 = vadd.f32 %v3485_v30, %v2214_v38  ;;  %v3489_v59 = vadd.f32 %v4799_v17, %v4662_v9 }
 0x1f1   :  { %v3262_v20 = vpack.c.bf16 %v2500_v32, %v2500_v32  ;;  %v2501_v39 = vmax.f32 %v2223_v35, 0.0  ;;  %v3491_v35 = vadd.f32 %v4799_v17, %v4684_v26 }
 0x1f2   :  { %v3260_v55 = vpack.c.bf16 %v2498_v31, %v2498_v31  ;;  %v2499_v12 = vmax.f32 %v2215_v56, 0.0 }
 0x1f3   :  { %2861 = vst.msk [vmem:[%s5410_s3 + $0x8] sm:$0xf] %vm2858_vm1, %v3262_v20  ;;  %v3263_v23 = vpack.c.bf16 %v2501_v39, %v2501_v39 }
 0x1f4   :  { %2859 = vst.msk [vmem:[%s5410_s3] sm:$0xf] %vm2858_vm1, %v3260_v55  ;;  %v3261_v31 = vpack.c.bf16 %v2499_v12, %v2499_v12  ;;  %v2042_v51 = vpop.f32.mrb[76].mxu0  ;;  %v3386_v46 = vpop.f32.mrb[112].mxu1 }
 0x1f5   :  { %2862 = vst.msk [vmem:[%s5410_s3 + $0xc] sm:$0xf] %vm2858_vm1, %v3263_v23  ;;  %v4948_v1 = vadd.f32 %v2042_v51, %v1722_v8  ;;  %v2236_v25 = vadd.f32 %v3490_v40, %v3386_v46  ;;  %v2044_v4 = vpop.f32.mrb[77].mxu0  ;;  %v2227_v43 = vpop.f32.mrb[113].mxu1  ;;  %v1730_v40 = vadd.f32 %v4799_v17, %v4650_v62  ;;  %v3494_v23 = vadd.f32 %v4799_v17, %v4718_v61 }
 0x1f6   :  { %2860 = vst.msk [vmem:[%s5410_s3 + $0x4] sm:$0xf] %vm2858_vm1, %v3261_v31  ;;  %v2228_v54 = vadd.f32 %v3488_v47, %v2227_v43  ;;  %v2045_v26 = vpop.f32.mrb[78].mxu0  ;;  %v3387_v63 = vpop.f32.mrb[114].mxu1  ;;  %v3492_v31 = vadd.f32 %v4799_v17, %v4696_v37  ;;  %v1733_v61 = vadd.f32 %v4799_v17, %v4660_v7  ;;  %v3493_v43 = vadd.f32 %v4799_v17, %v4706_v50 }
 0x1f7   :  { %v2504_v30 = vmax.f32 %v2236_v25, 0.0  ;;  %v4956_v48 = vadd.f32 %v2045_v26, %v1725_v16  ;;  %v2239_v32 = vadd.f32 %v3491_v35, %v3387_v63  ;;  %v2047_v38 = vpop.f32.mrb[79].mxu0  ;;  %v2230_v56 = vpop.f32.mrb[115].mxu1  ;;  %v3495_v16 = vadd.f32 %v4799_v17, %v4728_v11 }
 0x1f8   :  { %v2502_v20 = vmax.f32 %v2228_v54, 0.0  ;;  %v2231_v39 = vadd.f32 %v3489_v59, %v2230_v56 }
 0x1f9   :  { %v3266_v55 = vpack.c.bf16 %v2504_v30, %v2504_v30  ;;  %v2505_v12 = vmax.f32 %v2239_v32, 0.0 }
 0x1fa   :  { %v3264_v8 = vpack.c.bf16 %v2502_v20, %v2502_v20  ;;  %v2503_v9 = vmax.f32 %v2231_v39, 0.0 }
 0x1fb   :  { %2865 = vst.msk [vmem:[%s5410_s3 + $0x18] sm:$0xf] %vm2858_vm1, %v3266_v55  ;;  %v3267_v47 = vpack.c.bf16 %v2505_v12, %v2505_v12  ;;  %v1738_v12 = vadd.f32 %v4799_v17, %v4672_v14 }
 0x1fc   :  { %2863 = vst.msk [vmem:[%s5410_s3 + $0x10] sm:$0xf] %vm2858_vm1, %v3264_v8  ;;  %v3265_v51 = vpack.c.bf16 %v2503_v9, %v2503_v9  ;;  %v2050_v46 = vpop.f32.mrb[80].mxu0  ;;  %v3390_v62 = vpop.f32.mrb[116].mxu1  ;;  %v3498_v8 = vadd.f32 %v4799_v17, %v4762_v58  ;;  %v1741_v58 = vadd.f32 %v4799_v17, %v4682_v24 }
 0x1fd   :  { %2866 = vst.msk [vmem:[%s5410_s3 + $0x1c] sm:$0xf] %vm2858_vm1, %v3267_v47  ;;  %v4980_v37 = vadd.f32 %v2050_v46, %v1730_v40  ;;  %v2252_v35 = vadd.f32 %v3494_v23, %v3390_v62  ;;  %v2052_v25 = vpop.f32.mrb[81].mxu0  ;;  %v2243_v4 = vpop.f32.mrb[117].mxu1  ;;  %v3496_v40 = vadd.f32 %v4799_v17, %v4740_v22 }
 0x1fe   :  { %2864 = vst.msk [vmem:[%s5410_s3 + $0x14] sm:$0xf] %vm2858_vm1, %v3265_v51  ;;  %v2244_v7 = vadd.f32 %v3492_v31, %v2243_v4  ;;  %v2053_v11 = vpop.f32.mrb[82].mxu0  ;;  %v3391_v59 = vpop.f32.mrb[118].mxu1  ;;  %v3499_v31 = vadd.f32 %v4799_v17, %v4772_v13 }
 0x1ff   :  { %v2508_v54 = vmax.f32 %v2252_v35, 0.0  ;;  %v4988_v26 = vadd.f32 %v2053_v11, %v1733_v61  ;;  %v2255_v63 = vadd.f32 %v3495_v16, %v3391_v59  ;;  %v2055_v30 = vpop.f32.mrb[83].mxu0  ;;  %v2246_v32 = vpop.f32.mrb[119].mxu1  ;;  %v3497_v61 = vadd.f32 %v4799_v17, %v4750_v42 }
 0x200   :  { %v2506_v38 = vmax.f32 %v2244_v7, 0.0  ;;  %v2247_v56 = vadd.f32 %v3493_v43, %v2246_v32  ;;  %v1746_v32 = vadd.f32 %v4799_v17, %v4694_v36  ;;  %v1749_v36 = vadd.f32 %v4799_v17, %v4704_v49 }
 0x201   :  { %v3270_v20 = vpack.c.bf16 %v2508_v54, %v2508_v54  ;;  %v2509_v39 = vmax.f32 %v2255_v63, 0.0 }
 0x202   :  { %v3268_v55 = vpack.c.bf16 %v2506_v38, %v2506_v38  ;;  %v2507_v50 = vmax.f32 %v2247_v56, 0.0  ;;  %v3500_v56 = vadd.f32 %v4799_v17, %v4784_v34 }
 0x203   :  { %2869 = vst.msk [vmem:[%s5410_s3 + $0x28] sm:$0xf] %vm2858_vm1, %v3270_v20  ;;  %v3271_v9 = vpack.c.bf16 %v2509_v39, %v2509_v39 }
 0x204   :  { %2867 = vst.msk [vmem:[%s5410_s3 + $0x20] sm:$0xf] %vm2858_vm1, %v3268_v55  ;;  %v3269_v23 = vpack.c.bf16 %v2507_v50, %v2507_v50  ;;  %v2058_v47 = vpop.f32.mrb[84].mxu0  ;;  %v3394_v14 = vpop.f32.mrb[120].mxu1 }
 0x205   :  { %2870 = vst.msk [vmem:[%s5410_s3 + $0x2c] sm:$0xf] %vm2858_vm1, %v3271_v9  ;;  %v5012_v22 = vadd.f32 %v2058_v47, %v1738_v12  ;;  %v2268_v51 = vadd.f32 %v3498_v8, %v3394_v14  ;;  %v2060_v46 = vpop.f32.mrb[85].mxu0  ;;  %v2259_v62 = vpop.f32.mrb[121].mxu1  ;;  %v3501_v9 = vadd.f32 %v4799_v17, %v4794_v3 }
 0x206   :  { %2868 = vst.msk [vmem:[%s5410_s3 + $0x24] sm:$0xf] %vm2858_vm1, %v3269_v23  ;;  %v2260_v24 = vadd.f32 %v3496_v40, %v2259_v62  ;;  %v2061_v13 = vpop.f32.mrb[86].mxu0  ;;  %v3395_v16 = vpop.f32.mrb[122].mxu1 }
 0x207   :  { %v2512_v35 = vmax.f32 %v2268_v51, 0.0  ;;  %v5020_v25 = vadd.f32 %v2061_v13, %v1741_v58  ;;  %v2271_v4 = vadd.f32 %v3499_v31, %v3395_v16  ;;  %v2063_v43 = vpop.f32.mrb[87].mxu0  ;;  %v2262_v7 = vpop.f32.mrb[123].mxu1  ;;  %v1754_v13 = vadd.f32 %v4799_v17, %v4716_v60 }
 0x208   :  { %v2510_v11 = vmax.f32 %v2260_v24, 0.0  ;;  %v2263_v59 = vadd.f32 %v3497_v61, %v2262_v7  ;;  %v1757_v43 = vadd.f32 %v4799_v17, %v4726_v10 }
 0x209   :  { %v3274_v54 = vpack.c.bf16 %v2512_v35, %v2512_v35  ;;  %v2513_v63 = vmax.f32 %v2271_v4, 0.0 }
 0x20a   :  { %v3272_v30 = vpack.c.bf16 %v2510_v11, %v2510_v11  ;;  %v2511_v42 = vmax.f32 %v2263_v59, 0.0 }
 0x20b   :  { %2873 = vst.msk [vmem:[%s5410_s3 + $0x38] sm:$0xf] %vm2858_vm1, %v3274_v54  ;;  %v3275_v38 = vpack.c.bf16 %v2513_v63, %v2513_v63 }
 0x20c   :  { %2871 = vst.msk [vmem:[%s5410_s3 + $0x30] sm:$0xf] %vm2858_vm1, %v3272_v30  ;;  %v3273_v20 = vpack.c.bf16 %v2511_v42, %v2511_v42  ;;  %v2066_v39 = vpop.f32.mrb[88].mxu0  ;;  %v3398_v55 = vpop.f32.mrb[124].mxu1 }
 0x20d   :  { %2874 = vst.msk [vmem:[%s5410_s3 + $0x3c] sm:$0xf] %vm2858_vm1, %v3275_v38  ;;  %v5040_v50 = vadd.f32 %v2066_v39, %v1746_v32  ;;  %v2284_v34 = vadd.f32 %v3398_v55, %v4808_v45  ;;  %v2068_v12 = vpop.f32.mrb[89].mxu0  ;;  %v2275_v8 = vpop.f32.mrb[125].mxu1 }
 0x20e   :  { %2872 = vst.msk [vmem:[%s5410_s3 + $0x34] sm:$0xf] %vm2858_vm1, %v3273_v20  ;;  %v2276_v49 = vadd.f32 %v3500_v56, %v2275_v8  ;;  %v2069_v40 = vpop.f32.mrb[90].mxu0  ;;  %v3399_v23 = vpop.f32.mrb[126].mxu1  ;;  %v1762_v12 = vadd.f32 %v4799_v17, %v4738_v21 }
 0x20f   :  { %v2516_v47 = vmax.f32 %v2284_v34, 0.0  ;;  %v5049_v14 = vadd.f32 %v2069_v40, %v1749_v36  ;;  %v2287_v58 = vadd.f32 %v3399_v23, %v4812_v0  ;;  %v2071_v31 = vpop.f32.mrb[91].mxu0  ;;  %v2278_v45 = vpop.f32.mrb[127].mxu1 }
 0x210   :  { %v2514_v51 = vmax.f32 %v2276_v49, 0.0  ;;  %v2279_v46 = vadd.f32 %v3501_v9, %v2278_v45  ;;  %v1765_v9 = vadd.f32 %v4799_v17, %v4748_v41 }
 0x211   :  { %v3278_v62 = vpack.c.bf16 %v2516_v47, %v2516_v47  ;;  %v2517_v61 = vmax.f32 %v2287_v58, 0.0 }
 0x212   :  { %v3276_v3 = vpack.c.bf16 %v2514_v51, %v2514_v51  ;;  %v2515_v24 = vmax.f32 %v2279_v46, 0.0 }
 0x213   :  { %2877 = vst.msk [vmem:[%s5410_s3 + $0x48] sm:$0xf] %vm2858_vm1, %v3278_v62  ;;  %v3279_v16 = vpack.c.bf16 %v2517_v61, %v2517_v61 }
 0x214   :  { %2875 = vst.msk [vmem:[%s5410_s3 + $0x40] sm:$0xf] %vm2858_vm1, %v3276_v3  ;;  %v3277_v0 = vpack.c.bf16 %v2515_v24, %v2515_v24  ;;  %v2074_v35 = vpop.f32.mrb[92].mxu0  ;;  %v3402_v4 = vpop.f32.mrb[128].mxu1 }
 0x215   :  { %2878 = vst.msk [vmem:[%s5410_s3 + $0x4c] sm:$0xf] %vm2858_vm1, %v3279_v16  ;;  %v5068_v60 = vadd.f32 %v2074_v35, %v1754_v13  ;;  %v2300_v7 = vadd.f32 %v3402_v4, %v4832_v28  ;;  %v2076_v11 = vpop.f32.mrb[93].mxu0  ;;  %v2291_v59 = vpop.f32.mrb[129].mxu1 }
 0x216   :  { %2876 = vst.msk [vmem:[%s5410_s3 + $0x44] sm:$0xf] %vm2858_vm1, %v3277_v0  ;;  %v2292_v54 = vadd.f32 %v2291_v59, %v4820_v18  ;;  %v2077_v63 = vpop.f32.mrb[94].mxu0  ;;  %v3403_v10 = vpop.f32.mrb[130].mxu1  ;;  %v5437_v0 = vld [vmem:[#allocation2_spill] sm:$0xff] }
 0x217   :  { %v2520_v30 = vmax.f32 %v2300_v7, 0.0  ;;  %v5076_v42 = vadd.f32 %v2077_v63, %v1757_v43  ;;  %v2303_v32 = vadd.f32 %v3403_v10, %v4836_v2  ;;  %v2079_v38 = vpop.f32.mrb[95].mxu0  ;;  %v2294_v56 = vpop.f32.mrb[131].mxu1  ;;  %v1770_v35 = vadd.f32 %v4799_v17, %v5437_v0  ;;  %v5438_v43 = vld [vmem:[#allocation3_spill] sm:$0xff] }
 0x218   :  { %v2518_v20 = vmax.f32 %v2292_v54, 0.0  ;;  %v2295_v28 = vadd.f32 %v2294_v56, %v4824_v33  ;;  %v1773_v7 = vadd.f32 %v4799_v17, %v5438_v43 }
 0x219   :  { %v3282_v39 = vpack.c.bf16 %v2520_v30, %v2520_v30  ;;  %v2521_v55 = vmax.f32 %v2303_v32, 0.0 }
 0x21a   :  { %v3280_v36 = vpack.c.bf16 %v2518_v20, %v2518_v20  ;;  %v2519_v34 = vmax.f32 %v2295_v28, 0.0 }
 0x21b   :  { %2881 = vst.msk [vmem:[%s5410_s3 + $0x58] sm:$0xf] %vm2858_vm1, %v3282_v39  ;;  %v3283_v18 = vpack.c.bf16 %v2521_v55, %v2521_v55 }
 0x21c   :  { %2879 = vst.msk [vmem:[%s5410_s3 + $0x50] sm:$0xf] %vm2858_vm1, %v3280_v36  ;;  %v3281_v2 = vpack.c.bf16 %v2519_v34, %v2519_v34  ;;  %v2082_v33 = vpop.f32.mrb[96].mxu0  ;;  %v3406_v8 = vpop.f32.mrb[132].mxu1 }
 0x21d   :  { %2882 = vst.msk [vmem:[%s5410_s3 + $0x5c] sm:$0xf] %vm2858_vm1, %v3283_v18  ;;  %v5096_v21 = vadd.f32 %v2082_v33, %v1762_v12  ;;  %v2316_v49 = vadd.f32 %v3406_v8, %v4856_v53  ;;  %v2084_v40 = vpop.f32.mrb[97].mxu0  ;;  %v2307_v23 = vpop.f32.mrb[133].mxu1 }
 0x21e   :  { %2880 = vst.msk [vmem:[%s5410_s3 + $0x54] sm:$0xf] %vm2858_vm1, %v3281_v2  ;;  %v2308_v47 = vadd.f32 %v2307_v23, %v4844_v57  ;;  %v2085_v58 = vpop.f32.mrb[98].mxu0  ;;  %v3407_v41 = vpop.f32.mrb[134].mxu1  ;;  %v5439_v2 = vld [vmem:[#allocation4_spill] sm:$0xff]  ;;  %v5441_v23 = vld [vmem:[#allocation25_spill] sm:$0xff] }
 0x21f   :  { %v2524_v31 = vmax.f32 %v2316_v49, 0.0  ;;  %v5104_v45 = vadd.f32 %v2085_v58, %v1765_v9  ;;  %v2319_v51 = vadd.f32 %v3407_v41, %v4860_v5  ;;  %v2087_v46 = vpop.f32.mrb[99].mxu0  ;;  %v2310_v62 = vpop.f32.mrb[135].mxu1  ;;  %v1778_v33 = vadd.f32 %v4799_v17, %v5439_v2  ;;  %v5440_v9 = vld [vmem:[#allocation5_spill] sm:$0xff] }
 0x220   :  { %v2522_v61 = vmax.f32 %v2308_v47, 0.0  ;;  %v2311_v53 = vadd.f32 %v2310_v62, %v4848_v6  ;;  %v1781_v49 = vadd.f32 %v4799_v17, %v5440_v9 }
 0x221   :  { %v3286_v3 = vpack.c.bf16 %v2524_v31, %v2524_v31  ;;  %v2525_v24 = vmax.f32 %v2319_v51, 0.0  ;;  %v5442_v31 = vld [vmem:[#allocation21_spill] sm:$0xff] }
 0x222   :  { %v3284_v13 = vpack.c.bf16 %v2522_v61, %v2522_v61  ;;  %v2523_v16 = vmax.f32 %v2311_v53, 0.0 }
 0x223   :  { %2885 = vst.msk [vmem:[%s5410_s3 + $0x68] sm:$0xf] %vm2858_vm1, %v3286_v3  ;;  %v3287_v57 = vpack.c.bf16 %v2525_v24, %v2525_v24  ;;  %v5443_v3 = vld [vmem:[#allocation27_spill] sm:$0xff] }
 0x224   :  { %2883 = vst.msk [vmem:[%s5410_s3 + $0x60] sm:$0xf] %vm2858_vm1, %v3284_v13  ;;  %v3285_v5 = vpack.c.bf16 %v2523_v16, %v2523_v16  ;;  %v2090_v6 = vpop.f32.mrb[100].mxu0  ;;  %v3410_v4 = vpop.f32.mrb[136].mxu1 }
 0x225   :  { %2886 = vst.msk [vmem:[%s5410_s3 + $0x6c] sm:$0xf] %vm2858_vm1, %v3287_v57  ;;  %v5124_v11 = vadd.f32 %v2090_v6, %v1770_v35  ;;  %v2332_v59 = vadd.f32 %v3410_v4, %v4880_v44  ;;  %v2092_v54 = vpop.f32.mrb[101].mxu0  ;;  %v2323_v63 = vpop.f32.mrb[137].mxu1  ;;  %v5444_v35 = vld [vmem:[#allocation23_spill] sm:$0xff] }
 0x226   :  { %2884 = vst.msk [vmem:[%s5410_s3 + $0x64] sm:$0xf] %vm2858_vm1, %v3285_v5  ;;  %v2324_v10 = vadd.f32 %v2323_v63, %v4868_v52  ;;  %v2093_v30 = vpop.f32.mrb[102].mxu0  ;;  %v3411_v32 = vpop.f32.mrb[138].mxu1 }
 0x227   :  { %v2528_v38 = vmax.f32 %v2332_v59, 0.0  ;;  %v5132_v56 = vadd.f32 %v2093_v30, %v1773_v7  ;;  %v2335_v20 = vadd.f32 %v3411_v32, %v4884_v19  ;;  %v2095_v28 = vpop.f32.mrb[103].mxu0  ;;  %v2326_v39 = vpop.f32.mrb[139].mxu1  ;;  %v5445_v7 = vld [vmem:[#allocation6_spill] sm:$0xff]  ;;  %v5446_v32 = vld [vmem:[#allocation7_spill] sm:$0xff] }
 0x228   :  { %v2526_v55 = vmax.f32 %v2324_v10, 0.0  ;;  %v2327_v44 = vadd.f32 %v2326_v39, %v4872_v29  ;;  %v1786_v59 = vadd.f32 %v4799_v17, %v5445_v7 }
 0x229   :  { %v3290_v36 = vpack.c.bf16 %v2528_v38, %v2528_v38  ;;  %v2529_v34 = vmax.f32 %v2335_v20, 0.0  ;;  %v1789_v38 = vadd.f32 %v4799_v17, %v5446_v32 }
 0x22a   :  { %v3288_v12 = vpack.c.bf16 %v2526_v55, %v2526_v55  ;;  %v2527_v18 = vmax.f32 %v2327_v44, 0.0 }
 0x22b   :  { %2889 = vst.msk [vmem:[%s5410_s3 + $0x78] sm:$0xf] %vm2858_vm1, %v3290_v36  ;;  %v3291_v52 = vpack.c.bf16 %v2529_v34, %v2529_v34 }
 0x22c   :  { %2887 = vst.msk [vmem:[%s5410_s3 + $0x70] sm:$0xf] %vm2858_vm1, %v3288_v12  ;;  %v3289_v19 = vpack.c.bf16 %v2527_v18, %v2527_v18  ;;  %v2098_v29 = vpop.f32.mrb[104].mxu0  ;;  %v3414_v8 = vpop.f32.mrb[140].mxu1 }
 0x22d   :  { %2890 = vst.msk [vmem:[%s5410_s3 + $0x7c] sm:$0xf] %vm2858_vm1, %v3291_v52  ;;  %v5152_v40 = vadd.f32 %v2098_v29, %v1778_v33  ;;  %v2348_v47 = vadd.f32 %v3414_v8, %v5441_v23  ;;  %v2100_v58 = vpop.f32.mrb[105].mxu0  ;;  %v2339_v41 = vpop.f32.mrb[141].mxu1  ;;  %v5447_v23 = vld [vmem:[#allocation8_spill] sm:$0xff] }
 0x22e   :  { %2888 = vst.msk [vmem:[%s5410_s3 + $0x74] sm:$0xf] %vm2858_vm1, %v3289_v19  ;;  %v2340_v51 = vadd.f32 %v2339_v41, %v5442_v31  ;;  %v2101_v46 = vpop.f32.mrb[106].mxu0  ;;  %v3415_v62 = vpop.f32.mrb[142].mxu1  ;;  %v5448_v41 = vld [vmem:[#allocation9_spill] sm:$0xff] }
 0x22f   :  { %v2532_v61 = vmax.f32 %v2348_v47, 0.0  ;;  %v5160_v53 = vadd.f32 %v2101_v46, %v1781_v49  ;;  %v2351_v24 = vadd.f32 %v3415_v62, %v5443_v3  ;;  %v2103_v13 = vpop.f32.mrb[107].mxu0  ;;  %v2342_v16 = vpop.f32.mrb[143].mxu1  ;;  %v1794_v47 = vadd.f32 %v4799_v17, %v5447_v23  ;;  %v5451_v23 = vld [vmem:[#allocation12_spill] sm:$0xff] }
 0x230   :  { %v2530_v0 = vmax.f32 %v2340_v51, 0.0  ;;  %v2343_v57 = vadd.f32 %v2342_v16, %v5444_v35  ;;  %v1797_v31 = vadd.f32 %v4799_v17, %v5448_v41 }
 0x231   :  { %v3294_v5 = vpack.c.bf16 %v2532_v61, %v2532_v61  ;;  %v2533_v6 = vmax.f32 %v2351_v24, 0.0 }
 0x232   :  { %v3292_v4 = vpack.c.bf16 %v2530_v0, %v2530_v0  ;;  %v2531_v43 = vmax.f32 %v2343_v57, 0.0 }
 0x233   :  { %2893 = vst.msk [vmem:[%s5410_s3 + $0x88] sm:$0xf] %vm2858_vm1, %v3294_v5  ;;  %v3295_v54 = vpack.c.bf16 %v2533_v6, %v2533_v6 }
 0x234   :  { %2891 = vst.msk [vmem:[%s5410_s3 + $0x80] sm:$0xf] %vm2858_vm1, %v3292_v4  ;;  %v3293_v63 = vpack.c.bf16 %v2531_v43, %v2531_v43  ;;  %v2106_v10 = vpop.f32.mrb[108].mxu0  ;;  %v3418_v30 = vpop.f32.mrb[144].mxu1 }
 0x235   :  { %2894 = vst.msk [vmem:[%s5410_s3 + $0x8c] sm:$0xf] %vm2858_vm1, %v3295_v54  ;;  %v5180_v20 = vadd.f32 %v2106_v10, %v1786_v59  ;;  %v2364_v28 = vadd.f32 %v3418_v30, %v4948_v1  ;;  %v2108_v39 = vpop.f32.mrb[109].mxu0  ;;  %v2355_v55 = vpop.f32.mrb[145].mxu1  ;;  %v5449_v54 = vld [vmem:[#allocation10_spill] sm:$0xff]  ;;  %v5450_v30 = vld [vmem:[#allocation11_spill] sm:$0xff] }
 0x236   :  { %2892 = vst.msk [vmem:[%s5410_s3 + $0x84] sm:$0xf] %vm2858_vm1, %v3293_v63  ;;  %v2356_v44 = vadd.f32 %v2355_v55, %v4920_v15  ;;  %v2109_v36 = vpop.f32.mrb[110].mxu0  ;;  %v3419_v34 = vpop.f32.mrb[146].mxu1  ;;  %v1802_v63 = vadd.f32 %v4799_v17, %v5449_v54  ;;  %v1805_v32 = vadd.f32 %v4799_v17, %v5450_v30 }
 0x237   :  { %v2536_v12 = vmax.f32 %v2364_v28, 0.0  ;;  %v5188_v18 = vadd.f32 %v2109_v36, %v1789_v38  ;;  %v2367_v2 = vadd.f32 %v3419_v34, %v4956_v48  ;;  %v2111_v33 = vpop.f32.mrb[111].mxu0  ;;  %v2358_v52 = vpop.f32.mrb[147].mxu1 }
 0x238   :  { %v2534_v19 = vmax.f32 %v2356_v44, 0.0  ;;  %v2359_v1 = vadd.f32 %v2358_v52, %v4924_v27 }
 0x239   :  { %v3298_v29 = vpack.c.bf16 %v2536_v12, %v2536_v12  ;;  %v2537_v8 = vmax.f32 %v2367_v2, 0.0 }
 0x23a   :  { %v3296_v9 = vpack.c.bf16 %v2534_v19, %v2534_v19  ;;  %v2535_v49 = vmax.f32 %v2359_v1, 0.0 }
 0x23b   :  { %2897 = vst.msk [vmem:[%s5410_s3 + $0x98] sm:$0xf] %vm2858_vm1, %v3298_v29  ;;  %v3299_v15 = vpack.c.bf16 %v2537_v8, %v2537_v8 }
 0x23c   :  { %2895 = vst.msk [vmem:[%s5410_s3 + $0x90] sm:$0xf] %vm2858_vm1, %v3296_v9  ;;  %v3297_v48 = vpack.c.bf16 %v2535_v49, %v2535_v49  ;;  %v2114_v27 = vpop.f32.mrb[112].mxu0  ;;  %v3422_v58 = vpop.f32.mrb[148].mxu1 }
 0x23d   :  { %2898 = vst.msk [vmem:[%s5410_s3 + $0x9c] sm:$0xf] %vm2858_vm1, %v3299_v15  ;;  %v5208_v51 = vadd.f32 %v2114_v27, %v1794_v47  ;;  %v2380_v46 = vadd.f32 %v3422_v58, %v5012_v22  ;;  %v2116_v62 = vpop.f32.mrb[113].mxu0  ;;  %v2371_v61 = vpop.f32.mrb[149].mxu1  ;;  %v1810_v47 = vadd.f32 %v4799_v17, %v5451_v23 }
 0x23e   :  { %2896 = vst.msk [vmem:[%s5410_s3 + $0x94] sm:$0xf] %vm2858_vm1, %v3297_v48  ;;  %v2372_v3 = vadd.f32 %v2371_v61, %v4980_v37  ;;  %v2117_v24 = vpop.f32.mrb[114].mxu0  ;;  %v3423_v13 = vpop.f32.mrb[150].mxu1  ;;  %v5452_v48 = vld [vmem:[#allocation13_spill] sm:$0xff] }
 0x23f   :  { %v2540_v16 = vmax.f32 %v2380_v46, 0.0  ;;  %v5216_v0 = vadd.f32 %v2117_v24, %v1797_v31  ;;  %v2383_v35 = vadd.f32 %v3423_v13, %v5020_v25  ;;  %v2119_v57 = vpop.f32.mrb[115].mxu0  ;;  %v2374_v5 = vpop.f32.mrb[151].mxu1  ;;  %v1813_v27 = vadd.f32 %v4799_v17, %v5452_v48 }
 0x240   :  { %v2538_v6 = vmax.f32 %v2372_v3, 0.0  ;;  %v2375_v22 = vadd.f32 %v2374_v5, %v4988_v26 }
 0x241   :  { %v3302_v4 = vpack.c.bf16 %v2540_v16, %v2540_v16  ;;  %v2541_v43 = vmax.f32 %v2383_v35, 0.0 }
 0x242   :  { %v3300_v7 = vpack.c.bf16 %v2538_v6, %v2538_v6  ;;  %v2539_v59 = vmax.f32 %v2375_v22, 0.0 }
 0x243   :  { %2901 = vst.msk [vmem:[%s5410_s3 + $0xa8] sm:$0xf] %vm2858_vm1, %v3302_v4  ;;  %v3303_v37 = vpack.c.bf16 %v2541_v43, %v2541_v43 }
 0x244   :  { %2899 = vst.msk [vmem:[%s5410_s3 + $0xa0] sm:$0xf] %vm2858_vm1, %v3300_v7  ;;  %v3301_v25 = vpack.c.bf16 %v2539_v59, %v2539_v59  ;;  %v2122_v26 = vpop.f32.mrb[116].mxu0  ;;  %v3426_v10 = vpop.f32.mrb[152].mxu1  ;;  %v5453_v7 = vld [vmem:[#allocation14_spill] sm:$0xff] }
 0x245   :  { %2902 = vst.msk [vmem:[%s5410_s3 + $0xac] sm:$0xf] %vm2858_vm1, %v3303_v37  ;;  %v5236_v38 = vadd.f32 %v2122_v26, %v1802_v63  ;;  %v2396_v28 = vadd.f32 %v3426_v10, %v5068_v60  ;;  %v2124_v39 = vpop.f32.mrb[117].mxu0  ;;  %v2387_v55 = vpop.f32.mrb[153].mxu1  ;;  %v1818_v59 = vadd.f32 %v4799_v17, %v5453_v7  ;;  %v5454_v63 = vld [vmem:[#allocation15_spill] sm:$0xff] }
 0x246   :  { %2900 = vst.msk [vmem:[%s5410_s3 + $0xa4] sm:$0xf] %vm2858_vm1, %v3301_v25  ;;  %v2388_v44 = vadd.f32 %v2387_v55, %v5040_v50  ;;  %v2125_v36 = vpop.f32.mrb[118].mxu0  ;;  %v3427_v34 = vpop.f32.mrb[154].mxu1  ;;  %v1821_v37 = vadd.f32 %v4799_v17, %v5454_v63 }
 0x247   :  { %v2544_v12 = vmax.f32 %v2396_v28, 0.0  ;;  %v5244_v2 = vadd.f32 %v2125_v36, %v1805_v32  ;;  %v2399_v33 = vadd.f32 %v3427_v34, %v5076_v42  ;;  %v2127_v52 = vpop.f32.mrb[119].mxu0  ;;  %v2390_v19 = vpop.f32.mrb[155].mxu1 }
 0x248   :  { %v2542_v1 = vmax.f32 %v2388_v44, 0.0  ;;  %v2391_v60 = vadd.f32 %v2390_v19, %v5049_v14 }
 0x249   :  { %v3306_v29 = vpack.c.bf16 %v2544_v12, %v2544_v12  ;;  %v2545_v8 = vmax.f32 %v2399_v33, 0.0 }
 0x24a   :  { %v3304_v9 = vpack.c.bf16 %v2542_v1, %v2542_v1  ;;  %v2543_v49 = vmax.f32 %v2391_v60, 0.0  ;;  %v5303_v60 = vld [vmem:[%s5409_s2] ss:$0 sm:$0xff] }
 0x24b   :  { %2905 = vst.msk [vmem:[%s5410_s3 + $0xb8] sm:$0xf] %vm2858_vm1, %v3306_v29  ;;  %v3307_v50 = vpack.c.bf16 %v2545_v8, %v2545_v8 }
 0x24c   :  { %2903 = vst.msk [vmem:[%s5410_s3 + $0xb0] sm:$0xf] %vm2858_vm1, %v3304_v9  ;;  %v3305_v42 = vpack.c.bf16 %v2543_v49, %v2543_v49  ;;  %v2130_v14 = vpop.f32.mrb[120].mxu0  ;;  %v3430_v15 = vpop.f32.mrb[156].mxu1  ;;  %v5456_v49 = vld [vmem:[#allocation17_spill] sm:$0xff] }
 0x24d   :  { %2906 = vst.msk [vmem:[%s5410_s3 + $0xbc] sm:$0xf] %vm2858_vm1, %v3307_v50  ;;  %v5264_v58 = vadd.f32 %v2130_v14, %v1810_v47  ;;  %v2412_v41 = vadd.f32 %v3430_v15, %v5124_v11  ;;  %v2132_v31 = vpop.f32.mrb[121].mxu0  ;;  %v2403_v46 = vpop.f32.mrb[157].mxu1  ;;  %v1829_v23 = vadd.f32 %v5303_v60, %v5456_v49 }
 0x24e   :  { %2904 = vst.msk [vmem:[%s5410_s3 + $0xb4] sm:$0xf] %vm2858_vm1, %v3305_v42  ;;  %v2404_v62 = vadd.f32 %v2403_v46, %v5096_v21  ;;  %v2133_v61 = vpop.f32.mrb[122].mxu0  ;;  %v3431_v3 = vpop.f32.mrb[158].mxu1 }
 0x24f   :  { %v2548_v24 = vmax.f32 %v2412_v41, 0.0  ;;  %v5272_v13 = vadd.f32 %v2133_v61, %v1813_v27  ;;  %v2415_v16 = vadd.f32 %v3431_v3, %v5132_v56  ;;  %v2135_v35 = vpop.f32.mrb[123].mxu0  ;;  %v2406_v57 = vpop.f32.mrb[159].mxu1 }
 0x250   :  { %v2546_v5 = vmax.f32 %v2404_v62, 0.0  ;;  %v2407_v11 = vadd.f32 %v2406_v57, %v5104_v45 }
 0x251   :  { %v3310_v6 = vpack.c.bf16 %v2548_v24, %v2548_v24  ;;  %v2549_v22 = vmax.f32 %v2415_v16, 0.0 }
 0x252   :  { %v3308_v4 = vpack.c.bf16 %v2546_v5, %v2546_v5  ;;  %v2547_v43 = vmax.f32 %v2407_v11, 0.0  ;;  %v5457_v5 = vld [vmem:[#allocation18_spill] sm:$0xff] }
 0x253   :  { %2909 = vst.msk [vmem:[%s5410_s3 + $0xc8] sm:$0xf] %vm2858_vm1, %v3310_v6  ;;  %v3311_v21 = vpack.c.bf16 %v2549_v22, %v2549_v22  ;;  %v1834_v11 = vadd.f32 %v5303_v60, %v5457_v5  ;;  %v5458_v22 = vld [vmem:[#allocation19_spill] sm:$0xff] }
 0x254   :  { %2907 = vst.msk [vmem:[%s5410_s3 + $0xc0] sm:$0xf] %vm2858_vm1, %v3308_v4  ;;  %v3309_v56 = vpack.c.bf16 %v2547_v43, %v2547_v43  ;;  %v2138_v45 = vpop.f32.mrb[124].mxu0  ;;  %v3434_v54 = vpop.f32.mrb[160].mxu1  ;;  %v1837_v4 = vadd.f32 %v5303_v60, %v5458_v22 }
 0x255   :  { %2910 = vst.msk [vmem:[%s5410_s3 + $0xcc] sm:$0xf] %vm2858_vm1, %v3311_v21  ;;  %v2139_v25 = vadd.f32 %v2138_v45, %v1818_v59  ;;  %v2428_v26 = vadd.f32 %v3434_v54, %v5180_v20  ;;  %v2140_v10 = vpop.f32.mrb[125].mxu0  ;;  %v2419_v30 = vpop.f32.mrb[161].mxu1 }
 0x256   :  { %2908 = vst.msk [vmem:[%s5410_s3 + $0xc4] sm:$0xf] %vm2858_vm1, %v3309_v56  ;;  %v2420_v32 = vadd.f32 %v2419_v30, %v5152_v40  ;;  %v2141_v28 = vpop.f32.mrb[126].mxu0  ;;  %v3435_v39 = vpop.f32.mrb[162].mxu1  ;;  %v5455_v40 = vld [vmem:[#allocation16_spill] sm:$0xff] }
 0x257   :  { %v2552_v17 = vmax.f32 %v2428_v26, 0.0  ;;  %v2142_v55 = vadd.f32 %v2141_v28, %v1821_v37  ;;  %v2431_v44 = vadd.f32 %v3435_v39, %v5188_v18  ;;  %v2143_v36 = vpop.f32.mrb[127].mxu0  ;;  %v2422_v34 = vpop.f32.mrb[163].mxu1  ;;  %v1826_v29 = vadd.f32 %v5303_v60, %v5455_v40 }
 0x258   :  { %v2550_v12 = vmax.f32 %v2420_v32, 0.0  ;;  %v2423_v20 = vadd.f32 %v2422_v34, %v5160_v53  ;;  %v5459_v36 = vld [vmem:[#allocation20_spill] sm:$0xff] }
 0x259   :  { %v3314_v33 = vpack.c.bf16 %v2552_v17, %v2552_v17  ;;  %v2553_v52 = vmax.f32 %v2431_v44, 0.0  ;;  %v1842_v34 = vadd.f32 %v5303_v60, %v5459_v36 }
 0x25a   :  { %v3312_v19 = vpack.c.bf16 %v2550_v12, %v2550_v12  ;;  %v2551_v1 = vmax.f32 %v2423_v20, 0.0  ;;  %v5460_v20 = vld [vmem:[#allocation22_spill] sm:$0xff] }
 0x25b   :  { %2913 = vst.msk [vmem:[%s5410_s3 + $0xd8] sm:$0xf] %vm2858_vm1, %v3314_v33  ;;  %v3315_v18 = vpack.c.bf16 %v2553_v52, %v2553_v52  ;;  %v1845_v33 = vadd.f32 %v5303_v60, %v5460_v20 }
 0x25c   :  { %2911 = vst.msk [vmem:[%s5410_s3 + $0xd0] sm:$0xf] %vm2858_vm1, %v3312_v19  ;;  %v3313_v53 = vpack.c.bf16 %v2551_v1, %v2551_v1  ;;  %v2146_v8 = vpop.f32.mrb[128].mxu0  ;;  %v3438_v9 = vpop.f32.mrb[164].mxu1 }
 0x25d   :  { %2914 = vst.msk [vmem:[%s5410_s3 + $0xdc] sm:$0xf] %vm2858_vm1, %v3315_v18  ;;  %v2147_v47 = vadd.f32 %v2146_v8, %v1826_v29  ;;  %v2444_v50 = vadd.f32 %v3438_v9, %v5236_v38  ;;  %v2148_v42 = vpop.f32.mrb[129].mxu0  ;;  %v2435_v14 = vpop.f32.mrb[165].mxu1 }
 0x25e   :  { %2912 = vst.msk [vmem:[%s5410_s3 + $0xd4] sm:$0xf] %vm2858_vm1, %v3313_v53  ;;  %v2436_v15 = vadd.f32 %v2435_v14, %v5208_v51  ;;  %v2149_v48 = vpop.f32.mrb[130].mxu0  ;;  %v3439_v27 = vpop.f32.mrb[166].mxu1 }
 0x25f   :  { %v2556_v41 = vmax.f32 %v2444_v50, 0.0  ;;  %v2150_v31 = vadd.f32 %v2149_v48, %v1829_v23  ;;  %v2447_v46 = vadd.f32 %v3439_v27, %v5244_v2  ;;  %v2151_v62 = vpop.f32.mrb[131].mxu0  ;;  %v2438_v61 = vpop.f32.mrb[167].mxu1 }
 0x260   :  { %v2554_v3 = vmax.f32 %v2436_v15, 0.0  ;;  %v2439_v38 = vadd.f32 %v2438_v61, %v5216_v0 }
 0x261   :  { %v3318_v24 = vpack.c.bf16 %v2556_v41, %v2556_v41  ;;  %v2557_v16 = vmax.f32 %v2447_v46, 0.0  ;;  %v5461_v46 = vld [vmem:[#allocation24_spill] sm:$0xff] }
 0x262   :  { %v3316_v35 = vpack.c.bf16 %v2554_v3, %v2554_v3  ;;  %v2555_v57 = vmax.f32 %v2439_v38, 0.0  ;;  %v1850_v62 = vadd.f32 %v5303_v60, %v5461_v46  ;;  %v5462_v38 = vld [vmem:[#allocation26_spill] sm:$0xff] }
 0x263   :  { %2917 = vst.msk [vmem:[%s5410_s3 + $0xe8] sm:$0xf] %vm2858_vm1, %v3318_v24  ;;  %v3319_v51 = vpack.c.bf16 %v2557_v16, %v2557_v16  ;;  %v1853_v24 = vadd.f32 %v5303_v60, %v5462_v38 }
 0x264   :  { %2915 = vst.msk [vmem:[%s5410_s3 + $0xe0] sm:$0xf] %vm2858_vm1, %v3316_v35  ;;  %v3317_v2 = vpack.c.bf16 %v2555_v57, %v2555_v57  ;;  %v2154_v0 = vpop.f32.mrb[132].mxu0  ;;  %v3442_v6 = vpop.f32.mrb[168].mxu1 }
 0x265   :  { %2918 = vst.msk [vmem:[%s5410_s3 + $0xec] sm:$0xf] %vm2858_vm1, %v3319_v51  ;;  %v2155_v43 = vadd.f32 %v2154_v0, %v1834_v11  ;;  %v2460_v7 = vadd.f32 %v3442_v6, %v2139_v25  ;;  %v2156_v59 = vpop.f32.mrb[133].mxu0  ;;  %v2451_v21 = vpop.f32.mrb[169].mxu1 }
 0x266   :  { %2916 = vst.msk [vmem:[%s5410_s3 + $0xe4] sm:$0xf] %vm2858_vm1, %v3317_v2  ;;  %v2452_v56 = vadd.f32 %v2451_v21, %v5264_v58  ;;  %v2157_v45 = vpop.f32.mrb[134].mxu0  ;;  %v3443_v54 = vpop.f32.mrb[170].mxu1 }
 0x267   :  { %v2560_v63 = vmax.f32 %v2460_v7, 0.0  ;;  %v2158_v37 = vadd.f32 %v2157_v45, %v1837_v4  ;;  %v2463_v26 = vadd.f32 %v3443_v54, %v2142_v55  ;;  %v2159_v10 = vpop.f32.mrb[135].mxu0  ;;  %v2454_v30 = vpop.f32.mrb[171].mxu1 }
 0x268   :  { %v2558_v32 = vmax.f32 %v2452_v56, 0.0  ;;  %v2455_v28 = vadd.f32 %v2454_v30, %v5272_v13 }
 0x269   :  { %v3322_v25 = vpack.c.bf16 %v2560_v63, %v2560_v63  ;;  %v2561_v39 = vmax.f32 %v2463_v26, 0.0 }
 0x26a   :  { %v3320_v17 = vpack.c.bf16 %v2558_v32, %v2558_v32  ;;  %v2559_v44 = vmax.f32 %v2455_v28, 0.0 }
 0x26b   :  { %2921 = vst.msk [vmem:[%s5410_s3 + $0xf8] sm:$0xf] %vm2858_vm1, %v3322_v25  ;;  %v3323_v58 = vpack.c.bf16 %v2561_v39, %v2561_v39 }
 0x26c   :  { %2919 = vst.msk [vmem:[%s5410_s3 + $0xf0] sm:$0xf] %vm2858_vm1, %v3320_v17  ;;  %v3321_v55 = vpack.c.bf16 %v2559_v44, %v2559_v44  ;;  %v2162_v13 = vpop.f32.mrb[136].mxu0  ;;  %v3446_v12 = vpop.f32.mrb[172].mxu1 }
 0x26d   :  { %2922 = vst.msk [vmem:[%s5410_s3 + $0xfc] sm:$0xf] %vm2858_vm1, %v3323_v58  ;;  %v2163_v52 = vadd.f32 %v2162_v13, %v1842_v34  ;;  %v2476_v19 = vadd.f32 %v3446_v12, %v2155_v43  ;;  %v2164_v1 = vpop.f32.mrb[137].mxu0  ;;  %v2467_v40 = vpop.f32.mrb[173].mxu1 }
 0x26e   :  { %2920 = vst.msk [vmem:[%s5410_s3 + $0xf4] sm:$0xf] %vm2858_vm1, %v3321_v55  ;;  %v2468_v29 = vadd.f32 %v2467_v40, %v2147_v47  ;;  %v2165_v18 = vpop.f32.mrb[138].mxu0  ;;  %v3447_v53 = vpop.f32.mrb[174].mxu1 }
 0x26f   :  { %v2564_v8 = vmax.f32 %v2476_v19, 0.0  ;;  %v2166_v9 = vadd.f32 %v2165_v18, %v1845_v33  ;;  %v2479_v49 = vadd.f32 %v3447_v53, %v2158_v37  ;;  %v2167_v23 = vpop.f32.mrb[139].mxu0  ;;  %v2470_v50 = vpop.f32.mrb[175].mxu1 }
 0x270   :  { %v2562_v42 = vmax.f32 %v2468_v29, 0.0  ;;  %v2471_v14 = vadd.f32 %v2470_v50, %v2150_v31 }
 0x271   :  { %v3326_v15 = vpack.c.bf16 %v2564_v8, %v2564_v8  ;;  %v2565_v48 = vmax.f32 %v2479_v49, 0.0 }
 0x272   :  { %v3324_v27 = vpack.c.bf16 %v2562_v42, %v2562_v42  ;;  %v2563_v41 = vmax.f32 %v2471_v14, 0.0 }
 0x273   :  { %2925 = vst.msk [vmem:[%s5410_s3 + $0x108] sm:$0xf] %vm2858_vm1, %v3326_v15  ;;  %v3327_v47 = vpack.c.bf16 %v2565_v48, %v2565_v48 }
 0x274   :  { %2923 = vst.msk [vmem:[%s5410_s3 + $0x100] sm:$0xf] %vm2858_vm1, %v3324_v27  ;;  %v3325_v61 = vpack.c.bf16 %v2563_v41, %v2563_v41  ;;  %v2170_v31 = vpop.f32.mrb[140].mxu0  ;;  %v3450_v3 = vpop.f32.mrb[176].mxu1 }
 0x275   :  { %2926 = vst.msk [vmem:[%s5410_s3 + $0x10c] sm:$0xf] %vm2858_vm1, %v3327_v47  ;;  %v2171_v16 = vadd.f32 %v2170_v31, %v1850_v62  ;;  %v2172_v35 = vpop.f32.mrb[141].mxu0  ;;  %v2483_v57 = vpop.f32.mrb[177].mxu1 }
 0x276   :  { %2924 = vst.msk [vmem:[%s5410_s3 + $0x104] sm:$0xf] %vm2858_vm1, %v3325_v61  ;;  %v2484_v5 = vadd.f32 %v2483_v57, %v2163_v52  ;;  %v2173_v11 = vpop.f32.mrb[142].mxu0  ;;  %v3451_v51 = vpop.f32.mrb[178].mxu1 }
 0x277   :  { %v2492_v2 = vadd.f32 %v3450_v3, %v2171_v16  ;;  %v2174_v0 = vadd.f32 %v2173_v11, %v1853_v24  ;;  %v2175_v6 = vpop.f32.mrb[143].mxu0  ;;  %v2486_v60 = vpop.f32.mrb[179].mxu1 }
 0x278   :  { %v2566_v22 = vmax.f32 %v2484_v5, 0.0  ;;  %v2487_v4 = vadd.f32 %v2486_v60, %v2166_v9 }
 0x279   :  { %v2568_v43 = vmax.f32 %v2492_v2, 0.0  ;;  %v2495_v7 = vadd.f32 %v3451_v51, %v2174_v0 }
 0x27a   :  { %v3328_v59 = vpack.c.bf16 %v2566_v22, %v2566_v22  ;;  %v2567_v21 = vmax.f32 %v2487_v4, 0.0 }
 0x27b   :  { %v3330_v56 = vpack.c.bf16 %v2568_v43, %v2568_v43  ;;  %v2569_v45 = vmax.f32 %v2495_v7, 0.0 }
 0x27c   :  { %2927 = vst.msk [vmem:[%s5410_s3 + $0x110] sm:$0xf] %vm2858_vm1, %v3328_v59  ;;  %v3329_v54 = vpack.c.bf16 %v2567_v21, %v2567_v21 }
 0x27d   :  { %2929 = vst.msk [vmem:[%s5410_s3 + $0x118] sm:$0xf] %vm2858_vm1, %v3330_v56  ;;  %v3331_v63 = vpack.c.bf16 %v2569_v45, %v2569_v45 }
 0x27e   :  { %2928 = vst.msk [vmem:[%s5410_s3 + $0x114] sm:$0xf] %vm2858_vm1, %v3329_v54 }
 0x27f   :  { %2930 = vst.msk [vmem:[%s5410_s3 + $0x11c] sm:$0xf] %vm2858_vm1, %v3331_v63 }

// kernel: lffcnn_forward.7
= control target key start
LH: loop header
LB: loop body
LE: loop exit
PB: predicated region body
PF: predicated region fallthrough
CT: control target
= control target key end

     0   :  { %v355_v0 = vmov 0   ;;  %vm142_vm0 = vcmask 154624   ;;  %vm155_vm1 = vcmask 1040384   ;;  %vm156_vm2 = vcmask 1041408   ;;  %s470_s1 = inlined_call_operand.vmem [shape: bf16[147,64], index: 1, kind: input, shape index: {}]   ;;  %s471_s0 = inlined_call_operand.vmem [shape: bf16[64,147], index: 0, kind: input, shape index: {}]   ;;  %s472_s2 = inlined_call_operand.vmem [shape: f32[1,64], index: 2, kind: input, shape index: {}]   ;;  %s473_s3 = inlined_call_operand.vmem [shape: bf16[64,64], index: 3, kind: output, shape index: {}]  }
   0x1   :  { %162 = vmatprep.subr.bf16.mxu0 %v355_v0  ;;  %311 = vmatprep.subr.bf16.mxu1 %v355_v0  ;;  %v333_v1 = vld [vmem:[%s470_s1] sm:$0xff]   ;;  %v334_v2 = vld [vmem:[%s470_s1 + $0x8] sm:$0xff]   ;;  %v335_v3 = vld [vmem:[%s470_s1 + $0x10] sm:$0xff]   ;;  %v356_v11 = vmov 65535   ;;  %vm259_vm3 = vcmask 519168  }
   0x2   :  { %163 = vmatpush1.bf16.msra.mxu0 %v333_v1  ;;  %321 = vmatpush1.bf16.msra.mxu1 %v333_v1  ;;  %v336_v4 = vld [vmem:[%s470_s1 + $0x18] sm:$0xff]   ;;  %v345_v5 = vld [vmem:[%s471_s0 + $0x4] ss:$8 sps:$4 sm:$0xff]   ;;  %v339_v9 = vld [vmem:[%s470_s1 + $0x30] sm:$0xff]   ;;  %v157_v12 = vsel %vm155_vm1, 4294967295, %v356_v11 }
   0x3   :  { %164 = vmatprep.subr.bf16.mxu0 %v355_v0  ;;  %312 = vmatprep.subr.bf16.mxu1 %v355_v0  ;;  %v348_v6 = vld [vmem:[%s471_s0 + $0x24] ss:$8 sps:$4 sm:$0xff]   ;;  %v340_v10 = vld [vmem:[%s470_s1 + $0x38] sm:$0xff]   ;;  %v342_v14 = vld [vmem:[%s470_s1 + $0x48] ss:$0 sps:$4 sm:$0x33]  }
   0x4   :  { %291 = vmatprep.mubr.msk.bf16.mxu0 %vm142_vm0, %v345_v5  ;;  %v337_v7 = vld [vmem:[%s470_s1 + $0x20] sm:$0xff]   ;;  %293 = vmatprep.mubr.msk.bf16.mxu1 %vm142_vm0, %v348_v6  ;;  %v338_v8 = vld [vmem:[%s470_s1 + $0x28] sm:$0xff]   ;;  %v158_v15 = vsel %vm156_vm2, %v157_v12, 0  ;;  %v349_v19 = vld [vmem:[%s471_s0 + $0x14] ss:$8 sps:$4 sm:$0xff]  }
   0x5   :  { %v341_v13 = vld [vmem:[%s470_s1 + $0x40] sm:$0xff]   ;;  %v160_v16 = vand.u32 %v342_v14, %v158_v15  ;;  %v351_v20 = vld [vmem:[%s471_s0 + $0x34] ss:$8 sps:$4 sm:$0xff]   ;;  %v353_v21 = vld [vmem:[%s471_s0 + $0x10] ss:$8 sps:$4 sm:$0xff]  }
   0x6   :  { %165 = vmatpush1.bf16.msra.mxu0 %v334_v2  ;;  %322 = vmatpush1.bf16.msra.mxu1 %v334_v2  ;;  %v343_v17 = vld [vmem:[%s471_s0] ss:$8 sps:$4 sm:$0xff]   ;;  %v354_v22 = vld [vmem:[%s471_s0 + $0x30] ss:$8 sps:$4 sm:$0xff]  }
   0x7   :  { %166 = vmatprep.subr.bf16.mxu0 %v355_v0  ;;  %313 = vmatprep.subr.bf16.mxu1 %v355_v0  ;;  %v346_v18 = vld [vmem:[%s471_s0 + $0x20] ss:$8 sps:$4 sm:$0xff]  }
   0x8   :  { %v272_v23 = vld [vmem:[%s472_s2] ss:$0 sm:$0xff] }
   0xa   :  { %167 = vmatpush1.bf16.msra.mxu0 %v335_v3  ;;  %323 = vmatpush1.bf16.msra.mxu1 %v335_v3 }
   0xb   :  { %168 = vmatprep.subr.bf16.mxu0 %v355_v0  ;;  %314 = vmatprep.subr.bf16.mxu1 %v355_v0 }
   0xe   :  { %169 = vmatpush1.bf16.msra.mxu0 %v336_v4  ;;  %324 = vmatpush1.bf16.msra.mxu1 %v336_v4 }
   0xf   :  { %170 = vmatprep.subr.bf16.mxu0 %v355_v0  ;;  %315 = vmatprep.subr.bf16.mxu1 %v355_v0 }
  0x12   :  { %171 = vmatpush1.bf16.msra.mxu0 %v337_v7  ;;  %325 = vmatpush1.bf16.msra.mxu1 %v337_v7 }
  0x13   :  { %172 = vmatprep.subr.bf16.mxu0 %v355_v0  ;;  %316 = vmatprep.subr.bf16.mxu1 %v355_v0 }
  0x16   :  { %173 = vmatpush1.bf16.msra.mxu0 %v338_v8  ;;  %326 = vmatpush1.bf16.msra.mxu1 %v338_v8 }
  0x17   :  { %174 = vmatprep.subr.bf16.mxu0 %v355_v0  ;;  %317 = vmatprep.subr.bf16.mxu1 %v355_v0 }
  0x1a   :  { %175 = vmatpush1.bf16.msra.mxu0 %v339_v9  ;;  %327 = vmatpush1.bf16.msra.mxu1 %v339_v9 }
  0x1b   :  { %176 = vmatprep.subr.bf16.mxu0 %v355_v0  ;;  %318 = vmatprep.subr.bf16.mxu1 %v355_v0 }
  0x1e   :  { %177 = vmatpush1.bf16.msra.mxu0 %v340_v10  ;;  %328 = vmatpush1.bf16.msra.mxu1 %v340_v10 }
  0x1f   :  { %178 = vmatprep.subr.bf16.mxu0 %v355_v0  ;;  %319 = vmatprep.subr.bf16.mxu1 %v355_v0 }
  0x22   :  { %179 = vmatpush1.bf16.msra.mxu0 %v341_v13  ;;  %329 = vmatpush1.bf16.msra.mxu1 %v341_v13 }
  0x23   :  { %180 = vmatprep.subr.bf16.mxu0 %v355_v0  ;;  %320 = vmatprep.subr.bf16.mxu1 %v355_v0 }
  0x26   :  { %181 = vmatpush1.bf16.msra.mxu0 %v160_v16  ;;  %330 = vmatpush1.bf16.msra.mxu1 %v160_v16 }
  0x29   :  { %195 = vmatmul.mubr.bf16.vlgmr.msra.gmra.mrb[0].mxu0 %v343_v17  ;;  %211 = vmatmul.mubr.bf16.vlgmr.msra.gmra.mrb[0].mxu1 %v346_v18 }
  0x2a   :  { %292 = vmatprep.mubr.msk.bf16.mxu0 %vm142_vm0, %v349_v19  ;;  %294 = vmatprep.mubr.msk.bf16.mxu1 %vm142_vm0, %v351_v20 }
  0x31   :  { %203 = vmatmul.mubr.bf16.gmra.mrb[4].mxu0 %v353_v21  ;;  %219 = vmatmul.mubr.bf16.gmra.mrb[4].mxu1 %v354_v22 }
  0xfc   :  { %v196_v24 = vpop.f32.mrb[0].mxu0  ;;  %v212_v25 = vpop.f32.mrb[0].mxu1 }
  0xfd   :  { %v197_v26 = vadd.f32 %v272_v23, %v196_v24  ;;  %v213_v27 = vadd.f32 %v272_v23, %v212_v25  ;;  %v198_v28 = vpop.f32.mrb[1].mxu0  ;;  %v214_v29 = vpop.f32.mrb[1].mxu1 }
  0xfe   :  { %v199_v30 = vpop.f32.mrb[2].mxu0  ;;  %v215_v31 = vpop.f32.mrb[2].mxu1 }
  0xff   :  { %v303_v32 = vpack.c.bf16 %v197_v26, %v197_v26  ;;  %v307_v33 = vpack.c.bf16 %v213_v27, %v213_v27  ;;  %v200_v34 = vadd.f32 %v272_v23, %v199_v30  ;;  %v216_v35 = vadd.f32 %v272_v23, %v215_v31  ;;  %v201_v36 = vpop.f32.mrb[3].mxu0  ;;  %v217_v37 = vpop.f32.mrb[3].mxu1 }
 0x101   :  { %260 = vst.msk [vmem:[%s473_s3] sm:$0xf] %vm259_vm3, %v303_v32  ;;  %264 = vst.msk [vmem:[%s473_s3 + $0x10] sm:$0xf] %vm259_vm3, %v307_v33  ;;  %v304_v38 = vpack.c.bf16 %v200_v34, %v200_v34  ;;  %v308_v39 = vpack.c.bf16 %v216_v35, %v216_v35 }
 0x103   :  { %261 = vst.msk [vmem:[%s473_s3 + $0x4] sm:$0xf] %vm259_vm3, %v304_v38  ;;  %265 = vst.msk [vmem:[%s473_s3 + $0x14] sm:$0xf] %vm259_vm3, %v308_v39 }
 0x104   :  { %v204_v40 = vpop.f32.mrb[4].mxu0  ;;  %v220_v41 = vpop.f32.mrb[4].mxu1 }
 0x105   :  { %v205_v42 = vadd.f32 %v272_v23, %v204_v40  ;;  %v221_v43 = vadd.f32 %v272_v23, %v220_v41  ;;  %v206_v44 = vpop.f32.mrb[5].mxu0  ;;  %v222_v45 = vpop.f32.mrb[5].mxu1 }
 0x106   :  { %v207_v46 = vpop.f32.mrb[6].mxu0  ;;  %v223_v47 = vpop.f32.mrb[6].mxu1 }
 0x107   :  { %v305_v48 = vpack.c.bf16 %v205_v42, %v205_v42  ;;  %v309_v49 = vpack.c.bf16 %v221_v43, %v221_v43  ;;  %v208_v50 = vadd.f32 %v272_v23, %v207_v46  ;;  %v224_v51 = vadd.f32 %v272_v23, %v223_v47  ;;  %v209_v52 = vpop.f32.mrb[7].mxu0  ;;  %v225_v53 = vpop.f32.mrb[7].mxu1 }
 0x109   :  { %262 = vst.msk [vmem:[%s473_s3 + $0x8] sm:$0xf] %vm259_vm3, %v305_v48  ;;  %266 = vst.msk [vmem:[%s473_s3 + $0x18] sm:$0xf] %vm259_vm3, %v309_v49  ;;  %v306_v54 = vpack.c.bf16 %v208_v50, %v208_v50  ;;  %v310_v55 = vpack.c.bf16 %v224_v51, %v224_v51 }
 0x10b   :  { %263 = vst.msk [vmem:[%s473_s3 + $0xc] sm:$0xf] %vm259_vm3, %v306_v54  ;;  %267 = vst.msk [vmem:[%s473_s3 + $0x1c] sm:$0xf] %vm259_vm3, %v310_v55 }

// kernel: lffcnn_forward.8
= control target key start
LH: loop header
LB: loop body
LE: loop exit
PB: predicated region body
PF: predicated region fallthrough
CT: control target
= control target key end

     0   :  { %s4749_s18 = smov 0   ;;  %s4751_s19 = smov 0   ;;  %s6081_s0 = inlined_call_operand.vmem [shape: bf16[2,288,576], index: 0, kind: input, shape index: {}]   ;;  %s6082_s1 = inlined_call_operand.vmem [shape: bf16[2,288,576], index: 1, kind: input, shape index: {}]   ;;  %s6083_s2 = inlined_call_operand.vmem [shape: bf16[576,64], index: 2, kind: input, shape index: {}]   ;;  %s6084_s3 = inlined_call_operand.vmem [shape: bf16[576,64], index: 3, kind: input, shape index: {}]   ;;  %s6085_s4 = inlined_call_operand.vmem [shape: f32[1,64], index: 4, kind: input, shape index: {}]   ;;  %s6086_s5 = inlined_call_operand.vmem [shape: bf16[288,64], index: 5, kind: output, shape index: {}]  }
   0x1   :  { %s4753_s20 = smov 0  }
   0x2 LB: > { %s24_s21 = sadd.s32 1, %s4712_s19  ;;  %p3707_p0 = scmp.ge.s32.totalorder %s4716_s20, 1  ;;  %s4716_s20 = sphi %s4753_s20, %s15_s20   ;;  %s4712_s19 = sphi %s4751_s19, %s6136_s19   ;;  %s4708_s18 = sphi %s4749_s18, %s6135_s18  }
   0x3   : > { %p25_p1 = scmp.ge.s32.totalorder %s24_s21, 2  ;;  %p225_p2 = scmp.lt.s32.totalorder %s4716_s20, 3 }
   0x5   : > { %s6138_s21 = smov (%p25_p1, %s24_s21), 0  ;;  %p226_p3 = pnand %p3707_p0, %p225_p2 }
   0x7   : > { %229 = sbr.rel (%p226_p3) target bundleno = 682 (0x2aa), region = 40 }
   0xe   : > { %v4370_v0 = vld [vmem:[%s6084_s3] sm:$0xff]   ;;  %v4718_v1 = vmov 0   ;;  %p269_p4 = scmp.lt.s32.totalorder %s4708_s18, 1  ;;  %v4372_v3 = vld [vmem:[%s6084_s3 + $0x8] sm:$0xff]   ;;  %v4375_v5 = vld [vmem:[%s6084_s3 + $0x110] sm:$0xff]   ;;  %vm1323_vm0 = vcmask 523264  }
   0xf   : > { %1378 = vmatprep.subr.bf16.mxu0 %v4718_v1  ;;  %v4371_v2 = vld [vmem:[%s6084_s3 + $0x100] sm:$0xff]   ;;  %v4373_v4 = vld [vmem:[%s6084_s3 + $0x108] sm:$0xff]   ;;  %v4374_v6 = vld [vmem:[%s6084_s3 + $0x10] sm:$0xff]   ;;  %p3999_p5 = scmp.ne.s32.totalorder %s4708_s18, 0 }
  0x10   : > { %1379 = vmatpush1.bf16.msra.mxu0 %v4370_v0  ;;  %4122 = vmatprep.subr.bf16.mxu1 %v4371_v2  ;;  %s4785_s30 = scalar_select %p269_p4, %s4708_s18, 1  ;;  %v4377_v8 = vld [vmem:[%s6084_s3 + $0x118] sm:$0xff]   ;;  %v4379_v10 = vld [vmem:[%s6084_s3 + $0x20] sm:$0xff]   ;;  %v4382_v14 = vld [vmem:[%s6084_s3 + $0x28] sm:$0xff]  }
  0x11   : > { %1380 = vmatprep.subr.bf16.mxu0 %v4718_v1  ;;  %4123 = vmatpush3.bf16.msra.mxu1 %v4371_v2  ;;  %v4376_v9 = vld [vmem:[%s6084_s3 + $0x18] sm:$0xff]   ;;  %v4381_v12 = vld [vmem:[%s6083_s2] sm:$0xff]   ;;  %v4383_v15 = vld [vmem:[%s6083_s2 + $0x8] sm:$0xff]  }
  0x12   : > { %4124 = vmatprep.subr.bf16.mxu1 %v4373_v4  ;;  %s4344_s8 = smul.u32 720, %s4785_s30  ;;  %v4385_v16 = vld [vmem:[%s6084_s3 + $0x30] sm:$0xff]   ;;  %v4388_v20 = vld [vmem:[%s6084_s3 + $0x38] sm:$0xff]   ;;  %v4391_v22 = vld [vmem:[%s6084_s3 + $0x40] sm:$0xff]  }
  0x13   : > { %v4387_v18 = vld [vmem:[%s6083_s2 + $0x10] sm:$0xff]   ;;  %v4390_v21 = vld [vmem:[%s6083_s2 + $0x18] sm:$0xff]   ;;  %v4393_v24 = vld [vmem:[%s6083_s2 + $0x20] sm:$0xff]  }
  0x14   : > { %1381 = vmatpush1.bf16.msra.mxu0 %v4372_v3  ;;  %s4800_s13 = scalar_lea.vmem %s6082_s1, %s4344_s8  ;;  %v4394_v26 = vld [vmem:[%s6084_s3 + $0x48] sm:$0xff]   ;;  %v4396_v28 = vld [vmem:[%s6084_s3 + $0x50] sm:$0xff]   ;;  %v4399_v32 = vld [vmem:[%s6084_s3 + $0x58] sm:$0xff]   ;;  %s4941_s16 = scalar_lea.vmem %s6081_s0, %s4344_s8 }
  0x15   : > { %1382 = vmatprep.subr.bf16.mxu0 %v4718_v1  ;;  %4125 = vmatpush3.bf16.msra.mxu1 %v4373_v4  ;;  %v4378_v7 = vld [vmem:[%s4800_s13 + $0x10] ss:$20 sps:$4 sm:$0xff]   ;;  %v4380_v11 = vld [vmem:[%s4800_s13 + $0x38] ss:$20 sps:$4 sm:$0xff]   ;;  %v4384_v13 = vld [vmem:[%s4800_s13 + $0x60] ss:$20 sps:$4 sm:$0xff]  }
  0x16   : > { %4126 = vmatprep.subr.bf16.mxu1 %v4375_v5  ;;  %4130 = vmatprep.mubr.msk.bf16.mxu1 %vm1323_vm0, %v4378_v7  ;;  %v4386_v17 = vld [vmem:[%s4800_s13 + $0x88] ss:$20 sps:$4 sm:$0xff]   ;;  %v4389_v19 = vld [vmem:[%s4800_s13 + $0xb0] ss:$20 sps:$4 sm:$0xff]   ;;  %v4392_v23 = vld [vmem:[%s4800_s13 + $0xd8] ss:$20 sps:$4 sm:$0xff]  }
  0x17   : > { %v4395_v25 = vld [vmem:[%s4800_s13 + $0x100] ss:$20 sps:$4 sm:$0xff]   ;;  %v4398_v27 = vld [vmem:[%s6083_s2 + $0x28] sm:$0xff]   ;;  %v4401_v31 = vld [vmem:[%s4800_s13 + $0x150] ss:$20 sps:$4 sm:$0xff]  }
  0x18   : > { %1383 = vmatpush1.bf16.msra.mxu0 %v4374_v6  ;;  %v4397_v29 = vld [vmem:[%s4800_s13 + $0x128] ss:$20 sps:$4 sm:$0xff]   ;;  %v4400_v30 = vld [vmem:[%s6083_s2 + $0x30] sm:$0xff]   ;;  %v4414_v33 = vld [vmem:[%s4800_s13 + $0x4] ss:$20 sps:$4 sm:$0xff]  }
  0x19   : > { %1384 = vmatprep.subr.bf16.mxu0 %v4718_v1  ;;  %4127 = vmatpush3.bf16.msra.mxu1 %v4375_v5  ;;  %v4404_v34 = vld [vmem:[%s6083_s2 + $0x38] sm:$0xff]   ;;  %v4402_v35 = vld [vmem:[%s6084_s3 + $0x60] sm:$0xff]   ;;  %v4405_v39 = vld [vmem:[%s6084_s3 + $0x68] sm:$0xff]  }
  0x1a   : > { %4128 = vmatprep.subr.bf16.mxu1 %v4377_v8  ;;  %1410 = vmatprep.mubr.bf16.mxu0 %v4414_v33  ;;  %v4403_v36 = vld [vmem:[%s4800_s13 + $0x178] ss:$20 sps:$4 sm:$0xff]   ;;  %v4406_v37 = vld [vmem:[%s6083_s2 + $0x40] sm:$0xff]   ;;  %v4408_v41 = vld [vmem:[%s6084_s3 + $0x70] sm:$0xff]  }
  0x1b   : > { %v4407_v38 = vld [vmem:[%s4800_s13 + $0x1a0] ss:$20 sps:$4 sm:$0xff]   ;;  %v4410_v40 = vld [vmem:[%s6083_s2 + $0x48] sm:$0xff]   ;;  %v4416_v44 = vld [vmem:[%s4800_s13 + $0x1f0] ss:$20 sps:$4 sm:$0xff]  }
  0x1c   : > { %1385 = vmatpush1.bf16.msra.mxu0 %v4376_v9  ;;  %v4409_v42 = vld [vmem:[%s4800_s13 + $0x1c8] ss:$20 sps:$4 sm:$0xff]   ;;  %v4415_v43 = vld [vmem:[%s6083_s2 + $0x50] sm:$0xff]   ;;  %v4418_v48 = vld [vmem:[%s6084_s3 + $0x80] sm:$0xff]  }
  0x1d   : > { %1386 = vmatprep.subr.bf16.mxu0 %v4718_v1  ;;  %4129 = vmatpush3.bf16.msra.mxu1 %v4377_v8  ;;  %v4411_v45 = vld [vmem:[%s6084_s3 + $0x78] sm:$0xff]   ;;  %v4412_v46 = vld [vmem:[%s4800_s13] ss:$20 sps:$4 sm:$0xff]   ;;  %v4426_v53 = vld [vmem:[%s6084_s3 + $0x88] sm:$0xff]  }
  0x1e   : > { %2629 = vmatprep.subr.bf16.mxu1 %v4718_v1  ;;  %v4419_v47 = vld [vmem:[%s6083_s2 + $0x58] sm:$0xff]   ;;  %v4420_v49 = vld [vmem:[%s4800_s13 + $0x2c] ss:$20 sps:$4 sm:$0xff]   ;;  %v4428_v56 = vld [vmem:[%s4800_s13 + $0x54] ss:$20 sps:$4 sm:$0xff]  }
  0x1f   : > { %v4417_v50 = vld [vmem:[%s4800_s13 + $0x218] ss:$20 sps:$4 sm:$0xff]   ;;  %v4423_v51 = vld [vmem:[%s4800_s13 + $0x240] ss:$20 sps:$4 sm:$0xff]   ;;  %v4422_v54 = vld [vmem:[%s4800_s13 + $0x28] ss:$20 sps:$4 sm:$0xff]  }
  0x20   : > { %1387 = vmatpush1.bf16.msra.mxu0 %v4379_v10  ;;  %4131 = vmatmul.mubr.msk.bf16.vlgmr.msra.gmra.mrb[0].mxu1 %vm1323_vm0, %v4380_v11  ;;  %v4424_v52 = vld [vmem:[%s6083_s2 + $0x60] sm:$0xff]   ;;  %v4427_v55 = vld [vmem:[%s6083_s2 + $0x68] sm:$0xff]   ;;  %v4434_v57 = vld [vmem:[%s6084_s3 + $0x90] sm:$0xff]  }
  0x21   : > { %1388 = vmatprep.subr.bf16.mxu0 %v4718_v1  ;;  %2630 = vmatpush1.bf16.msra.mxu1 %v4381_v12  ;;  %v4425_v58 = vld [vmem:[%s4800_s13 + $0x268] ss:$20 sps:$4 sm:$0xff]   ;;  %v4431_v59 = vld [vmem:[%s4800_s13 + $0x290] ss:$20 sps:$4 sm:$0xff]   ;;  %v4432_v3 = vld [vmem:[%s4800_s13 + $0x2b8] ss:$20 sps:$4 sm:$0xff]  }
  0x22   : > { %4134 = vmatprep.mubr.msk.bf16.mxu1 %vm1323_vm0, %v4384_v13  ;;  %2631 = vmatprep.subr.bf16.mxu1 %v4718_v1  ;;  %v4433_v60 = vld [vmem:[%s6083_s2 + $0x70] sm:$0xff]   ;;  %v4443_v61 = vld [vmem:[%s6084_s3 + $0x98] sm:$0xff]   ;;  %v4451_v2 = vld [vmem:[%s6084_s3 + $0xa0] sm:$0xff]  }
  0x23   : > { %v4435_v62 = vld [vmem:[%s6083_s2 + $0x78] sm:$0xff]   ;;  %v4430_v63 = vld [vmem:[%s4800_s13 + $0x50] ss:$20 sps:$4 sm:$0xff]   ;;  %v4461_v5 = vld [vmem:[%s6084_s3 + $0xa8] sm:$0xff]  }
  0x24   : > { %1389 = vmatpush1.bf16.msra.mxu0 %v4382_v14  ;;  %v4436_v0 = vld [vmem:[%s4800_s13 + $0x7c] ss:$20 sps:$4 sm:$0xff]   ;;  %v4441_v4 = vld [vmem:[%s4941_s16 + $0x4] ss:$20 sps:$4 sm:$0xff]   ;;  %v4439_v7 = vld [vmem:[%s4941_s16] ss:$20 sps:$4 sm:$0xff]  }
  0x25   : > { %1390 = vmatprep.subr.bf16.mxu0 %v4718_v1  ;;  %2632 = vmatpush1.bf16.msra.mxu1 %v4383_v15  ;;  %v4438_v6 = vld [vmem:[%s4800_s13 + $0x78] ss:$20 sps:$4 sm:$0xff]   ;;  %v4470_v9 = vld [vmem:[%s6084_s3 + $0xb0] sm:$0xff]   ;;  %v4442_v10 = vld [vmem:[%s6083_s2 + $0x80] sm:$0xff]  }
  0x26   : > { %2633 = vmatprep.subr.bf16.mxu1 %v4718_v1  ;;  %v4444_v8 = vld [vmem:[%s4800_s13 + $0xa4] ss:$20 sps:$4 sm:$0xff]   ;;  %v4447_v11 = vld [vmem:[%s4941_s16 + $0x2c] ss:$20 sps:$4 sm:$0xff]   ;;  %v4449_v15 = vld [vmem:[%s4941_s16 + $0x28] ss:$20 sps:$4 sm:$0xff]  }
  0x27   : > { %v4480_v12 = vld [vmem:[%s6084_s3 + $0xb8] sm:$0xff]   ;;  %v4446_v13 = vld [vmem:[%s4800_s13 + $0xa0] ss:$20 sps:$4 sm:$0xff]   ;;  %v4450_v14 = vld [vmem:[%s6083_s2 + $0x88] sm:$0xff]  }
  0x28   : > { %1391 = vmatpush1.bf16.msra.mxu0 %v4385_v16  ;;  %4135 = vmatmul.mubr.msk.bf16.gmra.mrb[4].mxu1 %vm1323_vm0, %v4386_v17  ;;  %v4452_v16 = vld [vmem:[%s4800_s13 + $0xcc] ss:$20 sps:$4 sm:$0xff]  }
  0x29   : > { %1392 = vmatprep.subr.bf16.mxu0 %v4718_v1  ;;  %2634 = vmatpush1.bf16.msra.mxu1 %v4387_v18  ;;  %v4489_v17 = vld [vmem:[%s6084_s3 + $0xc0] sm:$0xff]   ;;  %v4455_v18 = vld [vmem:[%s4941_s16 + $0x54] ss:$20 sps:$4 sm:$0xff]   ;;  %v4465_v33 = vld [vmem:[%s4941_s16 + $0x78] ss:$20 sps:$4 sm:$0xff]  }
  0x2a   : > { %4138 = vmatprep.mubr.msk.bf16.mxu1 %vm1323_vm0, %v4389_v19  ;;  %2635 = vmatprep.subr.bf16.mxu1 %v4718_v1  ;;  %v4458_v19 = vld [vmem:[%s6083_s2 + $0x90] sm:$0xff]  }
  0x2c   : > { %1393 = vmatpush1.bf16.msra.mxu0 %v4388_v20  ;;  %v4497_v20 = vld [vmem:[%s6084_s3 + $0xc8] sm:$0xff]  }
  0x2d   : > { %1394 = vmatprep.subr.bf16.mxu0 %v4718_v1  ;;  %2636 = vmatpush1.bf16.msra.mxu1 %v4390_v21  ;;  %v4454_v21 = vld [vmem:[%s4800_s13 + $0xc8] ss:$20 sps:$4 sm:$0xff]  }
  0x2e   : > { %2637 = vmatprep.subr.bf16.mxu1 %v4718_v1 }
  0x30   : > { %1395 = vmatpush1.bf16.msra.mxu0 %v4391_v22  ;;  %4139 = vmatmul.mubr.msk.bf16.gmra.mrb[8].mxu1 %vm1323_vm0, %v4392_v23  ;;  %v4466_v22 = vld [vmem:[%s6083_s2 + $0x98] sm:$0xff]   ;;  %v4459_v23 = vld [vmem:[%s4800_s13 + $0xf4] ss:$20 sps:$4 sm:$0xff]  }
  0x31   : > { %1396 = vmatprep.subr.bf16.mxu0 %v4718_v1  ;;  %2638 = vmatpush1.bf16.msra.mxu1 %v4393_v24  ;;  %v4505_v24 = vld [vmem:[%s6084_s3 + $0xd0] sm:$0xff]  }
  0x32   : > { %4142 = vmatprep.mubr.msk.bf16.mxu1 %vm1323_vm0, %v4395_v25  ;;  %2639 = vmatprep.subr.bf16.mxu1 %v4718_v1  ;;  %v4457_v25 = vld [vmem:[%s4941_s16 + $0x50] ss:$20 sps:$4 sm:$0xff]  }
  0x34   : > { %1397 = vmatpush1.bf16.msra.mxu0 %v4394_v26  ;;  %v4463_v26 = vld [vmem:[%s4941_s16 + $0x7c] ss:$20 sps:$4 sm:$0xff]  }
  0x35   : > { %1398 = vmatprep.subr.bf16.mxu0 %v4718_v1  ;;  %2640 = vmatpush1.bf16.msra.mxu1 %v4398_v27  ;;  %v4474_v27 = vld [vmem:[%s6083_s2 + $0xa0] sm:$0xff]  }
  0x36   : > { %2641 = vmatprep.subr.bf16.mxu1 %v4718_v1 }
  0x38   : > { %1399 = vmatpush1.bf16.msra.mxu0 %v4396_v28  ;;  %4143 = vmatmul.mubr.msk.bf16.gmra.mrb[12].mxu1 %vm1323_vm0, %v4397_v29  ;;  %v4513_v28 = vld [vmem:[%s6084_s3 + $0xd8] sm:$0xff]   ;;  %v4462_v29 = vld [vmem:[%s4800_s13 + $0xf0] ss:$20 sps:$4 sm:$0xff]  }
  0x39   : > { %1400 = vmatprep.subr.bf16.mxu0 %v4718_v1  ;;  %2642 = vmatpush1.bf16.msra.mxu1 %v4400_v30  ;;  %v4484_v30 = vld [vmem:[%s6083_s2 + $0xa8] sm:$0xff]  }
  0x3a   : > { %4146 = vmatprep.mubr.msk.bf16.mxu1 %vm1323_vm0, %v4401_v31  ;;  %2643 = vmatprep.subr.bf16.mxu1 %v4718_v1  ;;  %v4467_v31 = vld [vmem:[%s4800_s13 + $0x11c] ss:$20 sps:$4 sm:$0xff]  }
  0x3c   : > { %1401 = vmatpush1.bf16.msra.mxu0 %v4399_v32  ;;  %v4521_v32 = vld [vmem:[%s6084_s3 + $0xe0] sm:$0xff]  }
  0x3d   : > { %1402 = vmatprep.subr.bf16.mxu0 %v4718_v1  ;;  %2644 = vmatpush1.bf16.msra.mxu1 %v4404_v34  ;;  %v4471_v34 = vld [vmem:[%s4941_s16 + $0xa4] ss:$20 sps:$4 sm:$0xff]  }
  0x3e   : > { %2645 = vmatprep.subr.bf16.mxu1 %v4718_v1 }
  0x40   : > { %1403 = vmatpush1.bf16.msra.mxu0 %v4402_v35  ;;  %4147 = vmatmul.mubr.msk.bf16.gmra.mrb[16].mxu1 %vm1323_vm0, %v4403_v36  ;;  %v4495_v35 = vld [vmem:[%s6083_s2 + $0xb0] sm:$0xff]   ;;  %v4531_v36 = vld [vmem:[%s6084_s3 + $0xe8] sm:$0xff]  }
  0x41   : > { %1404 = vmatprep.subr.bf16.mxu0 %v4718_v1  ;;  %2646 = vmatpush1.bf16.msra.mxu1 %v4406_v37  ;;  %v4504_v37 = vld [vmem:[%s6083_s2 + $0xb8] sm:$0xff]  }
  0x42   : > { %4150 = vmatprep.mubr.msk.bf16.mxu1 %vm1323_vm0, %v4407_v38  ;;  %2647 = vmatprep.subr.bf16.mxu1 %v4718_v1  ;;  %v4469_v38 = vld [vmem:[%s4800_s13 + $0x118] ss:$20 sps:$4 sm:$0xff]  }
  0x44   : > { %1405 = vmatpush1.bf16.msra.mxu0 %v4405_v39  ;;  %v4473_v39 = vld [vmem:[%s4941_s16 + $0xa0] ss:$20 sps:$4 sm:$0xff]  }
  0x45   : > { %1406 = vmatprep.subr.bf16.mxu0 %v4718_v1  ;;  %2648 = vmatpush1.bf16.msra.mxu1 %v4410_v40  ;;  %v4475_v40 = vld [vmem:[%s4800_s13 + $0x144] ss:$20 sps:$4 sm:$0xff]  }
  0x46   : > { %2649 = vmatprep.subr.bf16.mxu1 %v4718_v1 }
  0x48   : > { %1407 = vmatpush1.bf16.msra.mxu0 %v4408_v41  ;;  %4151 = vmatmul.mubr.msk.bf16.gmra.mrb[20].mxu1 %vm1323_vm0, %v4409_v42  ;;  %v4478_v41 = vld [vmem:[%s4941_s16 + $0xcc] ss:$20 sps:$4 sm:$0xff]  }
  0x49   : > { %1408 = vmatprep.subr.bf16.mxu0 %v4718_v1  ;;  %2650 = vmatpush1.bf16.msra.mxu1 %v4415_v43  ;;  %v4512_v42 = vld [vmem:[%s6083_s2 + $0xc0] sm:$0xff]   ;;  %v4540_v43 = vld [vmem:[%s6084_s3 + $0xf0] sm:$0xff]  }
  0x4a   : > { %4154 = vmatprep.mubr.msk.bf16.mxu1 %vm1323_vm0, %v4416_v44  ;;  %2651 = vmatprep.subr.bf16.mxu1 %v4718_v1  ;;  %v4477_v44 = vld [vmem:[%s4800_s13 + $0x140] ss:$20 sps:$4 sm:$0xff]  }
  0x4c   : > { %1409 = vmatpush1.bf16.msra.mxu0 %v4411_v45  ;;  %v4520_v45 = vld [vmem:[%s6083_s2 + $0xc8] sm:$0xff]  }
  0x4d   : > { %1555 = vmatprep.subr.bf16.mxu0 %v4718_v1  ;;  %2652 = vmatpush1.bf16.msra.mxu1 %v4419_v47  ;;  %v4482_v47 = vld [vmem:[%s4800_s13 + $0x16c] ss:$20 sps:$4 sm:$0xff]  }
  0x4e   : > { %2653 = vmatprep.subr.bf16.mxu1 %v4718_v1 }
  0x4f   : > { %1411 = vmatmul.mubr.bf16.vlgmr.msra.gmra.mrb[0].mxu0 %v4412_v46  ;;  %v4481_v46 = vld [vmem:[%s4941_s16 + $0xc8] ss:$20 sps:$4 sm:$0xff]  }
  0x50   : > { %1556 = vmatpush1.bf16.msra.mxu0 %v4418_v48  ;;  %1418 = vmatprep.mubr.bf16.mxu0 %v4420_v49  ;;  %v4550_v48 = vld [vmem:[%s6084_s3 + $0xf8] sm:$0xff]   ;;  %v4486_v49 = vld [vmem:[%s4941_s16 + $0xf4] ss:$20 sps:$4 sm:$0xff]  }
  0x51   : > { %4155 = vmatmul.mubr.msk.bf16.gmra.mrb[24].mxu1 %vm1323_vm0, %v4417_v50  ;;  %1557 = vmatprep.subr.bf16.mxu0 %v4718_v1  ;;  %v4528_v50 = vld [vmem:[%s6083_s2 + $0xd0] sm:$0xff]  }
  0x52   : > { %4158 = vmatprep.mubr.msk.bf16.mxu1 %vm1323_vm0, %v4423_v51  ;;  %2654 = vmatpush1.bf16.msra.mxu1 %v4424_v52  ;;  %v5107_v51 = vld [vmem:[%s6083_s2 + $0x100] sm:$0xff]   ;;  %v4536_v52 = vld [vmem:[%s6083_s2 + $0xd8] sm:$0xff]  }
  0x53   : > { %2655 = vmatprep.subr.bf16.mxu1 %v4718_v1 }
  0x54   : > { %1558 = vmatpush1.bf16.msra.mxu0 %v4426_v53  ;;  %v4485_v53 = vld [vmem:[%s4800_s13 + $0x168] ss:$20 sps:$4 sm:$0xff]  }
  0x55   : > { %1559 = vmatprep.subr.bf16.mxu0 %v4718_v1 }
  0x56   : > { %2656 = vmatpush1.bf16.msra.mxu1 %v4427_v55  ;;  %v4488_v55 = vld [vmem:[%s4941_s16 + $0xf0] ss:$20 sps:$4 sm:$0xff]  }
  0x57   : > { %1419 = vmatmul.mubr.bf16.gmra.mrb[4].mxu0 %v4422_v54  ;;  %2657 = vmatprep.subr.bf16.mxu1 %v4718_v1  ;;  %v4490_v54 = vld [vmem:[%s4800_s13 + $0x194] ss:$20 sps:$4 sm:$0xff]  }
  0x58   : > { %1426 = vmatprep.mubr.bf16.mxu0 %v4428_v56  ;;  %1560 = vmatpush1.bf16.msra.mxu0 %v4434_v57  ;;  %v4493_v56 = vld [vmem:[%s4941_s16 + $0x11c] ss:$20 sps:$4 sm:$0xff]   ;;  %v4544_v57 = vld [vmem:[%s6083_s2 + $0xe0] sm:$0xff]  }
  0x59   : > { %4159 = vmatmul.mubr.msk.bf16.gmra.mrb[28].mxu1 %vm1323_vm0, %v4425_v58  ;;  %1561 = vmatprep.subr.bf16.mxu0 %v4718_v1  ;;  %v4555_v58 = vld [vmem:[%s6083_s2 + $0xe8] sm:$0xff]  }
  0x5a   : > { %4162 = vmatprep.mubr.msk.bf16.mxu1 %vm1323_vm0, %v4431_v59  ;;  %2658 = vmatpush1.bf16.msra.mxu1 %v4433_v60  ;;  %v4492_v59 = vld [vmem:[%s4800_s13 + $0x190] ss:$20 sps:$4 sm:$0xff]   ;;  %v4496_v60 = vld [vmem:[%s4941_s16 + $0x118] ss:$20 sps:$4 sm:$0xff]  }
  0x5b   : > { %2659 = vmatprep.subr.bf16.mxu1 %v4718_v1 }
  0x5c   : > { %1562 = vmatpush1.bf16.msra.mxu0 %v4443_v61  ;;  %v4498_v61 = vld [vmem:[%s4800_s13 + $0x1bc] ss:$20 sps:$4 sm:$0xff]  }
  0x5d   : > { %1563 = vmatprep.subr.bf16.mxu0 %v4718_v1 }
  0x5e   : > { %2660 = vmatpush1.bf16.msra.mxu1 %v4435_v62  ;;  %v4501_v62 = vld [vmem:[%s4941_s16 + $0x144] ss:$20 sps:$4 sm:$0xff]  }
  0x5f   : > { %1427 = vmatmul.mubr.bf16.gmra.mrb[8].mxu0 %v4430_v63  ;;  %2806 = vmatprep.subr.bf16.mxu1 %v4718_v1  ;;  %v4565_v63 = vld [vmem:[%s6083_s2 + $0xf0] sm:$0xff]  }
  0x60   : > { %1434 = vmatprep.mubr.bf16.mxu0 %v4436_v0  ;;  %1564 = vmatpush1.bf16.msra.mxu0 %v4451_v2  ;;  %v4573_v0 = vld [vmem:[%s6083_s2 + $0xf8] sm:$0xff]  }
  0x61   : > { %4163 = vmatmul.mubr.msk.bf16.gmra.mrb[32].mxu1 %vm1323_vm0, %v4432_v3  ;;  %1565 = vmatprep.subr.bf16.mxu0 %v4718_v1  ;;  %v4500_v2 = vld [vmem:[%s4800_s13 + $0x1b8] ss:$20 sps:$4 sm:$0xff]  }
  0x62   : > { %2661 = vmatprep.mubr.bf16.mxu1 %v4441_v4  ;;  %v4506_v3 = vld [vmem:[%s4800_s13 + $0x1e4] ss:$20 sps:$4 sm:$0xff]   ;;  %v4503_v4 = vld [vmem:[%s4941_s16 + $0x140] ss:$20 sps:$4 sm:$0xff]  }
  0x64   : > { %1566 = vmatpush1.bf16.msra.mxu0 %v4461_v5  ;;  %v4509_v5 = vld [vmem:[%s4941_s16 + $0x16c] ss:$20 sps:$4 sm:$0xff]  }
  0x65   : > { %1567 = vmatprep.subr.bf16.mxu0 %v4718_v1 }
  0x67   : > { %1435 = vmatmul.mubr.bf16.gmra.mrb[12].mxu0 %v4438_v6  ;;  %v4508_v6 = vld [vmem:[%s4800_s13 + $0x1e0] ss:$20 sps:$4 sm:$0xff]  }
  0x68   : > { %1442 = vmatprep.mubr.bf16.mxu0 %v4444_v8  ;;  %1568 = vmatpush1.bf16.msra.mxu0 %v4470_v9  ;;  %v4511_v8 = vld [vmem:[%s4941_s16 + $0x168] ss:$20 sps:$4 sm:$0xff]  }
  0x69   : > { %2662 = vmatmul.mubr.bf16.vlgmr.msra.gmra.mrb[36].mxu1 %v4439_v7  ;;  %1569 = vmatprep.subr.bf16.mxu0 %v4718_v1  ;;  %v4514_v7 = vld [vmem:[%s4800_s13 + $0x20c] ss:$20 sps:$4 sm:$0xff]   ;;  %v4516_v9 = vld [vmem:[%s4800_s13 + $0x208] ss:$20 sps:$4 sm:$0xff]  }
  0x6a   : > { %2807 = vmatpush1.bf16.msra.mxu1 %v4442_v10  ;;  %2669 = vmatprep.mubr.bf16.mxu1 %v4447_v11  ;;  %v4522_v10 = vld [vmem:[%s4800_s13 + $0x234] ss:$20 sps:$4 sm:$0xff]   ;;  %v4519_v11 = vld [vmem:[%s4941_s16 + $0x190] ss:$20 sps:$4 sm:$0xff]  }
  0x6b   : > { %2808 = vmatprep.subr.bf16.mxu1 %v4718_v1 }
  0x6c   : > { %1570 = vmatpush1.bf16.msra.mxu0 %v4480_v12  ;;  %v4525_v12 = vld [vmem:[%s4941_s16 + $0x1bc] ss:$20 sps:$4 sm:$0xff]  }
  0x6d   : > { %1571 = vmatprep.subr.bf16.mxu0 %v4718_v1 }
  0x6e   : > { %2809 = vmatpush1.bf16.msra.mxu1 %v4450_v14  ;;  %v4529_v14 = vld [vmem:[%s4800_s13 + $0x25c] ss:$20 sps:$4 sm:$0xff]  }
  0x6f   : > { %1443 = vmatmul.mubr.bf16.gmra.mrb[16].mxu0 %v4446_v13  ;;  %2810 = vmatprep.subr.bf16.mxu1 %v4718_v1  ;;  %v4524_v13 = vld [vmem:[%s4800_s13 + $0x230] ss:$20 sps:$4 sm:$0xff]  }
  0x70   : > { %1450 = vmatprep.mubr.bf16.mxu0 %v4452_v16  ;;  %1572 = vmatpush1.bf16.msra.mxu0 %v4489_v17  ;;  %v4533_v16 = vld [vmem:[%s4941_s16 + $0x1e4] ss:$20 sps:$4 sm:$0xff]  }
  0x71   : > { %2670 = vmatmul.mubr.bf16.gmra.mrb[40].mxu1 %v4449_v15  ;;  %1573 = vmatprep.subr.bf16.mxu0 %v4718_v1  ;;  %v4527_v15 = vld [vmem:[%s4941_s16 + $0x1b8] ss:$20 sps:$4 sm:$0xff]  }
  0x72   : > { %2677 = vmatprep.mubr.bf16.mxu1 %v4455_v18  ;;  %2811 = vmatpush1.bf16.msra.mxu1 %v4458_v19  ;;  %v4532_v17 = vld [vmem:[%s4800_s13 + $0x258] ss:$20 sps:$4 sm:$0xff]   ;;  %v4535_v19 = vld [vmem:[%s4941_s16 + $0x1e0] ss:$20 sps:$4 sm:$0xff]  }
  0x73   : > { %2812 = vmatprep.subr.bf16.mxu1 %v4718_v1  ;;  %v4537_v18 = vld [vmem:[%s4800_s13 + $0x284] ss:$20 sps:$4 sm:$0xff]  }
  0x74   : > { %1574 = vmatpush1.bf16.msra.mxu0 %v4497_v20  ;;  %v4541_v20 = vld [vmem:[%s4941_s16 + $0x20c] ss:$20 sps:$4 sm:$0xff]  }
  0x75   : > { %1575 = vmatprep.subr.bf16.mxu0 %v4718_v1 }
  0x76   : > { %2813 = vmatpush1.bf16.msra.mxu1 %v4466_v22  ;;  %v4545_v22 = vld [vmem:[%s4800_s13 + $0x2ac] ss:$20 sps:$4 sm:$0xff]  }
  0x77   : > { %1451 = vmatmul.mubr.bf16.gmra.mrb[20].mxu0 %v4454_v21  ;;  %2814 = vmatprep.subr.bf16.mxu1 %v4718_v1  ;;  %v4539_v21 = vld [vmem:[%s4800_s13 + $0x280] ss:$20 sps:$4 sm:$0xff]  }
  0x78   : > { %1458 = vmatprep.mubr.bf16.mxu0 %v4459_v23  ;;  %1576 = vmatpush1.bf16.msra.mxu0 %v4505_v24  ;;  %v4543_v23 = vld [vmem:[%s4941_s16 + $0x208] ss:$20 sps:$4 sm:$0xff]  }
  0x79   : > { %2678 = vmatmul.mubr.bf16.gmra.mrb[44].mxu1 %v4457_v25  ;;  %1577 = vmatprep.subr.bf16.mxu0 %v4718_v1  ;;  %v4548_v24 = vld [vmem:[%s4941_s16 + $0x234] ss:$20 sps:$4 sm:$0xff]  }
  0x7a   : > { %2685 = vmatprep.mubr.bf16.mxu1 %v4463_v26  ;;  %2815 = vmatpush1.bf16.msra.mxu1 %v4474_v27  ;;  %v4547_v25 = vld [vmem:[%s4800_s13 + $0x2a8] ss:$20 sps:$4 sm:$0xff]   ;;  %v4554_v26 = vld [vmem:[%s4800_s13 + $0xc] ss:$20 sps:$4 sm:$0xff]   ;;  %v4551_v27 = vld [vmem:[%s4941_s16 + $0x230] ss:$20 sps:$4 sm:$0xff]  }
  0x7b   : > { %2816 = vmatprep.subr.bf16.mxu1 %v4718_v1 }
  0x7c   : > { %1578 = vmatpush1.bf16.msra.mxu0 %v4513_v28  ;;  %v4556_v28 = vld [vmem:[%s4941_s16 + $0x25c] ss:$20 sps:$4 sm:$0xff]  }
  0x7d   : > { %1579 = vmatprep.subr.bf16.mxu0 %v4718_v1 }
  0x7e   : > { %2817 = vmatpush1.bf16.msra.mxu1 %v4484_v30  ;;  %v4560_v30 = vld [vmem:[%s4800_s13 + $0x34] ss:$20 sps:$4 sm:$0xff]  }
  0x7f   : > { %1459 = vmatmul.mubr.bf16.gmra.mrb[24].mxu0 %v4462_v29  ;;  %2818 = vmatprep.subr.bf16.mxu1 %v4718_v1  ;;  %v4552_v29 = vld [vmem:[%s4800_s13 + $0x8] ss:$20 sps:$4 sm:$0xff]  }
  0x80   : > { %1466 = vmatprep.mubr.bf16.mxu0 %v4467_v31  ;;  %1580 = vmatpush1.bf16.msra.mxu0 %v4521_v32  ;;  %v4558_v31 = vld [vmem:[%s4941_s16 + $0x258] ss:$20 sps:$4 sm:$0xff]  }
  0x81   : > { %2686 = vmatmul.mubr.bf16.gmra.mrb[48].mxu1 %v4465_v33  ;;  %1581 = vmatprep.subr.bf16.mxu0 %v4718_v1  ;;  %v4586_v32 = vld [vmem:[%s6083_s2 + $0x108] sm:$0xff]   ;;  %v4563_v33 = vld [vmem:[%s4941_s16 + $0x284] ss:$20 sps:$4 sm:$0xff]  }
  0x82   : > { %2693 = vmatprep.mubr.bf16.mxu1 %v4471_v34  ;;  %2819 = vmatpush1.bf16.msra.mxu1 %v4495_v35  ;;  %v4617_v34 = vld [vmem:[%s6083_s2 + $0x110] sm:$0xff]  }
  0x83   : > { %2820 = vmatprep.subr.bf16.mxu1 %v4718_v1  ;;  %v4562_v35 = vld [vmem:[%s4800_s13 + $0x30] ss:$20 sps:$4 sm:$0xff]  }
  0x84   : > { %1582 = vmatpush1.bf16.msra.mxu0 %v4531_v36  ;;  %v4567_v36 = vld [vmem:[%s4800_s13 + $0x5c] ss:$20 sps:$4 sm:$0xff]  }
  0x85   : > { %1583 = vmatprep.subr.bf16.mxu0 %v4718_v1 }
  0x86   : > { %2821 = vmatpush1.bf16.msra.mxu1 %v4504_v37  ;;  %v4566_v37 = vld [vmem:[%s4941_s16 + $0x280] ss:$20 sps:$4 sm:$0xff]  }
  0x87   : > { %1467 = vmatmul.mubr.bf16.gmra.mrb[28].mxu0 %v4469_v38  ;;  %2822 = vmatprep.subr.bf16.mxu1 %v4718_v1  ;;  %v4642_v38 = vld [vmem:[%s6083_s2 + $0x118] sm:$0xff]  }
  0x88   : > { %1474 = vmatprep.mubr.bf16.mxu0 %v4475_v40  ;;  %1584 = vmatpush1.bf16.msra.mxu0 %v4540_v43  ;;  %v4569_v40 = vld [vmem:[%s4800_s13 + $0x58] ss:$20 sps:$4 sm:$0xff]  }
  0x89   : > { %2694 = vmatmul.mubr.bf16.gmra.mrb[52].mxu1 %v4473_v39  ;;  %1585 = vmatprep.subr.bf16.mxu0 %v4718_v1  ;;  %v4570_v39 = vld [vmem:[%s4941_s16 + $0x2ac] ss:$20 sps:$4 sm:$0xff]  }
  0x8a   : > { %2701 = vmatprep.mubr.bf16.mxu1 %v4478_v41  ;;  %2823 = vmatpush1.bf16.msra.mxu1 %v4512_v42  ;;  %v4574_v41 = vld [vmem:[%s4800_s13 + $0x84] ss:$20 sps:$4 sm:$0xff]   ;;  %v4572_v42 = vld [vmem:[%s4941_s16 + $0x2a8] ss:$20 sps:$4 sm:$0xff]   ;;  %v4579_v43 = vld [vmem:[%s4941_s16 + $0xc] ss:$20 sps:$4 sm:$0xff]  }
  0x8b   : > { %2824 = vmatprep.subr.bf16.mxu1 %v4718_v1 }
  0x8c   : > { %1586 = vmatpush1.bf16.msra.mxu0 %v4550_v48  ;;  %v4577_v48 = vld [vmem:[%s4941_s16 + $0x8] ss:$20 sps:$4 sm:$0xff]  }
  0x8d   : > { %4166 = vmatprep.subr.bf16.mxu0 %v5107_v51 }
  0x8e   : > { %2825 = vmatpush1.bf16.msra.mxu1 %v4520_v45 }
  0x8f   : > { %1475 = vmatmul.mubr.bf16.gmra.mrb[32].mxu0 %v4477_v44  ;;  %2826 = vmatprep.subr.bf16.mxu1 %v4718_v1  ;;  %v4576_v44 = vld [vmem:[%s4800_s13 + $0x80] ss:$20 sps:$4 sm:$0xff]  }
  0x90   : > { %1482 = vmatprep.mubr.bf16.mxu0 %v4482_v47 }
  0x91   : > { %2702 = vmatmul.mubr.bf16.gmra.mrb[56].mxu1 %v4481_v46  ;;  %v4580_v46 = vld [vmem:[%s4800_s13 + $0xac] ss:$20 sps:$4 sm:$0xff]  }
  0x92   : > { %2709 = vmatprep.mubr.bf16.mxu1 %v4486_v49  ;;  %2827 = vmatpush1.bf16.msra.mxu1 %v4528_v50  ;;  %v4583_v50 = vld [vmem:[%s4941_s16 + $0x34] ss:$20 sps:$4 sm:$0xff]  }
  0x93   : > { %2828 = vmatprep.subr.bf16.mxu1 %v4718_v1 }
  0x96   : > { %2829 = vmatpush1.bf16.msra.mxu1 %v4536_v52 }
  0x97   : > { %1483 = vmatmul.mubr.bf16.gmra.mrb[36].mxu0 %v4485_v53  ;;  %2830 = vmatprep.subr.bf16.mxu1 %v4718_v1  ;;  %v4582_v53 = vld [vmem:[%s4800_s13 + $0xa8] ss:$20 sps:$4 sm:$0xff]  }
  0x98   : > { %1490 = vmatprep.mubr.bf16.mxu0 %v4490_v54 }
  0x99   : > { %2710 = vmatmul.mubr.bf16.gmra.mrb[60].mxu1 %v4488_v55  ;;  %v4587_v55 = vld [vmem:[%s4800_s13 + $0xd4] ss:$20 sps:$4 sm:$0xff]  }
  0x9a   : > { %2717 = vmatprep.mubr.bf16.mxu1 %v4493_v56  ;;  %2831 = vmatpush1.bf16.msra.mxu1 %v4544_v57  ;;  %v4585_v57 = vld [vmem:[%s4941_s16 + $0x30] ss:$20 sps:$4 sm:$0xff]  }
  0x9b   : > { %2832 = vmatprep.subr.bf16.mxu1 %v4718_v1 }
  0x9e   : > { %2833 = vmatpush1.bf16.msra.mxu1 %v4555_v58 }
  0x9f   : > { %1491 = vmatmul.mubr.bf16.gmra.mrb[40].mxu0 %v4492_v59  ;;  %2834 = vmatprep.subr.bf16.mxu1 %v4718_v1  ;;  %v4590_v59 = vld [vmem:[%s4941_s16 + $0x5c] ss:$20 sps:$4 sm:$0xff]  }
  0xa0   : > { %1498 = vmatprep.mubr.bf16.mxu0 %v4498_v61 }
  0xa1   : > { %2718 = vmatmul.mubr.bf16.gmra.mrb[64].mxu1 %v4496_v60 }
  0xa2   : > { %2725 = vmatprep.mubr.bf16.mxu1 %v4501_v62  ;;  %2835 = vmatpush1.bf16.msra.mxu1 %v4565_v63  ;;  %v4593_v62 = vld [vmem:[%s4800_s13 + $0xfc] ss:$20 sps:$4 sm:$0xff]  }
  0xa3   : > { %2836 = vmatprep.subr.bf16.mxu1 %v4718_v1  ;;  %v4517_v1 = vld [vmem:[%s4941_s16 + $0x194] ss:$20 sps:$4 sm:$0xff]  }
  0xa6   : > { %2837 = vmatpush1.bf16.msra.mxu1 %v4573_v0  ;;  %v4592_v0 = vld [vmem:[%s4941_s16 + $0x58] ss:$20 sps:$4 sm:$0xff]  }
  0xa7   : > { %1499 = vmatmul.mubr.bf16.gmra.mrb[44].mxu0 %v4500_v2  ;;  %4210 = vmatprep.subr.bf16.mxu1 %v5107_v51 }
  0xa8   : > { %1506 = vmatprep.mubr.bf16.mxu0 %v4506_v3  ;;  %v4596_v3 = vld [vmem:[%s4941_s16 + $0x84] ss:$20 sps:$4 sm:$0xff]  }
  0xa9   : > { %2726 = vmatmul.mubr.bf16.gmra.mrb[68].mxu1 %v4503_v4 }
  0xaa   : > { %2733 = vmatprep.mubr.bf16.mxu1 %v4509_v5  ;;  %v4595_v5 = vld [vmem:[%s4800_s13 + $0xf8] ss:$20 sps:$4 sm:$0xff]  }
  0xaf   : > { %1507 = vmatmul.mubr.bf16.gmra.mrb[48].mxu0 %v4508_v6 }
  0xb0   : > { %1514 = vmatprep.mubr.bf16.mxu0 %v4514_v7  ;;  %v4599_v7 = vld [vmem:[%s4800_s13 + $0x124] ss:$20 sps:$4 sm:$0xff]  }
  0xb1   : > { %2734 = vmatmul.mubr.bf16.gmra.mrb[72].mxu1 %v4511_v8 }
  0xb2   : > { %2741 = vmatprep.mubr.bf16.mxu1 %v4517_v1  ;;  %v4598_v1 = vld [vmem:[%s4941_s16 + $0x80] ss:$20 sps:$4 sm:$0xff]  }
  0xb7   : > { %1515 = vmatmul.mubr.bf16.gmra.mrb[52].mxu0 %v4516_v9 }
  0xb8   : > { %1522 = vmatprep.mubr.bf16.mxu0 %v4522_v10  ;;  %v4602_v10 = vld [vmem:[%s4941_s16 + $0xac] ss:$20 sps:$4 sm:$0xff]  }
  0xb9   : > { %2742 = vmatmul.mubr.bf16.gmra.mrb[76].mxu1 %v4519_v11 }
  0xba   : > { %2749 = vmatprep.mubr.bf16.mxu1 %v4525_v12  ;;  %v4601_v12 = vld [vmem:[%s4800_s13 + $0x120] ss:$20 sps:$4 sm:$0xff]  }
  0xbf   : > { %1523 = vmatmul.mubr.bf16.gmra.mrb[56].mxu0 %v4524_v13 }
  0xc0   : > { %1530 = vmatprep.mubr.bf16.mxu0 %v4529_v14  ;;  %v4605_v14 = vld [vmem:[%s4800_s13 + $0x14c] ss:$20 sps:$4 sm:$0xff]  }
  0xc1   : > { %2750 = vmatmul.mubr.bf16.gmra.mrb[80].mxu1 %v4527_v15 }
  0xc2   : > { %2757 = vmatprep.mubr.bf16.mxu1 %v4533_v16  ;;  %v4604_v16 = vld [vmem:[%s4941_s16 + $0xa8] ss:$20 sps:$4 sm:$0xff]  }
  0xc7   : > { %1531 = vmatmul.mubr.bf16.gmra.mrb[60].mxu0 %v4532_v17 }
  0xc8   : > { %1538 = vmatprep.mubr.bf16.mxu0 %v4537_v18  ;;  %v4608_v18 = vld [vmem:[%s4941_s16 + $0xd4] ss:$20 sps:$4 sm:$0xff]  }
  0xc9   : > { %2758 = vmatmul.mubr.bf16.gmra.mrb[84].mxu1 %v4535_v19 }
  0xca   : > { %2765 = vmatprep.mubr.bf16.mxu1 %v4541_v20  ;;  %v4607_v20 = vld [vmem:[%s4800_s13 + $0x148] ss:$20 sps:$4 sm:$0xff]  }
  0xcf   : > { %1539 = vmatmul.mubr.bf16.gmra.mrb[64].mxu0 %v4539_v21 }
  0xd0   : > { %1546 = vmatprep.mubr.bf16.mxu0 %v4545_v22  ;;  %v4611_v22 = vld [vmem:[%s4800_s13 + $0x174] ss:$20 sps:$4 sm:$0xff]  }
  0xd1   : > { %2766 = vmatmul.mubr.bf16.gmra.mrb[88].mxu1 %v4543_v23 }
  0xd2   : > { %2773 = vmatprep.mubr.bf16.mxu1 %v4548_v24  ;;  %v4610_v24 = vld [vmem:[%s4941_s16 + $0xd0] ss:$20 sps:$4 sm:$0xff]  }
  0xd7   : > { %1547 = vmatmul.mubr.bf16.gmra.mrb[68].mxu0 %v4547_v25 }
  0xd8   : > { %1587 = vmatprep.mubr.bf16.mxu0 %v4554_v26  ;;  %v4614_v26 = vld [vmem:[%s4941_s16 + $0xfc] ss:$20 sps:$4 sm:$0xff]  }
  0xd9   : > { %2774 = vmatmul.mubr.bf16.gmra.mrb[92].mxu1 %v4551_v27 }
  0xda   : > { %2781 = vmatprep.mubr.bf16.mxu1 %v4556_v28  ;;  %v4613_v28 = vld [vmem:[%s4800_s13 + $0x170] ss:$20 sps:$4 sm:$0xff]  }
  0xdf   : > { %1588 = vmatmul.mubr.bf16.vlgmr.msra.gmra.mrb[0].mxu0 %v4552_v29 }
  0xe0   : > { %4167 = vmatpush3.bf16.msra.mxu0 %v5107_v51  ;;  %1595 = vmatprep.mubr.bf16.mxu0 %v4560_v30  ;;  %v4618_v30 = vld [vmem:[%s4800_s13 + $0x19c] ss:$20 sps:$4 sm:$0xff]  }
  0xe1   : > { %2782 = vmatmul.mubr.bf16.gmra.mrb[96].mxu1 %v4558_v31  ;;  %4168 = vmatprep.subr.bf16.mxu0 %v4586_v32 }
  0xe2   : > { %2789 = vmatprep.mubr.bf16.mxu1 %v4563_v33 }
  0xe4   : > { %4169 = vmatpush3.bf16.msra.mxu0 %v4586_v32 }
  0xe5   : > { %4170 = vmatprep.subr.bf16.mxu0 %v4617_v34 }
  0xe7   : > { %1596 = vmatmul.mubr.bf16.gmra.mrb[4].mxu0 %v4562_v35 }
  0xe8   : > { %1603 = vmatprep.mubr.bf16.mxu0 %v4567_v36  ;;  %4171 = vmatpush3.bf16.msra.mxu0 %v4617_v34  ;;  %v4620_v36 = vld [vmem:[%s4800_s13 + $0x198] ss:$20 sps:$4 sm:$0xff]  }
  0xe9   : > { %2790 = vmatmul.mubr.bf16.gmra.mrb[100].mxu1 %v4566_v37  ;;  %4172 = vmatprep.subr.bf16.mxu0 %v4642_v38 }
  0xea   : > { %2797 = vmatprep.mubr.bf16.mxu1 %v4570_v39 }
  0xec   : > { %4173 = vmatpush3.bf16.msra.mxu0 %v4642_v38 }
  0xef   : > { %1604 = vmatmul.mubr.bf16.gmra.mrb[8].mxu0 %v4569_v40  ;;  %v4623_v40 = vld [vmem:[%s4941_s16 + $0x120] ss:$20 sps:$4 sm:$0xff]  }
  0xf0   : > { %1611 = vmatprep.mubr.bf16.mxu0 %v4574_v41 }
  0xf1   : > { %2798 = vmatmul.mubr.bf16.gmra.mrb[104].mxu1 %v4572_v42  ;;  %v4627_v42 = vld [vmem:[%s4941_s16 + $0x14c] ss:$20 sps:$4 sm:$0xff]  }
  0xf2   : > { %2838 = vmatprep.mubr.bf16.mxu1 %v4579_v43 }
  0xf3   : > { %v5190_v45 = vpop.f32.mrb[0].mxu1 }
  0xf4   : > { %v5193_v47 = vpop.f32.mrb[1].mxu1 }
  0xf5   : > { %v5196_v49 = vpop.f32.mrb[2].mxu1 }
  0xf6   : > { %v5199_v52 = vpop.f32.mrb[3].mxu1 }
  0xf7   : > { %1612 = vmatmul.mubr.bf16.gmra.mrb[12].mxu0 %v4576_v44  ;;  %v4626_v44 = vld [vmem:[%s4800_s13 + $0x1c0] ss:$20 sps:$4 sm:$0xff]  }
  0xf8   : > { %1619 = vmatprep.mubr.bf16.mxu0 %v4580_v46 }
  0xf9   : > { %2839 = vmatmul.mubr.bf16.vlgmr.msra.gmra.mrb[36].mxu1 %v4577_v48  ;;  %v4630_v48 = vld [vmem:[%s4800_s13 + $0x1ec] ss:$20 sps:$4 sm:$0xff]  }
  0xfa   : > { %4214 = vmatpush3.bf16.msra.mxu1 %v5107_v51  ;;  %2846 = vmatprep.mubr.bf16.mxu1 %v4583_v50  ;;  %v4589_v51 = vld [vmem:[%s4800_s13 + $0xd0] ss:$20 sps:$4 sm:$0xff]  }
  0xfb   : > { %4211 = vmatprep.subr.bf16.mxu1 %v4586_v32  ;;  %v5203_v54 = vpop.f32.mrb[4].mxu1 }
  0xfc   : > { %v5206_v56 = vpop.f32.mrb[5].mxu1 }
  0xfd   : > { %v5209_v58 = vpop.f32.mrb[6].mxu1 }
  0xfe   : > { %4215 = vmatpush3.bf16.msra.mxu1 %v4586_v32  ;;  %v5212_v60 = vpop.f32.mrb[7].mxu1  ;;  %v4616_v32 = vld [vmem:[%s4941_s16 + $0xf8] ss:$20 sps:$4 sm:$0xff]  }
  0xff   : > { %1620 = vmatmul.mubr.bf16.gmra.mrb[16].mxu0 %v4582_v53  ;;  %4212 = vmatprep.subr.bf16.mxu1 %v4617_v34  ;;  %v4629_v53 = vld [vmem:[%s4941_s16 + $0x148] ss:$20 sps:$4 sm:$0xff]  }
 0x100   : > { %1627 = vmatprep.mubr.bf16.mxu0 %v4587_v55 }
 0x101   : > { %2847 = vmatmul.mubr.bf16.gmra.mrb[108].mxu1 %v4585_v57  ;;  %v4633_v57 = vld [vmem:[%s4941_s16 + $0x174] ss:$20 sps:$4 sm:$0xff]  }
 0x102   : > { %2854 = vmatprep.mubr.bf16.mxu1 %v4590_v59  ;;  %4216 = vmatpush3.bf16.msra.mxu1 %v4617_v34  ;;  %v4621_v34 = vld [vmem:[%s4941_s16 + $0x124] ss:$20 sps:$4 sm:$0xff]  }
 0x103   : > { %4213 = vmatprep.subr.bf16.mxu1 %v4642_v38  ;;  %v5215_v61 = vpop.f32.mrb[8].mxu1 }
 0x104   : > { %v5218_v63 = vpop.f32.mrb[9].mxu1 }
 0x105   : > { %v5221_v2 = vpop.f32.mrb[10].mxu1 }
 0x106   : > { %4217 = vmatpush3.bf16.msra.mxu1 %v4642_v38  ;;  %v5224_v4 = vpop.f32.mrb[11].mxu1  ;;  %v4624_v38 = vld [vmem:[%s4800_s13 + $0x1c4] ss:$20 sps:$4 sm:$0xff]  }
 0x107   : > { %1628 = vmatmul.mubr.bf16.gmra.mrb[20].mxu0 %v4589_v51  ;;  %v4632_v51 = vld [vmem:[%s4800_s13 + $0x1e8] ss:$20 sps:$4 sm:$0xff]  }
 0x108   : > { %1635 = vmatprep.mubr.bf16.mxu0 %v4593_v62  ;;  %v4636_v62 = vld [vmem:[%s4800_s13 + $0x214] ss:$20 sps:$4 sm:$0xff]  }
 0x109   : > { %2855 = vmatmul.mubr.bf16.gmra.mrb[44].mxu1 %v4592_v0  ;;  %v4635_v0 = vld [vmem:[%s4941_s16 + $0x170] ss:$20 sps:$4 sm:$0xff]  }
 0x10a   : > { %2862 = vmatprep.mubr.bf16.mxu1 %v4596_v3  ;;  %v4639_v3 = vld [vmem:[%s4941_s16 + $0x19c] ss:$20 sps:$4 sm:$0xff]  }
 0x10b   : > { %v5227_v6 = vpop.f32.mrb[12].mxu1 }
 0x10c   : > { %v5230_v8 = vpop.f32.mrb[13].mxu1 }
 0x10d   : > { %v5233_v9 = vpop.f32.mrb[14].mxu1 }
 0x10e   : > { %v5236_v11 = vpop.f32.mrb[15].mxu1 }
 0x10f   : > { %1636 = vmatmul.mubr.bf16.gmra.mrb[24].mxu0 %v4595_v5  ;;  %v4638_v5 = vld [vmem:[%s4800_s13 + $0x210] ss:$20 sps:$4 sm:$0xff]  }
 0x110   : > { %1643 = vmatprep.mubr.bf16.mxu0 %v4599_v7 }
 0x111   : > { %2863 = vmatmul.mubr.bf16.gmra.mrb[112].mxu1 %v4598_v1  ;;  %v4643_v1 = vld [vmem:[%s4800_s13 + $0x23c] ss:$20 sps:$4 sm:$0xff]  }
 0x112   : > { %2870 = vmatprep.mubr.bf16.mxu1 %v4602_v10 }
 0x113   : > { %v5239_v13 = vpop.f32.mrb[16].mxu1 }
 0x114   : > { %v5242_v15 = vpop.f32.mrb[17].mxu1 }
 0x115   : > { %v5245_v17 = vpop.f32.mrb[18].mxu1 }
 0x116   : > { %v5248_v19 = vpop.f32.mrb[19].mxu1 }
 0x117   : > { %1644 = vmatmul.mubr.bf16.gmra.mrb[28].mxu0 %v4601_v12  ;;  %v4641_v12 = vld [vmem:[%s4941_s16 + $0x198] ss:$20 sps:$4 sm:$0xff]  }
 0x118   : > { %1651 = vmatprep.mubr.bf16.mxu0 %v4605_v14 }
 0x119   : > { %2871 = vmatmul.mubr.bf16.gmra.mrb[52].mxu1 %v4604_v16  ;;  %v4646_v16 = vld [vmem:[%s4941_s16 + $0x1c4] ss:$20 sps:$4 sm:$0xff]  }
 0x11a   : > { %2878 = vmatprep.mubr.bf16.mxu1 %v4608_v18 }
 0x11b   : > { %v5251_v21 = vpop.f32.mrb[20].mxu1 }
 0x11c   : > { %v5254_v23 = vpop.f32.mrb[21].mxu1 }
 0x11d   : > { %v5257_v25 = vpop.f32.mrb[22].mxu1 }
 0x11e   : > { %v5260_v27 = vpop.f32.mrb[23].mxu1 }
 0x11f   : > { %1652 = vmatmul.mubr.bf16.gmra.mrb[32].mxu0 %v4607_v20  ;;  %v4645_v20 = vld [vmem:[%s4800_s13 + $0x238] ss:$20 sps:$4 sm:$0xff]  }
 0x120   : > { %1659 = vmatprep.mubr.bf16.mxu0 %v4611_v22  ;;  %v4649_v22 = vld [vmem:[%s4800_s13 + $0x264] ss:$20 sps:$4 sm:$0xff]  }
 0x121   : > { %2879 = vmatmul.mubr.bf16.gmra.mrb[116].mxu1 %v4610_v24  ;;  %v4648_v24 = vld [vmem:[%s4941_s16 + $0x1c0] ss:$20 sps:$4 sm:$0xff]  }
 0x122   : > { %2886 = vmatprep.mubr.bf16.mxu1 %v4614_v26  ;;  %v4652_v26 = vld [vmem:[%s4941_s16 + $0x1ec] ss:$20 sps:$4 sm:$0xff]  }
 0x124   : > { %v5263_v29 = vpop.f32.mrb[24].mxu1 }
 0x125   : > { %v5266_v31 = vpop.f32.mrb[25].mxu1 }
 0x126   : > { %v5269_v33 = vpop.f32.mrb[26].mxu1 }
 0x127   : > { %v5272_v35 = vpop.f32.mrb[27].mxu1  ;;  %1660 = vmatmul.mubr.bf16.gmra.mrb[36].mxu0 %v4613_v28  ;;  %v4651_v28 = vld [vmem:[%s4800_s13 + $0x260] ss:$20 sps:$4 sm:$0xff]  }
 0x128   : > { %1667 = vmatprep.mubr.bf16.mxu0 %v4618_v30 }
 0x129   : > { %2887 = vmatmul.mubr.bf16.gmra.mrb[60].mxu1 %v4616_v32  ;;  %v4655_v32 = vld [vmem:[%s4800_s13 + $0x28c] ss:$20 sps:$4 sm:$0xff]  }
 0x12a   : > { %2894 = vmatprep.mubr.bf16.mxu1 %v4621_v34 }
 0x12c   : > { %v5275_v37 = vpop.f32.mrb[28].mxu1 }
 0x12d   : > { %v5278_v39 = vpop.f32.mrb[29].mxu1 }
 0x12e   : > { %v5281_v41 = vpop.f32.mrb[30].mxu1 }
 0x12f   : > { %v5284_v43 = vpop.f32.mrb[31].mxu1  ;;  %1668 = vmatmul.mubr.bf16.gmra.mrb[40].mxu0 %v4620_v36  ;;  %v4654_v36 = vld [vmem:[%s4941_s16 + $0x1e8] ss:$20 sps:$4 sm:$0xff]  }
 0x130   : > { %1675 = vmatprep.mubr.bf16.mxu0 %v4624_v38 }
 0x131   : > { %2895 = vmatmul.mubr.bf16.gmra.mrb[120].mxu1 %v4623_v40  ;;  %v4658_v40 = vld [vmem:[%s4941_s16 + $0x214] ss:$20 sps:$4 sm:$0xff]  }
 0x132   : > { %2902 = vmatprep.mubr.bf16.mxu1 %v4627_v42 }
 0x134   : > { %v5287_v46 = vpop.f32.mrb[32].mxu1 }
 0x135   : > { %6093 = vst [vmem:[#allocation3_spill] sm:$0xff] %v5287_v46  ;;  %v5290_v50 = vpop.f32.mrb[33].mxu1 }
 0x136   : > { %v5293_v55 = vpop.f32.mrb[34].mxu1 }
 0x137   : > { %6094 = vst [vmem:[#allocation4_spill] sm:$0xff] %v5293_v55  ;;  %v5296_v59 = vpop.f32.mrb[35].mxu1  ;;  %1676 = vmatmul.mubr.bf16.gmra.mrb[44].mxu0 %v4626_v44  ;;  %v4657_v44 = vld [vmem:[%s4800_s13 + $0x288] ss:$20 sps:$4 sm:$0xff]  }
 0x138   : > { %6095 = vst [vmem:[#allocation5_spill] sm:$0xff] %v5296_v59  ;;  %1683 = vmatprep.mubr.bf16.mxu0 %v4630_v48  ;;  %v4661_v48 = vld [vmem:[%s4800_s13 + $0x2b4] ss:$20 sps:$4 sm:$0xff]  }
 0x139   : > { %2903 = vmatmul.mubr.bf16.gmra.mrb[68].mxu1 %v4629_v53  ;;  %v4660_v53 = vld [vmem:[%s4941_s16 + $0x210] ss:$20 sps:$4 sm:$0xff]  }
 0x13a   : > { %2910 = vmatprep.mubr.bf16.mxu1 %v4633_v57  ;;  %v4664_v57 = vld [vmem:[%s4941_s16 + $0x23c] ss:$20 sps:$4 sm:$0xff]  }
 0x13f   : > { %1684 = vmatmul.mubr.bf16.gmra.mrb[48].mxu0 %v4632_v51  ;;  %v4663_v51 = vld [vmem:[%s4800_s13 + $0x2b0] ss:$20 sps:$4 sm:$0xff]  }
 0x140   : > { %1691 = vmatprep.mubr.bf16.mxu0 %v4636_v62 }
 0x141   : > { %2911 = vmatmul.mubr.bf16.gmra.mrb[124].mxu1 %v4635_v0  ;;  %v4667_v0 = vld [vmem:[%s4941_s16 + $0x10] ss:$20 sps:$4 sm:$0xff]  }
 0x142   : > { %2918 = vmatprep.mubr.bf16.mxu1 %v4639_v3 }
 0x144   : > { %v5303_v7 = vpop.f32.mrb[40].mxu1 }
 0x145   : > { %v2673_v10 = vpop.f32.mrb[41].mxu1 }
 0x146   : > { %v5307_v14 = vpop.f32.mrb[42].mxu1  ;;  %v4668_v10 = vld [vmem:[%s4941_s16 + $0x264] ss:$20 sps:$4 sm:$0xff]  }
 0x147   : > { %v2676_v18 = vpop.f32.mrb[43].mxu1  ;;  %1692 = vmatmul.mubr.bf16.gmra.mrb[52].mxu0 %v4638_v5  ;;  %v4666_v5 = vld [vmem:[%s4941_s16 + $0x238] ss:$20 sps:$4 sm:$0xff]  }
 0x148   : > { %1699 = vmatprep.mubr.bf16.mxu0 %v4643_v1  ;;  %v4672_v18 = vld [vmem:[%s4941_s16 + $0x60] ss:$20 sps:$4 sm:$0xff]  }
 0x149   : > { %2919 = vmatmul.mubr.bf16.gmra.mrb[76].mxu1 %v4641_v12 }
 0x14a   : > { %2926 = vmatprep.mubr.bf16.mxu1 %v4646_v16  ;;  %v4670_v16 = vld [vmem:[%s4941_s16 + $0x38] ss:$20 sps:$4 sm:$0xff]  }
 0x14f   : > { %1700 = vmatmul.mubr.bf16.gmra.mrb[56].mxu0 %v4645_v20  ;;  %v4671_v20 = vld [vmem:[%s4941_s16 + $0x260] ss:$20 sps:$4 sm:$0xff]  }
 0x150   : > { %1707 = vmatprep.mubr.bf16.mxu0 %v4649_v22  ;;  %v4673_v22 = vld [vmem:[%s4941_s16 + $0x28c] ss:$20 sps:$4 sm:$0xff]  }
 0x151   : > { %2927 = vmatmul.mubr.bf16.gmra.mrb[128].mxu1 %v4648_v24  ;;  %v4675_v24 = vld [vmem:[%s4941_s16 + $0x88] ss:$20 sps:$4 sm:$0xff]  }
 0x152   : > { %2934 = vmatprep.mubr.bf16.mxu1 %v4652_v26 }
 0x154   : > { %v5315_v30 = vpop.f32.mrb[48].mxu1 }
 0x155   : > { %v2689_v34 = vpop.f32.mrb[49].mxu1 }
 0x156   : > { %v5319_v38 = vpop.f32.mrb[50].mxu1  ;;  %v4676_v34 = vld [vmem:[%s4941_s16 + $0x288] ss:$20 sps:$4 sm:$0xff]  }
 0x157   : > { %v2692_v42 = vpop.f32.mrb[51].mxu1  ;;  %1708 = vmatmul.mubr.bf16.gmra.mrb[60].mxu0 %v4651_v28  ;;  %v4677_v28 = vld [vmem:[%s4941_s16 + $0xb0] ss:$20 sps:$4 sm:$0xff]  }
 0x158   : > { %1715 = vmatprep.mubr.bf16.mxu0 %v4655_v32 }
 0x159   : > { %2935 = vmatmul.mubr.bf16.gmra.mrb[84].mxu1 %v4654_v36 }
 0x15a   : > { %2942 = vmatprep.mubr.bf16.mxu1 %v4658_v40  ;;  %v4678_v40 = vld [vmem:[%s4941_s16 + $0x2b4] ss:$20 sps:$4 sm:$0xff]  }
 0x15f   : > { %1716 = vmatmul.mubr.bf16.gmra.mrb[64].mxu0 %v4657_v44  ;;  %v4680_v44 = vld [vmem:[%s4941_s16 + $0xd8] ss:$20 sps:$4 sm:$0xff]  }
 0x160   : > { %1723 = vmatprep.mubr.bf16.mxu0 %v4661_v48  ;;  %v4682_v48 = vld [vmem:[%s4941_s16 + $0x100] ss:$20 sps:$4 sm:$0xff]  }
 0x161   : > { %2943 = vmatmul.mubr.bf16.gmra.mrb[132].mxu1 %v4660_v53  ;;  %v4681_v53 = vld [vmem:[%s4941_s16 + $0x2b0] ss:$20 sps:$4 sm:$0xff]  }
 0x162   : > { %2950 = vmatprep.mubr.bf16.mxu1 %v4664_v57  ;;  %v4684_v57 = vld [vmem:[%s4941_s16 + $0x1f0] ss:$20 sps:$4 sm:$0xff]  }
 0x164   : > { %v5327_v62 = vpop.f32.mrb[56].mxu1 }
 0x165   : > { %v2705_v3 = vpop.f32.mrb[57].mxu1 }
 0x166   : > { %v5331_v1 = vpop.f32.mrb[58].mxu1  ;;  %v4686_v3 = vld [vmem:[%s4941_s16 + $0x150] ss:$20 sps:$4 sm:$0xff]  }
 0x167   : > { %v2708_v12 = vpop.f32.mrb[59].mxu1  ;;  %1724 = vmatmul.mubr.bf16.gmra.mrb[68].mxu0 %v4663_v51  ;;  %v4683_v51 = vld [vmem:[%s4941_s16 + $0x128] ss:$20 sps:$4 sm:$0xff]  }
 0x168   : > { %4174 = vmatprep.mubr.msk.bf16.mxu0 %vm1323_vm0, %v4667_v0 }
 0x169   : > { %2951 = vmatmul.mubr.bf16.gmra.mrb[92].mxu1 %v4666_v5 }
 0x16a   : > { %2958 = vmatprep.mubr.bf16.mxu1 %v4668_v10  ;;  %v4685_v10 = vld [vmem:[%s4941_s16 + $0x218] ss:$20 sps:$4 sm:$0xff]  }
 0x16f   : > { %4175 = vmatmul.mubr.msk.bf16.vlgmr.msra.gmra.mrb[72].mxu0 %vm1323_vm0, %v4670_v16  ;;  %v4688_v16 = vld [vmem:[%s4941_s16 + $0x240] ss:$20 sps:$4 sm:$0xff]  }
 0x170   : > { %4178 = vmatprep.mubr.msk.bf16.mxu0 %vm1323_vm0, %v4672_v18 }
 0x171   : > { %2959 = vmatmul.mubr.bf16.gmra.mrb[136].mxu1 %v4671_v20  ;;  %v4687_v20 = vld [vmem:[%s4941_s16 + $0x178] ss:$20 sps:$4 sm:$0xff]  }
 0x172   : > { %2966 = vmatprep.mubr.bf16.mxu1 %v4673_v22  ;;  %v4690_v22 = vld [vmem:[%s4941_s16 + $0x1a0] ss:$20 sps:$4 sm:$0xff]  }
 0x174   : > { %v5342_v26 = vpop.f32.mrb[64].mxu1 }
 0x175   : > { %v2721_v32 = vpop.f32.mrb[65].mxu1 }
 0x176   : > { %v5346_v36 = vpop.f32.mrb[66].mxu1  ;;  %v4691_v32 = vld [vmem:[%s4941_s16 + $0x1c8] ss:$20 sps:$4 sm:$0xff]  }
 0x177   : > { %v2724_v42 = vpop.f32.mrb[67].mxu1  ;;  %4179 = vmatmul.mubr.msk.bf16.gmra.mrb[76].mxu0 %vm1323_vm0, %v4675_v24  ;;  %v4689_v24 = vld [vmem:[%s4941_s16 + $0x268] ss:$20 sps:$4 sm:$0xff]  }
 0x178   : > { %4182 = vmatprep.mubr.msk.bf16.mxu0 %vm1323_vm0, %v4677_v28  ;;  %v4692_v28 = vld [vmem:[%s4941_s16 + $0x290] ss:$20 sps:$4 sm:$0xff]   ;;  %v4693_v42 = vld [vmem:[%s4941_s16 + $0x2b8] ss:$20 sps:$4 sm:$0xff]  }
 0x179   : > { %2967 = vmatmul.mubr.bf16.gmra.mrb[100].mxu1 %v4676_v34 }
 0x17a   : > { %2974 = vmatprep.mubr.bf16.mxu1 %v4678_v40 }
 0x17f   : > { %4183 = vmatmul.mubr.msk.bf16.gmra.mrb[80].mxu0 %vm1323_vm0, %v4680_v44 }
 0x180   : > { %4186 = vmatprep.mubr.msk.bf16.mxu0 %vm1323_vm0, %v4682_v48 }
 0x181   : > { %2975 = vmatmul.mubr.bf16.gmra.mrb[140].mxu1 %v4681_v53 }
 0x182   : > { %4198 = vmatprep.mubr.msk.bf16.mxu1 %vm1323_vm0, %v4684_v57 }
 0x184   : > { %v5359_v0 = vpop.f32.mrb[72].mxu1 }
 0x185   : > { %v2737_v5 = vpop.f32.mrb[73].mxu1 }
 0x186   : > { %v5363_v12 = vpop.f32.mrb[74].mxu1 }
 0x187   : > { %v2740_v18 = vpop.f32.mrb[75].mxu1  ;;  %4187 = vmatmul.mubr.msk.bf16.gmra.mrb[84].mxu0 %vm1323_vm0, %v4683_v51 }
 0x188   : > { %4190 = vmatprep.mubr.msk.bf16.mxu0 %vm1323_vm0, %v4686_v3 }
 0x189   : > { %4199 = vmatmul.mubr.msk.bf16.vlgmr.msra.gmra.mrb[144].mxu1 %vm1323_vm0, %v4685_v10 }
 0x18a   : > { %4202 = vmatprep.mubr.msk.bf16.mxu1 %vm1323_vm0, %v4688_v16 }
 0x18f   : > { %4191 = vmatmul.mubr.msk.bf16.gmra.mrb[88].mxu0 %vm1323_vm0, %v4687_v20 }
 0x190   : > { %4194 = vmatprep.mubr.msk.bf16.mxu0 %vm1323_vm0, %v4690_v22 }
 0x191   : > { %4203 = vmatmul.mubr.msk.bf16.gmra.mrb[148].mxu1 %vm1323_vm0, %v4689_v24 }
 0x192   : > { %4206 = vmatprep.mubr.msk.bf16.mxu1 %vm1323_vm0, %v4692_v28 }
 0x194   : > { %v5379_v34 = vpop.f32.mrb[80].mxu1 }
 0x195   : > { %v2753_v40 = vpop.f32.mrb[81].mxu1 }
 0x196   : > { %v5382_v44 = vpop.f32.mrb[82].mxu1 }
 0x197   : > { %v2756_v48 = vpop.f32.mrb[83].mxu1  ;;  %4195 = vmatmul.mubr.msk.bf16.gmra.mrb[92].mxu0 %vm1323_vm0, %v4691_v32 }
 0x199   : > { %4207 = vmatmul.mubr.msk.bf16.gmra.mrb[152].mxu1 %vm1323_vm0, %v4693_v42 }
 0x1a4   : > { %v5386_v53 = vpop.f32.mrb[88].mxu1 }
 0x1a5   : > { %v2769_v57 = vpop.f32.mrb[89].mxu1 }
 0x1a6   : > { %v5388_v51 = vpop.f32.mrb[90].mxu1 }
 0x1a7   : > { %v2772_v3 = vpop.f32.mrb[91].mxu1 }
 0x1b2   : > { %v1589_v5 = vpop.f32.mrb[0].mxu0 }
 0x1b3   : > { %v1767_v10 = vadd.f32 %v5193_v47, %v1589_v5  ;;  %v1591_v16 = vpop.f32.mrb[1].mxu0 }
 0x1b4   : > { %v5391_v18 = vpop.f32.mrb[96].mxu1  ;;  %v1592_v20 = vpop.f32.mrb[2].mxu0 }
 0x1b5   : > { %v1770_v22 = vadd.f32 %v5199_v52, %v1592_v20  ;;  %v2785_v24 = vpop.f32.mrb[97].mxu1  ;;  %v1594_v28 = vpop.f32.mrb[3].mxu0 }
 0x1b6   : > { %v5394_v32 = vpop.f32.mrb[98].mxu1 }
 0x1b7   : > { %v2788_v40 = vpop.f32.mrb[99].mxu1 }
 0x1ba   : > { %v1597_v42 = vpop.f32.mrb[4].mxu0 }
 0x1bb   : > { %v1775_v48 = vadd.f32 %v5190_v45, %v1597_v42  ;;  %v1599_v57 = vpop.f32.mrb[5].mxu0 }
 0x1bc   : > { %v1600_v55 = vpop.f32.mrb[6].mxu0 }
 0x1bd   : > { %v1778_v3 = vadd.f32 %v5196_v49, %v1600_v55  ;;  %v1602_v46 = vpop.f32.mrb[7].mxu0  ;;  %v2672_v47 = vadd.f32 %v5303_v7, %v1775_v48 }
 0x1bf   : > { %v2675_v5 = vadd.f32 %v5307_v14, %v1778_v3 }
 0x1c2   : > { %v1605_v16 = vpop.f32.mrb[8].mxu0 }
 0x1c3   : > { %v1783_v52 = vadd.f32 %v5206_v56, %v1605_v16  ;;  %v1607_v20 = vpop.f32.mrb[9].mxu0 }
 0x1c4   : > { %v5401_v24 = vpop.f32.mrb[104].mxu1  ;;  %v1608_v28 = vpop.f32.mrb[10].mxu0 }
 0x1c5   : > { %v1786_v40 = vadd.f32 %v5212_v60, %v1608_v28  ;;  %v2801_v59 = vpop.f32.mrb[105].mxu1  ;;  %v1610_v45 = vpop.f32.mrb[11].mxu0 }
 0x1c6   : > { %v5404_v42 = vpop.f32.mrb[106].mxu1 }
 0x1c7   : > { %6096 = vst [vmem:[#allocation6_spill] sm:$0xff] %v5404_v42  ;;  %v2804_v57 = vpop.f32.mrb[107].mxu1 }
 0x1ca   : > { %v1613_v49 = vpop.f32.mrb[12].mxu0 }
 0x1cb   : > { %v1791_v46 = vadd.f32 %v5203_v54, %v1613_v49  ;;  %v1615_v55 = vpop.f32.mrb[13].mxu0 }
 0x1cc   : > { %v2840_v7 = vpop.f32.mrb[36].mxu1  ;;  %v1616_v14 = vpop.f32.mrb[14].mxu0 }
 0x1cd   : > { %v5407_v48 = vadd.f32 %v2840_v7, %v1767_v10  ;;  %v1794_v56 = vadd.f32 %v5209_v58, %v1616_v14  ;;  %v2842_v3 = vpop.f32.mrb[37].mxu1  ;;  %v1618_v16 = vpop.f32.mrb[15].mxu0  ;;  %v2688_v20 = vadd.f32 %v5315_v30, %v1791_v46 }
 0x1ce   : > { %v2843_v60 = vpop.f32.mrb[38].mxu1 }
 0x1cf   : > { %v5411_v59 = vadd.f32 %v2843_v60, %v1770_v22  ;;  %v2845_v28 = vpop.f32.mrb[39].mxu1  ;;  %v2691_v45 = vadd.f32 %v5319_v38, %v1794_v56 }
 0x1d2   : > { %v1621_v57 = vpop.f32.mrb[16].mxu0 }
 0x1d3   : > { %v1799_v54 = vadd.f32 %v5218_v63, %v1621_v57  ;;  %v1623_v49 = vpop.f32.mrb[17].mxu0 }
 0x1d4   : > { %v2848_v55 = vpop.f32.mrb[108].mxu1  ;;  %v1624_v42 = vpop.f32.mrb[18].mxu0 }
 0x1d5   : > { %v5415_v10 = vadd.f32 %v2848_v55, %v2672_v47  ;;  %v1802_v58 = vadd.f32 %v5224_v4, %v1624_v42  ;;  %v2850_v7 = vpop.f32.mrb[109].mxu1  ;;  %v1626_v14 = vpop.f32.mrb[19].mxu0 }
 0x1d6   : > { %v2851_v3 = vpop.f32.mrb[110].mxu1 }
 0x1d7   : > { %v5418_v30 = vadd.f32 %v2851_v3, %v2675_v5  ;;  %v2853_v22 = vpop.f32.mrb[111].mxu1 }
 0x1da   : > { %v1629_v46 = vpop.f32.mrb[20].mxu0 }
 0x1db   : > { %v1807_v16 = vadd.f32 %v5215_v61, %v1629_v46  ;;  %v1631_v38 = vpop.f32.mrb[21].mxu0 }
 0x1dc   : > { %v2856_v56 = vpop.f32.mrb[44].mxu1  ;;  %v1632_v60 = vpop.f32.mrb[22].mxu0 }
 0x1dd   : > { %v5421_v63 = vadd.f32 %v2856_v56, %v1783_v52  ;;  %v1810_v28 = vadd.f32 %v5221_v2, %v1632_v60  ;;  %v2858_v47 = vpop.f32.mrb[45].mxu1  ;;  %v1634_v57 = vpop.f32.mrb[23].mxu0  ;;  %v2704_v4 = vadd.f32 %v5327_v62, %v1807_v16 }
 0x1de   : > { %v2859_v42 = vpop.f32.mrb[46].mxu1 }
 0x1df   : > { %v5425_v49 = vadd.f32 %v2859_v42, %v1786_v40  ;;  %v2861_v5 = vpop.f32.mrb[47].mxu1  ;;  %v2707_v55 = vadd.f32 %v5331_v1, %v1810_v28 }
 0x1e2   : > { %v1637_v7 = vpop.f32.mrb[24].mxu0 }
 0x1e3   : > { %v1815_v61 = vadd.f32 %v5230_v8, %v1637_v7  ;;  %v1639_v14 = vpop.f32.mrb[25].mxu0 }
 0x1e4   : > { %v2864_v3 = vpop.f32.mrb[112].mxu1  ;;  %v1640_v22 = vpop.f32.mrb[26].mxu0 }
 0x1e5   : > { %v5429_v52 = vadd.f32 %v2864_v3, %v2688_v20  ;;  %v1818_v2 = vadd.f32 %v5236_v11, %v1640_v22  ;;  %v2866_v46 = vpop.f32.mrb[113].mxu1  ;;  %v1642_v38 = vpop.f32.mrb[27].mxu0 }
 0x1e6   : > { %v2867_v56 = vpop.f32.mrb[114].mxu1 }
 0x1e7   : > { %v5432_v62 = vadd.f32 %v2867_v56, %v2691_v45  ;;  %v2869_v40 = vpop.f32.mrb[115].mxu1 }
 0x1ea   : > { %v1645_v16 = vpop.f32.mrb[28].mxu0 }
 0x1eb   : > { %v1823_v60 = vadd.f32 %v5227_v6, %v1645_v16  ;;  %v1647_v1 = vpop.f32.mrb[29].mxu0 }
 0x1ec   : > { %v2872_v28 = vpop.f32.mrb[52].mxu1  ;;  %v1648_v47 = vpop.f32.mrb[30].mxu0 }
 0x1ed   : > { %v5435_v8 = vadd.f32 %v2872_v28, %v1799_v54  ;;  %v1826_v57 = vadd.f32 %v5233_v9, %v1648_v47  ;;  %v2874_v20 = vpop.f32.mrb[53].mxu1  ;;  %v1650_v42 = vpop.f32.mrb[31].mxu0  ;;  %v2720_v11 = vadd.f32 %v5342_v26, %v1823_v60 }
 0x1ee   : > { %v2875_v5 = vpop.f32.mrb[54].mxu1 }
 0x1ef   : > { %v5439_v7 = vadd.f32 %v2875_v5, %v1802_v58  ;;  %v2877_v45 = vpop.f32.mrb[55].mxu1  ;;  %v2723_v14 = vadd.f32 %v5346_v36, %v1826_v57 }
 0x1f2   : > { %v1653_v3 = vpop.f32.mrb[32].mxu0 }
 0x1f3   : > { %v1831_v6 = vadd.f32 %v5242_v15, %v1653_v3  ;;  %v1655_v22 = vpop.f32.mrb[33].mxu0 }
 0x1f4   : > { %v2880_v46 = vpop.f32.mrb[116].mxu1  ;;  %v1656_v38 = vpop.f32.mrb[34].mxu0 }
 0x1f5   : > { %v5443_v54 = vadd.f32 %v2880_v46, %v2704_v4  ;;  %v1834_v9 = vadd.f32 %v5248_v19, %v1656_v38  ;;  %v2882_v56 = vpop.f32.mrb[117].mxu1  ;;  %v1658_v40 = vpop.f32.mrb[35].mxu0 }
 0x1f6   : > { %v2883_v16 = vpop.f32.mrb[118].mxu1 }
 0x1f7   : > { %v5446_v26 = vadd.f32 %v2883_v16, %v2707_v55  ;;  %v2885_v58 = vpop.f32.mrb[119].mxu1 }
 0x1fa   : > { %v1661_v60 = vpop.f32.mrb[36].mxu0 }
 0x1fb   : > { %v1839_v1 = vadd.f32 %v5239_v13, %v1661_v60  ;;  %v1663_v36 = vpop.f32.mrb[37].mxu0 }
 0x1fc   : > { %v2888_v28 = vpop.f32.mrb[60].mxu1  ;;  %v1664_v47 = vpop.f32.mrb[38].mxu0 }
 0x1fd   : > { %v5449_v15 = vadd.f32 %v2888_v28, %v1815_v61  ;;  %v1842_v57 = vadd.f32 %v5245_v17, %v1664_v47  ;;  %v2890_v4 = vpop.f32.mrb[61].mxu1  ;;  %v1666_v20 = vpop.f32.mrb[39].mxu0  ;;  %v2736_v19 = vadd.f32 %v5359_v0, %v1839_v1 }
 0x1fe   : > { %v2891_v42 = vpop.f32.mrb[62].mxu1 }
 0x1ff   : > { %v5453_v5 = vadd.f32 %v2891_v42, %v1818_v2  ;;  %v2893_v55 = vpop.f32.mrb[63].mxu1  ;;  %v2739_v45 = vadd.f32 %v5363_v12, %v1842_v57 }
 0x202   : > { %v1669_v3 = vpop.f32.mrb[40].mxu0 }
 0x203   : > { %v1847_v13 = vadd.f32 %v5254_v23, %v1669_v3  ;;  %v1671_v22 = vpop.f32.mrb[41].mxu0 }
 0x204   : > { %v2896_v46 = vpop.f32.mrb[120].mxu1  ;;  %v1672_v38 = vpop.f32.mrb[42].mxu0 }
 0x205   : > { %v5457_v61 = vadd.f32 %v2896_v46, %v2720_v11  ;;  %v1850_v17 = vadd.f32 %v5260_v27, %v1672_v38  ;;  %v2898_v56 = vpop.f32.mrb[121].mxu1  ;;  %v1674_v40 = vpop.f32.mrb[43].mxu0 }
 0x206   : > { %v2899_v16 = vpop.f32.mrb[122].mxu1 }
 0x207   : > { %v5460_v0 = vadd.f32 %v2899_v16, %v2723_v14  ;;  %v2901_v2 = vpop.f32.mrb[123].mxu1 }
 0x20a   : > { %v1677_v58 = vpop.f32.mrb[44].mxu0 }
 0x20b   : > { %v1855_v60 = vadd.f32 %v5251_v21, %v1677_v58  ;;  %v1679_v12 = vpop.f32.mrb[45].mxu0 }
 0x20c   : > { %v2904_v1 = vpop.f32.mrb[68].mxu1  ;;  %v1680_v36 = vpop.f32.mrb[46].mxu0 }
 0x20d   : > { %v5463_v23 = vadd.f32 %v2904_v1, %v1831_v6  ;;  %v1858_v28 = vadd.f32 %v5257_v25, %v1680_v36  ;;  %v2906_v11 = vpop.f32.mrb[69].mxu1  ;;  %v1682_v47 = vpop.f32.mrb[47].mxu0  ;;  %v2752_v27 = vadd.f32 %v5379_v34, %v1855_v60 }
 0x20e   : > { %v2907_v57 = vpop.f32.mrb[70].mxu1 }
 0x20f   : > { %v5467_v4 = vadd.f32 %v2907_v57, %v1834_v9  ;;  %v2909_v14 = vpop.f32.mrb[71].mxu1  ;;  %v2755_v20 = vadd.f32 %v5382_v44, %v1858_v28 }
 0x212   : > { %v1685_v42 = vpop.f32.mrb[48].mxu0 }
 0x213   : > { %v1863_v21 = vadd.f32 %v5266_v31, %v1685_v42  ;;  %v1687_v55 = vpop.f32.mrb[49].mxu0 }
 0x214   : > { %v2912_v3 = vpop.f32.mrb[124].mxu1  ;;  %v1688_v22 = vpop.f32.mrb[50].mxu0 }
 0x215   : > { %v5471_v6 = vadd.f32 %v2912_v3, %v2736_v19  ;;  %v1866_v25 = vadd.f32 %v5272_v35, %v1688_v22  ;;  %v2914_v46 = vpop.f32.mrb[125].mxu1  ;;  %v1690_v38 = vpop.f32.mrb[51].mxu0 }
 0x216   : > { %v2915_v56 = vpop.f32.mrb[126].mxu1 }
 0x217   : > { %v5474_v34 = vadd.f32 %v2915_v56, %v2739_v45  ;;  %v2917_v9 = vpop.f32.mrb[127].mxu1 }
 0x21a   : > { %v1693_v40 = vpop.f32.mrb[52].mxu0 }
 0x21b   : > { %v1871_v16 = vadd.f32 %v5263_v29, %v1693_v40  ;;  %v1695_v44 = vpop.f32.mrb[53].mxu0 }
 0x21c   : > { %v2920_v2 = vpop.f32.mrb[76].mxu1  ;;  %v1696_v58 = vpop.f32.mrb[54].mxu0 }
 0x21d   : > { %v5477_v31 = vadd.f32 %v2920_v2, %v1847_v13  ;;  %v1874_v60 = vadd.f32 %v5269_v33, %v1696_v58  ;;  %v2922_v19 = vpop.f32.mrb[77].mxu1  ;;  %v1698_v12 = vpop.f32.mrb[55].mxu0  ;;  %v2768_v35 = vadd.f32 %v5386_v53, %v1871_v16 }
 0x21e   : > { %v2923_v1 = vpop.f32.mrb[78].mxu1 }
 0x21f   : > { %v5481_v36 = vadd.f32 %v2923_v1, %v1850_v17  ;;  %v2925_v45 = vpop.f32.mrb[79].mxu1  ;;  %v2771_v28 = vadd.f32 %v5388_v51, %v1874_v60  ;;  %v6097_v1 = vld [vmem:[#allocation5_spill] sm:$0xff] }
 0x222   : > { %v1701_v11 = vpop.f32.mrb[56].mxu0 }
 0x223   : > { %v1879_v29 = vadd.f32 %v5278_v39, %v1701_v11  ;;  %v1703_v47 = vpop.f32.mrb[57].mxu0 }
 0x224   : > { %v2928_v57 = vpop.f32.mrb[128].mxu1  ;;  %v1704_v14 = vpop.f32.mrb[58].mxu0 }
 0x225   : > { %v5485_v13 = vadd.f32 %v2928_v57, %v2752_v27  ;;  %v1882_v33 = vadd.f32 %v5284_v43, %v1704_v14  ;;  %v2930_v42 = vpop.f32.mrb[129].mxu1  ;;  %v1706_v55 = vpop.f32.mrb[59].mxu0  ;;  %v6098_v14 = vld [vmem:[#allocation3_spill] sm:$0xff] }
 0x226   : > { %v2931_v3 = vpop.f32.mrb[130].mxu1 }
 0x227   : > { %v5488_v53 = vadd.f32 %v2931_v3, %v2755_v20  ;;  %v2933_v17 = vpop.f32.mrb[131].mxu1 }
 0x228   : > { %v6099_v17 = vld [vmem:[#allocation4_spill] sm:$0xff] }
 0x22a   : > { %v1709_v22 = vpop.f32.mrb[60].mxu0 }
 0x22b   : > { %v1887_v46 = vadd.f32 %v5275_v37, %v1709_v22  ;;  %v1711_v51 = vpop.f32.mrb[61].mxu0 }
 0x22c   : > { %v2936_v38 = vpop.f32.mrb[84].mxu1  ;;  %v1712_v56 = vpop.f32.mrb[62].mxu0 }
 0x22d   : > { %v5491_v39 = vadd.f32 %v2936_v38, %v1863_v21  ;;  %v1890_v9 = vadd.f32 %v5281_v41, %v1712_v56  ;;  %v2938_v27 = vpop.f32.mrb[85].mxu1  ;;  %v1714_v40 = vpop.f32.mrb[63].mxu0  ;;  %v2784_v43 = vadd.f32 %v5391_v18, %v1887_v46 }
 0x22e   : > { %v2939_v16 = vpop.f32.mrb[86].mxu1 }
 0x22f   : > { %v5495_v44 = vadd.f32 %v2939_v16, %v1866_v25  ;;  %v2941_v20 = vpop.f32.mrb[87].mxu1  ;;  %v2787_v2 = vadd.f32 %v5394_v32, %v1890_v9  ;;  %v6100_v9 = vld [vmem:[#allocation6_spill] sm:$0xff]  ;;  %v5515_v16 = vld [vmem:[%s6085_s4] ss:$0 sm:$0xff] }
 0x232   : > { %v1717_v58 = vpop.f32.mrb[64].mxu0 }
 0x233   : > { %v1895_v37 = vadd.f32 %v5290_v50, %v1717_v58  ;;  %v1719_v60 = vpop.f32.mrb[65].mxu0 }
 0x234   : > { %v2944_v19 = vpop.f32.mrb[132].mxu1  ;;  %v1720_v12 = vpop.f32.mrb[66].mxu0 }
 0x235   : > { %v5499_v21 = vadd.f32 %v2944_v19, %v2768_v35  ;;  %v1898_v41 = vadd.f32 %v6097_v1, %v1720_v12  ;;  %v2946_v45 = vpop.f32.mrb[133].mxu1  ;;  %v1722_v11 = vpop.f32.mrb[67].mxu0 }
 0x236   : > { %v2947_v47 = vpop.f32.mrb[134].mxu1 }
 0x237   : > { %v5502_v18 = vadd.f32 %v2947_v47, %v2771_v28  ;;  %v2949_v25 = vpop.f32.mrb[135].mxu1 }
 0x23a   : > { %v1725_v57 = vpop.f32.mrb[68].mxu0 }
 0x23b   : > { %v1903_v42 = vadd.f32 %v6098_v14, %v1725_v57  ;;  %v1727_v32 = vpop.f32.mrb[69].mxu0 }
 0x23c   : > { %v2952_v55 = vpop.f32.mrb[92].mxu1  ;;  %v1728_v3 = vpop.f32.mrb[70].mxu0 }
 0x23d   : > { %v5505_v50 = vadd.f32 %v2952_v55, %v1879_v29  ;;  %v1906_v22 = vadd.f32 %v6099_v17, %v1728_v3  ;;  %v2954_v35 = vpop.f32.mrb[93].mxu1  ;;  %v1730_v46 = vpop.f32.mrb[71].mxu0  ;;  %v2800_v51 = vadd.f32 %v5401_v24, %v1903_v42 }
 0x23e   : > { %v2955_v38 = vpop.f32.mrb[94].mxu1 }
 0x23f   : > { %v5509_v56 = vadd.f32 %v2955_v38, %v1882_v33  ;;  %v2957_v28 = vpop.f32.mrb[95].mxu1  ;;  %v2803_v27 = vadd.f32 %v6100_v9, %v1906_v22 }
 0x242   : > { %v4176_v40 = vpop.f32.mrb[72].mxu0 }
 0x243   : > { %v3026_v29 = vadd.f32 %v4176_v40, %v5415_v10  ;;  %v3017_v20 = vpop.f32.mrb[73].mxu0 }
 0x244   : > { %v2960_v58 = vpop.f32.mrb[136].mxu1  ;;  %v3018_v60 = vadd.f32 %v5407_v48, %v3017_v20  ;;  %v4177_v19 = vpop.f32.mrb[74].mxu0 }
 0x245   : > { %v5520_v24 = vadd.f32 %v5515_v16, %v3026_v29  ;;  %v5522_v33 = vadd.f32 %v2960_v58, %v2784_v43  ;;  %v2962_v12 = vpop.f32.mrb[137].mxu1  ;;  %v3029_v1 = vadd.f32 %v4177_v19, %v5418_v30  ;;  %v3020_v45 = vpop.f32.mrb[75].mxu0 }
 0x246   : > { %v5526_v11 = vadd.f32 %v5515_v16, %v3018_v60  ;;  %v2963_v47 = vpop.f32.mrb[138].mxu1  ;;  %v3021_v10 = vadd.f32 %v5411_v59, %v3020_v45 }
 0x247   : > { %v3205_v25 = vmax.f32 %v5520_v24, 0.0  ;;  %v5531_v48 = vadd.f32 %v5515_v16, %v3029_v1  ;;  %v5533_v57 = vadd.f32 %v2963_v47, %v2787_v2  ;;  %v2965_v14 = vpop.f32.mrb[139].mxu1 }
 0x248   : > { %v3203_v43 = vmax.f32 %v5526_v11, 0.0  ;;  %v5537_v42 = vadd.f32 %v5515_v16, %v3021_v10 }
 0x249   : > { %v3206_v30 = vmax.f32 %v5531_v48, 0.0  ;;  %3245 = vst.msk [vmem:[#allocation2 + $0x10] sm:$0xff] (!%p3999_p5), %vm1323_vm0, %v3205_v25 }
 0x24a   : > { %v3204_v32 = vmax.f32 %v5537_v42, 0.0  ;;  %v4180_v55 = vpop.f32.mrb[76].mxu0  ;;  %3243 = vst.msk [vmem:[#allocation2] sm:$0xff] (!%p3999_p5), %vm1323_vm0, %v3203_v43 }
 0x24b   : > { %v3042_v59 = vadd.f32 %v4180_v55, %v5429_v52  ;;  %v3033_v3 = vpop.f32.mrb[77].mxu0  ;;  %3246 = vst.msk [vmem:[#allocation2 + $0x18] sm:$0xff] (!%p3999_p5), %vm1323_vm0, %v3206_v30 }
 0x24c   : > { %v2968_v17 = vpop.f32.mrb[100].mxu1  ;;  %v3034_v22 = vadd.f32 %v5421_v63, %v3033_v3  ;;  %v4181_v35 = vpop.f32.mrb[78].mxu0  ;;  %3244 = vst.msk [vmem:[#allocation2 + $0x8] sm:$0xff] (!%p3999_p5), %vm1323_vm0, %v3204_v32 }
 0x24d   : > { %v5544_v2 = vadd.f32 %v5515_v16, %v3042_v59  ;;  %v5546_v46 = vadd.f32 %v2968_v17, %v1895_v37  ;;  %v2970_v38 = vpop.f32.mrb[101].mxu1  ;;  %v3045_v28 = vadd.f32 %v4181_v35, %v5432_v62  ;;  %v3036_v9 = vpop.f32.mrb[79].mxu0 }
 0x24e   : > { %v5550_v40 = vadd.f32 %v5515_v16, %v3034_v22  ;;  %v2971_v29 = vpop.f32.mrb[102].mxu1  ;;  %v3037_v52 = vadd.f32 %v5425_v49, %v3036_v9 }
 0x24f   : > { %v3209_v20 = vmax.f32 %v5544_v2, 0.0  ;;  %v5555_v63 = vadd.f32 %v5515_v16, %v3045_v28  ;;  %v5557_v58 = vadd.f32 %v2971_v29, %v1898_v41  ;;  %v2973_v60 = vpop.f32.mrb[103].mxu1 }
 0x250   : > { %v3207_v37 = vmax.f32 %v5550_v40, 0.0  ;;  %v5561_v19 = vadd.f32 %v5515_v16, %v3037_v52 }
 0x251   : > { %v3210_v62 = vmax.f32 %v5555_v63, 0.0  ;;  %3249 = vst.msk [vmem:[#allocation2 + $0x30] sm:$0xff] (!%p3999_p5), %vm1323_vm0, %v3209_v20 }
 0x252   : > { %v3208_v12 = vmax.f32 %v5561_v19, 0.0  ;;  %v4184_v1 = vpop.f32.mrb[80].mxu0  ;;  %3247 = vst.msk [vmem:[#allocation2 + $0x20] sm:$0xff] (!%p3999_p5), %vm1323_vm0, %v3207_v37 }
 0x253   : > { %v3058_v49 = vadd.f32 %v4184_v1, %v5443_v54  ;;  %v3049_v45 = vpop.f32.mrb[81].mxu0  ;;  %3250 = vst.msk [vmem:[#allocation2 + $0x38] sm:$0xff] (!%p3999_p5), %vm1323_vm0, %v3210_v62 }
 0x254   : > { %v2976_v47 = vpop.f32.mrb[140].mxu1  ;;  %v3050_v10 = vadd.f32 %v5435_v8, %v3049_v45  ;;  %v4185_v14 = vpop.f32.mrb[82].mxu0  ;;  %3248 = vst.msk [vmem:[#allocation2 + $0x28] sm:$0xff] (!%p3999_p5), %vm1323_vm0, %v3208_v12 }
 0x255   : > { %v5568_v41 = vadd.f32 %v5515_v16, %v3058_v49  ;;  %v5570_v55 = vadd.f32 %v2976_v47, %v2800_v51  ;;  %v2978_v59 = vpop.f32.mrb[141].mxu1  ;;  %v3061_v3 = vadd.f32 %v4185_v14, %v5446_v26  ;;  %v3052_v17 = vpop.f32.mrb[83].mxu0 }
 0x256   : > { %v5574_v22 = vadd.f32 %v5515_v16, %v3050_v10  ;;  %v2979_v35 = vpop.f32.mrb[142].mxu1  ;;  %v3053_v54 = vadd.f32 %v5439_v7, %v3052_v17 }
 0x257   : > { %v3213_v38 = vmax.f32 %v5568_v41, 0.0  ;;  %v5579_v8 = vadd.f32 %v5515_v16, %v3061_v3  ;;  %v5581_v28 = vadd.f32 %v2979_v35, %v2803_v27  ;;  %v2981_v9 = vpop.f32.mrb[143].mxu1 }
 0x258   : > { %v3211_v51 = vmax.f32 %v5574_v22, 0.0  ;;  %v5585_v29 = vadd.f32 %v5515_v16, %v3053_v54 }
 0x259   : > { %v3214_v26 = vmax.f32 %v5579_v8, 0.0  ;;  %3253 = vst.msk [vmem:[#allocation2 + $0x50] sm:$0xff] (!%p3999_p5), %vm1323_vm0, %v3213_v38 }
 0x25a   : > { %v3212_v52 = vmax.f32 %v5585_v29, 0.0  ;;  %v4188_v60 = vpop.f32.mrb[84].mxu0  ;;  %3251 = vst.msk [vmem:[#allocation2 + $0x40] sm:$0xff] (!%p3999_p5), %vm1323_vm0, %v3211_v51 }
 0x25b   : > { %v3074_v7 = vadd.f32 %v4188_v60, %v5457_v61  ;;  %v3065_v1 = vpop.f32.mrb[85].mxu0  ;;  %3254 = vst.msk [vmem:[#allocation2 + $0x58] sm:$0xff] (!%p3999_p5), %vm1323_vm0, %v3214_v26 }
 0x25c   : > { %v3066_v49 = vadd.f32 %v5449_v15, %v3065_v1  ;;  %v4200_v45 = vpop.f32.mrb[144].mxu1  ;;  %v4189_v47 = vpop.f32.mrb[86].mxu0  ;;  %3252 = vst.msk [vmem:[#allocation2 + $0x48] sm:$0xff] (!%p3999_p5), %vm1323_vm0, %v3212_v52 }
 0x25d   : > { %v5592_v27 = vadd.f32 %v5515_v16, %v3074_v7  ;;  %v3122_v10 = vadd.f32 %v4200_v45, %v5499_v21  ;;  %v3077_v14 = vadd.f32 %v4189_v47, %v5460_v0  ;;  %v3113_v59 = vpop.f32.mrb[145].mxu1  ;;  %v3068_v3 = vpop.f32.mrb[87].mxu0 }
 0x25e   : > { %v5597_v17 = vadd.f32 %v5515_v16, %v3066_v49  ;;  %v3114_v35 = vadd.f32 %v5491_v39, %v3113_v59  ;;  %v3069_v61 = vadd.f32 %v5453_v5, %v3068_v3  ;;  %v4201_v54 = vpop.f32.mrb[146].mxu1 }
 0x25f   : > { %v5603_v9 = vadd.f32 %v5515_v16, %v3122_v10  ;;  %v5606_v60 = vadd.f32 %v5515_v16, %v3077_v14  ;;  %v3125_v0 = vadd.f32 %v4201_v54, %v5502_v18  ;;  %v3116_v21 = vpop.f32.mrb[147].mxu1 }
 0x260   : > { %v3215_v7 = vmax.f32 %v5597_v17, 0.0  ;;  %v5611_v1 = vadd.f32 %v5515_v16, %v3114_v35  ;;  %v5614_v39 = vadd.f32 %v5515_v16, %v3069_v61  ;;  %v3117_v5 = vadd.f32 %v5495_v44, %v3116_v21 }
 0x261   : > { %v5620_v47 = vadd.f32 %v5515_v16, %v3125_v0 }
 0x262   : > { %v3216_v10 = vmax.f32 %v5614_v39, 0.0  ;;  %v5625_v14 = vadd.f32 %v5515_v16, %v3117_v5  ;;  %v4192_v59 = vpop.f32.mrb[88].mxu0  ;;  %3255 = vst.msk [vmem:[#allocation2 + $0x60] sm:$0xff] (!%p3999_p5), %vm1323_vm0, %v3215_v7 }
 0x263   : > { %v3090_v35 = vadd.f32 %v4192_v59, %v5471_v6  ;;  %v3081_v44 = vpop.f32.mrb[89].mxu0 }
 0x264   : > { %v3082_v54 = vadd.f32 %v5463_v23, %v3081_v44  ;;  %v4204_v21 = vpop.f32.mrb[148].mxu1  ;;  %v4193_v0 = vpop.f32.mrb[90].mxu0  ;;  %3256 = vst.msk [vmem:[#allocation2 + $0x68] sm:$0xff] (!%p3999_p5), %vm1323_vm0, %v3216_v10 }
 0x265   : > { %v5632_v49 = vadd.f32 %v5515_v16, %v3090_v35  ;;  %v3138_v18 = vadd.f32 %v4204_v21, %v5522_v33  ;;  %v3093_v5 = vadd.f32 %v4193_v0, %v5474_v34  ;;  %v3129_v45 = vpop.f32.mrb[149].mxu1  ;;  %v3084_v15 = vpop.f32.mrb[91].mxu0 }
 0x266   : > { %v5637_v3 = vadd.f32 %v5515_v16, %v3082_v54  ;;  %v3130_v6 = vadd.f32 %v5505_v50, %v3129_v45  ;;  %v3085_v59 = vadd.f32 %v5467_v4, %v3084_v15  ;;  %v4205_v61 = vpop.f32.mrb[150].mxu1 }
 0x267   : > { %v5643_v44 = vadd.f32 %v5515_v16, %v3138_v18  ;;  %v5646_v35 = vadd.f32 %v5515_v16, %v3093_v5  ;;  %v3141_v34 = vadd.f32 %v4205_v61, %v5533_v57  ;;  %v3132_v33 = vpop.f32.mrb[151].mxu1 }
 0x268   : > { %v5651_v54 = vadd.f32 %v5515_v16, %v3130_v6  ;;  %v5654_v50 = vadd.f32 %v5515_v16, %v3085_v59  ;;  %v3133_v4 = vadd.f32 %v5509_v56, %v3132_v33 }
 0x269   : > { %v5660_v18 = vadd.f32 %v5515_v16, %v3141_v34 }
 0x26a   : > { %v5665_v0 = vadd.f32 %v5515_v16, %v3133_v4  ;;  %v4196_v5 = vpop.f32.mrb[92].mxu0 }
 0x26b   : > { %v3106_v59 = vadd.f32 %v4196_v5, %v5485_v13  ;;  %v3097_v56 = vpop.f32.mrb[93].mxu0 }
 0x26c   : > { %v3098_v15 = vadd.f32 %v5477_v31, %v3097_v56  ;;  %v4208_v45 = vpop.f32.mrb[152].mxu1  ;;  %v4197_v34 = vpop.f32.mrb[94].mxu0 }
 0x26d   : > { %v5672_v23 = vadd.f32 %v5515_v16, %v3106_v59  ;;  %v3154_v57 = vadd.f32 %v4208_v45, %v5570_v55  ;;  %v3109_v4 = vadd.f32 %v4197_v34, %v5488_v53  ;;  %v3145_v61 = vpop.f32.mrb[153].mxu1  ;;  %v3100_v21 = vpop.f32.mrb[95].mxu0 }
 0x26e   : > { %v5677_v6 = vadd.f32 %v5515_v16, %v3098_v15  ;;  %v3146_v13 = vadd.f32 %v5546_v46, %v3145_v61  ;;  %v3101_v5 = vadd.f32 %v5481_v36, %v3100_v21  ;;  %v4209_v33 = vpop.f32.mrb[154].mxu1  ;;  %3242 = sbr.rel (%p3999_p5) target bundleno = 637 (0x27d), region = 44 }
 0x26f   : > { %v6092_v31 = vmax.f32 %v5672_v23, 0.0  ;;  %v5683_v56 = vadd.f32 %v5515_v16, %v3154_v57  ;;  %v5686_v59 = vadd.f32 %v5515_v16, %v3109_v4  ;;  %v3157_v53 = vadd.f32 %v4209_v33, %v5581_v28  ;;  %v3148_v55 = vpop.f32.mrb[155].mxu1 }
 0x270   : > { %v3223_v45 = vmax.f32 %v5677_v6, 0.0  ;;  %v5691_v15 = vadd.f32 %v5515_v16, %v3146_v13  ;;  %v5694_v46 = vadd.f32 %v5515_v16, %v3101_v5  ;;  %v3149_v36 = vadd.f32 %v5557_v58, %v3148_v55 }
 0x271   : > { %v6087_v21 = vmax.f32 %v5683_v56, 0.0  ;;  %v6091_v57 = vmax.f32 %v5686_v59, 0.0  ;;  %v5700_v61 = vadd.f32 %v5515_v16, %v3157_v53  ;;  %v6102_v58 = vmax.f32 (!%p3999_p5), %v5606_v60, 0.0  ;;  %3265 = vst.msk [vmem:[#allocation2 + $0xb0] sm:$0xff] (!%p3999_p5), %vm1323_vm0, %v6092_v31 }
 0x272   : > { %v6089_v28 = vmax.f32 %v5691_v15, 0.0  ;;  %v3224_v33 = vmax.f32 %v5694_v46, 0.0  ;;  %v5705_v34 = vadd.f32 %v5515_v16, %v3149_v36  ;;  %v6101_v16 = vmax.f32 (!%p3999_p5), %v5592_v27, 0.0  ;;  %3263 = vst.msk [vmem:[#allocation2 + $0xa0] sm:$0xff] (!%p3999_p5), %vm1323_vm0, %v3223_v45 }
 0x273   : > { %v6090_v4 = vmax.f32 %v5700_v61, 0.0  ;;  %3258 = vst.msk [vmem:[#allocation2 + $0x78] sm:$0xff] (!%p3999_p5), %vm1323_vm0, %v6102_v58  ;;  %v6103_v5 = vmax.f32 (!%p3999_p5), %v5637_v3, 0.0  ;;  %v6104_v53 = vmax.f32 (!%p3999_p5), %v5654_v50, 0.0  ;;  %v6105_v55 = vmax.f32 (!%p3999_p5), %v5632_v49, 0.0  ;;  %3266 = vst.msk [vmem:[#allocation2 + $0xb8] sm:$0xff] (!%p3999_p5), %vm1323_vm0, %v6091_v57 }
 0x274   : > { %v6088_v13 = vmax.f32 %v5705_v34, 0.0  ;;  %3257 = vst.msk [vmem:[#allocation2 + $0x70] sm:$0xff] (!%p3999_p5), %vm1323_vm0, %v6101_v16  ;;  %v6106_v36 = vmax.f32 (!%p3999_p5), %v5646_v35, 0.0  ;;  %3264 = vst.msk [vmem:[#allocation2 + $0xa8] sm:$0xff] (!%p3999_p5), %vm1323_vm0, %v3224_v33  ;;  %v6107_v16 = vmax.f32 (!%p3999_p5), %v5611_v1, 0.0  ;;  %v6108_v58 = vmax.f32 (!%p3999_p5), %v5625_v14, 0.0 }
 0x275   : > { %3259 = vst.msk [vmem:[#allocation2 + $0x80] sm:$0xff] %vm1323_vm0, %v6103_v5  ;;  %3260 = vst.msk [vmem:[#allocation2 + $0x88] sm:$0xff] %vm1323_vm0, %v6104_v53  ;;  %v6109_v5 = vmax.f32 %v5603_v9, 0.0  ;;  %v6110_v53 = vmax.f32 %v5620_v47, 0.0 }
 0x276   : > { %3261 = vst.msk [vmem:[#allocation2 + $0x90] sm:$0xff] %vm1323_vm0, %v6105_v55  ;;  %3262 = vst.msk [vmem:[#allocation2 + $0x98] sm:$0xff] %vm1323_vm0, %v6106_v36  ;;  %v6111_v55 = vmax.f32 %v5651_v54, 0.0  ;;  %v6112_v36 = vmax.f32 %v5665_v0, 0.0 }
 0x277   : > { %3267 = vst.msk [vmem:[#allocation2 + $0xc0] sm:$0xff] %vm1323_vm0, %v6107_v16  ;;  %3268 = vst.msk [vmem:[#allocation2 + $0xc8] sm:$0xff] %vm1323_vm0, %v6108_v58  ;;  %v6113_v16 = vmax.f32 %v5643_v44, 0.0  ;;  %v6114_v58 = vmax.f32 %v5660_v18, 0.0 }
 0x278   : > { %3269 = vst.msk [vmem:[#allocation2 + $0xd0] sm:$0xff] %vm1323_vm0, %v6109_v5  ;;  %3270 = vst.msk [vmem:[#allocation2 + $0xd8] sm:$0xff] %vm1323_vm0, %v6110_v53 }
 0x279   : > { %3271 = vst.msk [vmem:[#allocation2 + $0xe0] sm:$0xff] %vm1323_vm0, %v6111_v55  ;;  %3272 = vst.msk [vmem:[#allocation2 + $0xe8] sm:$0xff] %vm1323_vm0, %v6112_v36 }
 0x27a   : > { %3273 = vst.msk [vmem:[#allocation2 + $0xf0] sm:$0xff] %vm1323_vm0, %v6113_v16  ;;  %3274 = vst.msk [vmem:[#allocation2 + $0xf8] sm:$0xff] %vm1323_vm0, %v6114_v58 }
 0x27b   : > { %3275 = vst.msk [vmem:[#allocation2 + $0x100] sm:$0xff] %vm1323_vm0, %v6089_v28  ;;  %3276 = vst.msk [vmem:[#allocation2 + $0x108] sm:$0xff] %vm1323_vm0, %v6088_v13 }
 0x27c   : > { %3277 = vst.msk [vmem:[#allocation2 + $0x110] sm:$0xff] %vm1323_vm0, %v6087_v21  ;;  %3278 = vst.msk [vmem:[#allocation2 + $0x118] sm:$0xff] %vm1323_vm0, %v6090_v4 }
 0x27d PF: > { %p4000_p6 = scmp.le.s32.totalorder %s4708_s18, 0 }
 0x27e   : > { %v3283_v5 = vld [vmem:[#allocation2] sm:$0xff] (!%p4000_p6)  ;;  %v3284_v53 = vld [vmem:[#allocation2 + $0x8] sm:$0xff] (!%p4000_p6)  ;;  %v3285_v55 = vld [vmem:[#allocation2 + $0x10] sm:$0xff] (!%p4000_p6)  ;;  %v6115_v41 = vmax.f32 (!%p4000_p6), %v5592_v27, 0.0  ;;  %v6116_v29 = vmax.f32 (!%p4000_p6), %v5606_v60, 0.0  ;;  %v6120_v60 = vmax.f32 (!%p4000_p6), %v5646_v35, 0.0 }
 0x27f   : > { %3282 = sbr.rel (%p4000_p6) target bundleno = 659 (0x293), region = 48  ;;  %v3319_v36 = vmax.f32 (!%p4000_p6), %v3283_v5, %v3203_v43  ;;  %v3320_v16 = vmax.f32 (!%p4000_p6), %v3284_v53, %v3204_v32  ;;  %v3321_v58 = vmax.f32 (!%p4000_p6), %v3285_v55, %v3205_v25  ;;  %v3286_v21 = vld [vmem:[#allocation2 + $0x18] sm:$0xff] (!%p4000_p6)  ;;  %v3287_v13 = vld [vmem:[#allocation2 + $0x20] sm:$0xff] (!%p4000_p6)  ;;  %v3288_v28 = vld [vmem:[#allocation2 + $0x28] sm:$0xff] (!%p4000_p6)  ;;  %v6122_v35 = vmax.f32 (!%p4000_p6), %v5686_v59, 0.0 }
 0x280   : > { %v3322_v4 = vmax.f32 (!%p4000_p6), %v3286_v21, %v3206_v30  ;;  %v3323_v57 = vmax.f32 (!%p4000_p6), %v3287_v13, %v3207_v37  ;;  %v3324_v31 = vmax.f32 (!%p4000_p6), %v3288_v28, %v3208_v12  ;;  %v3289_v11 = vld [vmem:[#allocation2 + $0x30] sm:$0xff] (!%p4000_p6)  ;;  %v3290_v43 = vld [vmem:[#allocation2 + $0x38] sm:$0xff] (!%p4000_p6)  ;;  %v3291_v5 = vld [vmem:[#allocation2 + $0x40] sm:$0xff] (!%p4000_p6)  ;;  %v6119_v21 = vmax.f32 (!%p4000_p6), %v5632_v49, 0.0 }
 0x281   : > { %3355 = vst.msk [vmem:[#allocation2] sm:$0xff] (!%p4000_p6), %vm1323_vm0, %v3319_v36  ;;  %3356 = vst.msk [vmem:[#allocation2 + $0x8] sm:$0xff] (!%p4000_p6), %vm1323_vm0, %v3320_v16  ;;  %v3325_v24 = vmax.f32 (!%p4000_p6), %v3289_v11, %v3209_v20  ;;  %v3326_v25 = vmax.f32 (!%p4000_p6), %v3290_v43, %v3210_v62  ;;  %v3327_v48 = vmax.f32 (!%p4000_p6), %v3291_v5, %v3211_v51  ;;  %v3292_v42 = vld [vmem:[#allocation2 + $0x48] sm:$0xff] (!%p4000_p6)  ;;  %v3293_v30 = vld [vmem:[#allocation2 + $0x50] sm:$0xff] (!%p4000_p6)  ;;  %v6121_v49 = vmax.f32 (!%p4000_p6), %v5672_v23, 0.0 }
 0x282   : > { %3357 = vst.msk [vmem:[#allocation2 + $0x10] sm:$0xff] (!%p4000_p6), %vm1323_vm0, %v3321_v58  ;;  %v3294_v32 = vld [vmem:[#allocation2 + $0x58] sm:$0xff] (!%p4000_p6)  ;;  %3358 = vst.msk [vmem:[#allocation2 + $0x18] sm:$0xff] (!%p4000_p6), %vm1323_vm0, %v3322_v4  ;;  %v3328_v40 = vmax.f32 (!%p4000_p6), %v3292_v42, %v3212_v52  ;;  %v3329_v2 = vmax.f32 (!%p4000_p6), %v3293_v30, %v3213_v38  ;;  %v3295_v63 = vld [vmem:[#allocation2 + $0x60] sm:$0xff] (!%p4000_p6)  ;;  %v6117_v52 = vmax.f32 (!%p4000_p6), %v5637_v3, 0.0  ;;  %v6123_v58 = vmax.f32 (!%p4000_p6), %v5611_v1, 0.0 }
 0x283   : > { %3359 = vst.msk [vmem:[#allocation2 + $0x20] sm:$0xff] (!%p4000_p6), %vm1323_vm0, %v3323_v57  ;;  %3360 = vst.msk [vmem:[#allocation2 + $0x28] sm:$0xff] (!%p4000_p6), %vm1323_vm0, %v3324_v31  ;;  %v3330_v20 = vmax.f32 (!%p4000_p6), %v3294_v32, %v3214_v26  ;;  %v3296_v37 = vld [vmem:[#allocation2 + $0x68] sm:$0xff] (!%p4000_p6)  ;;  %v3297_v19 = vld [vmem:[#allocation2 + $0x70] sm:$0xff] (!%p4000_p6)  ;;  %v3331_v62 = vmax.f32 (!%p4000_p6), %v3295_v63, %v3215_v7  ;;  %v6118_v7 = vmax.f32 (!%p4000_p6), %v5654_v50, 0.0  ;;  %v6124_v46 = vmax.f32 (!%p4000_p6), %v5625_v14, 0.0 }
 0x284   : > { %3361 = vst.msk [vmem:[#allocation2 + $0x30] sm:$0xff] (!%p4000_p6), %vm1323_vm0, %v3325_v24  ;;  %3362 = vst.msk [vmem:[#allocation2 + $0x38] sm:$0xff] (!%p4000_p6), %vm1323_vm0, %v3326_v25  ;;  %v3332_v12 = vmax.f32 (!%p4000_p6), %v3296_v37, %v3216_v10  ;;  %v3333_v22 = vmax.f32 (!%p4000_p6), %v3297_v19, %v6115_v41  ;;  %v3298_v38 = vld [vmem:[#allocation2 + $0x78] sm:$0xff] (!%p4000_p6)  ;;  %v3299_v8 = vld [vmem:[#allocation2 + $0x80] sm:$0xff] (!%p4000_p6)  ;;  %v6125_v23 = vmax.f32 (!%p4000_p6), %v5603_v9, 0.0  ;;  %v6126_v25 = vmax.f32 (!%p4000_p6), %v5620_v47, 0.0 }
 0x285   : > { %3363 = vst.msk [vmem:[#allocation2 + $0x40] sm:$0xff] (!%p4000_p6), %vm1323_vm0, %v3327_v48  ;;  %v3300_v51 = vld [vmem:[#allocation2 + $0x88] sm:$0xff] (!%p4000_p6)  ;;  %3364 = vst.msk [vmem:[#allocation2 + $0x48] sm:$0xff] (!%p4000_p6), %vm1323_vm0, %v3328_v40  ;;  %v3334_v26 = vmax.f32 (!%p4000_p6), %v3298_v38, %v6116_v29  ;;  %v3335_v17 = vmax.f32 (!%p4000_p6), %v3299_v8, %v6117_v52  ;;  %v3301_v27 = vld [vmem:[#allocation2 + $0x90] sm:$0xff] (!%p4000_p6)  ;;  %v6127_v1 = vmax.f32 (!%p4000_p6), %v5651_v54, 0.0  ;;  %v6128_v14 = vmax.f32 (!%p4000_p6), %v5665_v0, 0.0 }
 0x286   : > { %3365 = vst.msk [vmem:[#allocation2 + $0x50] sm:$0xff] %vm1323_vm0, %v3329_v2  ;;  %3366 = vst.msk [vmem:[#allocation2 + $0x58] sm:$0xff] %vm1323_vm0, %v3330_v20  ;;  %v3336_v39 = vmax.f32 %v3300_v51, %v6118_v7  ;;  %v3302_v10 = vld [vmem:[#allocation2 + $0x98] sm:$0xff]  ;;  %v3303_v31 = vld [vmem:[#allocation2 + $0xa0] sm:$0xff]  ;;  %v3337_v57 = vmax.f32 %v3301_v27, %v6119_v21  ;;  %v6129_v2 = vmax.f32 %v5643_v44, 0.0  ;;  %v6130_v47 = vmax.f32 %v5660_v18, 0.0 }
 0x287   : > { %3367 = vst.msk [vmem:[#allocation2 + $0x60] sm:$0xff] %vm1323_vm0, %v3331_v62  ;;  %3368 = vst.msk [vmem:[#allocation2 + $0x68] sm:$0xff] %vm1323_vm0, %v3332_v12  ;;  %v3338_v28 = vmax.f32 %v3302_v10, %v6120_v60  ;;  %v3339_v3 = vmax.f32 %v3303_v31, %v3223_v45  ;;  %v3304_v50 = vld [vmem:[#allocation2 + $0xa8] sm:$0xff]  ;;  %v3305_v4 = vld [vmem:[#allocation2 + $0xb0] sm:$0xff]  ;;  %v6131_v54 = vmax.f32 %v5691_v15, 0.0  ;;  %v6132_v12 = vmax.f32 %v5705_v34, 0.0 }
 0x288   : > { %3369 = vst.msk [vmem:[#allocation2 + $0x70] sm:$0xff] %vm1323_vm0, %v3333_v22  ;;  %v3306_v13 = vld [vmem:[#allocation2 + $0xb8] sm:$0xff]  ;;  %3370 = vst.msk [vmem:[#allocation2 + $0x78] sm:$0xff] %vm1323_vm0, %v3334_v26  ;;  %v3340_v53 = vmax.f32 %v3304_v50, %v3224_v33  ;;  %v3341_v55 = vmax.f32 %v3305_v4, %v6121_v49  ;;  %v3307_v6 = vld [vmem:[#allocation2 + $0xc0] sm:$0xff]  ;;  %v6133_v44 = vmax.f32 %v5683_v56, 0.0  ;;  %v6134_v18 = vmax.f32 %v5700_v61, 0.0 }
 0x289   : > { %3371 = vst.msk [vmem:[#allocation2 + $0x80] sm:$0xff] %vm1323_vm0, %v3335_v17  ;;  %3372 = vst.msk [vmem:[#allocation2 + $0x88] sm:$0xff] %vm1323_vm0, %v3336_v39  ;;  %v3342_v36 = vmax.f32 %v3306_v13, %v6122_v35  ;;  %v3308_v45 = vld [vmem:[#allocation2 + $0xc8] sm:$0xff]  ;;  %v3309_v16 = vld [vmem:[#allocation2 + $0xd0] sm:$0xff]  ;;  %v3343_v11 = vmax.f32 %v3307_v6, %v6123_v58 }
 0x28a   : > { %3373 = vst.msk [vmem:[#allocation2 + $0x90] sm:$0xff] %vm1323_vm0, %v3337_v57  ;;  %3374 = vst.msk [vmem:[#allocation2 + $0x98] sm:$0xff] %vm1323_vm0, %v3338_v28  ;;  %v3344_v33 = vmax.f32 %v3308_v45, %v6124_v46  ;;  %v3345_v43 = vmax.f32 %v3309_v16, %v6125_v23  ;;  %v3310_v59 = vld [vmem:[#allocation2 + $0xd8] sm:$0xff]  ;;  %v3311_v5 = vld [vmem:[#allocation2 + $0xe0] sm:$0xff] }
 0x28b   : > { %3375 = vst.msk [vmem:[#allocation2 + $0xa0] sm:$0xff] %vm1323_vm0, %v3339_v3  ;;  %v3312_v24 = vld [vmem:[#allocation2 + $0xe8] sm:$0xff]  ;;  %3376 = vst.msk [vmem:[#allocation2 + $0xa8] sm:$0xff] %vm1323_vm0, %v3340_v53  ;;  %v3346_v48 = vmax.f32 %v3310_v59, %v6126_v25  ;;  %v3347_v42 = vmax.f32 %v3311_v5, %v6127_v1  ;;  %v3313_v9 = vld [vmem:[#allocation2 + $0xf0] sm:$0xff] }
 0x28c   : > { %3377 = vst.msk [vmem:[#allocation2 + $0xb0] sm:$0xff] %vm1323_vm0, %v3341_v55  ;;  %3378 = vst.msk [vmem:[#allocation2 + $0xb8] sm:$0xff] %vm1323_vm0, %v3342_v36  ;;  %v3348_v30 = vmax.f32 %v3312_v24, %v6128_v14  ;;  %v3314_v32 = vld [vmem:[#allocation2 + $0xf8] sm:$0xff]  ;;  %v3315_v40 = vld [vmem:[#allocation2 + $0x100] sm:$0xff]  ;;  %v3349_v20 = vmax.f32 %v3313_v9, %v6129_v2 }
 0x28d   : > { %3379 = vst.msk [vmem:[#allocation2 + $0xc0] sm:$0xff] %vm1323_vm0, %v3343_v11  ;;  %3380 = vst.msk [vmem:[#allocation2 + $0xc8] sm:$0xff] %vm1323_vm0, %v3344_v33  ;;  %v3350_v63 = vmax.f32 %v3314_v32, %v6130_v47  ;;  %v3351_v37 = vmax.f32 %v3315_v40, %v6131_v54  ;;  %v3316_v0 = vld [vmem:[#allocation2 + $0x108] sm:$0xff]  ;;  %v3317_v19 = vld [vmem:[#allocation2 + $0x110] sm:$0xff] }
 0x28e   : > { %3381 = vst.msk [vmem:[#allocation2 + $0xd0] sm:$0xff] %vm1323_vm0, %v3345_v43  ;;  %v3318_v62 = vld [vmem:[#allocation2 + $0x118] sm:$0xff]  ;;  %3382 = vst.msk [vmem:[#allocation2 + $0xd8] sm:$0xff] %vm1323_vm0, %v3346_v48  ;;  %v3352_v41 = vmax.f32 %v3316_v0, %v6132_v12  ;;  %v3353_v22 = vmax.f32 %v3317_v19, %v6133_v44 }
 0x28f   : > { %3383 = vst.msk [vmem:[#allocation2 + $0xe0] sm:$0xff] %vm1323_vm0, %v3347_v42  ;;  %3384 = vst.msk [vmem:[#allocation2 + $0xe8] sm:$0xff] %vm1323_vm0, %v3348_v30  ;;  %v3354_v38 = vmax.f32 %v3318_v62, %v6134_v18 }
 0x290   : > { %3385 = vst.msk [vmem:[#allocation2 + $0xf0] sm:$0xff] %vm1323_vm0, %v3349_v20  ;;  %3386 = vst.msk [vmem:[#allocation2 + $0xf8] sm:$0xff] %vm1323_vm0, %v3350_v63 }
 0x291   : > { %3387 = vst.msk [vmem:[#allocation2 + $0x100] sm:$0xff] %vm1323_vm0, %v3351_v37  ;;  %3388 = vst.msk [vmem:[#allocation2 + $0x108] sm:$0xff] %vm1323_vm0, %v3352_v41 }
 0x292   : > { %3389 = vst.msk [vmem:[#allocation2 + $0x110] sm:$0xff] %vm1323_vm0, %v3353_v22  ;;  %3390 = vst.msk [vmem:[#allocation2 + $0x118] sm:$0xff] %vm1323_vm0, %v3354_v38 }
 0x293 PF: > { %p4001_p7 = scmp.ne.s32.totalorder %s4708_s18, 1 }
 0x294   : > { %vm3575_vm1 = vcmask (!%p4001_p7), 519168   ;;  %v3407_v49 = vld [vmem:[#allocation2 + $0x60] sm:$0xff] (!%p4001_p7)  ;;  %v3408_v55 = vld [vmem:[#allocation2 + $0x68] sm:$0xff] (!%p4001_p7)  ;;  %v3409_v35 = vld [vmem:[#allocation2 + $0x70] sm:$0xff] (!%p4001_p7) }
 0x295   : > { %3394 = sbr.rel (%p4001_p7) target bundleno = 682 (0x2aa), region = 52  ;;  %v3395_v56 = vld [vmem:[#allocation2] sm:$0xff] (!%p4001_p7)  ;;  %v3396_v15 = vld [vmem:[#allocation2 + $0x8] sm:$0xff] (!%p4001_p7)  ;;  %v4054_v36 = vpack.c.bf16 (!%p4001_p7), %v3407_v49, %v3407_v49  ;;  %v4055_v6 = vpack.c.bf16 (!%p4001_p7), %v3408_v55, %v3408_v55  ;;  %v4056_v45 = vpack.c.bf16 (!%p4001_p7), %v3409_v35, %v3409_v35  ;;  %v3410_v16 = vld [vmem:[#allocation2 + $0x78] sm:$0xff] (!%p4001_p7) }
 0x296   : > { %v3397_v61 = vld [vmem:[#allocation2 + $0x10] sm:$0xff] (!%p4001_p7)  ;;  %v4042_v34 = vpack.c.bf16 (!%p4001_p7), %v3395_v56, %v3395_v56  ;;  %v4043_v8 = vpack.c.bf16 (!%p4001_p7), %v3396_v15, %v3396_v15  ;;  %v3398_v29 = vld [vmem:[#allocation2 + $0x18] sm:$0xff] (!%p4001_p7)  ;;  %v3411_v58 = vld [vmem:[#allocation2 + $0x80] sm:$0xff] (!%p4001_p7)  ;;  %v4057_v46 = vpack.c.bf16 (!%p4001_p7), %v3410_v16, %v3410_v16 }
 0x297   : > { %v4044_v51 = vpack.c.bf16 (!%p4001_p7), %v3397_v61, %v3397_v61  ;;  %v3399_v26 = vld [vmem:[#allocation2 + $0x20] sm:$0xff] (!%p4001_p7)  ;;  %v3400_v52 = vld [vmem:[#allocation2 + $0x28] sm:$0xff] (!%p4001_p7)  ;;  %v4045_v17 = vpack.c.bf16 (!%p4001_p7), %v3398_v29, %v3398_v29  ;;  %v4058_v33 = vpack.c.bf16 (!%p4001_p7), %v3411_v58, %v3411_v58  ;;  %v3413_v43 = vld [vmem:[#allocation2 + $0x90] sm:$0xff] (!%p4001_p7)  ;;  %3588 = vst.msk [vmem:[%s6086_s5 + $0x30] sm:$0xf] (!%p4001_p7), %vm3575_vm1, %v4054_v36 }
 0x298   : > { %v4046_v7 = vpack.c.bf16 (!%p4001_p7), %v3399_v26, %v3399_v26  ;;  %v4047_v39 = vpack.c.bf16 (!%p4001_p7), %v3400_v52, %v3400_v52  ;;  %v3401_v27 = vld [vmem:[#allocation2 + $0x30] sm:$0xff] (!%p4001_p7)  ;;  %v3402_v10 = vld [vmem:[#allocation2 + $0x38] sm:$0xff] (!%p4001_p7)  ;;  %3576 = vst.msk [vmem:[%s6086_s5] sm:$0xf] (!%p4001_p7), %vm3575_vm1, %v4042_v34  ;;  %3577 = vst.msk [vmem:[%s6086_s5 + $0x4] sm:$0xf] (!%p4001_p7), %vm3575_vm1, %v4043_v8  ;;  %v4060_v24 = vpack.c.bf16 (!%p4001_p7), %v3413_v43, %v3413_v43 }
 0x299   : > { %v3403_v31 = vld [vmem:[#allocation2 + $0x40] sm:$0xff] (!%p4001_p7)  ;;  %3578 = vst.msk [vmem:[%s6086_s5 + $0x8] sm:$0xf] (!%p4001_p7), %vm3575_vm1, %v4044_v51  ;;  %v4048_v21 = vpack.c.bf16 (!%p4001_p7), %v3401_v27, %v3401_v27  ;;  %v4049_v57 = vpack.c.bf16 (!%p4001_p7), %v3402_v10, %v3402_v10  ;;  %v3404_v28 = vld [vmem:[#allocation2 + $0x48] sm:$0xff] (!%p4001_p7)  ;;  %3579 = vst.msk [vmem:[%s6086_s5 + $0xc] sm:$0xf] (!%p4001_p7), %vm3575_vm1, %v4045_v17 }
 0x29a   : > { %v4050_v60 = vpack.c.bf16 (!%p4001_p7), %v3403_v31, %v3403_v31  ;;  %v3405_v3 = vld [vmem:[#allocation2 + $0x50] sm:$0xff] (!%p4001_p7)  ;;  %v3406_v50 = vld [vmem:[#allocation2 + $0x58] sm:$0xff] (!%p4001_p7)  ;;  %3580 = vst.msk [vmem:[%s6086_s5 + $0x10] sm:$0xf] (!%p4001_p7), %vm3575_vm1, %v4046_v7  ;;  %3581 = vst.msk [vmem:[%s6086_s5 + $0x14] sm:$0xf] (!%p4001_p7), %vm3575_vm1, %v4047_v39  ;;  %v4051_v4 = vpack.c.bf16 (!%p4001_p7), %v3404_v28, %v3404_v28 }
 0x29b   : > { %v4052_v13 = vpack.c.bf16 (!%p4001_p7), %v3405_v3, %v3405_v3  ;;  %v4053_v53 = vpack.c.bf16 (!%p4001_p7), %v3406_v50, %v3406_v50  ;;  %3582 = vst.msk [vmem:[%s6086_s5 + $0x18] sm:$0xf] (!%p4001_p7), %vm3575_vm1, %v4048_v21  ;;  %3583 = vst.msk [vmem:[%s6086_s5 + $0x1c] sm:$0xf] (!%p4001_p7), %vm3575_vm1, %v4049_v57  ;;  %v3412_v11 = vld [vmem:[#allocation2 + $0x88] sm:$0xff] (!%p4001_p7)  ;;  %v3414_v59 = vld [vmem:[#allocation2 + $0x98] sm:$0xff] (!%p4001_p7) }
 0x29c   : > { %3584 = vst.msk [vmem:[%s6086_s5 + $0x20] sm:$0xf] %vm3575_vm1, %v4050_v60  ;;  %3585 = vst.msk [vmem:[%s6086_s5 + $0x24] sm:$0xf] %vm3575_vm1, %v4051_v4  ;;  %v4059_v23 = vpack.c.bf16 %v3412_v11, %v3412_v11  ;;  %v3415_v5 = vld [vmem:[#allocation2 + $0xa0] sm:$0xff]  ;;  %v4061_v25 = vpack.c.bf16 %v3414_v59, %v3414_v59  ;;  %v3416_v1 = vld [vmem:[#allocation2 + $0xa8] sm:$0xff] }
 0x29d   : > { %3586 = vst.msk [vmem:[%s6086_s5 + $0x28] sm:$0xf] %vm3575_vm1, %v4052_v13  ;;  %3587 = vst.msk [vmem:[%s6086_s5 + $0x2c] sm:$0xf] %vm3575_vm1, %v4053_v53  ;;  %v4062_v48 = vpack.c.bf16 %v3415_v5, %v3415_v5  ;;  %v3417_v42 = vld [vmem:[#allocation2 + $0xb0] sm:$0xff]  ;;  %v3418_v14 = vld [vmem:[#allocation2 + $0xb8] sm:$0xff]  ;;  %v4063_v30 = vpack.c.bf16 %v3416_v1, %v3416_v1 }
 0x29e   : > { %3589 = vst.msk [vmem:[%s6086_s5 + $0x34] sm:$0xf] %vm3575_vm1, %v4055_v6  ;;  %3590 = vst.msk [vmem:[%s6086_s5 + $0x38] sm:$0xf] %vm3575_vm1, %v4056_v45  ;;  %v4064_v9 = vpack.c.bf16 %v3417_v42, %v3417_v42  ;;  %v4065_v32 = vpack.c.bf16 %v3418_v14, %v3418_v14  ;;  %v3419_v40 = vld [vmem:[#allocation2 + $0xc0] sm:$0xff]  ;;  %v3420_v2 = vld [vmem:[#allocation2 + $0xc8] sm:$0xff] }
 0x29f   : > { %3591 = vst.msk [vmem:[%s6086_s5 + $0x3c] sm:$0xf] %vm3575_vm1, %v4057_v46  ;;  %3592 = vst.msk [vmem:[%s6086_s5 + $0x40] sm:$0xf] %vm3575_vm1, %v4058_v33  ;;  %v3421_v20 = vld [vmem:[#allocation2 + $0xd0] sm:$0xff]  ;;  %v4066_v47 = vpack.c.bf16 %v3419_v40, %v3419_v40  ;;  %v4067_v63 = vpack.c.bf16 %v3420_v2, %v3420_v2  ;;  %v3422_v37 = vld [vmem:[#allocation2 + $0xd8] sm:$0xff] }
 0x2a0   : > { %3593 = vst.msk [vmem:[%s6086_s5 + $0x44] sm:$0xf] %vm3575_vm1, %v4059_v23  ;;  %3594 = vst.msk [vmem:[%s6086_s5 + $0x48] sm:$0xf] %vm3575_vm1, %v4060_v24  ;;  %v4068_v54 = vpack.c.bf16 %v3421_v20, %v3421_v20  ;;  %v3423_v0 = vld [vmem:[#allocation2 + $0xe0] sm:$0xff]  ;;  %v3424_v19 = vld [vmem:[#allocation2 + $0xe8] sm:$0xff]  ;;  %v4069_v62 = vpack.c.bf16 %v3422_v37, %v3422_v37 }
 0x2a1   : > { %3595 = vst.msk [vmem:[%s6086_s5 + $0x4c] sm:$0xf] %vm3575_vm1, %v4061_v25  ;;  %3596 = vst.msk [vmem:[%s6086_s5 + $0x50] sm:$0xf] %vm3575_vm1, %v4062_v48  ;;  %v4070_v12 = vpack.c.bf16 %v3423_v0, %v3423_v0  ;;  %v4071_v41 = vpack.c.bf16 %v3424_v19, %v3424_v19  ;;  %v3425_v44 = vld [vmem:[#allocation2 + $0xf0] sm:$0xff]  ;;  %v3426_v22 = vld [vmem:[#allocation2 + $0xf8] sm:$0xff] }
 0x2a2   : > { %3597 = vst.msk [vmem:[%s6086_s5 + $0x54] sm:$0xf] %vm3575_vm1, %v4063_v30  ;;  %3598 = vst.msk [vmem:[%s6086_s5 + $0x58] sm:$0xf] %vm3575_vm1, %v4064_v9  ;;  %v3427_v18 = vld [vmem:[#allocation2 + $0x100] sm:$0xff]  ;;  %v4072_v38 = vpack.c.bf16 %v3425_v44, %v3425_v44  ;;  %v4073_v56 = vpack.c.bf16 %v3426_v22, %v3426_v22  ;;  %v3428_v61 = vld [vmem:[#allocation2 + $0x108] sm:$0xff] }
 0x2a3   : > { %3599 = vst.msk [vmem:[%s6086_s5 + $0x5c] sm:$0xf] %vm3575_vm1, %v4065_v32  ;;  %3600 = vst.msk [vmem:[%s6086_s5 + $0x60] sm:$0xf] %vm3575_vm1, %v4066_v47  ;;  %v4074_v15 = vpack.c.bf16 %v3427_v18, %v3427_v18  ;;  %v3429_v34 = vld [vmem:[#allocation2 + $0x110] sm:$0xff]  ;;  %v3430_v8 = vld [vmem:[#allocation2 + $0x118] sm:$0xff]  ;;  %v4075_v51 = vpack.c.bf16 %v3428_v61, %v3428_v61 }
 0x2a4   : > { %3601 = vst.msk [vmem:[%s6086_s5 + $0x64] sm:$0xf] %vm3575_vm1, %v4067_v63  ;;  %3602 = vst.msk [vmem:[%s6086_s5 + $0x68] sm:$0xf] %vm3575_vm1, %v4068_v54  ;;  %v4076_v29 = vpack.c.bf16 %v3429_v34, %v3429_v34  ;;  %v4077_v26 = vpack.c.bf16 %v3430_v8, %v3430_v8 }
 0x2a5   : > { %3603 = vst.msk [vmem:[%s6086_s5 + $0x6c] sm:$0xf] %vm3575_vm1, %v4069_v62  ;;  %3604 = vst.msk [vmem:[%s6086_s5 + $0x70] sm:$0xf] %vm3575_vm1, %v4070_v12 }
 0x2a6   : > { %3605 = vst.msk [vmem:[%s6086_s5 + $0x74] sm:$0xf] %vm3575_vm1, %v4071_v41  ;;  %3606 = vst.msk [vmem:[%s6086_s5 + $0x78] sm:$0xf] %vm3575_vm1, %v4072_v38 }
 0x2a7   : > { %3607 = vst.msk [vmem:[%s6086_s5 + $0x7c] sm:$0xf] %vm3575_vm1, %v4073_v56  ;;  %3608 = vst.msk [vmem:[%s6086_s5 + $0x80] sm:$0xf] %vm3575_vm1, %v4074_v15 }
 0x2a8   : > { %3609 = vst.msk [vmem:[%s6086_s5 + $0x84] sm:$0xf] %vm3575_vm1, %v4075_v51  ;;  %3610 = vst.msk [vmem:[%s6086_s5 + $0x88] sm:$0xf] %vm3575_vm1, %v4076_v29 }
 0x2a9   : > { %3611 = vst.msk [vmem:[%s6086_s5 + $0x8c] sm:$0xf] %vm3575_vm1, %v4077_v26 }
 0x2aa PF: > { %s15_s20 = sadd.s32 1, %s4716_s20   ;;  %s6135_s18 = smov %s4712_s19 }
 0x2ab   : > { %p12_p8 = scmp.ge.s32.totalorder %s15_s20, 4   ;;  %s6136_s19 = smov %s6138_s21 }
 0x2ad   :  { %14 = sbr.rel (!%p12_p8) target bundleno = 2 (0x2), region = 85 }

// kernel: lffcnn_forward.9
= control target key start
LH: loop header
LB: loop body
LE: loop exit
PB: predicated region body
PF: predicated region fallthrough
CT: control target
= control target key end

     0   :  { %v2405_v0 = vmov 0   ;;  %vm874_vm0 = vcmask 523264   ;;  %vm1503_vm1 = vcmask 261120   ;;  %vm2407_vm3 = vmmov 0   ;;  %s3234_s1 = inlined_call_operand.vmem [shape: bf16[576,32], index: 1, kind: input, shape index: {}]   ;;  %s3235_s0 = inlined_call_operand.vmem [shape: bf16[288,576], index: 0, kind: input, shape index: {}]   ;;  %s3236_s2 = inlined_call_operand.vmem [shape: f32[1,32], index: 2, kind: input, shape index: {}]   ;;  %s3237_s3 = inlined_call_operand.vmem [shape: f32[3,32], index: 3, kind: input, shape index: {}]   ;;  %s3238_s4 = inlined_call_operand.vmem [shape: f32[3,1], index: 4, kind: input, shape index: {}]   ;;  %s3239_s5 = inlined_call_operand.vmem [shape: f32[3,288], index: 5, kind: output, shape index: {}]  }
   0x1   :  { %929 = vmatprep.subr.bf16.mxu0 %v2405_v0  ;;  %2122 = vmatprep.subr.bf16.mxu1 %v2405_v0  ;;  %v2243_v1 = vld [vmem:[%s3234_s1] sm:$0xff]   ;;  %v2245_v3 = vld [vmem:[%s3234_s1 + $0x8] sm:$0xff]   ;;  %v2247_v5 = vld [vmem:[%s3234_s1 + $0x10] sm:$0xff]   ;;  %vm1761_vm4 = vcmask 256000  }
   0x2   :  { %v2447_v2 = vld [vmem:[%s3234_s1 + $0x80] sm:$0xff]   ;;  %2242 = vset.pattern.permute.xlu0 %v2405_v0  ;;  %930 = vmatpush1.bf16.msra.mxu0 %v2243_v1  ;;  %v2458_v4 = vld [vmem:[%s3234_s1 + $0x88] sm:$0xff]   ;;  %v2469_v6 = vld [vmem:[%s3234_s1 + $0x90] sm:$0xff]  }
   0x3   :  { %2138 = vmatpush1.bf16.msra.mxu1 %v2447_v2  ;;  %931 = vmatprep.subr.bf16.mxu0 %v2405_v0  ;;  %v2249_v7 = vld [vmem:[%s3234_s1 + $0x18] sm:$0xff]   ;;  %v2251_v9 = vld [vmem:[%s3234_s1 + $0x20] sm:$0xff]   ;;  %v2253_v11 = vld [vmem:[%s3234_s1 + $0x28] sm:$0xff]  }
   0x4   :  { %2123 = vmatprep.subr.bf16.mxu1 %v2405_v0  ;;  %v2480_v8 = vld [vmem:[%s3234_s1 + $0x98] sm:$0xff]   ;;  %v2491_v10 = vld [vmem:[%s3234_s1 + $0xa0] sm:$0xff]   ;;  %v2502_v12 = vld [vmem:[%s3234_s1 + $0xa8] sm:$0xff]  }
   0x5   :  { %v2255_v13 = vld [vmem:[%s3234_s1 + $0x30] sm:$0xff]   ;;  %v2257_v15 = vld [vmem:[%s3234_s1 + $0x38] sm:$0xff]   ;;  %v2259_v17 = vld [vmem:[%s3234_s1 + $0x40] sm:$0xff]  }
   0x6   :  { %932 = vmatpush1.bf16.msra.mxu0 %v2245_v3  ;;  %v2513_v14 = vld [vmem:[%s3234_s1 + $0xb0] sm:$0xff]   ;;  %v2524_v16 = vld [vmem:[%s3234_s1 + $0xb8] sm:$0xff]   ;;  %v2535_v18 = vld [vmem:[%s3234_s1 + $0xc0] sm:$0xff]  }
   0x7   :  { %2139 = vmatpush1.bf16.msra.mxu1 %v2458_v4  ;;  %933 = vmatprep.subr.bf16.mxu0 %v2405_v0  ;;  %v2277_v19 = vld [vmem:[%s3235_s0 + $0x4] ss:$20 sps:$4 sm:$0xff]   ;;  %v2261_v20 = vld [vmem:[%s3234_s1 + $0x48] sm:$0xff]   ;;  %v2280_v21 = vld [vmem:[%s3235_s0 + $0xfc] ss:$20 sps:$4 sm:$0xff]  }
   0x8   :  { %2124 = vmatprep.subr.bf16.mxu1 %v2405_v0  ;;  %v2552_v22 = vld [vmem:[%s3234_s1 + $0xc8] sm:$0xff]   ;;  %961 = vmatprep.mubr.bf16.mxu0 %v2277_v19  ;;  %v2263_v23 = vld [vmem:[%s3234_s1 + $0x50] sm:$0xff]   ;;  %v2265_v25 = vld [vmem:[%s3234_s1 + $0x58] sm:$0xff]  }
   0x9   :  { %1186 = vmatprep.mubr.bf16.mxu1 %v2280_v21  ;;  %v2563_v24 = vld [vmem:[%s3234_s1 + $0xd0] sm:$0xff]   ;;  %v2574_v26 = vld [vmem:[%s3234_s1 + $0xd8] sm:$0xff]   ;;  %v2267_v27 = vld [vmem:[%s3234_s1 + $0x60] sm:$0xff]  }
   0xa   :  { %934 = vmatpush1.bf16.msra.mxu0 %v2247_v5  ;;  %v2585_v28 = vld [vmem:[%s3234_s1 + $0xe0] sm:$0xff]   ;;  %v2269_v29 = vld [vmem:[%s3234_s1 + $0x68] sm:$0xff]   ;;  %v2271_v31 = vld [vmem:[%s3234_s1 + $0x70] sm:$0xff]  }
   0xb   :  { %2140 = vmatpush1.bf16.msra.mxu1 %v2469_v6  ;;  %935 = vmatprep.subr.bf16.mxu0 %v2405_v0  ;;  %v2596_v30 = vld [vmem:[%s3234_s1 + $0xe8] sm:$0xff]   ;;  %v2607_v32 = vld [vmem:[%s3234_s1 + $0xf0] sm:$0xff]   ;;  %v2273_v33 = vld [vmem:[%s3234_s1 + $0x78] sm:$0xff]  }
   0xc   :  { %2125 = vmatprep.subr.bf16.mxu1 %v2405_v0  ;;  %v2618_v34 = vld [vmem:[%s3234_s1 + $0xf8] sm:$0xff]   ;;  %v2297_v35 = vld [vmem:[%s3234_s1 + $0x100] sm:$0xff]   ;;  %v2316_v40 = vld [vmem:[%s3234_s1 + $0x108] sm:$0xff]  }
   0xd   :  { %v2275_v36 = vld [vmem:[%s3235_s0] ss:$20 sps:$4 sm:$0xff]   ;;  %v2278_v37 = vld [vmem:[%s3235_s0 + $0xf8] ss:$20 sps:$4 sm:$0xff]   ;;  %v2285_v41 = vld [vmem:[%s3235_s0 + $0x28] ss:$20 sps:$4 sm:$0xff]  }
   0xe   :  { %936 = vmatpush1.bf16.msra.mxu0 %v2249_v7  ;;  %v2281_v38 = vld [vmem:[%s3235_s0 + $0x2c] ss:$20 sps:$4 sm:$0xff]   ;;  %v2283_v39 = vld [vmem:[%s3235_s0 + $0x124] ss:$20 sps:$4 sm:$0xff]   ;;  %v2335_v43 = vld [vmem:[%s3234_s1 + $0x110] sm:$0xff]  }
   0xf   :  { %2141 = vmatpush1.bf16.msra.mxu1 %v2480_v8  ;;  %937 = vmatprep.subr.bf16.mxu0 %v2405_v0  ;;  %v2286_v42 = vld [vmem:[%s3235_s0 + $0x120] ss:$20 sps:$4 sm:$0xff]   ;;  %v2350_v46 = vld [vmem:[%s3234_s1 + $0x118] sm:$0xff]   ;;  %v2291_v47 = vld [vmem:[%s3235_s0 + $0x50] ss:$20 sps:$4 sm:$0xff]  }
  0x10   :  { %2126 = vmatprep.subr.bf16.mxu1 %v2405_v0  ;;  %v2287_v44 = vld [vmem:[%s3235_s0 + $0x54] ss:$20 sps:$4 sm:$0xff]   ;;  %v2289_v45 = vld [vmem:[%s3235_s0 + $0x14c] ss:$20 sps:$4 sm:$0xff]   ;;  %v2293_v49 = vld [vmem:[%s3235_s0 + $0x7c] ss:$20 sps:$4 sm:$0xff]  }
  0x11   :  { %v2292_v48 = vld [vmem:[%s3235_s0 + $0x148] ss:$20 sps:$4 sm:$0xff]   ;;  %v2298_v51 = vld [vmem:[%s3235_s0 + $0x78] ss:$20 sps:$4 sm:$0xff]   ;;  %v2299_v52 = vld [vmem:[%s3235_s0 + $0x170] ss:$20 sps:$4 sm:$0xff]  }
  0x12   :  { %938 = vmatpush1.bf16.msra.mxu0 %v2251_v9  ;;  %v2295_v50 = vld [vmem:[%s3235_s0 + $0x174] ss:$20 sps:$4 sm:$0xff]   ;;  %v2300_v53 = vld [vmem:[%s3235_s0 + $0xa4] ss:$20 sps:$4 sm:$0xff]   ;;  %v2302_v54 = vld [vmem:[%s3235_s0 + $0x19c] ss:$20 sps:$4 sm:$0xff]  }
  0x13   :  { %2142 = vmatpush1.bf16.msra.mxu1 %v2491_v10  ;;  %939 = vmatprep.subr.bf16.mxu0 %v2405_v0  ;;  %v2304_v55 = vld [vmem:[%s3235_s0 + $0xa0] ss:$20 sps:$4 sm:$0xff]   ;;  %v2305_v56 = vld [vmem:[%s3235_s0 + $0x198] ss:$20 sps:$4 sm:$0xff]   ;;  %v2310_v59 = vld [vmem:[%s3235_s0 + $0xc8] ss:$20 sps:$4 sm:$0xff]  }
  0x14   :  { %2127 = vmatprep.subr.bf16.mxu1 %v2405_v0  ;;  %v2306_v57 = vld [vmem:[%s3235_s0 + $0xcc] ss:$20 sps:$4 sm:$0xff]   ;;  %v2308_v58 = vld [vmem:[%s3235_s0 + $0x1c4] ss:$20 sps:$4 sm:$0xff]   ;;  %v2312_v61 = vld [vmem:[%s3235_s0 + $0xf4] ss:$20 sps:$4 sm:$0xff]  }
  0x15   :  { %v2311_v60 = vld [vmem:[%s3235_s0 + $0x1c0] ss:$20 sps:$4 sm:$0xff]   ;;  %v2317_v63 = vld [vmem:[%s3235_s0 + $0xf0] ss:$20 sps:$4 sm:$0xff]   ;;  %v2318_v1 = vld [vmem:[%s3235_s0 + $0x1e8] ss:$20 sps:$4 sm:$0xff]  }
  0x16   :  { %940 = vmatpush1.bf16.msra.mxu0 %v2253_v11  ;;  %v2314_v62 = vld [vmem:[%s3235_s0 + $0x1ec] ss:$20 sps:$4 sm:$0xff]   ;;  %v2321_v3 = vld [vmem:[%s3235_s0 + $0x214] ss:$20 sps:$4 sm:$0xff]   ;;  %v2324_v5 = vld [vmem:[%s3235_s0 + $0x210] ss:$20 sps:$4 sm:$0xff]  }
  0x17   :  { %2143 = vmatpush1.bf16.msra.mxu1 %v2502_v12  ;;  %941 = vmatprep.subr.bf16.mxu0 %v2405_v0  ;;  %v2327_v7 = vld [vmem:[%s3235_s0 + $0x23c] ss:$20 sps:$4 sm:$0xff]   ;;  %v2330_v9 = vld [vmem:[%s3235_s0 + $0x238] ss:$20 sps:$4 sm:$0xff]   ;;  %vm3115_vm2 = vmpackc.low %vm1503_vm1, %vm1503_vm1 }
  0x18   :  { %2128 = vmatprep.subr.bf16.mxu1 %v2405_v0  ;;  %v2333_v11 = vld [vmem:[%s3235_s0 + $0x264] ss:$20 sps:$4 sm:$0xff]  }
  0x19   :  { %v2348_v19 = vld [vmem:[%s3235_s0 + $0x1b8] ss:$20 sps:$4 sm:$0xff]  }
  0x1a   :  { %942 = vmatpush1.bf16.msra.mxu0 %v2255_v13  ;;  %v2338_v13 = vld [vmem:[%s3235_s0 + $0x194] ss:$20 sps:$4 sm:$0xff]   ;;  %v2351_v21 = vld [vmem:[%s3235_s0 + $0x1e4] ss:$20 sps:$4 sm:$0xff]  }
  0x1b   :  { %2144 = vmatpush1.bf16.msra.mxu1 %v2513_v14  ;;  %943 = vmatprep.subr.bf16.mxu0 %v2405_v0 }
  0x1c   :  { %2129 = vmatprep.subr.bf16.mxu1 %v2405_v0 }
  0x1e   :  { %944 = vmatpush1.bf16.msra.mxu0 %v2257_v15  ;;  %v2342_v15 = vld [vmem:[%s3235_s0 + $0x190] ss:$20 sps:$4 sm:$0xff]  }
  0x1f   :  { %2145 = vmatpush1.bf16.msra.mxu1 %v2524_v16  ;;  %945 = vmatprep.subr.bf16.mxu0 %v2405_v0 }
  0x20   :  { %2130 = vmatprep.subr.bf16.mxu1 %v2405_v0 }
  0x22   :  { %946 = vmatpush1.bf16.msra.mxu0 %v2259_v17  ;;  %v2344_v17 = vld [vmem:[%s3235_s0 + $0x1bc] ss:$20 sps:$4 sm:$0xff]  }
  0x23   :  { %2146 = vmatpush1.bf16.msra.mxu1 %v2535_v18  ;;  %947 = vmatprep.subr.bf16.mxu0 %v2405_v0 }
  0x24   :  { %2131 = vmatprep.subr.bf16.mxu1 %v2405_v0 }
  0x26   :  { %948 = vmatpush1.bf16.msra.mxu0 %v2261_v20  ;;  %v2349_v20 = vld [vmem:[%s3235_s0 + $0x2b0] ss:$20 sps:$4 sm:$0xff]  }
  0x27   :  { %2147 = vmatpush1.bf16.msra.mxu1 %v2552_v22  ;;  %949 = vmatprep.subr.bf16.mxu0 %v2405_v0 }
  0x28   :  { %2132 = vmatprep.subr.bf16.mxu1 %v2405_v0 }
  0x2a   :  { %950 = vmatpush1.bf16.msra.mxu0 %v2263_v23  ;;  %v2354_v23 = vld [vmem:[%s3235_s0 + $0x1e0] ss:$20 sps:$4 sm:$0xff]  }
  0x2b   :  { %2148 = vmatpush1.bf16.msra.mxu1 %v2563_v24  ;;  %951 = vmatprep.subr.bf16.mxu0 %v2405_v0 }
  0x2c   :  { %2133 = vmatprep.subr.bf16.mxu1 %v2405_v0 }
  0x2e   :  { %952 = vmatpush1.bf16.msra.mxu0 %v2265_v25  ;;  %v2356_v25 = vld [vmem:[%s3235_s0 + $0x20c] ss:$20 sps:$4 sm:$0xff]  }
  0x2f   :  { %2149 = vmatpush1.bf16.msra.mxu1 %v2574_v26  ;;  %953 = vmatprep.subr.bf16.mxu0 %v2405_v0 }
  0x30   :  { %2134 = vmatprep.subr.bf16.mxu1 %v2405_v0 }
  0x32   :  { %954 = vmatpush1.bf16.msra.mxu0 %v2267_v27  ;;  %v2359_v27 = vld [vmem:[%s3235_s0 + $0x208] ss:$20 sps:$4 sm:$0xff]  }
  0x33   :  { %2150 = vmatpush1.bf16.msra.mxu1 %v2585_v28  ;;  %955 = vmatprep.subr.bf16.mxu0 %v2405_v0 }
  0x34   :  { %2135 = vmatprep.subr.bf16.mxu1 %v2405_v0 }
  0x36   :  { %956 = vmatpush1.bf16.msra.mxu0 %v2269_v29  ;;  %v2361_v29 = vld [vmem:[%s3235_s0 + $0x234] ss:$20 sps:$4 sm:$0xff]  }
  0x37   :  { %2151 = vmatpush1.bf16.msra.mxu1 %v2596_v30  ;;  %957 = vmatprep.subr.bf16.mxu0 %v2405_v0 }
  0x38   :  { %2136 = vmatprep.subr.bf16.mxu1 %v2405_v0 }
  0x3a   :  { %958 = vmatpush1.bf16.msra.mxu0 %v2271_v31  ;;  %v2364_v31 = vld [vmem:[%s3235_s0 + $0x230] ss:$20 sps:$4 sm:$0xff]  }
  0x3b   :  { %2152 = vmatpush1.bf16.msra.mxu1 %v2607_v32  ;;  %959 = vmatprep.subr.bf16.mxu0 %v2405_v0 }
  0x3c   :  { %2137 = vmatprep.subr.bf16.mxu1 %v2405_v0 }
  0x3e   :  { %960 = vmatpush1.bf16.msra.mxu0 %v2273_v33  ;;  %v2366_v33 = vld [vmem:[%s3235_s0 + $0x25c] ss:$20 sps:$4 sm:$0xff]  }
  0x3f   :  { %2153 = vmatpush1.bf16.msra.mxu1 %v2618_v34  ;;  %1106 = vmatprep.subr.bf16.mxu0 %v2405_v0 }
  0x40   :  { %2011 = vmatprep.subr.bf16.mxu1 %v2297_v35 }
  0x41   :  { %962 = vmatmul.mubr.bf16.vlgmr.msra.gmra.mrb[0].mxu0 %v2275_v36  ;;  %v2370_v36 = vld [vmem:[%s3235_s0 + $0x128] ss:$20 sps:$4 sm:$0xff]  }
  0x42   :  { %1187 = vmatmul.mubr.bf16.vlgmr.msra.gmra.mrb[0].mxu1 %v2278_v37  ;;  %969 = vmatprep.mubr.bf16.mxu0 %v2281_v38  ;;  %v2371_v37 = vld [vmem:[%s3235_s0 + $0x284] ss:$20 sps:$4 sm:$0xff]  }
  0x43   :  { %1194 = vmatprep.mubr.bf16.mxu1 %v2283_v39  ;;  %1107 = vmatpush1.bf16.msra.mxu0 %v2447_v2  ;;  %v2319_v2 = vld [vmem:[%s3235_s0 + $0x11c] ss:$20 sps:$4 sm:$0xff]   ;;  %v2374_v39 = vld [vmem:[%s3235_s0 + $0x280] ss:$20 sps:$4 sm:$0xff]  }
  0x44   :  { %1108 = vmatprep.subr.bf16.mxu0 %v2405_v0  ;;  %2012 = vmatpush3.bf16.msra.mxu1 %v2297_v35  ;;  %v2369_v35 = vld [vmem:[%s3235_s0 + $0x258] ss:$20 sps:$4 sm:$0xff]   ;;  %v2373_v38 = vld [vmem:[%s3235_s0 + $0x150] ss:$20 sps:$4 sm:$0xff]  }
  0x45   :  { %2013 = vmatprep.subr.bf16.mxu1 %v2316_v40 }
  0x47   :  { %1109 = vmatpush1.bf16.msra.mxu0 %v2458_v4  ;;  %v2323_v4 = vld [vmem:[%s3235_s0 + $0x118] ss:$20 sps:$4 sm:$0xff]  }
  0x48   :  { %1110 = vmatprep.subr.bf16.mxu0 %v2405_v0  ;;  %2014 = vmatpush3.bf16.msra.mxu1 %v2316_v40  ;;  %v2375_v40 = vld [vmem:[%s3235_s0 + $0x178] ss:$20 sps:$4 sm:$0xff]  }
  0x49   :  { %970 = vmatmul.mubr.bf16.gmra.mrb[4].mxu0 %v2285_v41  ;;  %2015 = vmatprep.subr.bf16.mxu1 %v2335_v43  ;;  %v2376_v41 = vld [vmem:[%s3235_s0 + $0x2ac] ss:$20 sps:$4 sm:$0xff]  }
  0x4a   :  { %1195 = vmatmul.mubr.bf16.gmra.mrb[4].mxu1 %v2286_v42  ;;  %977 = vmatprep.mubr.bf16.mxu0 %v2287_v44  ;;  %v2378_v42 = vld [vmem:[%s3235_s0 + $0x1a0] ss:$20 sps:$4 sm:$0xff]   ;;  %v2380_v44 = vld [vmem:[%s3235_s0 + $0x1c8] ss:$20 sps:$4 sm:$0xff]  }
  0x4b   :  { %1202 = vmatprep.mubr.bf16.mxu1 %v2289_v45  ;;  %1111 = vmatpush1.bf16.msra.mxu0 %v2469_v6  ;;  %v2325_v6 = vld [vmem:[%s3235_s0 + $0x144] ss:$20 sps:$4 sm:$0xff]   ;;  %v2383_v45 = vld [vmem:[%s3235_s0 + $0xc] ss:$20 sps:$4 sm:$0xff]  }
  0x4c   :  { %1112 = vmatprep.subr.bf16.mxu0 %v2405_v0  ;;  %2016 = vmatpush3.bf16.msra.mxu1 %v2335_v43  ;;  %v2379_v43 = vld [vmem:[%s3235_s0 + $0x2a8] ss:$20 sps:$4 sm:$0xff]  }
  0x4d   :  { %2017 = vmatprep.subr.bf16.mxu1 %v2350_v46 }
  0x4f   :  { %1113 = vmatpush1.bf16.msra.mxu0 %v2480_v8  ;;  %v2329_v8 = vld [vmem:[%s3235_s0 + $0x140] ss:$20 sps:$4 sm:$0xff]  }
  0x50   :  { %1114 = vmatprep.subr.bf16.mxu0 %v2405_v0  ;;  %2018 = vmatpush3.bf16.msra.mxu1 %v2350_v46  ;;  %v2384_v46 = vld [vmem:[%s3235_s0 + $0x1f0] ss:$20 sps:$4 sm:$0xff]  }
  0x51   :  { %978 = vmatmul.mubr.bf16.gmra.mrb[8].mxu0 %v2291_v47  ;;  %v2381_v47 = vld [vmem:[%s3235_s0 + $0x8] ss:$20 sps:$4 sm:$0xff]  }
  0x52   :  { %1203 = vmatmul.mubr.bf16.gmra.mrb[8].mxu1 %v2292_v48  ;;  %985 = vmatprep.mubr.bf16.mxu0 %v2293_v49  ;;  %v2385_v48 = vld [vmem:[%s3235_s0 + $0x218] ss:$20 sps:$4 sm:$0xff]   ;;  %v2386_v49 = vld [vmem:[%s3235_s0 + $0x34] ss:$20 sps:$4 sm:$0xff]  }
  0x53   :  { %1210 = vmatprep.mubr.bf16.mxu1 %v2295_v50  ;;  %1115 = vmatpush1.bf16.msra.mxu0 %v2491_v10  ;;  %v2331_v10 = vld [vmem:[%s3235_s0 + $0x16c] ss:$20 sps:$4 sm:$0xff]  }
  0x54   :  { %1116 = vmatprep.subr.bf16.mxu0 %v2405_v0  ;;  %v2388_v50 = vld [vmem:[%s3235_s0 + $0x240] ss:$20 sps:$4 sm:$0xff]  }
  0x57   :  { %1117 = vmatpush1.bf16.msra.mxu0 %v2502_v12  ;;  %v2337_v12 = vld [vmem:[%s3235_s0 + $0x260] ss:$20 sps:$4 sm:$0xff]  }
  0x58   :  { %1118 = vmatprep.subr.bf16.mxu0 %v2405_v0 }
  0x59   :  { %986 = vmatmul.mubr.bf16.gmra.mrb[12].mxu0 %v2298_v51  ;;  %v2389_v51 = vld [vmem:[%s3235_s0 + $0x30] ss:$20 sps:$4 sm:$0xff]  }
  0x5a   :  { %1211 = vmatmul.mubr.bf16.gmra.mrb[12].mxu1 %v2299_v52  ;;  %993 = vmatprep.mubr.bf16.mxu0 %v2300_v53  ;;  %v2390_v52 = vld [vmem:[%s3235_s0 + $0x268] ss:$20 sps:$4 sm:$0xff]  }
  0x5b   :  { %1218 = vmatprep.mubr.bf16.mxu1 %v2302_v54  ;;  %1119 = vmatpush1.bf16.msra.mxu0 %v2513_v14  ;;  %v2340_v14 = vld [vmem:[%s3235_s0 + $0x28c] ss:$20 sps:$4 sm:$0xff]   ;;  %v2391_v53 = vld [vmem:[%s3235_s0 + $0x5c] ss:$20 sps:$4 sm:$0xff]  }
  0x5c   :  { %1120 = vmatprep.subr.bf16.mxu0 %v2405_v0  ;;  %v2393_v54 = vld [vmem:[%s3235_s0 + $0x290] ss:$20 sps:$4 sm:$0xff]  }
  0x5f   :  { %1121 = vmatpush1.bf16.msra.mxu0 %v2524_v16  ;;  %v2343_v16 = vld [vmem:[%s3235_s0 + $0x288] ss:$20 sps:$4 sm:$0xff]  }
  0x60   :  { %1122 = vmatprep.subr.bf16.mxu0 %v2405_v0 }
  0x61   :  { %994 = vmatmul.mubr.bf16.gmra.mrb[16].mxu0 %v2304_v55  ;;  %v2394_v55 = vld [vmem:[%s3235_s0 + $0x58] ss:$20 sps:$4 sm:$0xff]  }
  0x62   :  { %1219 = vmatmul.mubr.bf16.gmra.mrb[16].mxu1 %v2305_v56  ;;  %1001 = vmatprep.mubr.bf16.mxu0 %v2306_v57  ;;  %v2395_v56 = vld [vmem:[%s3235_s0 + $0x2b8] ss:$20 sps:$4 sm:$0xff]  }
  0x63   :  { %1226 = vmatprep.mubr.bf16.mxu1 %v2308_v58  ;;  %1123 = vmatpush1.bf16.msra.mxu0 %v2535_v18  ;;  %v2346_v18 = vld [vmem:[%s3235_s0 + $0x2b4] ss:$20 sps:$4 sm:$0xff]   ;;  %v2396_v57 = vld [vmem:[%s3235_s0 + $0x84] ss:$20 sps:$4 sm:$0xff]  }
  0x64   :  { %1124 = vmatprep.subr.bf16.mxu0 %v2405_v0  ;;  %v2398_v58 = vld [vmem:[%s3235_s0 + $0x80] ss:$20 sps:$4 sm:$0xff]  }
  0x67   :  { %1125 = vmatpush1.bf16.msra.mxu0 %v2552_v22  ;;  %v2353_v22 = vld [vmem:[%s3235_s0 + $0x10] ss:$20 sps:$4 sm:$0xff]  }
  0x68   :  { %1126 = vmatprep.subr.bf16.mxu0 %v2405_v0 }
  0x69   :  { %1002 = vmatmul.mubr.bf16.gmra.mrb[20].mxu0 %v2310_v59  ;;  %v2399_v59 = vld [vmem:[%s3235_s0 + $0xac] ss:$20 sps:$4 sm:$0xff]  }
  0x6a   :  { %1227 = vmatmul.mubr.bf16.gmra.mrb[20].mxu1 %v2311_v60  ;;  %1009 = vmatprep.mubr.bf16.mxu0 %v2312_v61  ;;  %v2401_v60 = vld [vmem:[%s3235_s0 + $0xa8] ss:$20 sps:$4 sm:$0xff]  }
  0x6b   :  { %1234 = vmatprep.mubr.bf16.mxu1 %v2314_v62  ;;  %1127 = vmatpush1.bf16.msra.mxu0 %v2563_v24  ;;  %v2355_v24 = vld [vmem:[%s3235_s0 + $0x38] ss:$20 sps:$4 sm:$0xff]   ;;  %v2402_v61 = vld [vmem:[%s3235_s0 + $0xd4] ss:$20 sps:$4 sm:$0xff]   ;;  %v2404_v62 = vld [vmem:[%s3235_s0 + $0xd0] ss:$20 sps:$4 sm:$0xff]  }
  0x6c   :  { %1128 = vmatprep.subr.bf16.mxu0 %v2405_v0 }
  0x6f   :  { %1129 = vmatpush1.bf16.msra.mxu0 %v2574_v26  ;;  %v2358_v26 = vld [vmem:[%s3235_s0 + $0x60] ss:$20 sps:$4 sm:$0xff]  }
  0x70   :  { %1130 = vmatprep.subr.bf16.mxu0 %v2405_v0 }
  0x71   :  { %1010 = vmatmul.mubr.bf16.gmra.mrb[24].mxu0 %v2317_v63 }
  0x72   :  { %1235 = vmatmul.mubr.bf16.gmra.mrb[24].mxu1 %v2318_v1  ;;  %1017 = vmatprep.mubr.bf16.mxu0 %v2319_v2 }
  0x73   :  { %1242 = vmatprep.mubr.bf16.mxu1 %v2321_v3  ;;  %1131 = vmatpush1.bf16.msra.mxu0 %v2585_v28  ;;  %v2360_v28 = vld [vmem:[%s3235_s0 + $0x88] ss:$20 sps:$4 sm:$0xff]  }
  0x74   :  { %1132 = vmatprep.subr.bf16.mxu0 %v2405_v0 }
  0x77   :  { %1133 = vmatpush1.bf16.msra.mxu0 %v2596_v30  ;;  %v2363_v30 = vld [vmem:[%s3235_s0 + $0xb0] ss:$20 sps:$4 sm:$0xff]  }
  0x78   :  { %1134 = vmatprep.subr.bf16.mxu0 %v2405_v0 }
  0x79   :  { %1018 = vmatmul.mubr.bf16.gmra.mrb[28].mxu0 %v2323_v4 }
  0x7a   :  { %1243 = vmatmul.mubr.bf16.gmra.mrb[28].mxu1 %v2324_v5  ;;  %1025 = vmatprep.mubr.bf16.mxu0 %v2325_v6 }
  0x7b   :  { %1250 = vmatprep.mubr.bf16.mxu1 %v2327_v7  ;;  %1135 = vmatpush1.bf16.msra.mxu0 %v2607_v32  ;;  %v2365_v32 = vld [vmem:[%s3235_s0 + $0xd8] ss:$20 sps:$4 sm:$0xff]  }
  0x7c   :  { %1136 = vmatprep.subr.bf16.mxu0 %v2405_v0  ;;  %v2336_v0 = vld [vmem:[%s3235_s0 + $0x168] ss:$20 sps:$4 sm:$0xff]  }
  0x7f   :  { %1137 = vmatpush1.bf16.msra.mxu0 %v2618_v34  ;;  %v2368_v34 = vld [vmem:[%s3235_s0 + $0x100] ss:$20 sps:$4 sm:$0xff]  }
  0x81   :  { %1026 = vmatmul.mubr.bf16.gmra.mrb[32].mxu0 %v2329_v8 }
  0x82   :  { %1251 = vmatmul.mubr.bf16.gmra.mrb[32].mxu1 %v2330_v9  ;;  %1033 = vmatprep.mubr.bf16.mxu0 %v2331_v10 }
  0x83   :  { %1258 = vmatprep.mubr.bf16.mxu1 %v2333_v11 }
  0x89   :  { %1034 = vmatmul.mubr.bf16.gmra.mrb[36].mxu0 %v2336_v0 }
  0x8a   :  { %1259 = vmatmul.mubr.bf16.gmra.mrb[36].mxu1 %v2337_v12  ;;  %1041 = vmatprep.mubr.bf16.mxu0 %v2338_v13 }
  0x8b   :  { %1266 = vmatprep.mubr.bf16.mxu1 %v2340_v14 }
  0x91   :  { %1042 = vmatmul.mubr.bf16.gmra.mrb[40].mxu0 %v2342_v15 }
  0x92   :  { %1267 = vmatmul.mubr.bf16.gmra.mrb[40].mxu1 %v2343_v16  ;;  %1049 = vmatprep.mubr.bf16.mxu0 %v2344_v17 }
  0x93   :  { %1274 = vmatprep.mubr.bf16.mxu1 %v2346_v18 }
  0x99   :  { %1050 = vmatmul.mubr.bf16.gmra.mrb[44].mxu0 %v2348_v19 }
  0x9a   :  { %1275 = vmatmul.mubr.bf16.gmra.mrb[44].mxu1 %v2349_v20  ;;  %1057 = vmatprep.mubr.bf16.mxu0 %v2351_v21 }
  0x9b   :  { %2019 = vmatprep.mubr.msk.bf16.mxu1 %vm874_vm0, %v2353_v22 }
  0xa1   :  { %1058 = vmatmul.mubr.bf16.gmra.mrb[48].mxu0 %v2354_v23  ;;  %v2959_v23 = vld [vmem:[%s3236_s2] ss:$0 sm:$0xff] }
  0xa2   :  { %2020 = vmatmul.mubr.msk.bf16.vlgmr.msra.gmra.mrb[48].mxu1 %vm874_vm0, %v2355_v24  ;;  %1065 = vmatprep.mubr.bf16.mxu0 %v2356_v25 }
  0xa3   :  { %2023 = vmatprep.mubr.msk.bf16.mxu1 %vm874_vm0, %v2358_v26 }
  0xa9   :  { %1066 = vmatmul.mubr.bf16.gmra.mrb[52].mxu0 %v2359_v27 }
  0xaa   :  { %2024 = vmatmul.mubr.msk.bf16.gmra.mrb[52].mxu1 %vm874_vm0, %v2360_v28  ;;  %1073 = vmatprep.mubr.bf16.mxu0 %v2361_v29 }
  0xab   :  { %2027 = vmatprep.mubr.msk.bf16.mxu1 %vm874_vm0, %v2363_v30 }
  0xb1   :  { %1074 = vmatmul.mubr.bf16.gmra.mrb[56].mxu0 %v2364_v31 }
  0xb2   :  { %2028 = vmatmul.mubr.msk.bf16.gmra.mrb[56].mxu1 %vm874_vm0, %v2365_v32  ;;  %1081 = vmatprep.mubr.bf16.mxu0 %v2366_v33 }
  0xb3   :  { %2031 = vmatprep.mubr.msk.bf16.mxu1 %vm874_vm0, %v2368_v34 }
  0xb9   :  { %1082 = vmatmul.mubr.bf16.gmra.mrb[60].mxu0 %v2369_v35 }
  0xba   :  { %2032 = vmatmul.mubr.msk.bf16.gmra.mrb[60].mxu1 %vm874_vm0, %v2370_v36  ;;  %1089 = vmatprep.mubr.bf16.mxu0 %v2371_v37 }
  0xbb   :  { %2035 = vmatprep.mubr.msk.bf16.mxu1 %vm874_vm0, %v2373_v38 }
  0xc1   :  { %1090 = vmatmul.mubr.bf16.gmra.mrb[64].mxu0 %v2374_v39 }
  0xc2   :  { %2036 = vmatmul.mubr.msk.bf16.gmra.mrb[64].mxu1 %vm874_vm0, %v2375_v40  ;;  %1097 = vmatprep.mubr.bf16.mxu0 %v2376_v41 }
  0xc3   :  { %2039 = vmatprep.mubr.msk.bf16.mxu1 %vm874_vm0, %v2378_v42 }
  0xc9   :  { %1098 = vmatmul.mubr.bf16.gmra.mrb[68].mxu0 %v2379_v43 }
  0xca   :  { %2040 = vmatmul.mubr.msk.bf16.gmra.mrb[68].mxu1 %vm874_vm0, %v2380_v44  ;;  %1138 = vmatprep.mubr.bf16.mxu0 %v2383_v45 }
  0xcb   :  { %2043 = vmatprep.mubr.msk.bf16.mxu1 %vm874_vm0, %v2384_v46 }
  0xd1   :  { %1139 = vmatmul.mubr.bf16.vlgmr.msra.gmra.mrb[0].mxu0 %v2381_v47 }
  0xd2   :  { %2044 = vmatmul.mubr.msk.bf16.gmra.mrb[72].mxu1 %vm874_vm0, %v2385_v48  ;;  %1146 = vmatprep.mubr.bf16.mxu0 %v2386_v49 }
  0xd3   :  { %2047 = vmatprep.mubr.msk.bf16.mxu1 %vm874_vm0, %v2388_v50 }
  0xd9   :  { %1147 = vmatmul.mubr.bf16.gmra.mrb[4].mxu0 %v2389_v51 }
  0xda   :  { %2048 = vmatmul.mubr.msk.bf16.gmra.mrb[76].mxu1 %vm874_vm0, %v2390_v52  ;;  %1154 = vmatprep.mubr.bf16.mxu0 %v2391_v53 }
  0xdb   :  { %2051 = vmatprep.mubr.msk.bf16.mxu1 %vm874_vm0, %v2393_v54 }
  0xe1   :  { %1155 = vmatmul.mubr.bf16.gmra.mrb[8].mxu0 %v2394_v55 }
  0xe2   :  { %2052 = vmatmul.mubr.msk.bf16.gmra.mrb[80].mxu1 %vm874_vm0, %v2395_v56  ;;  %1162 = vmatprep.mubr.bf16.mxu0 %v2396_v57 }
  0xe9   :  { %1163 = vmatmul.mubr.bf16.gmra.mrb[12].mxu0 %v2398_v58 }
  0xea   :  { %1170 = vmatprep.mubr.bf16.mxu0 %v2399_v59 }
  0xf1   :  { %1171 = vmatmul.mubr.bf16.gmra.mrb[16].mxu0 %v2401_v60 }
  0xf2   :  { %1178 = vmatprep.mubr.bf16.mxu0 %v2402_v61 }
  0xf9   :  { %1179 = vmatmul.mubr.bf16.gmra.mrb[20].mxu0 %v2404_v62 }
 0x115   :  { %v1188_v63 = vpop.f32.mrb[0].mxu1 }
 0x116   :  { %v1190_v1 = vpop.f32.mrb[1].mxu1 }
 0x117   :  { %v1191_v2 = vpop.f32.mrb[2].mxu1 }
 0x118   :  { %v1193_v3 = vpop.f32.mrb[3].mxu1 }
 0x11d   :  { %v1196_v4 = vpop.f32.mrb[4].mxu1 }
 0x11e   :  { %v1198_v5 = vpop.f32.mrb[5].mxu1 }
 0x11f   :  { %v1199_v6 = vpop.f32.mrb[6].mxu1 }
 0x120   :  { %v1201_v7 = vpop.f32.mrb[7].mxu1 }
 0x125   :  { %v1204_v8 = vpop.f32.mrb[8].mxu1 }
 0x126   :  { %v1206_v9 = vpop.f32.mrb[9].mxu1 }
 0x127   :  { %v1207_v10 = vpop.f32.mrb[10].mxu1 }
 0x128   :  { %v1209_v11 = vpop.f32.mrb[11].mxu1 }
 0x12d   :  { %v1212_v0 = vpop.f32.mrb[12].mxu1 }
 0x12e   :  { %v1214_v12 = vpop.f32.mrb[13].mxu1 }
 0x12f   :  { %v1215_v13 = vpop.f32.mrb[14].mxu1 }
 0x130   :  { %v1217_v14 = vpop.f32.mrb[15].mxu1 }
 0x135   :  { %v2948_v15 = vpop.f32.mrb[16].mxu1 }
 0x136   :  { %v1222_v16 = vpop.f32.mrb[17].mxu1 }
 0x137   :  { %v2950_v17 = vpop.f32.mrb[18].mxu1 }
 0x138   :  { %v1225_v18 = vpop.f32.mrb[19].mxu1 }
 0x13d   :  { %v2952_v19 = vpop.f32.mrb[20].mxu1 }
 0x13e   :  { %v1230_v20 = vpop.f32.mrb[21].mxu1 }
 0x13f   :  { %v2954_v21 = vpop.f32.mrb[22].mxu1 }
 0x140   :  { %v1233_v22 = vpop.f32.mrb[23].mxu1 }
 0x144   :  { %v1011_v24 = vpop.f32.mrb[24].mxu0 }
 0x145   :  { %v1012_v25 = vadd.f32 %v2959_v23, %v1011_v24  ;;  %v1013_v26 = vpop.f32.mrb[25].mxu0  ;;  %v2962_v27 = vpop.f32.mrb[24].mxu1 }
 0x146   :  { %v1014_v28 = vpop.f32.mrb[26].mxu0  ;;  %v1238_v29 = vpop.f32.mrb[25].mxu1 }
 0x147   :  { %v1015_v30 = vadd.f32 %v2959_v23, %v1014_v28  ;;  %v1016_v31 = vpop.f32.mrb[27].mxu0  ;;  %v2965_v32 = vpop.f32.mrb[26].mxu1  ;;  %v2967_v33 = vadd.f32 %v1188_v63, %v1012_v25 }
 0x148   :  { %v1241_v34 = vpop.f32.mrb[27].mxu1 }
 0x149   :  { %v2969_v35 = vadd.f32 %v1191_v2, %v1015_v30 }
 0x14c   :  { %v1019_v36 = vpop.f32.mrb[28].mxu0 }
 0x14d   :  { %v1020_v37 = vadd.f32 %v2959_v23, %v1019_v36  ;;  %v1021_v38 = vpop.f32.mrb[29].mxu0  ;;  %v2972_v39 = vpop.f32.mrb[28].mxu1 }
 0x14e   :  { %v1022_v40 = vpop.f32.mrb[30].mxu0  ;;  %v1246_v41 = vpop.f32.mrb[29].mxu1 }
 0x14f   :  { %v1023_v42 = vadd.f32 %v2959_v23, %v1022_v40  ;;  %v1024_v43 = vpop.f32.mrb[31].mxu0  ;;  %v2975_v44 = vpop.f32.mrb[30].mxu1  ;;  %v2977_v45 = vadd.f32 %v1196_v4, %v1020_v37 }
 0x150   :  { %v1249_v46 = vpop.f32.mrb[31].mxu1 }
 0x151   :  { %v2979_v47 = vadd.f32 %v1199_v6, %v1023_v42 }
 0x154   :  { %v1027_v48 = vpop.f32.mrb[32].mxu0 }
 0x155   :  { %v1028_v49 = vadd.f32 %v2959_v23, %v1027_v48  ;;  %v1029_v50 = vpop.f32.mrb[33].mxu0  ;;  %v2982_v51 = vpop.f32.mrb[32].mxu1 }
 0x156   :  { %v1030_v52 = vpop.f32.mrb[34].mxu0  ;;  %v1254_v53 = vpop.f32.mrb[33].mxu1 }
 0x157   :  { %v1031_v54 = vadd.f32 %v2959_v23, %v1030_v52  ;;  %v1032_v55 = vpop.f32.mrb[35].mxu0  ;;  %v2985_v56 = vpop.f32.mrb[34].mxu1  ;;  %v2987_v57 = vadd.f32 %v1204_v8, %v1028_v49 }
 0x158   :  { %v1257_v58 = vpop.f32.mrb[35].mxu1 }
 0x159   :  { %v2989_v59 = vadd.f32 %v1207_v10, %v1031_v54 }
 0x15c   :  { %v1035_v60 = vpop.f32.mrb[36].mxu0 }
 0x15d   :  { %v1036_v61 = vadd.f32 %v2959_v23, %v1035_v60  ;;  %v1037_v62 = vpop.f32.mrb[37].mxu0  ;;  %v2992_v63 = vpop.f32.mrb[36].mxu1 }
 0x15e   :  { %v1038_v1 = vpop.f32.mrb[38].mxu0  ;;  %v1262_v2 = vpop.f32.mrb[37].mxu1 }
 0x15f   :  { %v1039_v3 = vadd.f32 %v2959_v23, %v1038_v1  ;;  %v1040_v4 = vpop.f32.mrb[39].mxu0  ;;  %v2995_v5 = vpop.f32.mrb[38].mxu1  ;;  %v2997_v6 = vadd.f32 %v1212_v0, %v1036_v61 }
 0x160   :  { %v1265_v7 = vpop.f32.mrb[39].mxu1 }
 0x161   :  { %v2999_v8 = vadd.f32 %v1215_v13, %v1039_v3  ;;  %v3013_v13 = vld [vmem:[%s3237_s3] sm:$0x7] }
 0x162   :  { %2004 = vmatprep.mubr.msk.f32.mxu1 %vm1503_vm1, %v3013_v13 }
 0x164   :  { %v1043_v9 = vpop.f32.mrb[40].mxu0 }
 0x165   :  { %v1044_v10 = vadd.f32 %v2959_v23, %v1043_v9  ;;  %v1045_v11 = vpop.f32.mrb[41].mxu0  ;;  %v3002_v12 = vpop.f32.mrb[40].mxu1 }
 0x166   :  { %v1046_v14 = vpop.f32.mrb[42].mxu0  ;;  %v1270_v16 = vpop.f32.mrb[41].mxu1 }
 0x167   :  { %v1047_v18 = vadd.f32 %v2959_v23, %v1046_v14  ;;  %v1048_v20 = vpop.f32.mrb[43].mxu0  ;;  %v3005_v22 = vpop.f32.mrb[42].mxu1  ;;  %v3008_v24 = vadd.f32 %v2948_v15, %v1044_v10 }
 0x168   :  { %v1273_v0 = vpop.f32.mrb[43].mxu1 }
 0x169   :  { %v3016_v25 = vadd.f32 %v2950_v17, %v1047_v18 }
 0x16c   :  { %v1051_v26 = vpop.f32.mrb[44].mxu0 }
 0x16d   :  { %v1052_v28 = vadd.f32 %v2959_v23, %v1051_v26  ;;  %v1053_v29 = vpop.f32.mrb[45].mxu0  ;;  %v3021_v30 = vpop.f32.mrb[44].mxu1 }
 0x16e   :  { %v1054_v15 = vpop.f32.mrb[46].mxu0  ;;  %v1278_v31 = vpop.f32.mrb[45].mxu1 }
 0x16f   :  { %v1055_v34 = vadd.f32 %v2959_v23, %v1054_v15  ;;  %v1056_v36 = vpop.f32.mrb[47].mxu0  ;;  %v3024_v37 = vpop.f32.mrb[46].mxu1  ;;  %v3027_v38 = vadd.f32 %v2952_v19, %v1052_v28 }
 0x170   :  { %v1281_v17 = vpop.f32.mrb[47].mxu1 }
 0x171   :  { %v3030_v40 = vadd.f32 %v2954_v21, %v1055_v34 }
 0x174   :  { %v1059_v41 = vpop.f32.mrb[48].mxu0 }
 0x175   :  { %v1060_v42 = vadd.f32 %v2959_v23, %v1059_v41  ;;  %v1061_v43 = vpop.f32.mrb[49].mxu0  ;;  %v3033_v46 = vpop.f32.mrb[48].mxu1 }
 0x176   :  { %v1062_v48 = vpop.f32.mrb[50].mxu0  ;;  %v3035_v49 = vpop.f32.mrb[49].mxu1 }
 0x177   :  { %v1063_v50 = vadd.f32 %v2959_v23, %v1062_v48  ;;  %v1064_v52 = vpop.f32.mrb[51].mxu0  ;;  %v3038_v53 = vpop.f32.mrb[50].mxu1  ;;  %v3041_v19 = vadd.f32 %v2962_v27, %v1060_v42 }
 0x178   :  { %v3043_v54 = vpop.f32.mrb[51].mxu1 }
 0x179   :  { %v3046_v21 = vadd.f32 %v2965_v32, %v1063_v50  ;;  %v1497_v32 = vld [vmem:[%s3238_s4] sm:$0x7] }
 0x17a   :  { %1500 = vperm.xlu0 %2242, %v1497_v32  }
 0x17c   :  { %v1067_v55 = vpop.f32.mrb[52].mxu0 }
 0x17d   :  { %v1068_v58 = vadd.f32 %v2959_v23, %v1067_v55  ;;  %v1069_v60 = vpop.f32.mrb[53].mxu0  ;;  %v3049_v61 = vpop.f32.mrb[52].mxu1 }
 0x17e   :  { %v1070_v62 = vpop.f32.mrb[54].mxu0  ;;  %v3051_v1 = vpop.f32.mrb[53].mxu1 }
 0x17f   :  { %v1071_v2 = vadd.f32 %v2959_v23, %v1070_v62  ;;  %v1072_v3 = vpop.f32.mrb[55].mxu0  ;;  %v3054_v4 = vpop.f32.mrb[54].mxu1  ;;  %v3057_v27 = vadd.f32 %v2972_v39, %v1068_v58 }
 0x180   :  { %v3062_v7 = vpop.f32.mrb[55].mxu1 }
 0x181   :  { %v3065_v9 = vadd.f32 %v2975_v44, %v1071_v2 }
 0x184   :  { %v1075_v10 = vpop.f32.mrb[56].mxu0 }
 0x185   :  { %v1076_v11 = vadd.f32 %v2959_v23, %v1075_v10  ;;  %v1077_v14 = vpop.f32.mrb[57].mxu0  ;;  %v3068_v16 = vpop.f32.mrb[56].mxu1 }
 0x186   :  { %v1078_v18 = vpop.f32.mrb[58].mxu0  ;;  %v3070_v20 = vpop.f32.mrb[57].mxu1 }
 0x187   :  { %v1079_v39 = vadd.f32 %v2959_v23, %v1078_v18  ;;  %v1080_v0 = vpop.f32.mrb[59].mxu0  ;;  %v3073_v26 = vpop.f32.mrb[58].mxu1  ;;  %v3076_v28 = vadd.f32 %v2982_v51, %v1076_v11 }
 0x188   :  { %v3078_v29 = vpop.f32.mrb[59].mxu1 }
 0x189   :  { %v3081_v44 = vadd.f32 %v2985_v56, %v1079_v39 }
 0x18c   :  { %v1083_v15 = vpop.f32.mrb[60].mxu0 }
 0x18d   :  { %v1084_v31 = vadd.f32 %v2959_v23, %v1083_v15  ;;  %v2033_v34 = vpop.f32.mrb[60].mxu1  ;;  %v1085_v36 = vpop.f32.mrb[61].mxu0 }
 0x18e   :  { %v1374_v17 = vadd.f32 %v2033_v34, %v2977_v45  ;;  %v1365_v41 = vpop.f32.mrb[61].mxu1  ;;  %v1086_v42 = vpop.f32.mrb[62].mxu0 }
 0x18f   :  { %v1366_v43 = vadd.f32 %v1365_v41, %v2967_v33  ;;  %v1087_v48 = vadd.f32 %v2959_v23, %v1086_v42  ;;  %v2034_v51 = vpop.f32.mrb[62].mxu1  ;;  %v1088_v50 = vpop.f32.mrb[63].mxu0  ;;  %v3088_v52 = vadd.f32 %v2992_v63, %v1084_v31 }
 0x190   :  { %v1377_v56 = vadd.f32 %v2034_v51, %v2979_v47  ;;  %v1368_v55 = vpop.f32.mrb[63].mxu1  ;;  %v1474_v45 = vmax.f32 %v1374_v17, 0.0 }
 0x191   :  { %v1369_v58 = vadd.f32 %v1368_v55, %v2969_v35  ;;  %v3093_v60 = vadd.f32 %v2995_v5, %v1087_v48  ;;  %v1472_v2 = vmax.f32 %v1366_v43, 0.0 }
 0x192   :  { %v1475_v62 = vmax.f32 %v1377_v56, 0.0 }
 0x193   :  { %v1473_v3 = vmax.f32 %v1369_v58, 0.0 }
 0x194   :  { %v3095_v33 = vpack.c.bf16 %v1475_v62, %v1474_v45  ;;  %v1091_v32 = vpop.f32.mrb[64].mxu0 }
 0x195   :  { %v3097_v10 = vpack.c.bf16 %v1473_v3, %v1472_v2  ;;  %v1092_v63 = vadd.f32 %v2959_v23, %v1091_v32  ;;  %v2037_v11 = vpop.f32.mrb[64].mxu1  ;;  %v1093_v14 = vpop.f32.mrb[65].mxu0 }
 0x196   :  { %v1390_v47 = vadd.f32 %v2037_v11, %v2997_v6  ;;  %v1381_v18 = vpop.f32.mrb[65].mxu1  ;;  %v1094_v35 = vpop.f32.mrb[66].mxu0 }
 0x197   :  { %v1382_v5 = vadd.f32 %v1381_v18, %v2987_v57  ;;  %v1095_v39 = vadd.f32 %v2959_v23, %v1094_v35  ;;  %v2038_v0 = vpop.f32.mrb[66].mxu1  ;;  %v1096_v15 = vpop.f32.mrb[67].mxu0  ;;  %v3104_v31 = vadd.f32 %v3002_v12, %v1092_v63 }
 0x198   :  { %v1393_v34 = vadd.f32 %v2038_v0, %v2999_v8  ;;  %v1384_v36 = vpop.f32.mrb[67].mxu1  ;;  %v1478_v6 = vmax.f32 %v1390_v47, 0.0 }
 0x199   :  { %v1385_v17 = vadd.f32 %v1384_v36, %v2989_v59  ;;  %v3109_v41 = vadd.f32 %v3005_v22, %v1095_v39  ;;  %v1476_v43 = vmax.f32 %v1382_v5, 0.0 }
 0x19a   :  { %v1479_v42 = vmax.f32 %v1393_v34, 0.0 }
 0x19b   :  { %v1477_v48 = vmax.f32 %v1385_v17, 0.0 }
 0x19c   :  { %v3111_v57 = vpack.c.bf16 %v1479_v42, %v1478_v6  ;;  %v1099_v51 = vpop.f32.mrb[68].mxu0 }
 0x19d   :  { %v2066_v8 = vpack.c.bf16 %v1477_v48, %v1476_v43  ;;  %v1100_v50 = vadd.f32 %v2959_v23, %v1099_v51  ;;  %v2041_v59 = vpop.f32.mrb[68].mxu1  ;;  %v1101_v56 = vpop.f32.mrb[69].mxu0 }
 0x19e   :  { %v1406_v22 = vadd.f32 %v2041_v59, %v3027_v38  ;;  %v1397_v55 = vpop.f32.mrb[69].mxu1  ;;  %v1102_v58 = vpop.f32.mrb[70].mxu0 }
 0x19f   :  { %v1398_v45 = vadd.f32 %v1397_v55, %v3008_v24  ;;  %v1103_v62 = vadd.f32 %v2959_v23, %v1102_v58  ;;  %v2042_v2 = vpop.f32.mrb[70].mxu1  ;;  %2068 = vmatprep.subr.msk.bf16.mxu1 %vm3115_vm2, %v2066_v8  ;;  %v1104_v3 = vpop.f32.mrb[71].mxu0  ;;  %v3126_v32 = vadd.f32 %v3021_v30, %v1100_v50 }
 0x1a0   :  { %v1409_v63 = vadd.f32 %v2042_v2, %v3030_v40  ;;  %v1400_v11 = vpop.f32.mrb[71].mxu1  ;;  %v1482_v47 = vmax.f32 %v1406_v22, 0.0 }
 0x1a1   :  { %v1401_v14 = vadd.f32 %v1400_v11, %v3016_v25  ;;  %v3131_v38 = vadd.f32 %v3024_v37, %v1103_v62  ;;  %v1480_v18 = vmax.f32 %v1398_v45, 0.0 }
 0x1a2   :  { %v1483_v24 = vmax.f32 %v1409_v63, 0.0 }
 0x1a3   :  { %v1481_v35 = vmax.f32 %v1401_v14, 0.0 }
 0x1a4   :  { %v3133_v5 = vpack.c.bf16 %v1483_v24, %v1482_v47  ;;  %v1140_v39 = vpop.f32.mrb[0].mxu0 }
 0x1a5   :  { %v3135_v0 = vpack.c.bf16 %v1481_v35, %v1480_v18  ;;  %v2154_v30 = vadd.f32 %v2959_v23, %v1140_v39  ;;  %v2045_v15 = vpop.f32.mrb[72].mxu1  ;;  %v1142_v34 = vpop.f32.mrb[1].mxu0 }
 0x1a6   :  { %v1422_v40 = vadd.f32 %v2045_v15, %v3057_v27  ;;  %v1413_v36 = vpop.f32.mrb[73].mxu1  ;;  %v1143_v25 = vpop.f32.mrb[2].mxu0 }
 0x1a7   :  { %v1318_v37 = vadd.f32 %v2154_v30, %v3035_v49  ;;  %v1414_v17 = vadd.f32 %v1413_v36, %v3041_v19  ;;  %v2155_v6 = vadd.f32 %v2959_v23, %v1143_v25  ;;  %v2046_v42 = vpop.f32.mrb[74].mxu1  ;;  %v1145_v43 = vpop.f32.mrb[3].mxu0 }
 0x1a8   :  { %v1425_v48 = vadd.f32 %v2046_v42, %v3065_v9  ;;  %v1416_v51 = vpop.f32.mrb[75].mxu1  ;;  %v1486_v59 = vmax.f32 %v1422_v40, 0.0 }
 0x1a9   :  { %v1321_v8 = vadd.f32 %v2155_v6, %v3043_v54  ;;  %v1417_v50 = vadd.f32 %v1416_v51, %v3046_v21  ;;  %v1460_v27 = vmax.f32 %v1318_v37, 0.0  ;;  %v1484_v22 = vmax.f32 %v1414_v17, 0.0 }
 0x1aa   :  { %v1487_v56 = vmax.f32 %v1425_v48, 0.0 }
 0x1ab   :  { %v1461_v55 = vmax.f32 %v1321_v8, 0.0  ;;  %v1485_v58 = vmax.f32 %v1417_v50, 0.0 }
 0x1ac   :  { %v3145_v49 = vpack.c.bf16 %v1487_v56, %v1486_v59  ;;  %v1148_v19 = vpop.f32.mrb[4].mxu0 }
 0x1ad   :  { %v2069_v45 = vpack.c.bf16 %v1461_v55, %v1460_v27  ;;  %v3147_v62 = vpack.c.bf16 %v1485_v58, %v1484_v22  ;;  %v2156_v2 = vadd.f32 %v2959_v23, %v1148_v19  ;;  %v2049_v9 = vpop.f32.mrb[76].mxu1  ;;  %v1150_v3 = vpop.f32.mrb[5].mxu0 }
 0x1ae   :  { %v1438_v54 = vadd.f32 %v2049_v9, %v3088_v52  ;;  %v1429_v63 = vpop.f32.mrb[77].mxu1  ;;  %v1151_v21 = vpop.f32.mrb[6].mxu0 }
 0x1af   :  { %v1326_v11 = vadd.f32 %v2156_v2, %v3033_v46  ;;  %v1430_v14 = vadd.f32 %v1429_v63, %v3076_v28  ;;  %v2157_v47 = vadd.f32 %v2959_v23, %v1151_v21  ;;  %v2050_v24 = vpop.f32.mrb[78].mxu1  ;;  %v1153_v18 = vpop.f32.mrb[7].mxu0  ;;  %2071 = vmatpush3.bf16.xpose.msk.msra.mxu1 %vm3115_vm2, %v2069_v45 }
 0x1b0   :  { %v1441_v35 = vadd.f32 %v2050_v24, %v3093_v60  ;;  %v1432_v39 = vpop.f32.mrb[79].mxu1  ;;  %2074 = vmatprep.subr.msk.bf16.mxu1 %vm3115_vm2, %v3111_v57  ;;  %v1490_v30 = vmax.f32 %v1438_v54, 0.0 }
 0x1b1   :  { %v1329_v52 = vadd.f32 %v2157_v47, %v3038_v53  ;;  %v1433_v46 = vadd.f32 %v1432_v39, %v3081_v44  ;;  %v1462_v15 = vmax.f32 %v1326_v11, 0.0  ;;  %v1488_v34 = vmax.f32 %v1430_v14, 0.0 }
 0x1b2   :  { %v1491_v28 = vmax.f32 %v1441_v35, 0.0 }
 0x1b3   :  { %v1463_v40 = vmax.f32 %v1329_v52, 0.0  ;;  %v1489_v36 = vmax.f32 %v1433_v46, 0.0 }
 0x1b4   :  { %v3162_v25 = vpack.c.bf16 %v1491_v28, %v1490_v30  ;;  %v1156_v37 = vpop.f32.mrb[8].mxu0 }
 0x1b5   :  { %v2075_v17 = vpack.c.bf16 %v1463_v40, %v1462_v15  ;;  %v3164_v60 = vpack.c.bf16 %v1489_v36, %v1488_v34  ;;  %v2158_v6 = vadd.f32 %v2959_v23, %v1156_v37  ;;  %v2053_v42 = vpop.f32.mrb[80].mxu1  ;;  %v1158_v57 = vpop.f32.mrb[9].mxu0 }
 0x1b6   :  { %v1454_v53 = vadd.f32 %v2053_v42, %v3126_v32  ;;  %v1445_v43 = vpop.f32.mrb[81].mxu1  ;;  %v1159_v44 = vpop.f32.mrb[10].mxu0 }
 0x1b7   :  { %v1334_v48 = vadd.f32 %v2158_v6, %v3051_v1  ;;  %v1446_v51 = vadd.f32 %v1445_v43, %v3104_v31  ;;  %v2159_v8 = vadd.f32 %v2959_v23, %v1159_v44  ;;  %v2054_v50 = vpop.f32.mrb[82].mxu1  ;;  %v1161_v59 = vpop.f32.mrb[11].mxu0  ;;  %2077 = vmatpush3.bf16.xpose.msk.msra.mxu1 %vm3115_vm2, %v2075_v17 }
 0x1b8   :  { %v1457_v56 = vadd.f32 %v2054_v50, %v3131_v38  ;;  %v1448_v27 = vpop.f32.mrb[83].mxu1  ;;  %2080 = vmatprep.subr.msk.bf16.mxu1 %vm3115_vm2, %v3135_v0  ;;  %v1494_v22 = vmax.f32 %v1454_v53, 0.0 }
 0x1b9   :  { %v1337_v32 = vadd.f32 %v2159_v8, %v3062_v7  ;;  %v1449_v1 = vadd.f32 %v1448_v27, %v3109_v41  ;;  %v1464_v55 = vmax.f32 %v1334_v48, 0.0  ;;  %v1492_v58 = vmax.f32 %v1446_v51, 0.0 }
 0x1ba   :  { %v1495_v31 = vmax.f32 %v1457_v56, 0.0 }
 0x1bb   :  { %v1465_v19 = vmax.f32 %v1337_v32, 0.0  ;;  %v1493_v45 = vmax.f32 %v1449_v1, 0.0 }
 0x1bc   :  { %v2119_v2 = vpack.c.bf16 %v1495_v31, %v1494_v22  ;;  %v1164_v9 = vpop.f32.mrb[12].mxu0 }
 0x1bd   :  { %v2081_v3 = vpack.c.bf16 %v1465_v19, %v1464_v55  ;;  %v2115_v54 = vpack.c.bf16 %v1493_v45, %v1492_v58  ;;  %v2160_v38 = vadd.f32 %v2959_v23, %v1164_v9  ;;  %v1166_v63 = vpop.f32.mrb[13].mxu0 }
 0x1be   :  { %v1167_v21 = vpop.f32.mrb[14].mxu0 }
 0x1bf   :  { %v1342_v0 = vadd.f32 %v2160_v38, %v3049_v61  ;;  %v2161_v7 = vadd.f32 %v2959_v23, %v1167_v21  ;;  %v1169_v11 = vpop.f32.mrb[15].mxu0  ;;  %2083 = vmatpush3.bf16.xpose.msk.msra.mxu1 %vm3115_vm2, %v2081_v3 }
 0x1c0   :  { %2086 = vmatprep.subr.msk.bf16.mxu1 %vm3115_vm2, %v3133_v5 }
 0x1c1   :  { %v1345_v41 = vadd.f32 %v2161_v7, %v3054_v4  ;;  %v1466_v14 = vmax.f32 %v1342_v0, 0.0 }
 0x1c3   :  { %v1467_v47 = vmax.f32 %v1345_v41, 0.0 }
 0x1c4   :  { %v1172_v24 = vpop.f32.mrb[16].mxu0 }
 0x1c5   :  { %v2087_v18 = vpack.c.bf16 %v1467_v47, %v1466_v14  ;;  %v2162_v35 = vadd.f32 %v2959_v23, %v1172_v24  ;;  %v1174_v39 = vpop.f32.mrb[17].mxu0 }
 0x1c6   :  { %v1175_v61 = vpop.f32.mrb[18].mxu0 }
 0x1c7   :  { %v1350_v52 = vadd.f32 %v2162_v35, %v3070_v20  ;;  %v2163_v46 = vadd.f32 %v2959_v23, %v1175_v61  ;;  %v1177_v30 = vpop.f32.mrb[19].mxu0  ;;  %2089 = vmatpush3.bf16.xpose.msk.msra.mxu1 %vm3115_vm2, %v2087_v18 }
 0x1c8   :  { %2092 = vmatprep.subr.msk.bf16.mxu1 %vm3115_vm2, %v3147_v62 }
 0x1c9   :  { %v1353_v4 = vadd.f32 %v2163_v46, %v3078_v29  ;;  %v1468_v5 = vmax.f32 %v1350_v52, 0.0 }
 0x1cb   :  { %v1469_v28 = vmax.f32 %v1353_v4, 0.0 }
 0x1cc   :  { %v1180_v15 = vpop.f32.mrb[20].mxu0 }
 0x1cd   :  { %v2093_v34 = vpack.c.bf16 %v1469_v28, %v1468_v5  ;;  %v2164_v40 = vadd.f32 %v2959_v23, %v1180_v15  ;;  %v1182_v36 = vpop.f32.mrb[21].mxu0 }
 0x1ce   :  { %v1183_v20 = vpop.f32.mrb[22].mxu0 }
 0x1cf   :  { %v1358_v37 = vadd.f32 %v2164_v40, %v3068_v16  ;;  %v2165_v17 = vadd.f32 %v2959_v23, %v1183_v20  ;;  %v1185_v6 = vpop.f32.mrb[23].mxu0  ;;  %2095 = vmatpush3.bf16.xpose.msk.msra.mxu1 %vm3115_vm2, %v2093_v34  ;;  %v2406_v23 = vmov 0.0|0.0   ;;  %v2408_v16 = vmov 0.0  }
 0x1d0   :  { %2098 = vmatprep.subr.msk.bf16.mxu1 %vm3115_vm2, %v3145_v49 }
 0x1d1   :  { %v1361_v29 = vadd.f32 %v2165_v17, %v3073_v26  ;;  %v1470_v62 = vmax.f32 %v1358_v37, 0.0 }
 0x1d3   :  { %v1471_v42 = vmax.f32 %v1361_v29, 0.0 }
 0x1d5   :  { %v2099_v57 = vpack.c.bf16 %v1471_v42, %v1470_v62 }
 0x1d7   :  { %2101 = vmatpush3.bf16.xpose.msk.msra.mxu1 %vm3115_vm2, %v2099_v57 }
 0x1d8   :  { %2104 = vmatprep.subr.msk.bf16.mxu1 %vm3115_vm2, %v3164_v60 }
 0x1df   :  { %2107 = vmatpush3.bf16.xpose.msk.msra.mxu1 %vm3115_vm2, %v3097_v10 }
 0x1e0   :  { %2110 = vmatprep.subr.msk.bf16.mxu1 %vm3115_vm2, %v3162_v25 }
 0x1e7   :  { %2113 = vmatpush3.bf16.xpose.msk.msra.mxu1 %vm3115_vm2, %v3095_v33 }
 0x1e8   :  { %2114 = vmatprep.subr.bf16.mxu1 %v2406_v23 }
 0x1ee   :  { %2005 = vmatmul.mubr.msk.f32.vlgmr.msra.gmra.mrb[84].mxu1 %vm1503_vm1, %v3013_v13 }
 0x1ef   :  { %2117 = vmatpush3.bf16.xpose.msk.msra.mxu1 %vm3115_vm2, %v2115_v54  ;;  %2063 = vmatprep.mubr.msk.f32.mxu1 %vm2407_vm3, %v2408_v16 }
 0x1f0   :  { %2118 = vmatprep.subr.bf16.mxu1 %v2406_v23 }
 0x1f7   :  { %2121 = vmatpush3.bf16.xpose.msk.msra.mxu1 %vm3115_vm2, %v2119_v2 }
 0x1f9   :  { %v1501_v26 = vpop.permute.xlu0 %1500 }
 0x1fe   :  { %2064 = vmatmul.mubr.msk.f32.vlgmr.msra.gmra.mrb[86].mxu1 %vm1503_vm1, %v3013_v13 }
 0x2c1   :  { %v1681_v33 = vpop.f32.mrb[84].mxu1 }
 0x2c2   :  { %v1682_v10 = vadd.f32 %v1681_v33, %v1501_v26  ;;  %v1683_v49 = vpop.f32.mrb[85].mxu1 }
 0x2c3   :  { %v1684_v25 = vadd.f32 %v1683_v49, %v1501_v26 }
 0x2c5   :  { %v1758_v60 = vcombine.low %v1682_v10, %v1684_v25 }
 0x2c7   :  { %1760 = vst [vmem:[%s3239_s5] sm:$0x77] %v1758_v60 }
 0x2d1   :  { %v1752_v53 = vpop.f32.mrb[86].mxu1 }
 0x2d2   :  { %v1753_v43 = vadd.f32 %v1752_v53, %v1501_v26  ;;  %v2065_v44 = vpop.f32.mrb[87].mxu1 }
 0x2d4   :  { %1762 = vst.msk [vmem:[%s3239_s5 + $0x8] sm:$0x7] %vm1761_vm4, %v1753_v43 }

</bundles_post_ra>
